<compile_context>
chip_gen: v6e
topology: v6e:2x2x1
jax: 0.10.0
libtpu: 0.0.40
codegen_flags: <defaults>
</compile_context>

<pallas_src>
import math
import functools

import jax
import jax.numpy as jnp
from jax import lax
from jax.experimental import pallas as pl
from jax.experimental.pallas import tpu as pltpu

CLIP_VAL = 5.0                      # default_hyperparams['clip_val']
LOGVAR_MIN = math.log(1e-4)         # clamp(min=np.log(0.0001)) on g0_logvar
F1_DIM = 80                         # hidden width of self.f1

FUSED_ORDER = (
    'enc_f_w', 'enc_f_b', 'enc_b_w', 'enc_b_b',
    'con_w', 'con_b', 'gen_w', 'gen_b',
    'g0_w', 'g0_b', 'u_w', 'u_b',
    'fac_w', 'fac_b', 'f1_w', 'f1_b', 'cl_w', 'cl_b',
)


# --------------------------------------------------------------------------
# The kernel
# --------------------------------------------------------------------------
def _lfads_kernel(
    # data
    x_ref, y_ref, ng_ref, nu_ref, prior_ref,
    # fused weights / biases
    enc_f_w_ref, enc_f_b_ref, enc_b_w_ref, enc_b_b_ref,
    con_w_ref, con_b_ref, gen_w_ref, gen_b_ref,
    g0_w_ref, g0_b_ref, u_w_ref, u_b_ref,
    fac_w_ref, fac_b_ref, f1_w_ref, f1_b_ref, cl_w_ref, cl_b_ref,
    # outputs
    comb_ref, kl_ref, rec_ref,
    # scratch
    efcon_ref, ebcon_ref,
    *, n_batch_real,
):
    T, B, _ = x_ref.shape
    E = enc_f_w_ref.shape[1] // 8      # g0 / controller-encoder dim
    K = con_w_ref.shape[1] // 4        # controller dim
    G = gen_w_ref.shape[1] // 4        # generator dim
    U = u_w_ref.shape[1] // 2          # inferred-input dim
    Dout = cl_w_ref.shape[1]

    # Mask over padded batch rows (losses only over the real batch rows).
    row_ids = lax.broadcasted_iota(jnp.int32, (B, 1), 0)
    mask = (row_ids < n_batch_real).astype(jnp.float32)

    # ---- hoisted weight loads & pre-broadcast biases (loop invariants) ----
    def bias(ref):
        b = ref[...]
        return jnp.broadcast_to(b, (B, b.shape[1]))

    w_enc_f, b_enc_f = enc_f_w_ref[...], bias(enc_f_b_ref)
    w_enc_b, b_enc_b = enc_b_w_ref[...], bias(enc_b_b_ref)
    w_con, b_con = con_w_ref[...], bias(con_b_ref)
    w_gen, b_gen = gen_w_ref[...], bias(gen_b_ref)
    w_u, b_u = u_w_ref[...], bias(u_b_ref)
    w_fac, b_fac = fac_w_ref[...], bias(fac_b_ref)
    w_f1, b_f1 = f1_w_ref[...], bias(f1_b_ref)
    w_cl, b_cl = cl_w_ref[...], bias(cl_b_ref)

    # scalar priors from SMEM
    g0_prior_mu = prior_ref[0]
    g0_prior_lv = prior_ref[1]
    u_prior_mu = prior_ref[2]
    u_prior_lv = prior_ref[3]

    def dot(a, w):
        return jnp.dot(a, w, preferred_element_type=jnp.float32)

    def fused_gru(gates, h, H):
        """gates = [r|z pre-acts (2H) | n_input (H) | n_hidden (H)] (biased)."""
        rz = jax.nn.sigmoid(gates[:, :2 * H])        # one EUP chain for r and z
        r, z = rz[:, :H], rz[:, H:]
        n = jnp.tanh(gates[:, 2 * H:3 * H] + r * gates[:, 3 * H:])
        return (1.0 - z) * n + z * h

    # ------------------------------ encode ------------------------------
    efgen = jnp.zeros((B, E), jnp.float32)
    ebgen = jnp.zeros((B, E), jnp.float32)
    efcon = jnp.zeros((B, E), jnp.float32)
    ebcon = jnp.zeros((B, E), jnp.float32)
    for t in range(1, T + 1):                        # fully unrolled (static T)
        x_f = x_ref[t - 1]                           # x[:, t-1]
        x_b = x_ref[T - t]                           # x[:, -t]
        gates_f = dot(jnp.concatenate([x_f, efgen, efcon], axis=1), w_enc_f) + b_enc_f
        gates_b = dot(jnp.concatenate([x_b, ebgen, ebcon], axis=1), w_enc_b) + b_enc_b
        efgen = jnp.minimum(fused_gru(gates_f[:, :4 * E], efgen, E), CLIP_VAL)
        efcon = jnp.minimum(fused_gru(gates_f[:, 4 * E:], efcon, E), CLIP_VAL)
        ebgen = jnp.minimum(fused_gru(gates_b[:, :4 * E], ebgen, E), CLIP_VAL)
        ebcon = jnp.minimum(fused_gru(gates_b[:, 4 * E:], ebcon, E), CLIP_VAL)
        efcon_ref[t - 1] = efcon                     # efcon state at time t
        ebcon_ref[T - t] = ebcon                     # ebcon state at time T - t

    # fused fc_g0mean | fc_g0logvar on cat(efgen, ebgen)
    g0_stats = dot(jnp.concatenate([efgen, ebgen], axis=1), g0_w_ref[...]) + bias(g0_b_ref)
    g0_mean = g0_stats[:, :G]
    g0_logvar = jnp.maximum(g0_stats[:, G:], LOGVAR_MIN)
    g = ng_ref[...] * jnp.exp(0.5 * g0_logvar) + g0_mean

    # KL(g0 posterior || prior), masked to real batch rows.
    g0_plv = jnp.zeros_like(g0_logvar) + g0_prior_lv
    g0_pmu = jnp.zeros_like(g0_mean) + g0_prior_mu
    kl = 0.5 * jnp.sum(
        (g0_plv - g0_logvar + jnp.exp(g0_logvar - g0_plv)
         + ((g0_mean - g0_pmu) * jnp.exp(-0.5 * g0_plv)) ** 2 - 1.0) * mask,
        keepdims=True)

    f = dot(g, w_fac) + b_fac

    # hoisted u-prior broadcasts (reused every generate step)
    u_plv = jnp.zeros((B, U), jnp.float32) + u_prior_lv
    u_pmu = jnp.zeros((B, U), jnp.float32) + u_prior_mu
    u_pinv_std = jnp.exp(-0.5 * u_plv)

    # ----------------------------- generate -----------------------------
    c = jnp.zeros((B, K), jnp.float32)
    rec = jnp.zeros((1, 1), jnp.float32)
    for t in range(T):                               # fully unrolled (static T)
        ef = efcon_ref[t]                            # efcon state at time t + 1
        eb = ebcon_ref[t]                            # ebcon state at time t
        gates_c = dot(jnp.concatenate([ef, eb, f, c], axis=1), w_con) + b_con
        c = jnp.minimum(fused_gru(gates_c, c, K), CLIP_VAL)

        u_stats = dot(c, w_u) + b_u                  # fused fc_umean | fc_ulogvar
        u_mean = u_stats[:, :U]
        u_logvar = u_stats[:, U:]
        u = nu_ref[t] * jnp.exp(0.5 * u_logvar) + u_mean
        kl = kl + 0.5 * jnp.sum(
            (u_plv - u_logvar + jnp.exp(u_logvar - u_plv)
             + ((u_mean - u_pmu) * u_pinv_std) ** 2 - 1.0) * mask,
            keepdims=True)

        gates_g = dot(jnp.concatenate([u, g], axis=1), w_gen) + b_gen
        g = jnp.clip(fused_gru(gates_g, g, G), 0.0, CLIP_VAL)

        f = dot(g, w_fac) + b_fac
        h1 = jax.nn.relu(dot(f, w_f1) + b_f1)
        res = dot(h1, w_cl) + b_cl

        rec = rec + jnp.sum(((y_ref[t] - res) ** 2) * mask, keepdims=True)
        comb_ref[t] = jnp.concatenate([res, f, u], axis=1)   # one lane-dense store

    kl_ref[...] = kl / float(n_batch_real)
    rec_ref[...] = rec / float(n_batch_real * Dout * T)


# --------------------------------------------------------------------------
# Weight fusion (done once, outside the kernel)
# --------------------------------------------------------------------------
def _fuse_gru(wih, whh, bih, bhh):
    """Pack a PyTorch GRUCell into one (in+H, 4H) matmul: [rz | n_in | n_hid]."""
    in_dim = wih.shape[0]
    H = whh.shape[0]
    W = jnp.zeros((in_dim + H, 4 * H), jnp.float32)
    W = W.at[:in_dim, :2 * H].set(wih[:, :2 * H])
    W = W.at[in_dim:, :2 * H].set(whh[:, :2 * H])
    W = W.at[:in_dim, 2 * H:3 * H].set(wih[:, 2 * H:])
    W = W.at[in_dim:, 3 * H:].set(whh[:, 2 * H:])
    b = jnp.concatenate([bih[:, :2 * H] + bhh[:, :2 * H],
                         bih[:, 2 * H:], bhh[:, 2 * H:]], axis=1)
    return W, b


def _fuse_enc_pair(wg, bg, wc, bc, in_dim, E):
    """Two fused GRUs sharing x -> one (in+2E, 8E) matmul (rows: x, h_gen, h_con)."""
    W = jnp.zeros((in_dim + 2 * E, 8 * E), jnp.float32)
    W = W.at[:in_dim, :4 * E].set(wg[:in_dim])
    W = W.at[in_dim:in_dim + E, :4 * E].set(wg[in_dim:])
    W = W.at[:in_dim, 4 * E:].set(wc[:in_dim])
    W = W.at[in_dim + E:, 4 * E:].set(wc[in_dim:])
    b = jnp.concatenate([bg, bc], axis=1)
    return W, b


def prepare_fused_params(p):
    """Build the fused / concatenated weights consumed by the kernel."""
    Din = p['egf_wih'].shape[0]
    E = p['egf_whh'].shape[0]

    wgf, bgf = _fuse_gru(p['egf_wih'], p['egf_whh'], p['egf_bih'], p['egf_bhh'])
    wcf, bcf = _fuse_gru(p['ecf_wih'], p['ecf_whh'], p['ecf_bih'], p['ecf_bhh'])
    wgb, bgb = _fuse_gru(p['egb_wih'], p['egb_whh'], p['egb_bih'], p['egb_bhh'])
    wcb, bcb = _fuse_gru(p['ecb_wih'], p['ecb_whh'], p['ecb_bih'], p['ecb_bhh'])

    f = {}
    f['enc_f_w'], f['enc_f_b'] = _fuse_enc_pair(wgf, bgf, wcf, bcf, Din, E)
    f['enc_b_w'], f['enc_b_b'] = _fuse_enc_pair(wgb, bgb, wcb, bcb, Din, E)
    f['con_w'], f['con_b'] = _fuse_gru(p['con_wih'], p['con_whh'],
                                       p['con_bih'], p['con_bhh'])
    f['gen_w'], f['gen_b'] = _fuse_gru(p['gen_wih'], p['gen_whh'],
                                       p['gen_bih'], p['gen_bhh'])
    f['g0_w'] = jnp.concatenate([p['g0m_w'], p['g0v_w']], axis=1)
    f['g0_b'] = jnp.concatenate([p['g0m_b'], p['g0v_b']], axis=1)
    f['u_w'] = jnp.concatenate([p['um_w'], p['uv_w']], axis=1)
    f['u_b'] = jnp.concatenate([p['um_b'], p['uv_b']], axis=1)
    for k in ('fac_w', 'fac_b', 'f1_w', 'f1_b', 'cl_w', 'cl_b'):
        f[k] = p[k]
    return f


# --------------------------------------------------------------------------
# Wrapper
# --------------------------------------------------------------------------
@jax.jit
def lfads_forward(fused, priors, x, y, noise_g, noise_u):
    """x, y: (B, T, D) batch-major (PyTorch convention). Returns
    (output, factors, inferred_inputs, kl_loss, recon_loss)."""
    B, T, _ = x.shape
    Dout = y.shape[-1]
    E = fused['enc_f_w'].shape[1] // 8
    F = fused['fac_w'].shape[1]
    U = fused['u_w'].shape[1] // 2
    B_pad = max(8, ((B + 7) // 8) * 8)               # fill sublanes

    def pad_b(a):
        return jnp.pad(a.astype(jnp.float32),
                       ((0, B_pad - B),) + ((0, 0),) * (a.ndim - 1))

    xt = jnp.transpose(pad_b(x), (1, 0, 2))          # time-major (T, B_pad, Din)
    yt = jnp.transpose(pad_b(y), (1, 0, 2))
    nut = jnp.transpose(pad_b(noise_u), (1, 0, 2))
    ngp = pad_b(noise_g)

    flat = [fused[k] for k in FUSED_ORDER]

    vmem = pl.BlockSpec(memory_space=pltpu.MemorySpace.VMEM)
    smem = pl.BlockSpec(memory_space=pltpu.MemorySpace.SMEM)
    in_specs = [vmem, vmem, vmem, vmem, smem] + [vmem] * len(flat)
    out_shape = (
        jax.ShapeDtypeStruct((T, B_pad, Dout + F + U), jnp.float32),  # [res|f|u]
        jax.ShapeDtypeStruct((1, 1), jnp.float32),                    # kl loss
        jax.ShapeDtypeStruct((1, 1), jnp.float32),                    # recon loss
    )
    out_specs = (vmem, vmem, vmem)
    scratch_shapes = [
        pltpu.VMEM((T, B_pad, E), jnp.float32),      # efcon states (times 1..T)
        pltpu.VMEM((T, B_pad, E), jnp.float32),      # ebcon states (times 0..T-1)
    ]

    kernel = functools.partial(_lfads_kernel, n_batch_real=B)
    comb, kl, rec = pl.pallas_call(
        kernel,
        out_shape=out_shape,
        in_specs=in_specs,
        out_specs=out_specs,
        scratch_shapes=scratch_shapes,
    )(xt, yt, ngp, nut, priors.astype(jnp.float32), *flat)

    comb = jnp.transpose(comb[:, :B], (1, 0, 2))     # (B, T, Dout+F+U)
    out = comb[..., :Dout]
    fac = comb[..., Dout:Dout + F]
    u = comb[..., Dout + F:]
    return out, fac, u, kl[0, 0], rec[0, 0]


# --------------------------------------------------------------------------
# Deterministic parameter initialization (mirrors LFADS.__init__)
# --------------------------------------------------------------------------
def init_lfads_params(key, inputs_dim, output_dim, value1, value2, u_dim=2):
    g_dim = g0_enc = c_enc = ctrl = value1
    factors = value2
    kit = iter(jax.random.split(key, 48))

    def gru(in_dim, hid):
        w_ih = jax.random.normal(next(kit), (3 * hid, in_dim), jnp.float32) * (in_dim ** -0.5)
        w_hh = jax.random.normal(next(kit), (3 * hid, hid), jnp.float32) * (hid ** -0.5)
        bnd = 1.0 / math.sqrt(hid)
        b_ih = jax.random.uniform(next(kit), (3 * hid,), jnp.float32, -bnd, bnd)
        b_hh = jax.random.uniform(next(kit), (3 * hid,), jnp.float32, -bnd, bnd)
        return w_ih.T, w_hh.T, b_ih.reshape(1, -1), b_hh.reshape(1, -1)

    def linear(in_dim, out_dim, std=None, normalize_rows=False):
        s = (in_dim ** -0.5) if std is None else std
        w = jax.random.normal(next(kit), (out_dim, in_dim), jnp.float32) * s
        if normalize_rows:  # F.normalize(weight, dim=1)
            w = w / jnp.maximum(jnp.linalg.norm(w, axis=1, keepdims=True), 1e-12)
        bnd = 1.0 / math.sqrt(in_dim)
        b = jax.random.uniform(next(kit), (out_dim,), jnp.float32, -bnd, bnd)
        return w.T, b.reshape(1, -1)

    p = {}
    p['egf_wih'], p['egf_whh'], p['egf_bih'], p['egf_bhh'] = gru(inputs_dim, g0_enc)
    p['egb_wih'], p['egb_whh'], p['egb_bih'], p['egb_bhh'] = gru(inputs_dim, g0_enc)
    p['ecf_wih'], p['ecf_whh'], p['ecf_bih'], p['ecf_bhh'] = gru(inputs_dim, c_enc)
    p['ecb_wih'], p['ecb_whh'], p['ecb_bih'], p['ecb_bhh'] = gru(inputs_dim, c_enc)
    p['con_wih'], p['con_whh'], p['con_bih'], p['con_bhh'] = gru(2 * c_enc + factors, ctrl)
    p['gen_wih'], p['gen_whh'], p['gen_bih'], p['gen_bhh'] = gru(u_dim, g_dim)

    p['g0m_w'], p['g0m_b'] = linear(2 * g0_enc, g_dim)
    p['g0v_w'], p['g0v_b'] = linear(2 * g0_enc, g_dim)
    p['um_w'], p['um_b'] = linear(ctrl, u_dim)
    p['uv_w'], p['uv_b'] = linear(ctrl, u_dim)
    p['fac_w'], p['fac_b'] = linear(g_dim, factors, std=1.0, normalize_rows=True)
    p['f1_w'], p['f1_b'] = linear(factors, F1_DIM, std=1.0)
    p['cl_w'], p['cl_b'] = linear(F1_DIM, output_dim, std=1.0)

    # [g0_prior_mu, g0_prior_logkappa, u_prior_mu, u_prior_logkappa]
    priors = jnp.array([0.0, math.log(0.1), 0.0, math.log(0.1)], jnp.float32)
    return p, priors


# --------------------------------------------------------------------------
# Main
# --------------------------------------------------------------------------
if __name__ == "__main__":
    B, T = 2, 8
    inputs_dim, output_dim = 16, 16
    value1, value2 = 32, 8          # g_dim / encoder / controller dims ; factors_dim
    u_dim = 2

    key = jax.random.PRNGKey(0)
    k_param, k_x, k_y, k_ng, k_nu = jax.random.split(key, 5)

    params, priors = init_lfads_params(k_param, inputs_dim, output_dim,
                                       value1, value2, u_dim)
    fused = prepare_fused_params(params)

    x = jax.random.normal(k_x, (B, T, inputs_dim), jnp.float32)
    y = jax.random.normal(k_y, (B, T, output_dim), jnp.float32)
    noise_g = jax.random.normal(k_ng, (B, value1), jnp.float32)      # torch.randn for g
    noise_u = jax.random.normal(k_nu, (B, T, u_dim), jnp.float32)    # torch.randn for u

    out, factors, u_infer, kl_loss, recon_loss = lfads_forward(
        fused, priors, x, y, noise_g, noise_u)
    jax.block_until_ready((out, factors, u_infer, kl_loss, recon_loss))
    print("KERNEL_OK")
</pallas_src>

<mosaic_0001>
module attributes {stable_mosaic.version = 11 : i64} {
  func.func @_lfads_kernel(%arg0: memref<8x8x16xf32, #tpu.memory_space<vmem>>, %arg1: memref<8x8x16xf32, #tpu.memory_space<vmem>>, %arg2: memref<8x32xf32, #tpu.memory_space<vmem>>, %arg3: memref<8x8x2xf32, #tpu.memory_space<vmem>>, %arg4: memref<4xf32, #tpu.memory_space<smem>>, %arg5: memref<80x256xf32, #tpu.memory_space<vmem>>, %arg6: memref<1x256xf32, #tpu.memory_space<vmem>>, %arg7: memref<80x256xf32, #tpu.memory_space<vmem>>, %arg8: memref<1x256xf32, #tpu.memory_space<vmem>>, %arg9: memref<104x128xf32, #tpu.memory_space<vmem>>, %arg10: memref<1x128xf32, #tpu.memory_space<vmem>>, %arg11: memref<34x128xf32, #tpu.memory_space<vmem>>, %arg12: memref<1x128xf32, #tpu.memory_space<vmem>>, %arg13: memref<64x64xf32, #tpu.memory_space<vmem>>, %arg14: memref<1x64xf32, #tpu.memory_space<vmem>>, %arg15: memref<32x4xf32, #tpu.memory_space<vmem>>, %arg16: memref<1x4xf32, #tpu.memory_space<vmem>>, %arg17: memref<32x8xf32, #tpu.memory_space<vmem>>, %arg18: memref<1x8xf32, #tpu.memory_space<vmem>>, %arg19: memref<8x80xf32, #tpu.memory_space<vmem>>, %arg20: memref<1x80xf32, #tpu.memory_space<vmem>>, %arg21: memref<80x16xf32, #tpu.memory_space<vmem>>, %arg22: memref<1x16xf32, #tpu.memory_space<vmem>>, %arg23: memref<8x8x26xf32, #tpu.memory_space<vmem>>, %arg24: memref<1x1xf32, #tpu.memory_space<vmem>>, %arg25: memref<1x1xf32, #tpu.memory_space<vmem>>, %arg26: memref<8x8x32xf32, #tpu.memory_space<vmem>>, %arg27: memref<8x8x32xf32, #tpu.memory_space<vmem>>) attributes {dimension_semantics = [], scalar_prefetch = 0 : i64, scratch_operands = 2 : i64, tpu.core_type = #tpu.core_type<tc>} {
    %0 = tpu.iota {dimensions = array<i32: 0>} : vector<8x1xi32>
    %c2_i32 = arith.constant 2 : i32
    %1 = vector.broadcast %c2_i32 : i32 to vector<8x1xi32>
    %2 = arith.cmpi slt, %0, %1 : vector<8x1xi32>
    %3 = arith.extui %2 : vector<8x1xi1> to vector<8x1xi32>
    %4 = arith.sitofp %3 : vector<8x1xi32> to vector<8x1xf32>
    %c0 = arith.constant 0 : index
    %c0_0 = arith.constant 0 : index
    %5 = vector.load %arg5[%c0, %c0_0] : memref<80x256xf32, #tpu.memory_space<vmem>>, vector<80x256xf32>
    %c0_1 = arith.constant 0 : index
    %c0_2 = arith.constant 0 : index
    %6 = vector.load %arg6[%c0_1, %c0_2] : memref<1x256xf32, #tpu.memory_space<vmem>>, vector<1x256xf32>
    %7 = vector.shape_cast %6 : vector<1x256xf32> to vector<1x256xf32>
    %8 = vector.broadcast %7 : vector<1x256xf32> to vector<8x256xf32>
    %c0_3 = arith.constant 0 : index
    %c0_4 = arith.constant 0 : index
    %9 = vector.load %arg7[%c0_3, %c0_4] : memref<80x256xf32, #tpu.memory_space<vmem>>, vector<80x256xf32>
    %c0_5 = arith.constant 0 : index
    %c0_6 = arith.constant 0 : index
    %10 = vector.load %arg8[%c0_5, %c0_6] : memref<1x256xf32, #tpu.memory_space<vmem>>, vector<1x256xf32>
    %11 = vector.shape_cast %10 : vector<1x256xf32> to vector<1x256xf32>
    %12 = vector.broadcast %11 : vector<1x256xf32> to vector<8x256xf32>
    %c0_7 = arith.constant 0 : index
    %c0_8 = arith.constant 0 : index
    %13 = vector.load %arg9[%c0_7, %c0_8] : memref<104x128xf32, #tpu.memory_space<vmem>>, vector<104x128xf32>
    %c0_9 = arith.constant 0 : index
    %c0_10 = arith.constant 0 : index
    %14 = vector.load %arg10[%c0_9, %c0_10] : memref<1x128xf32, #tpu.memory_space<vmem>>, vector<1x128xf32>
    %15 = vector.shape_cast %14 : vector<1x128xf32> to vector<1x128xf32>
    %16 = vector.broadcast %15 : vector<1x128xf32> to vector<8x128xf32>
    %c0_11 = arith.constant 0 : index
    %c0_12 = arith.constant 0 : index
    %17 = vector.load %arg11[%c0_11, %c0_12] : memref<34x128xf32, #tpu.memory_space<vmem>>, vector<34x128xf32>
    %c0_13 = arith.constant 0 : index
    %c0_14 = arith.constant 0 : index
    %18 = vector.load %arg12[%c0_13, %c0_14] : memref<1x128xf32, #tpu.memory_space<vmem>>, vector<1x128xf32>
    %19 = vector.shape_cast %18 : vector<1x128xf32> to vector<1x128xf32>
    %20 = vector.broadcast %19 : vector<1x128xf32> to vector<8x128xf32>
    %c0_15 = arith.constant 0 : index
    %c0_16 = arith.constant 0 : index
    %21 = vector.load %arg15[%c0_15, %c0_16] : memref<32x4xf32, #tpu.memory_space<vmem>>, vector<32x4xf32>
    %c0_17 = arith.constant 0 : index
    %c0_18 = arith.constant 0 : index
    %22 = vector.load %arg16[%c0_17, %c0_18] : memref<1x4xf32, #tpu.memory_space<vmem>>, vector<1x4xf32>
    %23 = vector.shape_cast %22 : vector<1x4xf32> to vector<1x4xf32>
    %24 = vector.broadcast %23 : vector<1x4xf32> to vector<8x4xf32>
    %c0_19 = arith.constant 0 : index
    %c0_20 = arith.constant 0 : index
    %25 = vector.load %arg17[%c0_19, %c0_20] : memref<32x8xf32, #tpu.memory_space<vmem>>, vector<32x8xf32>
    %c0_21 = arith.constant 0 : index
    %c0_22 = arith.constant 0 : index
    %26 = vector.load %arg18[%c0_21, %c0_22] : memref<1x8xf32, #tpu.memory_space<vmem>>, vector<1x8xf32>
    %27 = vector.shape_cast %26 : vector<1x8xf32> to vector<1x8xf32>
    %28 = vector.broadcast %27 : vector<1x8xf32> to vector<8x8xf32>
    %c0_23 = arith.constant 0 : index
    %c0_24 = arith.constant 0 : index
    %29 = vector.load %arg19[%c0_23, %c0_24] : memref<8x80xf32, #tpu.memory_space<vmem>>, vector<8x80xf32>
    %c0_25 = arith.constant 0 : index
    %c0_26 = arith.constant 0 : index
    %30 = vector.load %arg20[%c0_25, %c0_26] : memref<1x80xf32, #tpu.memory_space<vmem>>, vector<1x80xf32>
    %31 = vector.shape_cast %30 : vector<1x80xf32> to vector<1x80xf32>
    %32 = vector.broadcast %31 : vector<1x80xf32> to vector<8x80xf32>
    %c0_27 = arith.constant 0 : index
    %c0_28 = arith.constant 0 : index
    %33 = vector.load %arg21[%c0_27, %c0_28] : memref<80x16xf32, #tpu.memory_space<vmem>>, vector<80x16xf32>
    %c0_29 = arith.constant 0 : index
    %c0_30 = arith.constant 0 : index
    %34 = vector.load %arg22[%c0_29, %c0_30] : memref<1x16xf32, #tpu.memory_space<vmem>>, vector<1x16xf32>
    %35 = vector.shape_cast %34 : vector<1x16xf32> to vector<1x16xf32>
    %36 = vector.broadcast %35 : vector<1x16xf32> to vector<8x16xf32>
    %c0_31 = arith.constant 0 : index
    %37 = memref.load %arg4[%c0_31] : memref<4xf32, #tpu.memory_space<smem>>
    %c1 = arith.constant 1 : index
    %38 = memref.load %arg4[%c1] : memref<4xf32, #tpu.memory_space<smem>>
    %c2 = arith.constant 2 : index
    %39 = memref.load %arg4[%c2] : memref<4xf32, #tpu.memory_space<smem>>
    %c3 = arith.constant 3 : index
    %40 = memref.load %arg4[%c3] : memref<4xf32, #tpu.memory_space<smem>>
    %cst = arith.constant 0.000000e+00 : f32
    %41 = vector.broadcast %cst : f32 to vector<8x32xf32>
    %cst_32 = arith.constant 0.000000e+00 : f32
    %42 = vector.broadcast %cst_32 : f32 to vector<8x32xf32>
    %cst_33 = arith.constant 0.000000e+00 : f32
    %43 = vector.broadcast %cst_33 : f32 to vector<8x32xf32>
    %cst_34 = arith.constant 0.000000e+00 : f32
    %44 = vector.broadcast %cst_34 : f32 to vector<8x32xf32>
    %c0_35 = arith.constant 0 : index
    %c0_36 = arith.constant 0 : index
    %c0_37 = arith.constant 0 : index
    %45 = vector.load %arg0[%c0_35, %c0_36, %c0_37] : memref<8x8x16xf32, #tpu.memory_space<vmem>>, vector<1x8x16xf32>
    %46 = vector.shape_cast %45 : vector<1x8x16xf32> to vector<8x16xf32>
    %c7 = arith.constant 7 : index
    %c0_38 = arith.constant 0 : index
    %c0_39 = arith.constant 0 : index
    %47 = vector.load %arg0[%c7, %c0_38, %c0_39] : memref<8x8x16xf32, #tpu.memory_space<vmem>>, vector<1x8x16xf32>
    %48 = vector.shape_cast %47 : vector<1x8x16xf32> to vector<8x16xf32>
    %49 = tpu.concatenate %46, %41, %43 in 1 : vector<8x16xf32>, vector<8x32xf32>, vector<8x32xf32> -> vector<8x80xf32>
    %cst_40 = arith.constant dense<0.000000e+00> : vector<8x256xf32>
    %50 = tpu.matmul %49, %5, %cst_40 {dimension_numbers = #tpu.dot_dimension_numbers<[1], [0], [0], [1], [0, 0, 1, 1], [], []>} : vector<8x80xf32>, vector<80x256xf32>, vector<8x256xf32> -> vector<8x256xf32>
    %51 = arith.addf %50, %8 : vector<8x256xf32>
    %52 = tpu.concatenate %48, %42, %44 in 1 : vector<8x16xf32>, vector<8x32xf32>, vector<8x32xf32> -> vector<8x80xf32>
    %cst_41 = arith.constant dense<0.000000e+00> : vector<8x256xf32>
    %53 = tpu.matmul %52, %9, %cst_41 {dimension_numbers = #tpu.dot_dimension_numbers<[1], [0], [0], [1], [0, 0, 1, 1], [], []>} : vector<8x80xf32>, vector<80x256xf32>, vector<8x256xf32> -> vector<8x256xf32>
    %54 = arith.addf %53, %12 : vector<8x256xf32>
    %55 = vector.extract_strided_slice %51 {offsets = [0, 0], sizes = [8, 128], strides = [1, 1]} : vector<8x256xf32> to vector<8x128xf32>
    %56 = vector.extract_strided_slice %55 {offsets = [0, 0], sizes = [8, 64], strides = [1, 1]} : vector<8x128xf32> to vector<8x64xf32>
    %57 = arith.negf %56 : vector<8x64xf32>
    %58 = math.exp %57 : vector<8x64xf32>
    %cst_42 = arith.constant 1.000000e+00 : f32
    %59 = vector.broadcast %cst_42 : f32 to vector<8x64xf32>
    %60 = arith.addf %59, %58 : vector<8x64xf32>
    %61 = arith.divf %59, %60 : vector<8x64xf32>
    %62 = vector.extract_strided_slice %61 {offsets = [0, 0], sizes = [8, 32], strides = [1, 1]} : vector<8x64xf32> to vector<8x32xf32>
    %63 = vector.extract_strided_slice %61 {offsets = [0, 32], sizes = [8, 32], strides = [1, 1]} : vector<8x64xf32> to vector<8x32xf32>
    %64 = vector.extract_strided_slice %55 {offsets = [0, 64], sizes = [8, 32], strides = [1, 1]} : vector<8x128xf32> to vector<8x32xf32>
    %65 = vector.extract_strided_slice %55 {offsets = [0, 96], sizes = [8, 32], strides = [1, 1]} : vector<8x128xf32> to vector<8x32xf32>
    %66 = arith.mulf %62, %65 : vector<8x32xf32>
    %67 = arith.addf %64, %66 : vector<8x32xf32>
    %68 = math.tanh %67 : vector<8x32xf32>
    %cst_43 = arith.constant 1.000000e+00 : f32
    %69 = vector.broadcast %cst_43 : f32 to vector<8x32xf32>
    %70 = arith.subf %69, %63 : vector<8x32xf32>
    %71 = arith.mulf %70, %68 : vector<8x32xf32>
    %72 = arith.mulf %63, %41 : vector<8x32xf32>
    %73 = arith.addf %71, %72 : vector<8x32xf32>
    %cst_44 = arith.constant 5.000000e+00 : f32
    %74 = vector.broadcast %cst_44 : f32 to vector<8x32xf32>
    %75 = arith.minimumf %73, %74 : vector<8x32xf32>
    %76 = vector.extract_strided_slice %51 {offsets = [0, 128], sizes = [8, 128], strides = [1, 1]} : vector<8x256xf32> to vector<8x128xf32>
    %77 = vector.extract_strided_slice %76 {offsets = [0, 0], sizes = [8, 64], strides = [1, 1]} : vector<8x128xf32> to vector<8x64xf32>
    %78 = arith.negf %77 : vector<8x64xf32>
    %79 = math.exp %78 : vector<8x64xf32>
    %cst_45 = arith.constant 1.000000e+00 : f32
    %80 = vector.broadcast %cst_45 : f32 to vector<8x64xf32>
    %81 = arith.addf %80, %79 : vector<8x64xf32>
    %82 = arith.divf %80, %81 : vector<8x64xf32>
    %83 = vector.extract_strided_slice %82 {offsets = [0, 0], sizes = [8, 32], strides = [1, 1]} : vector<8x64xf32> to vector<8x32xf32>
    %84 = vector.extract_strided_slice %82 {offsets = [0, 32], sizes = [8, 32], strides = [1, 1]} : vector<8x64xf32> to vector<8x32xf32>
    %85 = vector.extract_strided_slice %76 {offsets = [0, 64], sizes = [8, 32], strides = [1, 1]} : vector<8x128xf32> to vector<8x32xf32>
    %86 = vector.extract_strided_slice %76 {offsets = [0, 96], sizes = [8, 32], strides = [1, 1]} : vector<8x128xf32> to vector<8x32xf32>
    %87 = arith.mulf %83, %86 : vector<8x32xf32>
    %88 = arith.addf %85, %87 : vector<8x32xf32>
    %89 = math.tanh %88 : vector<8x32xf32>
    %cst_46 = arith.constant 1.000000e+00 : f32
    %90 = vector.broadcast %cst_46 : f32 to vector<8x32xf32>
    %91 = arith.subf %90, %84 : vector<8x32xf32>
    %92 = arith.mulf %91, %89 : vector<8x32xf32>
    %93 = arith.mulf %84, %43 : vector<8x32xf32>
    %94 = arith.addf %92, %93 : vector<8x32xf32>
    %cst_47 = arith.constant 5.000000e+00 : f32
    %95 = vector.broadcast %cst_47 : f32 to vector<8x32xf32>
    %96 = arith.minimumf %94, %95 : vector<8x32xf32>
    %97 = vector.extract_strided_slice %54 {offsets = [0, 0], sizes = [8, 128], strides = [1, 1]} : vector<8x256xf32> to vector<8x128xf32>
    %98 = vector.extract_strided_slice %97 {offsets = [0, 0], sizes = [8, 64], strides = [1, 1]} : vector<8x128xf32> to vector<8x64xf32>
    %99 = arith.negf %98 : vector<8x64xf32>
    %100 = math.exp %99 : vector<8x64xf32>
    %cst_48 = arith.constant 1.000000e+00 : f32
    %101 = vector.broadcast %cst_48 : f32 to vector<8x64xf32>
    %102 = arith.addf %101, %100 : vector<8x64xf32>
    %103 = arith.divf %101, %102 : vector<8x64xf32>
    %104 = vector.extract_strided_slice %103 {offsets = [0, 0], sizes = [8, 32], strides = [1, 1]} : vector<8x64xf32> to vector<8x32xf32>
    %105 = vector.extract_strided_slice %103 {offsets = [0, 32], sizes = [8, 32], strides = [1, 1]} : vector<8x64xf32> to vector<8x32xf32>
    %106 = vector.extract_strided_slice %97 {offsets = [0, 64], sizes = [8, 32], strides = [1, 1]} : vector<8x128xf32> to vector<8x32xf32>
    %107 = vector.extract_strided_slice %97 {offsets = [0, 96], sizes = [8, 32], strides = [1, 1]} : vector<8x128xf32> to vector<8x32xf32>
    %108 = arith.mulf %104, %107 : vector<8x32xf32>
    %109 = arith.addf %106, %108 : vector<8x32xf32>
    %110 = math.tanh %109 : vector<8x32xf32>
    %cst_49 = arith.constant 1.000000e+00 : f32
    %111 = vector.broadcast %cst_49 : f32 to vector<8x32xf32>
    %112 = arith.subf %111, %105 : vector<8x32xf32>
    %113 = arith.mulf %112, %110 : vector<8x32xf32>
    %114 = arith.mulf %105, %42 : vector<8x32xf32>
    %115 = arith.addf %113, %114 : vector<8x32xf32>
    %cst_50 = arith.constant 5.000000e+00 : f32
    %116 = vector.broadcast %cst_50 : f32 to vector<8x32xf32>
    %117 = arith.minimumf %115, %116 : vector<8x32xf32>
    %118 = vector.extract_strided_slice %54 {offsets = [0, 128], sizes = [8, 128], strides = [1, 1]} : vector<8x256xf32> to vector<8x128xf32>
    %119 = vector.extract_strided_slice %118 {offsets = [0, 0], sizes = [8, 64], strides = [1, 1]} : vector<8x128xf32> to vector<8x64xf32>
    %120 = arith.negf %119 : vector<8x64xf32>
    %121 = math.exp %120 : vector<8x64xf32>
    %cst_51 = arith.constant 1.000000e+00 : f32
    %122 = vector.broadcast %cst_51 : f32 to vector<8x64xf32>
    %123 = arith.addf %122, %121 : vector<8x64xf32>
    %124 = arith.divf %122, %123 : vector<8x64xf32>
    %125 = vector.extract_strided_slice %124 {offsets = [0, 0], sizes = [8, 32], strides = [1, 1]} : vector<8x64xf32> to vector<8x32xf32>
    %126 = vector.extract_strided_slice %124 {offsets = [0, 32], sizes = [8, 32], strides = [1, 1]} : vector<8x64xf32> to vector<8x32xf32>
    %127 = vector.extract_strided_slice %118 {offsets = [0, 64], sizes = [8, 32], strides = [1, 1]} : vector<8x128xf32> to vector<8x32xf32>
    %128 = vector.extract_strided_slice %118 {offsets = [0, 96], sizes = [8, 32], strides = [1, 1]} : vector<8x128xf32> to vector<8x32xf32>
    %129 = arith.mulf %125, %128 : vector<8x32xf32>
    %130 = arith.addf %127, %129 : vector<8x32xf32>
    %131 = math.tanh %130 : vector<8x32xf32>
    %cst_52 = arith.constant 1.000000e+00 : f32
    %132 = vector.broadcast %cst_52 : f32 to vector<8x32xf32>
    %133 = arith.subf %132, %126 : vector<8x32xf32>
    %134 = arith.mulf %133, %131 : vector<8x32xf32>
    %135 = arith.mulf %126, %44 : vector<8x32xf32>
    %136 = arith.addf %134, %135 : vector<8x32xf32>
    %cst_53 = arith.constant 5.000000e+00 : f32
    %137 = vector.broadcast %cst_53 : f32 to vector<8x32xf32>
    %138 = arith.minimumf %136, %137 : vector<8x32xf32>
    %c0_54 = arith.constant 0 : index
    %c0_55 = arith.constant 0 : index
    %c0_56 = arith.constant 0 : index
    %139 = vector.load %arg26[%c0_54, %c0_55, %c0_56] : memref<8x8x32xf32, #tpu.memory_space<vmem>>, vector<1x8x32xf32>
    %140 = vector.shape_cast %139 : vector<1x8x32xf32> to vector<8x32xf32>
    %141 = vector.shape_cast %96 : vector<8x32xf32> to vector<1x8x32xf32>
    tpu.vector_store %arg26[%c0_54, %c0_55, %c0_56], %141 {strides = array<i32>} : memref<8x8x32xf32, #tpu.memory_space<vmem>>, vector<1x8x32xf32>,
    %c7_57 = arith.constant 7 : index
    %c0_58 = arith.constant 0 : index
    %c0_59 = arith.constant 0 : index
    %142 = vector.load %arg27[%c7_57, %c0_58, %c0_59] : memref<8x8x32xf32, #tpu.memory_space<vmem>>, vector<1x8x32xf32>
    %143 = vector.shape_cast %142 : vector<1x8x32xf32> to vector<8x32xf32>
    %144 = vector.shape_cast %138 : vector<8x32xf32> to vector<1x8x32xf32>
    tpu.vector_store %arg27[%c7_57, %c0_58, %c0_59], %144 {strides = array<i32>} : memref<8x8x32xf32, #tpu.memory_space<vmem>>, vector<1x8x32xf32>,
    %c1_60 = arith.constant 1 : index
    %c0_61 = arith.constant 0 : index
    %c0_62 = arith.constant 0 : index
    %145 = vector.load %arg0[%c1_60, %c0_61, %c0_62] : memref<8x8x16xf32, #tpu.memory_space<vmem>>, vector<1x8x16xf32>
    %146 = vector.shape_cast %145 : vector<1x8x16xf32> to vector<8x16xf32>
    %c6 = arith.constant 6 : index
    %c0_63 = arith.constant 0 : index
    %c0_64 = arith.constant 0 : index
    %147 = vector.load %arg0[%c6, %c0_63, %c0_64] : memref<8x8x16xf32, #tpu.memory_space<vmem>>, vector<1x8x16xf32>
    %148 = vector.shape_cast %147 : vector<1x8x16xf32> to vector<8x16xf32>
    %149 = tpu.concatenate %146, %75, %96 in 1 : vector<8x16xf32>, vector<8x32xf32>, vector<8x32xf32> -> vector<8x80xf32>
    %cst_65 = arith.constant dense<0.000000e+00> : vector<8x256xf32>
    %150 = tpu.matmul %149, %5, %cst_65 {dimension_numbers = #tpu.dot_dimension_numbers<[1], [0], [0], [1], [0, 0, 1, 1], [], []>} : vector<8x80xf32>, vector<80x256xf32>, vector<8x256xf32> -> vector<8x256xf32>
    %151 = arith.addf %150, %8 : vector<8x256xf32>
    %152 = tpu.concatenate %148, %117, %138 in 1 : vector<8x16xf32>, vector<8x32xf32>, vector<8x32xf32> -> vector<8x80xf32>
    %cst_66 = arith.constant dense<0.000000e+00> : vector<8x256xf32>
    %153 = tpu.matmul %152, %9, %cst_66 {dimension_numbers = #tpu.dot_dimension_numbers<[1], [0], [0], [1], [0, 0, 1, 1], [], []>} : vector<8x80xf32>, vector<80x256xf32>, vector<8x256xf32> -> vector<8x256xf32>
    %154 = arith.addf %153, %12 : vector<8x256xf32>
    %155 = vector.extract_strided_slice %151 {offsets = [0, 0], sizes = [8, 128], strides = [1, 1]} : vector<8x256xf32> to vector<8x128xf32>
    %156 = vector.extract_strided_slice %155 {offsets = [0, 0], sizes = [8, 64], strides = [1, 1]} : vector<8x128xf32> to vector<8x64xf32>
    %157 = arith.negf %156 : vector<8x64xf32>
    %158 = math.exp %157 : vector<8x64xf32>
    %cst_67 = arith.constant 1.000000e+00 : f32
    %159 = vector.broadcast %cst_67 : f32 to vector<8x64xf32>
    %160 = arith.addf %159, %158 : vector<8x64xf32>
    %161 = arith.divf %159, %160 : vector<8x64xf32>
    %162 = vector.extract_strided_slice %161 {offsets = [0, 0], sizes = [8, 32], strides = [1, 1]} : vector<8x64xf32> to vector<8x32xf32>
    %163 = vector.extract_strided_slice %161 {offsets = [0, 32], sizes = [8, 32], strides = [1, 1]} : vector<8x64xf32> to vector<8x32xf32>
    %164 = vector.extract_strided_slice %155 {offsets = [0, 64], sizes = [8, 32], strides = [1, 1]} : vector<8x128xf32> to vector<8x32xf32>
    %165 = vector.extract_strided_slice %155 {offsets = [0, 96], sizes = [8, 32], strides = [1, 1]} : vector<8x128xf32> to vector<8x32xf32>
    %166 = arith.mulf %162, %165 : vector<8x32xf32>
    %167 = arith.addf %164, %166 : vector<8x32xf32>
    %168 = math.tanh %167 : vector<8x32xf32>
    %cst_68 = arith.constant 1.000000e+00 : f32
    %169 = vector.broadcast %cst_68 : f32 to vector<8x32xf32>
    %170 = arith.subf %169, %163 : vector<8x32xf32>
    %171 = arith.mulf %170, %168 : vector<8x32xf32>
    %172 = arith.mulf %163, %75 : vector<8x32xf32>
    %173 = arith.addf %171, %172 : vector<8x32xf32>
    %cst_69 = arith.constant 5.000000e+00 : f32
    %174 = vector.broadcast %cst_69 : f32 to vector<8x32xf32>
    %175 = arith.minimumf %173, %174 : vector<8x32xf32>
    %176 = vector.extract_strided_slice %151 {offsets = [0, 128], sizes = [8, 128], strides = [1, 1]} : vector<8x256xf32> to vector<8x128xf32>
    %177 = vector.extract_strided_slice %176 {offsets = [0, 0], sizes = [8, 64], strides = [1, 1]} : vector<8x128xf32> to vector<8x64xf32>
    %178 = arith.negf %177 : vector<8x64xf32>
    %179 = math.exp %178 : vector<8x64xf32>
    %cst_70 = arith.constant 1.000000e+00 : f32
    %180 = vector.broadcast %cst_70 : f32 to vector<8x64xf32>
    %181 = arith.addf %180, %179 : vector<8x64xf32>
    %182 = arith.divf %180, %181 : vector<8x64xf32>
    %183 = vector.extract_strided_slice %182 {offsets = [0, 0], sizes = [8, 32], strides = [1, 1]} : vector<8x64xf32> to vector<8x32xf32>
    %184 = vector.extract_strided_slice %182 {offsets = [0, 32], sizes = [8, 32], strides = [1, 1]} : vector<8x64xf32> to vector<8x32xf32>
    %185 = vector.extract_strided_slice %176 {offsets = [0, 64], sizes = [8, 32], strides = [1, 1]} : vector<8x128xf32> to vector<8x32xf32>
    %186 = vector.extract_strided_slice %176 {offsets = [0, 96], sizes = [8, 32], strides = [1, 1]} : vector<8x128xf32> to vector<8x32xf32>
    %187 = arith.mulf %183, %186 : vector<8x32xf32>
    %188 = arith.addf %185, %187 : vector<8x32xf32>
    %189 = math.tanh %188 : vector<8x32xf32>
    %cst_71 = arith.constant 1.000000e+00 : f32
    %190 = vector.broadcast %cst_71 : f32 to vector<8x32xf32>
    %191 = arith.subf %190, %184 : vector<8x32xf32>
    %192 = arith.mulf %191, %189 : vector<8x32xf32>
    %193 = arith.mulf %184, %96 : vector<8x32xf32>
    %194 = arith.addf %192, %193 : vector<8x32xf32>
    %cst_72 = arith.constant 5.000000e+00 : f32
    %195 = vector.broadcast %cst_72 : f32 to vector<8x32xf32>
    %196 = arith.minimumf %194, %195 : vector<8x32xf32>
    %197 = vector.extract_strided_slice %154 {offsets = [0, 0], sizes = [8, 128], strides = [1, 1]} : vector<8x256xf32> to vector<8x128xf32>
    %198 = vector.extract_strided_slice %197 {offsets = [0, 0], sizes = [8, 64], strides = [1, 1]} : vector<8x128xf32> to vector<8x64xf32>
    %199 = arith.negf %198 : vector<8x64xf32>
    %200 = math.exp %199 : vector<8x64xf32>
    %cst_73 = arith.constant 1.000000e+00 : f32
    %201 = vector.broadcast %cst_73 : f32 to vector<8x64xf32>
    %202 = arith.addf %201, %200 : vector<8x64xf32>
    %203 = arith.divf %201, %202 : vector<8x64xf32>
    %204 = vector.extract_strided_slice %203 {offsets = [0, 0], sizes = [8, 32], strides = [1, 1]} : vector<8x64xf32> to vector<8x32xf32>
    %205 = vector.extract_strided_slice %203 {offsets = [0, 32], sizes = [8, 32], strides = [1, 1]} : vector<8x64xf32> to vector<8x32xf32>
    %206 = vector.extract_strided_slice %197 {offsets = [0, 64], sizes = [8, 32], strides = [1, 1]} : vector<8x128xf32> to vector<8x32xf32>
    %207 = vector.extract_strided_slice %197 {offsets = [0, 96], sizes = [8, 32], strides = [1, 1]} : vector<8x128xf32> to vector<8x32xf32>
    %208 = arith.mulf %204, %207 : vector<8x32xf32>
    %209 = arith.addf %206, %208 : vector<8x32xf32>
    %210 = math.tanh %209 : vector<8x32xf32>
    %cst_74 = arith.constant 1.000000e+00 : f32
    %211 = vector.broadcast %cst_74 : f32 to vector<8x32xf32>
    %212 = arith.subf %211, %205 : vector<8x32xf32>
    %213 = arith.mulf %212, %210 : vector<8x32xf32>
    %214 = arith.mulf %205, %117 : vector<8x32xf32>
    %215 = arith.addf %213, %214 : vector<8x32xf32>
    %cst_75 = arith.constant 5.000000e+00 : f32
    %216 = vector.broadcast %cst_75 : f32 to vector<8x32xf32>
    %217 = arith.minimumf %215, %216 : vector<8x32xf32>
    %218 = vector.extract_strided_slice %154 {offsets = [0, 128], sizes = [8, 128], strides = [1, 1]} : vector<8x256xf32> to vector<8x128xf32>
    %219 = vector.extract_strided_slice %218 {offsets = [0, 0], sizes = [8, 64], strides = [1, 1]} : vector<8x128xf32> to vector<8x64xf32>
    %220 = arith.negf %219 : vector<8x64xf32>
    %221 = math.exp %220 : vector<8x64xf32>
    %cst_76 = arith.constant 1.000000e+00 : f32
    %222 = vector.broadcast %cst_76 : f32 to vector<8x64xf32>
    %223 = arith.addf %222, %221 : vector<8x64xf32>
    %224 = arith.divf %222, %223 : vector<8x64xf32>
    %225 = vector.extract_strided_slice %224 {offsets = [0, 0], sizes = [8, 32], strides = [1, 1]} : vector<8x64xf32> to vector<8x32xf32>
    %226 = vector.extract_strided_slice %224 {offsets = [0, 32], sizes = [8, 32], strides = [1, 1]} : vector<8x64xf32> to vector<8x32xf32>
    %227 = vector.extract_strided_slice %218 {offsets = [0, 64], sizes = [8, 32], strides = [1, 1]} : vector<8x128xf32> to vector<8x32xf32>
    %228 = vector.extract_strided_slice %218 {offsets = [0, 96], sizes = [8, 32], strides = [1, 1]} : vector<8x128xf32> to vector<8x32xf32>
    %229 = arith.mulf %225, %228 : vector<8x32xf32>
    %230 = arith.addf %227, %229 : vector<8x32xf32>
    %231 = math.tanh %230 : vector<8x32xf32>
    %cst_77 = arith.constant 1.000000e+00 : f32
    %232 = vector.broadcast %cst_77 : f32 to vector<8x32xf32>
    %233 = arith.subf %232, %226 : vector<8x32xf32>
    %234 = arith.mulf %233, %231 : vector<8x32xf32>
    %235 = arith.mulf %226, %138 : vector<8x32xf32>
    %236 = arith.addf %234, %235 : vector<8x32xf32>
    %cst_78 = arith.constant 5.000000e+00 : f32
    %237 = vector.broadcast %cst_78 : f32 to vector<8x32xf32>
    %238 = arith.minimumf %236, %237 : vector<8x32xf32>
    %c1_79 = arith.constant 1 : index
    %c0_80 = arith.constant 0 : index
    %c0_81 = arith.constant 0 : index
    %239 = vector.load %arg26[%c1_79, %c0_80, %c0_81] : memref<8x8x32xf32, #tpu.memory_space<vmem>>, vector<1x8x32xf32>
    %240 = vector.shape_cast %239 : vector<1x8x32xf32> to vector<8x32xf32>
    %241 = vector.shape_cast %196 : vector<8x32xf32> to vector<1x8x32xf32>
    tpu.vector_store %arg26[%c1_79, %c0_80, %c0_81], %241 {strides = array<i32>} : memref<8x8x32xf32, #tpu.memory_space<vmem>>, vector<1x8x32xf32>,
    %c6_82 = arith.constant 6 : index
    %c0_83 = arith.constant 0 : index
    %c0_84 = arith.constant 0 : index
    %242 = vector.load %arg27[%c6_82, %c0_83, %c0_84] : memref<8x8x32xf32, #tpu.memory_space<vmem>>, vector<1x8x32xf32>
    %243 = vector.shape_cast %242 : vector<1x8x32xf32> to vector<8x32xf32>
    %244 = vector.shape_cast %238 : vector<8x32xf32> to vector<1x8x32xf32>
    tpu.vector_store %arg27[%c6_82, %c0_83, %c0_84], %244 {strides = array<i32>} : memref<8x8x32xf32, #tpu.memory_space<vmem>>, vector<1x8x32xf32>,
    %c2_85 = arith.constant 2 : index
    %c0_86 = arith.constant 0 : index
    %c0_87 = arith.constant 0 : index
    %245 = vector.load %arg0[%c2_85, %c0_86, %c0_87] : memref<8x8x16xf32, #tpu.memory_space<vmem>>, vector<1x8x16xf32>
    %246 = vector.shape_cast %245 : vector<1x8x16xf32> to vector<8x16xf32>
    %c5 = arith.constant 5 : index
    %c0_88 = arith.constant 0 : index
    %c0_89 = arith.constant 0 : index
    %247 = vector.load %arg0[%c5, %c0_88, %c0_89] : memref<8x8x16xf32, #tpu.memory_space<vmem>>, vector<1x8x16xf32>
    %248 = vector.shape_cast %247 : vector<1x8x16xf32> to vector<8x16xf32>
    %249 = tpu.concatenate %246, %175, %196 in 1 : vector<8x16xf32>, vector<8x32xf32>, vector<8x32xf32> -> vector<8x80xf32>
    %cst_90 = arith.constant dense<0.000000e+00> : vector<8x256xf32>
    %250 = tpu.matmul %249, %5, %cst_90 {dimension_numbers = #tpu.dot_dimension_numbers<[1], [0], [0], [1], [0, 0, 1, 1], [], []>} : vector<8x80xf32>, vector<80x256xf32>, vector<8x256xf32> -> vector<8x256xf32>
    %251 = arith.addf %250, %8 : vector<8x256xf32>
    %252 = tpu.concatenate %248, %217, %238 in 1 : vector<8x16xf32>, vector<8x32xf32>, vector<8x32xf32> -> vector<8x80xf32>
    %cst_91 = arith.constant dense<0.000000e+00> : vector<8x256xf32>
    %253 = tpu.matmul %252, %9, %cst_91 {dimension_numbers = #tpu.dot_dimension_numbers<[1], [0], [0], [1], [0, 0, 1, 1], [], []>} : vector<8x80xf32>, vector<80x256xf32>, vector<8x256xf32> -> vector<8x256xf32>
    %254 = arith.addf %253, %12 : vector<8x256xf32>
    %255 = vector.extract_strided_slice %251 {offsets = [0, 0], sizes = [8, 128], strides = [1, 1]} : vector<8x256xf32> to vector<8x128xf32>
    %256 = vector.extract_strided_slice %255 {offsets = [0, 0], sizes = [8, 64], strides = [1, 1]} : vector<8x128xf32> to vector<8x64xf32>
    %257 = arith.negf %256 : vector<8x64xf32>
    %258 = math.exp %257 : vector<8x64xf32>
    %cst_92 = arith.constant 1.000000e+00 : f32
    %259 = vector.broadcast %cst_92 : f32 to vector<8x64xf32>
    %260 = arith.addf %259, %258 : vector<8x64xf32>
    %261 = arith.divf %259, %260 : vector<8x64xf32>
    %262 = vector.extract_strided_slice %261 {offsets = [0, 0], sizes = [8, 32], strides = [1, 1]} : vector<8x64xf32> to vector<8x32xf32>
    %263 = vector.extract_strided_slice %261 {offsets = [0, 32], sizes = [8, 32], strides = [1, 1]} : vector<8x64xf32> to vector<8x32xf32>
    %264 = vector.extract_strided_slice %255 {offsets = [0, 64], sizes = [8, 32], strides = [1, 1]} : vector<8x128xf32> to vector<8x32xf32>
    %265 = vector.extract_strided_slice %255 {offsets = [0, 96], sizes = [8, 32], strides = [1, 1]} : vector<8x128xf32> to vector<8x32xf32>
    %266 = arith.mulf %262, %265 : vector<8x32xf32>
    %267 = arith.addf %264, %266 : vector<8x32xf32>
    %268 = math.tanh %267 : vector<8x32xf32>
    %cst_93 = arith.constant 1.000000e+00 : f32
    %269 = vector.broadcast %cst_93 : f32 to vector<8x32xf32>
    %270 = arith.subf %269, %263 : vector<8x32xf32>
    %271 = arith.mulf %270, %268 : vector<8x32xf32>
    %272 = arith.mulf %263, %175 : vector<8x32xf32>
    %273 = arith.addf %271, %272 : vector<8x32xf32>
    %cst_94 = arith.constant 5.000000e+00 : f32
    %274 = vector.broadcast %cst_94 : f32 to vector<8x32xf32>
    %275 = arith.minimumf %273, %274 : vector<8x32xf32>
    %276 = vector.extract_strided_slice %251 {offsets = [0, 128], sizes = [8, 128], strides = [1, 1]} : vector<8x256xf32> to vector<8x128xf32>
    %277 = vector.extract_strided_slice %276 {offsets = [0, 0], sizes = [8, 64], strides = [1, 1]} : vector<8x128xf32> to vector<8x64xf32>
    %278 = arith.negf %277 : vector<8x64xf32>
    %279 = math.exp %278 : vector<8x64xf32>
    %cst_95 = arith.constant 1.000000e+00 : f32
    %280 = vector.broadcast %cst_95 : f32 to vector<8x64xf32>
    %281 = arith.addf %280, %279 : vector<8x64xf32>
    %282 = arith.divf %280, %281 : vector<8x64xf32>
    %283 = vector.extract_strided_slice %282 {offsets = [0, 0], sizes = [8, 32], strides = [1, 1]} : vector<8x64xf32> to vector<8x32xf32>
    %284 = vector.extract_strided_slice %282 {offsets = [0, 32], sizes = [8, 32], strides = [1, 1]} : vector<8x64xf32> to vector<8x32xf32>
    %285 = vector.extract_strided_slice %276 {offsets = [0, 64], sizes = [8, 32], strides = [1, 1]} : vector<8x128xf32> to vector<8x32xf32>
    %286 = vector.extract_strided_slice %276 {offsets = [0, 96], sizes = [8, 32], strides = [1, 1]} : vector<8x128xf32> to vector<8x32xf32>
    %287 = arith.mulf %283, %286 : vector<8x32xf32>
    %288 = arith.addf %285, %287 : vector<8x32xf32>
    %289 = math.tanh %288 : vector<8x32xf32>
    %cst_96 = arith.constant 1.000000e+00 : f32
    %290 = vector.broadcast %cst_96 : f32 to vector<8x32xf32>
    %291 = arith.subf %290, %284 : vector<8x32xf32>
    %292 = arith.mulf %291, %289 : vector<8x32xf32>
    %293 = arith.mulf %284, %196 : vector<8x32xf32>
    %294 = arith.addf %292, %293 : vector<8x32xf32>
    %cst_97 = arith.constant 5.000000e+00 : f32
    %295 = vector.broadcast %cst_97 : f32 to vector<8x32xf32>
    %296 = arith.minimumf %294, %295 : vector<8x32xf32>
    %297 = vector.extract_strided_slice %254 {offsets = [0, 0], sizes = [8, 128], strides = [1, 1]} : vector<8x256xf32> to vector<8x128xf32>
    %298 = vector.extract_strided_slice %297 {offsets = [0, 0], sizes = [8, 64], strides = [1, 1]} : vector<8x128xf32> to vector<8x64xf32>
    %299 = arith.negf %298 : vector<8x64xf32>
    %300 = math.exp %299 : vector<8x64xf32>
    %cst_98 = arith.constant 1.000000e+00 : f32
    %301 = vector.broadcast %cst_98 : f32 to vector<8x64xf32>
    %302 = arith.addf %301, %300 : vector<8x64xf32>
    %303 = arith.divf %301, %302 : vector<8x64xf32>
    %304 = vector.extract_strided_slice %303 {offsets = [0, 0], sizes = [8, 32], strides = [1, 1]} : vector<8x64xf32> to vector<8x32xf32>
    %305 = vector.extract_strided_slice %303 {offsets = [0, 32], sizes = [8, 32], strides = [1, 1]} : vector<8x64xf32> to vector<8x32xf32>
    %306 = vector.extract_strided_slice %297 {offsets = [0, 64], sizes = [8, 32], strides = [1, 1]} : vector<8x128xf32> to vector<8x32xf32>
    %307 = vector.extract_strided_slice %297 {offsets = [0, 96], sizes = [8, 32], strides = [1, 1]} : vector<8x128xf32> to vector<8x32xf32>
    %308 = arith.mulf %304, %307 : vector<8x32xf32>
    %309 = arith.addf %306, %308 : vector<8x32xf32>
    %310 = math.tanh %309 : vector<8x32xf32>
    %cst_99 = arith.constant 1.000000e+00 : f32
    %311 = vector.broadcast %cst_99 : f32 to vector<8x32xf32>
    %312 = arith.subf %311, %305 : vector<8x32xf32>
    %313 = arith.mulf %312, %310 : vector<8x32xf32>
    %314 = arith.mulf %305, %217 : vector<8x32xf32>
    %315 = arith.addf %313, %314 : vector<8x32xf32>
    %cst_100 = arith.constant 5.000000e+00 : f32
    %316 = vector.broadcast %cst_100 : f32 to vector<8x32xf32>
    %317 = arith.minimumf %315, %316 : vector<8x32xf32>
    %318 = vector.extract_strided_slice %254 {offsets = [0, 128], sizes = [8, 128], strides = [1, 1]} : vector<8x256xf32> to vector<8x128xf32>
    %319 = vector.extract_strided_slice %318 {offsets = [0, 0], sizes = [8, 64], strides = [1, 1]} : vector<8x128xf32> to vector<8x64xf32>
    %320 = arith.negf %319 : vector<8x64xf32>
    %321 = math.exp %320 : vector<8x64xf32>
    %cst_101 = arith.constant 1.000000e+00 : f32
    %322 = vector.broadcast %cst_101 : f32 to vector<8x64xf32>
    %323 = arith.addf %322, %321 : vector<8x64xf32>
    %324 = arith.divf %322, %323 : vector<8x64xf32>
    %325 = vector.extract_strided_slice %324 {offsets = [0, 0], sizes = [8, 32], strides = [1, 1]} : vector<8x64xf32> to vector<8x32xf32>
    %326 = vector.extract_strided_slice %324 {offsets = [0, 32], sizes = [8, 32], strides = [1, 1]} : vector<8x64xf32> to vector<8x32xf32>
    %327 = vector.extract_strided_slice %318 {offsets = [0, 64], sizes = [8, 32], strides = [1, 1]} : vector<8x128xf32> to vector<8x32xf32>
    %328 = vector.extract_strided_slice %318 {offsets = [0, 96], sizes = [8, 32], strides = [1, 1]} : vector<8x128xf32> to vector<8x32xf32>
    %329 = arith.mulf %325, %328 : vector<8x32xf32>
    %330 = arith.addf %327, %329 : vector<8x32xf32>
    %331 = math.tanh %330 : vector<8x32xf32>
    %cst_102 = arith.constant 1.000000e+00 : f32
    %332 = vector.broadcast %cst_102 : f32 to vector<8x32xf32>
    %333 = arith.subf %332, %326 : vector<8x32xf32>
    %334 = arith.mulf %333, %331 : vector<8x32xf32>
    %335 = arith.mulf %326, %238 : vector<8x32xf32>
    %336 = arith.addf %334, %335 : vector<8x32xf32>
    %cst_103 = arith.constant 5.000000e+00 : f32
    %337 = vector.broadcast %cst_103 : f32 to vector<8x32xf32>
    %338 = arith.minimumf %336, %337 : vector<8x32xf32>
    %c2_104 = arith.constant 2 : index
    %c0_105 = arith.constant 0 : index
    %c0_106 = arith.constant 0 : index
    %339 = vector.load %arg26[%c2_104, %c0_105, %c0_106] : memref<8x8x32xf32, #tpu.memory_space<vmem>>, vector<1x8x32xf32>
    %340 = vector.shape_cast %339 : vector<1x8x32xf32> to vector<8x32xf32>
    %341 = vector.shape_cast %296 : vector<8x32xf32> to vector<1x8x32xf32>
    tpu.vector_store %arg26[%c2_104, %c0_105, %c0_106], %341 {strides = array<i32>} : memref<8x8x32xf32, #tpu.memory_space<vmem>>, vector<1x8x32xf32>,
    %c5_107 = arith.constant 5 : index
    %c0_108 = arith.constant 0 : index
    %c0_109 = arith.constant 0 : index
    %342 = vector.load %arg27[%c5_107, %c0_108, %c0_109] : memref<8x8x32xf32, #tpu.memory_space<vmem>>, vector<1x8x32xf32>
    %343 = vector.shape_cast %342 : vector<1x8x32xf32> to vector<8x32xf32>
    %344 = vector.shape_cast %338 : vector<8x32xf32> to vector<1x8x32xf32>
    tpu.vector_store %arg27[%c5_107, %c0_108, %c0_109], %344 {strides = array<i32>} : memref<8x8x32xf32, #tpu.memory_space<vmem>>, vector<1x8x32xf32>,
    %c3_110 = arith.constant 3 : index
    %c0_111 = arith.constant 0 : index
    %c0_112 = arith.constant 0 : index
    %345 = vector.load %arg0[%c3_110, %c0_111, %c0_112] : memref<8x8x16xf32, #tpu.memory_space<vmem>>, vector<1x8x16xf32>
    %346 = vector.shape_cast %345 : vector<1x8x16xf32> to vector<8x16xf32>
    %c4 = arith.constant 4 : index
    %c0_113 = arith.constant 0 : index
    %c0_114 = arith.constant 0 : index
    %347 = vector.load %arg0[%c4, %c0_113, %c0_114] : memref<8x8x16xf32, #tpu.memory_space<vmem>>, vector<1x8x16xf32>
    %348 = vector.shape_cast %347 : vector<1x8x16xf32> to vector<8x16xf32>
    %349 = tpu.concatenate %346, %275, %296 in 1 : vector<8x16xf32>, vector<8x32xf32>, vector<8x32xf32> -> vector<8x80xf32>
    %cst_115 = arith.constant dense<0.000000e+00> : vector<8x256xf32>
    %350 = tpu.matmul %349, %5, %cst_115 {dimension_numbers = #tpu.dot_dimension_numbers<[1], [0], [0], [1], [0, 0, 1, 1], [], []>} : vector<8x80xf32>, vector<80x256xf32>, vector<8x256xf32> -> vector<8x256xf32>
    %351 = arith.addf %350, %8 : vector<8x256xf32>
    %352 = tpu.concatenate %348, %317, %338 in 1 : vector<8x16xf32>, vector<8x32xf32>, vector<8x32xf32> -> vector<8x80xf32>
    %cst_116 = arith.constant dense<0.000000e+00> : vector<8x256xf32>
    %353 = tpu.matmul %352, %9, %cst_116 {dimension_numbers = #tpu.dot_dimension_numbers<[1], [0], [0], [1], [0, 0, 1, 1], [], []>} : vector<8x80xf32>, vector<80x256xf32>, vector<8x256xf32> -> vector<8x256xf32>
    %354 = arith.addf %353, %12 : vector<8x256xf32>
    %355 = vector.extract_strided_slice %351 {offsets = [0, 0], sizes = [8, 128], strides = [1, 1]} : vector<8x256xf32> to vector<8x128xf32>
    %356 = vector.extract_strided_slice %355 {offsets = [0, 0], sizes = [8, 64], strides = [1, 1]} : vector<8x128xf32> to vector<8x64xf32>
    %357 = arith.negf %356 : vector<8x64xf32>
    %358 = math.exp %357 : vector<8x64xf32>
    %cst_117 = arith.constant 1.000000e+00 : f32
    %359 = vector.broadcast %cst_117 : f32 to vector<8x64xf32>
    %360 = arith.addf %359, %358 : vector<8x64xf32>
    %361 = arith.divf %359, %360 : vector<8x64xf32>
    %362 = vector.extract_strided_slice %361 {offsets = [0, 0], sizes = [8, 32], strides = [1, 1]} : vector<8x64xf32> to vector<8x32xf32>
    %363 = vector.extract_strided_slice %361 {offsets = [0, 32], sizes = [8, 32], strides = [1, 1]} : vector<8x64xf32> to vector<8x32xf32>
    %364 = vector.extract_strided_slice %355 {offsets = [0, 64], sizes = [8, 32], strides = [1, 1]} : vector<8x128xf32> to vector<8x32xf32>
    %365 = vector.extract_strided_slice %355 {offsets = [0, 96], sizes = [8, 32], strides = [1, 1]} : vector<8x128xf32> to vector<8x32xf32>
    %366 = arith.mulf %362, %365 : vector<8x32xf32>
    %367 = arith.addf %364, %366 : vector<8x32xf32>
    %368 = math.tanh %367 : vector<8x32xf32>
    %cst_118 = arith.constant 1.000000e+00 : f32
    %369 = vector.broadcast %cst_118 : f32 to vector<8x32xf32>
    %370 = arith.subf %369, %363 : vector<8x32xf32>
    %371 = arith.mulf %370, %368 : vector<8x32xf32>
    %372 = arith.mulf %363, %275 : vector<8x32xf32>
    %373 = arith.addf %371, %372 : vector<8x32xf32>
    %cst_119 = arith.constant 5.000000e+00 : f32
    %374 = vector.broadcast %cst_119 : f32 to vector<8x32xf32>
    %375 = arith.minimumf %373, %374 : vector<8x32xf32>
    %376 = vector.extract_strided_slice %351 {offsets = [0, 128], sizes = [8, 128], strides = [1, 1]} : vector<8x256xf32> to vector<8x128xf32>
    %377 = vector.extract_strided_slice %376 {offsets = [0, 0], sizes = [8, 64], strides = [1, 1]} : vector<8x128xf32> to vector<8x64xf32>
    %378 = arith.negf %377 : vector<8x64xf32>
    %379 = math.exp %378 : vector<8x64xf32>
    %cst_120 = arith.constant 1.000000e+00 : f32
    %380 = vector.broadcast %cst_120 : f32 to vector<8x64xf32>
    %381 = arith.addf %380, %379 : vector<8x64xf32>
    %382 = arith.divf %380, %381 : vector<8x64xf32>
    %383 = vector.extract_strided_slice %382 {offsets = [0, 0], sizes = [8, 32], strides = [1, 1]} : vector<8x64xf32> to vector<8x32xf32>
    %384 = vector.extract_strided_slice %382 {offsets = [0, 32], sizes = [8, 32], strides = [1, 1]} : vector<8x64xf32> to vector<8x32xf32>
    %385 = vector.extract_strided_slice %376 {offsets = [0, 64], sizes = [8, 32], strides = [1, 1]} : vector<8x128xf32> to vector<8x32xf32>
    %386 = vector.extract_strided_slice %376 {offsets = [0, 96], sizes = [8, 32], strides = [1, 1]} : vector<8x128xf32> to vector<8x32xf32>
    %387 = arith.mulf %383, %386 : vector<8x32xf32>
    %388 = arith.addf %385, %387 : vector<8x32xf32>
    %389 = math.tanh %388 : vector<8x32xf32>
    %cst_121 = arith.constant 1.000000e+00 : f32
    %390 = vector.broadcast %cst_121 : f32 to vector<8x32xf32>
    %391 = arith.subf %390, %384 : vector<8x32xf32>
    %392 = arith.mulf %391, %389 : vector<8x32xf32>
    %393 = arith.mulf %384, %296 : vector<8x32xf32>
    %394 = arith.addf %392, %393 : vector<8x32xf32>
    %cst_122 = arith.constant 5.000000e+00 : f32
    %395 = vector.broadcast %cst_122 : f32 to vector<8x32xf32>
    %396 = arith.minimumf %394, %395 : vector<8x32xf32>
    %397 = vector.extract_strided_slice %354 {offsets = [0, 0], sizes = [8, 128], strides = [1, 1]} : vector<8x256xf32> to vector<8x128xf32>
    %398 = vector.extract_strided_slice %397 {offsets = [0, 0], sizes = [8, 64], strides = [1, 1]} : vector<8x128xf32> to vector<8x64xf32>
    %399 = arith.negf %398 : vector<8x64xf32>
    %400 = math.exp %399 : vector<8x64xf32>
    %cst_123 = arith.constant 1.000000e+00 : f32
    %401 = vector.broadcast %cst_123 : f32 to vector<8x64xf32>
    %402 = arith.addf %401, %400 : vector<8x64xf32>
    %403 = arith.divf %401, %402 : vector<8x64xf32>
    %404 = vector.extract_strided_slice %403 {offsets = [0, 0], sizes = [8, 32], strides = [1, 1]} : vector<8x64xf32> to vector<8x32xf32>
    %405 = vector.extract_strided_slice %403 {offsets = [0, 32], sizes = [8, 32], strides = [1, 1]} : vector<8x64xf32> to vector<8x32xf32>
    %406 = vector.extract_strided_slice %397 {offsets = [0, 64], sizes = [8, 32], strides = [1, 1]} : vector<8x128xf32> to vector<8x32xf32>
    %407 = vector.extract_strided_slice %397 {offsets = [0, 96], sizes = [8, 32], strides = [1, 1]} : vector<8x128xf32> to vector<8x32xf32>
    %408 = arith.mulf %404, %407 : vector<8x32xf32>
    %409 = arith.addf %406, %408 : vector<8x32xf32>
    %410 = math.tanh %409 : vector<8x32xf32>
    %cst_124 = arith.constant 1.000000e+00 : f32
    %411 = vector.broadcast %cst_124 : f32 to vector<8x32xf32>
    %412 = arith.subf %411, %405 : vector<8x32xf32>
    %413 = arith.mulf %412, %410 : vector<8x32xf32>
    %414 = arith.mulf %405, %317 : vector<8x32xf32>
    %415 = arith.addf %413, %414 : vector<8x32xf32>
    %cst_125 = arith.constant 5.000000e+00 : f32
    %416 = vector.broadcast %cst_125 : f32 to vector<8x32xf32>
    %417 = arith.minimumf %415, %416 : vector<8x32xf32>
    %418 = vector.extract_strided_slice %354 {offsets = [0, 128], sizes = [8, 128], strides = [1, 1]} : vector<8x256xf32> to vector<8x128xf32>
    %419 = vector.extract_strided_slice %418 {offsets = [0, 0], sizes = [8, 64], strides = [1, 1]} : vector<8x128xf32> to vector<8x64xf32>
    %420 = arith.negf %419 : vector<8x64xf32>
    %421 = math.exp %420 : vector<8x64xf32>
    %cst_126 = arith.constant 1.000000e+00 : f32
    %422 = vector.broadcast %cst_126 : f32 to vector<8x64xf32>
    %423 = arith.addf %422, %421 : vector<8x64xf32>
    %424 = arith.divf %422, %423 : vector<8x64xf32>
    %425 = vector.extract_strided_slice %424 {offsets = [0, 0], sizes = [8, 32], strides = [1, 1]} : vector<8x64xf32> to vector<8x32xf32>
    %426 = vector.extract_strided_slice %424 {offsets = [0, 32], sizes = [8, 32], strides = [1, 1]} : vector<8x64xf32> to vector<8x32xf32>
    %427 = vector.extract_strided_slice %418 {offsets = [0, 64], sizes = [8, 32], strides = [1, 1]} : vector<8x128xf32> to vector<8x32xf32>
    %428 = vector.extract_strided_slice %418 {offsets = [0, 96], sizes = [8, 32], strides = [1, 1]} : vector<8x128xf32> to vector<8x32xf32>
    %429 = arith.mulf %425, %428 : vector<8x32xf32>
    %430 = arith.addf %427, %429 : vector<8x32xf32>
    %431 = math.tanh %430 : vector<8x32xf32>
    %cst_127 = arith.constant 1.000000e+00 : f32
    %432 = vector.broadcast %cst_127 : f32 to vector<8x32xf32>
    %433 = arith.subf %432, %426 : vector<8x32xf32>
    %434 = arith.mulf %433, %431 : vector<8x32xf32>
    %435 = arith.mulf %426, %338 : vector<8x32xf32>
    %436 = arith.addf %434, %435 : vector<8x32xf32>
    %cst_128 = arith.constant 5.000000e+00 : f32
    %437 = vector.broadcast %cst_128 : f32 to vector<8x32xf32>
    %438 = arith.minimumf %436, %437 : vector<8x32xf32>
    %c3_129 = arith.constant 3 : index
    %c0_130 = arith.constant 0 : index
    %c0_131 = arith.constant 0 : index
    %439 = vector.load %arg26[%c3_129, %c0_130, %c0_131] : memref<8x8x32xf32, #tpu.memory_space<vmem>>, vector<1x8x32xf32>
    %440 = vector.shape_cast %439 : vector<1x8x32xf32> to vector<8x32xf32>
    %441 = vector.shape_cast %396 : vector<8x32xf32> to vector<1x8x32xf32>
    tpu.vector_store %arg26[%c3_129, %c0_130, %c0_131], %441 {strides = array<i32>} : memref<8x8x32xf32, #tpu.memory_space<vmem>>, vector<1x8x32xf32>,
    %c4_132 = arith.constant 4 : index
    %c0_133 = arith.constant 0 : index
    %c0_134 = arith.constant 0 : index
    %442 = vector.load %arg27[%c4_132, %c0_133, %c0_134] : memref<8x8x32xf32, #tpu.memory_space<vmem>>, vector<1x8x32xf32>
    %443 = vector.shape_cast %442 : vector<1x8x32xf32> to vector<8x32xf32>
    %444 = vector.shape_cast %438 : vector<8x32xf32> to vector<1x8x32xf32>
    tpu.vector_store %arg27[%c4_132, %c0_133, %c0_134], %444 {strides = array<i32>} : memref<8x8x32xf32, #tpu.memory_space<vmem>>, vector<1x8x32xf32>,
    %c4_135 = arith.constant 4 : index
    %c0_136 = arith.constant 0 : index
    %c0_137 = arith.constant 0 : index
    %445 = vector.load %arg0[%c4_135, %c0_136, %c0_137] : memref<8x8x16xf32, #tpu.memory_space<vmem>>, vector<1x8x16xf32>
    %446 = vector.shape_cast %445 : vector<1x8x16xf32> to vector<8x16xf32>
    %c3_138 = arith.constant 3 : index
    %c0_139 = arith.constant 0 : index
    %c0_140 = arith.constant 0 : index
    %447 = vector.load %arg0[%c3_138, %c0_139, %c0_140] : memref<8x8x16xf32, #tpu.memory_space<vmem>>, vector<1x8x16xf32>
    %448 = vector.shape_cast %447 : vector<1x8x16xf32> to vector<8x16xf32>
    %449 = tpu.concatenate %446, %375, %396 in 1 : vector<8x16xf32>, vector<8x32xf32>, vector<8x32xf32> -> vector<8x80xf32>
    %cst_141 = arith.constant dense<0.000000e+00> : vector<8x256xf32>
    %450 = tpu.matmul %449, %5, %cst_141 {dimension_numbers = #tpu.dot_dimension_numbers<[1], [0], [0], [1], [0, 0, 1, 1], [], []>} : vector<8x80xf32>, vector<80x256xf32>, vector<8x256xf32> -> vector<8x256xf32>
    %451 = arith.addf %450, %8 : vector<8x256xf32>
    %452 = tpu.concatenate %448, %417, %438 in 1 : vector<8x16xf32>, vector<8x32xf32>, vector<8x32xf32> -> vector<8x80xf32>
    %cst_142 = arith.constant dense<0.000000e+00> : vector<8x256xf32>
    %453 = tpu.matmul %452, %9, %cst_142 {dimension_numbers = #tpu.dot_dimension_numbers<[1], [0], [0], [1], [0, 0, 1, 1], [], []>} : vector<8x80xf32>, vector<80x256xf32>, vector<8x256xf32> -> vector<8x256xf32>
    %454 = arith.addf %453, %12 : vector<8x256xf32>
    %455 = vector.extract_strided_slice %451 {offsets = [0, 0], sizes = [8, 128], strides = [1, 1]} : vector<8x256xf32> to vector<8x128xf32>
    %456 = vector.extract_strided_slice %455 {offsets = [0, 0], sizes = [8, 64], strides = [1, 1]} : vector<8x128xf32> to vector<8x64xf32>
    %457 = arith.negf %456 : vector<8x64xf32>
    %458 = math.exp %457 : vector<8x64xf32>
    %cst_143 = arith.constant 1.000000e+00 : f32
    %459 = vector.broadcast %cst_143 : f32 to vector<8x64xf32>
    %460 = arith.addf %459, %458 : vector<8x64xf32>
    %461 = arith.divf %459, %460 : vector<8x64xf32>
    %462 = vector.extract_strided_slice %461 {offsets = [0, 0], sizes = [8, 32], strides = [1, 1]} : vector<8x64xf32> to vector<8x32xf32>
    %463 = vector.extract_strided_slice %461 {offsets = [0, 32], sizes = [8, 32], strides = [1, 1]} : vector<8x64xf32> to vector<8x32xf32>
    %464 = vector.extract_strided_slice %455 {offsets = [0, 64], sizes = [8, 32], strides = [1, 1]} : vector<8x128xf32> to vector<8x32xf32>
    %465 = vector.extract_strided_slice %455 {offsets = [0, 96], sizes = [8, 32], strides = [1, 1]} : vector<8x128xf32> to vector<8x32xf32>
    %466 = arith.mulf %462, %465 : vector<8x32xf32>
    %467 = arith.addf %464, %466 : vector<8x32xf32>
    %468 = math.tanh %467 : vector<8x32xf32>
    %cst_144 = arith.constant 1.000000e+00 : f32
    %469 = vector.broadcast %cst_144 : f32 to vector<8x32xf32>
    %470 = arith.subf %469, %463 : vector<8x32xf32>
    %471 = arith.mulf %470, %468 : vector<8x32xf32>
    %472 = arith.mulf %463, %375 : vector<8x32xf32>
    %473 = arith.addf %471, %472 : vector<8x32xf32>
    %cst_145 = arith.constant 5.000000e+00 : f32
    %474 = vector.broadcast %cst_145 : f32 to vector<8x32xf32>
    %475 = arith.minimumf %473, %474 : vector<8x32xf32>
    %476 = vector.extract_strided_slice %451 {offsets = [0, 128], sizes = [8, 128], strides = [1, 1]} : vector<8x256xf32> to vector<8x128xf32>
    %477 = vector.extract_strided_slice %476 {offsets = [0, 0], sizes = [8, 64], strides = [1, 1]} : vector<8x128xf32> to vector<8x64xf32>
    %478 = arith.negf %477 : vector<8x64xf32>
    %479 = math.exp %478 : vector<8x64xf32>
    %cst_146 = arith.constant 1.000000e+00 : f32
    %480 = vector.broadcast %cst_146 : f32 to vector<8x64xf32>
    %481 = arith.addf %480, %479 : vector<8x64xf32>
    %482 = arith.divf %480, %481 : vector<8x64xf32>
    %483 = vector.extract_strided_slice %482 {offsets = [0, 0], sizes = [8, 32], strides = [1, 1]} : vector<8x64xf32> to vector<8x32xf32>
    %484 = vector.extract_strided_slice %482 {offsets = [0, 32], sizes = [8, 32], strides = [1, 1]} : vector<8x64xf32> to vector<8x32xf32>
    %485 = vector.extract_strided_slice %476 {offsets = [0, 64], sizes = [8, 32], strides = [1, 1]} : vector<8x128xf32> to vector<8x32xf32>
    %486 = vector.extract_strided_slice %476 {offsets = [0, 96], sizes = [8, 32], strides = [1, 1]} : vector<8x128xf32> to vector<8x32xf32>
    %487 = arith.mulf %483, %486 : vector<8x32xf32>
    %488 = arith.addf %485, %487 : vector<8x32xf32>
    %489 = math.tanh %488 : vector<8x32xf32>
    %cst_147 = arith.constant 1.000000e+00 : f32
    %490 = vector.broadcast %cst_147 : f32 to vector<8x32xf32>
    %491 = arith.subf %490, %484 : vector<8x32xf32>
    %492 = arith.mulf %491, %489 : vector<8x32xf32>
    %493 = arith.mulf %484, %396 : vector<8x32xf32>
    %494 = arith.addf %492, %493 : vector<8x32xf32>
    %cst_148 = arith.constant 5.000000e+00 : f32
    %495 = vector.broadcast %cst_148 : f32 to vector<8x32xf32>
    %496 = arith.minimumf %494, %495 : vector<8x32xf32>
    %497 = vector.extract_strided_slice %454 {offsets = [0, 0], sizes = [8, 128], strides = [1, 1]} : vector<8x256xf32> to vector<8x128xf32>
    %498 = vector.extract_strided_slice %497 {offsets = [0, 0], sizes = [8, 64], strides = [1, 1]} : vector<8x128xf32> to vector<8x64xf32>
    %499 = arith.negf %498 : vector<8x64xf32>
    %500 = math.exp %499 : vector<8x64xf32>
    %cst_149 = arith.constant 1.000000e+00 : f32
    %501 = vector.broadcast %cst_149 : f32 to vector<8x64xf32>
    %502 = arith.addf %501, %500 : vector<8x64xf32>
    %503 = arith.divf %501, %502 : vector<8x64xf32>
    %504 = vector.extract_strided_slice %503 {offsets = [0, 0], sizes = [8, 32], strides = [1, 1]} : vector<8x64xf32> to vector<8x32xf32>
    %505 = vector.extract_strided_slice %503 {offsets = [0, 32], sizes = [8, 32], strides = [1, 1]} : vector<8x64xf32> to vector<8x32xf32>
    %506 = vector.extract_strided_slice %497 {offsets = [0, 64], sizes = [8, 32], strides = [1, 1]} : vector<8x128xf32> to vector<8x32xf32>
    %507 = vector.extract_strided_slice %497 {offsets = [0, 96], sizes = [8, 32], strides = [1, 1]} : vector<8x128xf32> to vector<8x32xf32>
    %508 = arith.mulf %504, %507 : vector<8x32xf32>
    %509 = arith.addf %506, %508 : vector<8x32xf32>
    %510 = math.tanh %509 : vector<8x32xf32>
    %cst_150 = arith.constant 1.000000e+00 : f32
    %511 = vector.broadcast %cst_150 : f32 to vector<8x32xf32>
    %512 = arith.subf %511, %505 : vector<8x32xf32>
    %513 = arith.mulf %512, %510 : vector<8x32xf32>
    %514 = arith.mulf %505, %417 : vector<8x32xf32>
    %515 = arith.addf %513, %514 : vector<8x32xf32>
    %cst_151 = arith.constant 5.000000e+00 : f32
    %516 = vector.broadcast %cst_151 : f32 to vector<8x32xf32>
    %517 = arith.minimumf %515, %516 : vector<8x32xf32>
    %518 = vector.extract_strided_slice %454 {offsets = [0, 128], sizes = [8, 128], strides = [1, 1]} : vector<8x256xf32> to vector<8x128xf32>
    %519 = vector.extract_strided_slice %518 {offsets = [0, 0], sizes = [8, 64], strides = [1, 1]} : vector<8x128xf32> to vector<8x64xf32>
    %520 = arith.negf %519 : vector<8x64xf32>
    %521 = math.exp %520 : vector<8x64xf32>
    %cst_152 = arith.constant 1.000000e+00 : f32
    %522 = vector.broadcast %cst_152 : f32 to vector<8x64xf32>
    %523 = arith.addf %522, %521 : vector<8x64xf32>
    %524 = arith.divf %522, %523 : vector<8x64xf32>
    %525 = vector.extract_strided_slice %524 {offsets = [0, 0], sizes = [8, 32], strides = [1, 1]} : vector<8x64xf32> to vector<8x32xf32>
    %526 = vector.extract_strided_slice %524 {offsets = [0, 32], sizes = [8, 32], strides = [1, 1]} : vector<8x64xf32> to vector<8x32xf32>
    %527 = vector.extract_strided_slice %518 {offsets = [0, 64], sizes = [8, 32], strides = [1, 1]} : vector<8x128xf32> to vector<8x32xf32>
    %528 = vector.extract_strided_slice %518 {offsets = [0, 96], sizes = [8, 32], strides = [1, 1]} : vector<8x128xf32> to vector<8x32xf32>
    %529 = arith.mulf %525, %528 : vector<8x32xf32>
    %530 = arith.addf %527, %529 : vector<8x32xf32>
    %531 = math.tanh %530 : vector<8x32xf32>
    %cst_153 = arith.constant 1.000000e+00 : f32
    %532 = vector.broadcast %cst_153 : f32 to vector<8x32xf32>
    %533 = arith.subf %532, %526 : vector<8x32xf32>
    %534 = arith.mulf %533, %531 : vector<8x32xf32>
    %535 = arith.mulf %526, %438 : vector<8x32xf32>
    %536 = arith.addf %534, %535 : vector<8x32xf32>
    %cst_154 = arith.constant 5.000000e+00 : f32
    %537 = vector.broadcast %cst_154 : f32 to vector<8x32xf32>
    %538 = arith.minimumf %536, %537 : vector<8x32xf32>
    %c4_155 = arith.constant 4 : index
    %c0_156 = arith.constant 0 : index
    %c0_157 = arith.constant 0 : index
    %539 = vector.load %arg26[%c4_155, %c0_156, %c0_157] : memref<8x8x32xf32, #tpu.memory_space<vmem>>, vector<1x8x32xf32>
    %540 = vector.shape_cast %539 : vector<1x8x32xf32> to vector<8x32xf32>
    %541 = vector.shape_cast %496 : vector<8x32xf32> to vector<1x8x32xf32>
    tpu.vector_store %arg26[%c4_155, %c0_156, %c0_157], %541 {strides = array<i32>} : memref<8x8x32xf32, #tpu.memory_space<vmem>>, vector<1x8x32xf32>,
    %c3_158 = arith.constant 3 : index
    %c0_159 = arith.constant 0 : index
    %c0_160 = arith.constant 0 : index
    %542 = vector.load %arg27[%c3_158, %c0_159, %c0_160] : memref<8x8x32xf32, #tpu.memory_space<vmem>>, vector<1x8x32xf32>
    %543 = vector.shape_cast %542 : vector<1x8x32xf32> to vector<8x32xf32>
    %544 = vector.shape_cast %538 : vector<8x32xf32> to vector<1x8x32xf32>
    tpu.vector_store %arg27[%c3_158, %c0_159, %c0_160], %544 {strides = array<i32>} : memref<8x8x32xf32, #tpu.memory_space<vmem>>, vector<1x8x32xf32>,
    %c5_161 = arith.constant 5 : index
    %c0_162 = arith.constant 0 : index
    %c0_163 = arith.constant 0 : index
    %545 = vector.load %arg0[%c5_161, %c0_162, %c0_163] : memref<8x8x16xf32, #tpu.memory_space<vmem>>, vector<1x8x16xf32>
    %546 = vector.shape_cast %545 : vector<1x8x16xf32> to vector<8x16xf32>
    %c2_164 = arith.constant 2 : index
    %c0_165 = arith.constant 0 : index
    %c0_166 = arith.constant 0 : index
    %547 = vector.load %arg0[%c2_164, %c0_165, %c0_166] : memref<8x8x16xf32, #tpu.memory_space<vmem>>, vector<1x8x16xf32>
    %548 = vector.shape_cast %547 : vector<1x8x16xf32> to vector<8x16xf32>
    %549 = tpu.concatenate %546, %475, %496 in 1 : vector<8x16xf32>, vector<8x32xf32>, vector<8x32xf32> -> vector<8x80xf32>
    %cst_167 = arith.constant dense<0.000000e+00> : vector<8x256xf32>
    %550 = tpu.matmul %549, %5, %cst_167 {dimension_numbers = #tpu.dot_dimension_numbers<[1], [0], [0], [1], [0, 0, 1, 1], [], []>} : vector<8x80xf32>, vector<80x256xf32>, vector<8x256xf32> -> vector<8x256xf32>
    %551 = arith.addf %550, %8 : vector<8x256xf32>
    %552 = tpu.concatenate %548, %517, %538 in 1 : vector<8x16xf32>, vector<8x32xf32>, vector<8x32xf32> -> vector<8x80xf32>
    %cst_168 = arith.constant dense<0.000000e+00> : vector<8x256xf32>
    %553 = tpu.matmul %552, %9, %cst_168 {dimension_numbers = #tpu.dot_dimension_numbers<[1], [0], [0], [1], [0, 0, 1, 1], [], []>} : vector<8x80xf32>, vector<80x256xf32>, vector<8x256xf32> -> vector<8x256xf32>
    %554 = arith.addf %553, %12 : vector<8x256xf32>
    %555 = vector.extract_strided_slice %551 {offsets = [0, 0], sizes = [8, 128], strides = [1, 1]} : vector<8x256xf32> to vector<8x128xf32>
    %556 = vector.extract_strided_slice %555 {offsets = [0, 0], sizes = [8, 64], strides = [1, 1]} : vector<8x128xf32> to vector<8x64xf32>
    %557 = arith.negf %556 : vector<8x64xf32>
    %558 = math.exp %557 : vector<8x64xf32>
    %cst_169 = arith.constant 1.000000e+00 : f32
    %559 = vector.broadcast %cst_169 : f32 to vector<8x64xf32>
    %560 = arith.addf %559, %558 : vector<8x64xf32>
    %561 = arith.divf %559, %560 : vector<8x64xf32>
    %562 = vector.extract_strided_slice %561 {offsets = [0, 0], sizes = [8, 32], strides = [1, 1]} : vector<8x64xf32> to vector<8x32xf32>
    %563 = vector.extract_strided_slice %561 {offsets = [0, 32], sizes = [8, 32], strides = [1, 1]} : vector<8x64xf32> to vector<8x32xf32>
    %564 = vector.extract_strided_slice %555 {offsets = [0, 64], sizes = [8, 32], strides = [1, 1]} : vector<8x128xf32> to vector<8x32xf32>
    %565 = vector.extract_strided_slice %555 {offsets = [0, 96], sizes = [8, 32], strides = [1, 1]} : vector<8x128xf32> to vector<8x32xf32>
    %566 = arith.mulf %562, %565 : vector<8x32xf32>
    %567 = arith.addf %564, %566 : vector<8x32xf32>
    %568 = math.tanh %567 : vector<8x32xf32>
    %cst_170 = arith.constant 1.000000e+00 : f32
    %569 = vector.broadcast %cst_170 : f32 to vector<8x32xf32>
    %570 = arith.subf %569, %563 : vector<8x32xf32>
    %571 = arith.mulf %570, %568 : vector<8x32xf32>
    %572 = arith.mulf %563, %475 : vector<8x32xf32>
    %573 = arith.addf %571, %572 : vector<8x32xf32>
    %cst_171 = arith.constant 5.000000e+00 : f32
    %574 = vector.broadcast %cst_171 : f32 to vector<8x32xf32>
    %575 = arith.minimumf %573, %574 : vector<8x32xf32>
    %576 = vector.extract_strided_slice %551 {offsets = [0, 128], sizes = [8, 128], strides = [1, 1]} : vector<8x256xf32> to vector<8x128xf32>
    %577 = vector.extract_strided_slice %576 {offsets = [0, 0], sizes = [8, 64], strides = [1, 1]} : vector<8x128xf32> to vector<8x64xf32>
    %578 = arith.negf %577 : vector<8x64xf32>
    %579 = math.exp %578 : vector<8x64xf32>
    %cst_172 = arith.constant 1.000000e+00 : f32
    %580 = vector.broadcast %cst_172 : f32 to vector<8x64xf32>
    %581 = arith.addf %580, %579 : vector<8x64xf32>
    %582 = arith.divf %580, %581 : vector<8x64xf32>
    %583 = vector.extract_strided_slice %582 {offsets = [0, 0], sizes = [8, 32], strides = [1, 1]} : vector<8x64xf32> to vector<8x32xf32>
    %584 = vector.extract_strided_slice %582 {offsets = [0, 32], sizes = [8, 32], strides = [1, 1]} : vector<8x64xf32> to vector<8x32xf32>
    %585 = vector.extract_strided_slice %576 {offsets = [0, 64], sizes = [8, 32], strides = [1, 1]} : vector<8x128xf32> to vector<8x32xf32>
    %586 = vector.extract_strided_slice %576 {offsets = [0, 96], sizes = [8, 32], strides = [1, 1]} : vector<8x128xf32> to vector<8x32xf32>
    %587 = arith.mulf %583, %586 : vector<8x32xf32>
    %588 = arith.addf %585, %587 : vector<8x32xf32>
    %589 = math.tanh %588 : vector<8x32xf32>
    %cst_173 = arith.constant 1.000000e+00 : f32
    %590 = vector.broadcast %cst_173 : f32 to vector<8x32xf32>
    %591 = arith.subf %590, %584 : vector<8x32xf32>
    %592 = arith.mulf %591, %589 : vector<8x32xf32>
    %593 = arith.mulf %584, %496 : vector<8x32xf32>
    %594 = arith.addf %592, %593 : vector<8x32xf32>
    %cst_174 = arith.constant 5.000000e+00 : f32
    %595 = vector.broadcast %cst_174 : f32 to vector<8x32xf32>
    %596 = arith.minimumf %594, %595 : vector<8x32xf32>
    %597 = vector.extract_strided_slice %554 {offsets = [0, 0], sizes = [8, 128], strides = [1, 1]} : vector<8x256xf32> to vector<8x128xf32>
    %598 = vector.extract_strided_slice %597 {offsets = [0, 0], sizes = [8, 64], strides = [1, 1]} : vector<8x128xf32> to vector<8x64xf32>
    %599 = arith.negf %598 : vector<8x64xf32>
    %600 = math.exp %599 : vector<8x64xf32>
    %cst_175 = arith.constant 1.000000e+00 : f32
    %601 = vector.broadcast %cst_175 : f32 to vector<8x64xf32>
    %602 = arith.addf %601, %600 : vector<8x64xf32>
    %603 = arith.divf %601, %602 : vector<8x64xf32>
    %604 = vector.extract_strided_slice %603 {offsets = [0, 0], sizes = [8, 32], strides = [1, 1]} : vector<8x64xf32> to vector<8x32xf32>
    %605 = vector.extract_strided_slice %603 {offsets = [0, 32], sizes = [8, 32], strides = [1, 1]} : vector<8x64xf32> to vector<8x32xf32>
    %606 = vector.extract_strided_slice %597 {offsets = [0, 64], sizes = [8, 32], strides = [1, 1]} : vector<8x128xf32> to vector<8x32xf32>
    %607 = vector.extract_strided_slice %597 {offsets = [0, 96], sizes = [8, 32], strides = [1, 1]} : vector<8x128xf32> to vector<8x32xf32>
    %608 = arith.mulf %604, %607 : vector<8x32xf32>
    %609 = arith.addf %606, %608 : vector<8x32xf32>
    %610 = math.tanh %609 : vector<8x32xf32>
    %cst_176 = arith.constant 1.000000e+00 : f32
    %611 = vector.broadcast %cst_176 : f32 to vector<8x32xf32>
    %612 = arith.subf %611, %605 : vector<8x32xf32>
    %613 = arith.mulf %612, %610 : vector<8x32xf32>
    %614 = arith.mulf %605, %517 : vector<8x32xf32>
    %615 = arith.addf %613, %614 : vector<8x32xf32>
    %cst_177 = arith.constant 5.000000e+00 : f32
    %616 = vector.broadcast %cst_177 : f32 to vector<8x32xf32>
    %617 = arith.minimumf %615, %616 : vector<8x32xf32>
    %618 = vector.extract_strided_slice %554 {offsets = [0, 128], sizes = [8, 128], strides = [1, 1]} : vector<8x256xf32> to vector<8x128xf32>
    %619 = vector.extract_strided_slice %618 {offsets = [0, 0], sizes = [8, 64], strides = [1, 1]} : vector<8x128xf32> to vector<8x64xf32>
    %620 = arith.negf %619 : vector<8x64xf32>
    %621 = math.exp %620 : vector<8x64xf32>
    %cst_178 = arith.constant 1.000000e+00 : f32
    %622 = vector.broadcast %cst_178 : f32 to vector<8x64xf32>
    %623 = arith.addf %622, %621 : vector<8x64xf32>
    %624 = arith.divf %622, %623 : vector<8x64xf32>
    %625 = vector.extract_strided_slice %624 {offsets = [0, 0], sizes = [8, 32], strides = [1, 1]} : vector<8x64xf32> to vector<8x32xf32>
    %626 = vector.extract_strided_slice %624 {offsets = [0, 32], sizes = [8, 32], strides = [1, 1]} : vector<8x64xf32> to vector<8x32xf32>
    %627 = vector.extract_strided_slice %618 {offsets = [0, 64], sizes = [8, 32], strides = [1, 1]} : vector<8x128xf32> to vector<8x32xf32>
    %628 = vector.extract_strided_slice %618 {offsets = [0, 96], sizes = [8, 32], strides = [1, 1]} : vector<8x128xf32> to vector<8x32xf32>
    %629 = arith.mulf %625, %628 : vector<8x32xf32>
    %630 = arith.addf %627, %629 : vector<8x32xf32>
    %631 = math.tanh %630 : vector<8x32xf32>
    %cst_179 = arith.constant 1.000000e+00 : f32
    %632 = vector.broadcast %cst_179 : f32 to vector<8x32xf32>
    %633 = arith.subf %632, %626 : vector<8x32xf32>
    %634 = arith.mulf %633, %631 : vector<8x32xf32>
    %635 = arith.mulf %626, %538 : vector<8x32xf32>
    %636 = arith.addf %634, %635 : vector<8x32xf32>
    %cst_180 = arith.constant 5.000000e+00 : f32
    %637 = vector.broadcast %cst_180 : f32 to vector<8x32xf32>
    %638 = arith.minimumf %636, %637 : vector<8x32xf32>
    %c5_181 = arith.constant 5 : index
    %c0_182 = arith.constant 0 : index
    %c0_183 = arith.constant 0 : index
    %639 = vector.load %arg26[%c5_181, %c0_182, %c0_183] : memref<8x8x32xf32, #tpu.memory_space<vmem>>, vector<1x8x32xf32>
    %640 = vector.shape_cast %639 : vector<1x8x32xf32> to vector<8x32xf32>
    %641 = vector.shape_cast %596 : vector<8x32xf32> to vector<1x8x32xf32>
    tpu.vector_store %arg26[%c5_181, %c0_182, %c0_183], %641 {strides = array<i32>} : memref<8x8x32xf32, #tpu.memory_space<vmem>>, vector<1x8x32xf32>,
    %c2_184 = arith.constant 2 : index
    %c0_185 = arith.constant 0 : index
    %c0_186 = arith.constant 0 : index
    %642 = vector.load %arg27[%c2_184, %c0_185, %c0_186] : memref<8x8x32xf32, #tpu.memory_space<vmem>>, vector<1x8x32xf32>
    %643 = vector.shape_cast %642 : vector<1x8x32xf32> to vector<8x32xf32>
    %644 = vector.shape_cast %638 : vector<8x32xf32> to vector<1x8x32xf32>
    tpu.vector_store %arg27[%c2_184, %c0_185, %c0_186], %644 {strides = array<i32>} : memref<8x8x32xf32, #tpu.memory_space<vmem>>, vector<1x8x32xf32>,
    %c6_187 = arith.constant 6 : index
    %c0_188 = arith.constant 0 : index
    %c0_189 = arith.constant 0 : index
    %645 = vector.load %arg0[%c6_187, %c0_188, %c0_189] : memref<8x8x16xf32, #tpu.memory_space<vmem>>, vector<1x8x16xf32>
    %646 = vector.shape_cast %645 : vector<1x8x16xf32> to vector<8x16xf32>
    %c1_190 = arith.constant 1 : index
    %c0_191 = arith.constant 0 : index
    %c0_192 = arith.constant 0 : index
    %647 = vector.load %arg0[%c1_190, %c0_191, %c0_192] : memref<8x8x16xf32, #tpu.memory_space<vmem>>, vector<1x8x16xf32>
    %648 = vector.shape_cast %647 : vector<1x8x16xf32> to vector<8x16xf32>
    %649 = tpu.concatenate %646, %575, %596 in 1 : vector<8x16xf32>, vector<8x32xf32>, vector<8x32xf32> -> vector<8x80xf32>
    %cst_193 = arith.constant dense<0.000000e+00> : vector<8x256xf32>
    %650 = tpu.matmul %649, %5, %cst_193 {dimension_numbers = #tpu.dot_dimension_numbers<[1], [0], [0], [1], [0, 0, 1, 1], [], []>} : vector<8x80xf32>, vector<80x256xf32>, vector<8x256xf32> -> vector<8x256xf32>
    %651 = arith.addf %650, %8 : vector<8x256xf32>
    %652 = tpu.concatenate %648, %617, %638 in 1 : vector<8x16xf32>, vector<8x32xf32>, vector<8x32xf32> -> vector<8x80xf32>
    %cst_194 = arith.constant dense<0.000000e+00> : vector<8x256xf32>
    %653 = tpu.matmul %652, %9, %cst_194 {dimension_numbers = #tpu.dot_dimension_numbers<[1], [0], [0], [1], [0, 0, 1, 1], [], []>} : vector<8x80xf32>, vector<80x256xf32>, vector<8x256xf32> -> vector<8x256xf32>
    %654 = arith.addf %653, %12 : vector<8x256xf32>
    %655 = vector.extract_strided_slice %651 {offsets = [0, 0], sizes = [8, 128], strides = [1, 1]} : vector<8x256xf32> to vector<8x128xf32>
    %656 = vector.extract_strided_slice %655 {offsets = [0, 0], sizes = [8, 64], strides = [1, 1]} : vector<8x128xf32> to vector<8x64xf32>
    %657 = arith.negf %656 : vector<8x64xf32>
    %658 = math.exp %657 : vector<8x64xf32>
    %cst_195 = arith.constant 1.000000e+00 : f32
    %659 = vector.broadcast %cst_195 : f32 to vector<8x64xf32>
    %660 = arith.addf %659, %658 : vector<8x64xf32>
    %661 = arith.divf %659, %660 : vector<8x64xf32>
    %662 = vector.extract_strided_slice %661 {offsets = [0, 0], sizes = [8, 32], strides = [1, 1]} : vector<8x64xf32> to vector<8x32xf32>
    %663 = vector.extract_strided_slice %661 {offsets = [0, 32], sizes = [8, 32], strides = [1, 1]} : vector<8x64xf32> to vector<8x32xf32>
    %664 = vector.extract_strided_slice %655 {offsets = [0, 64], sizes = [8, 32], strides = [1, 1]} : vector<8x128xf32> to vector<8x32xf32>
    %665 = vector.extract_strided_slice %655 {offsets = [0, 96], sizes = [8, 32], strides = [1, 1]} : vector<8x128xf32> to vector<8x32xf32>
    %666 = arith.mulf %662, %665 : vector<8x32xf32>
    %667 = arith.addf %664, %666 : vector<8x32xf32>
    %668 = math.tanh %667 : vector<8x32xf32>
    %cst_196 = arith.constant 1.000000e+00 : f32
    %669 = vector.broadcast %cst_196 : f32 to vector<8x32xf32>
    %670 = arith.subf %669, %663 : vector<8x32xf32>
    %671 = arith.mulf %670, %668 : vector<8x32xf32>
    %672 = arith.mulf %663, %575 : vector<8x32xf32>
    %673 = arith.addf %671, %672 : vector<8x32xf32>
    %cst_197 = arith.constant 5.000000e+00 : f32
    %674 = vector.broadcast %cst_197 : f32 to vector<8x32xf32>
    %675 = arith.minimumf %673, %674 : vector<8x32xf32>
    %676 = vector.extract_strided_slice %651 {offsets = [0, 128], sizes = [8, 128], strides = [1, 1]} : vector<8x256xf32> to vector<8x128xf32>
    %677 = vector.extract_strided_slice %676 {offsets = [0, 0], sizes = [8, 64], strides = [1, 1]} : vector<8x128xf32> to vector<8x64xf32>
    %678 = arith.negf %677 : vector<8x64xf32>
    %679 = math.exp %678 : vector<8x64xf32>
    %cst_198 = arith.constant 1.000000e+00 : f32
    %680 = vector.broadcast %cst_198 : f32 to vector<8x64xf32>
    %681 = arith.addf %680, %679 : vector<8x64xf32>
    %682 = arith.divf %680, %681 : vector<8x64xf32>
    %683 = vector.extract_strided_slice %682 {offsets = [0, 0], sizes = [8, 32], strides = [1, 1]} : vector<8x64xf32> to vector<8x32xf32>
    %684 = vector.extract_strided_slice %682 {offsets = [0, 32], sizes = [8, 32], strides = [1, 1]} : vector<8x64xf32> to vector<8x32xf32>
    %685 = vector.extract_strided_slice %676 {offsets = [0, 64], sizes = [8, 32], strides = [1, 1]} : vector<8x128xf32> to vector<8x32xf32>
    %686 = vector.extract_strided_slice %676 {offsets = [0, 96], sizes = [8, 32], strides = [1, 1]} : vector<8x128xf32> to vector<8x32xf32>
    %687 = arith.mulf %683, %686 : vector<8x32xf32>
    %688 = arith.addf %685, %687 : vector<8x32xf32>
    %689 = math.tanh %688 : vector<8x32xf32>
    %cst_199 = arith.constant 1.000000e+00 : f32
    %690 = vector.broadcast %cst_199 : f32 to vector<8x32xf32>
    %691 = arith.subf %690, %684 : vector<8x32xf32>
    %692 = arith.mulf %691, %689 : vector<8x32xf32>
    %693 = arith.mulf %684, %596 : vector<8x32xf32>
    %694 = arith.addf %692, %693 : vector<8x32xf32>
    %cst_200 = arith.constant 5.000000e+00 : f32
    %695 = vector.broadcast %cst_200 : f32 to vector<8x32xf32>
    %696 = arith.minimumf %694, %695 : vector<8x32xf32>
    %697 = vector.extract_strided_slice %654 {offsets = [0, 0], sizes = [8, 128], strides = [1, 1]} : vector<8x256xf32> to vector<8x128xf32>
    %698 = vector.extract_strided_slice %697 {offsets = [0, 0], sizes = [8, 64], strides = [1, 1]} : vector<8x128xf32> to vector<8x64xf32>
    %699 = arith.negf %698 : vector<8x64xf32>
    %700 = math.exp %699 : vector<8x64xf32>
    %cst_201 = arith.constant 1.000000e+00 : f32
    %701 = vector.broadcast %cst_201 : f32 to vector<8x64xf32>
    %702 = arith.addf %701, %700 : vector<8x64xf32>
    %703 = arith.divf %701, %702 : vector<8x64xf32>
    %704 = vector.extract_strided_slice %703 {offsets = [0, 0], sizes = [8, 32], strides = [1, 1]} : vector<8x64xf32> to vector<8x32xf32>
    %705 = vector.extract_strided_slice %703 {offsets = [0, 32], sizes = [8, 32], strides = [1, 1]} : vector<8x64xf32> to vector<8x32xf32>
    %706 = vector.extract_strided_slice %697 {offsets = [0, 64], sizes = [8, 32], strides = [1, 1]} : vector<8x128xf32> to vector<8x32xf32>
    %707 = vector.extract_strided_slice %697 {offsets = [0, 96], sizes = [8, 32], strides = [1, 1]} : vector<8x128xf32> to vector<8x32xf32>
    %708 = arith.mulf %704, %707 : vector<8x32xf32>
    %709 = arith.addf %706, %708 : vector<8x32xf32>
    %710 = math.tanh %709 : vector<8x32xf32>
    %cst_202 = arith.constant 1.000000e+00 : f32
    %711 = vector.broadcast %cst_202 : f32 to vector<8x32xf32>
    %712 = arith.subf %711, %705 : vector<8x32xf32>
    %713 = arith.mulf %712, %710 : vector<8x32xf32>
    %714 = arith.mulf %705, %617 : vector<8x32xf32>
    %715 = arith.addf %713, %714 : vector<8x32xf32>
    %cst_203 = arith.constant 5.000000e+00 : f32
    %716 = vector.broadcast %cst_203 : f32 to vector<8x32xf32>
    %717 = arith.minimumf %715, %716 : vector<8x32xf32>
    %718 = vector.extract_strided_slice %654 {offsets = [0, 128], sizes = [8, 128], strides = [1, 1]} : vector<8x256xf32> to vector<8x128xf32>
    %719 = vector.extract_strided_slice %718 {offsets = [0, 0], sizes = [8, 64], strides = [1, 1]} : vector<8x128xf32> to vector<8x64xf32>
    %720 = arith.negf %719 : vector<8x64xf32>
    %721 = math.exp %720 : vector<8x64xf32>
    %cst_204 = arith.constant 1.000000e+00 : f32
    %722 = vector.broadcast %cst_204 : f32 to vector<8x64xf32>
    %723 = arith.addf %722, %721 : vector<8x64xf32>
    %724 = arith.divf %722, %723 : vector<8x64xf32>
    %725 = vector.extract_strided_slice %724 {offsets = [0, 0], sizes = [8, 32], strides = [1, 1]} : vector<8x64xf32> to vector<8x32xf32>
    %726 = vector.extract_strided_slice %724 {offsets = [0, 32], sizes = [8, 32], strides = [1, 1]} : vector<8x64xf32> to vector<8x32xf32>
    %727 = vector.extract_strided_slice %718 {offsets = [0, 64], sizes = [8, 32], strides = [1, 1]} : vector<8x128xf32> to vector<8x32xf32>
    %728 = vector.extract_strided_slice %718 {offsets = [0, 96], sizes = [8, 32], strides = [1, 1]} : vector<8x128xf32> to vector<8x32xf32>
    %729 = arith.mulf %725, %728 : vector<8x32xf32>
    %730 = arith.addf %727, %729 : vector<8x32xf32>
    %731 = math.tanh %730 : vector<8x32xf32>
    %cst_205 = arith.constant 1.000000e+00 : f32
    %732 = vector.broadcast %cst_205 : f32 to vector<8x32xf32>
    %733 = arith.subf %732, %726 : vector<8x32xf32>
    %734 = arith.mulf %733, %731 : vector<8x32xf32>
    %735 = arith.mulf %726, %638 : vector<8x32xf32>
    %736 = arith.addf %734, %735 : vector<8x32xf32>
    %cst_206 = arith.constant 5.000000e+00 : f32
    %737 = vector.broadcast %cst_206 : f32 to vector<8x32xf32>
    %738 = arith.minimumf %736, %737 : vector<8x32xf32>
    %c6_207 = arith.constant 6 : index
    %c0_208 = arith.constant 0 : index
    %c0_209 = arith.constant 0 : index
    %739 = vector.load %arg26[%c6_207, %c0_208, %c0_209] : memref<8x8x32xf32, #tpu.memory_space<vmem>>, vector<1x8x32xf32>
    %740 = vector.shape_cast %739 : vector<1x8x32xf32> to vector<8x32xf32>
    %741 = vector.shape_cast %696 : vector<8x32xf32> to vector<1x8x32xf32>
    tpu.vector_store %arg26[%c6_207, %c0_208, %c0_209], %741 {strides = array<i32>} : memref<8x8x32xf32, #tpu.memory_space<vmem>>, vector<1x8x32xf32>,
    %c1_210 = arith.constant 1 : index
    %c0_211 = arith.constant 0 : index
    %c0_212 = arith.constant 0 : index
    %742 = vector.load %arg27[%c1_210, %c0_211, %c0_212] : memref<8x8x32xf32, #tpu.memory_space<vmem>>, vector<1x8x32xf32>
    %743 = vector.shape_cast %742 : vector<1x8x32xf32> to vector<8x32xf32>
    %744 = vector.shape_cast %738 : vector<8x32xf32> to vector<1x8x32xf32>
    tpu.vector_store %arg27[%c1_210, %c0_211, %c0_212], %744 {strides = array<i32>} : memref<8x8x32xf32, #tpu.memory_space<vmem>>, vector<1x8x32xf32>,
    %c7_213 = arith.constant 7 : index
    %c0_214 = arith.constant 0 : index
    %c0_215 = arith.constant 0 : index
    %745 = vector.load %arg0[%c7_213, %c0_214, %c0_215] : memref<8x8x16xf32, #tpu.memory_space<vmem>>, vector<1x8x16xf32>
    %746 = vector.shape_cast %745 : vector<1x8x16xf32> to vector<8x16xf32>
    %c0_216 = arith.constant 0 : index
    %c0_217 = arith.constant 0 : index
    %c0_218 = arith.constant 0 : index
    %747 = vector.load %arg0[%c0_216, %c0_217, %c0_218] : memref<8x8x16xf32, #tpu.memory_space<vmem>>, vector<1x8x16xf32>
    %748 = vector.shape_cast %747 : vector<1x8x16xf32> to vector<8x16xf32>
    %749 = tpu.concatenate %746, %675, %696 in 1 : vector<8x16xf32>, vector<8x32xf32>, vector<8x32xf32> -> vector<8x80xf32>
    %cst_219 = arith.constant dense<0.000000e+00> : vector<8x256xf32>
    %750 = tpu.matmul %749, %5, %cst_219 {dimension_numbers = #tpu.dot_dimension_numbers<[1], [0], [0], [1], [0, 0, 1, 1], [], []>} : vector<8x80xf32>, vector<80x256xf32>, vector<8x256xf32> -> vector<8x256xf32>
    %751 = arith.addf %750, %8 : vector<8x256xf32>
    %752 = tpu.concatenate %748, %717, %738 in 1 : vector<8x16xf32>, vector<8x32xf32>, vector<8x32xf32> -> vector<8x80xf32>
    %cst_220 = arith.constant dense<0.000000e+00> : vector<8x256xf32>
    %753 = tpu.matmul %752, %9, %cst_220 {dimension_numbers = #tpu.dot_dimension_numbers<[1], [0], [0], [1], [0, 0, 1, 1], [], []>} : vector<8x80xf32>, vector<80x256xf32>, vector<8x256xf32> -> vector<8x256xf32>
    %754 = arith.addf %753, %12 : vector<8x256xf32>
    %755 = vector.extract_strided_slice %751 {offsets = [0, 0], sizes = [8, 128], strides = [1, 1]} : vector<8x256xf32> to vector<8x128xf32>
    %756 = vector.extract_strided_slice %755 {offsets = [0, 0], sizes = [8, 64], strides = [1, 1]} : vector<8x128xf32> to vector<8x64xf32>
    %757 = arith.negf %756 : vector<8x64xf32>
    %758 = math.exp %757 : vector<8x64xf32>
    %cst_221 = arith.constant 1.000000e+00 : f32
    %759 = vector.broadcast %cst_221 : f32 to vector<8x64xf32>
    %760 = arith.addf %759, %758 : vector<8x64xf32>
    %761 = arith.divf %759, %760 : vector<8x64xf32>
    %762 = vector.extract_strided_slice %761 {offsets = [0, 0], sizes = [8, 32], strides = [1, 1]} : vector<8x64xf32> to vector<8x32xf32>
    %763 = vector.extract_strided_slice %761 {offsets = [0, 32], sizes = [8, 32], strides = [1, 1]} : vector<8x64xf32> to vector<8x32xf32>
    %764 = vector.extract_strided_slice %755 {offsets = [0, 64], sizes = [8, 32], strides = [1, 1]} : vector<8x128xf32> to vector<8x32xf32>
    %765 = vector.extract_strided_slice %755 {offsets = [0, 96], sizes = [8, 32], strides = [1, 1]} : vector<8x128xf32> to vector<8x32xf32>
    %766 = arith.mulf %762, %765 : vector<8x32xf32>
    %767 = arith.addf %764, %766 : vector<8x32xf32>
    %768 = math.tanh %767 : vector<8x32xf32>
    %cst_222 = arith.constant 1.000000e+00 : f32
    %769 = vector.broadcast %cst_222 : f32 to vector<8x32xf32>
    %770 = arith.subf %769, %763 : vector<8x32xf32>
    %771 = arith.mulf %770, %768 : vector<8x32xf32>
    %772 = arith.mulf %763, %675 : vector<8x32xf32>
    %773 = arith.addf %771, %772 : vector<8x32xf32>
    %cst_223 = arith.constant 5.000000e+00 : f32
    %774 = vector.broadcast %cst_223 : f32 to vector<8x32xf32>
    %775 = arith.minimumf %773, %774 : vector<8x32xf32>
    %776 = vector.extract_strided_slice %751 {offsets = [0, 128], sizes = [8, 128], strides = [1, 1]} : vector<8x256xf32> to vector<8x128xf32>
    %777 = vector.extract_strided_slice %776 {offsets = [0, 0], sizes = [8, 64], strides = [1, 1]} : vector<8x128xf32> to vector<8x64xf32>
    %778 = arith.negf %777 : vector<8x64xf32>
    %779 = math.exp %778 : vector<8x64xf32>
    %cst_224 = arith.constant 1.000000e+00 : f32
    %780 = vector.broadcast %cst_224 : f32 to vector<8x64xf32>
    %781 = arith.addf %780, %779 : vector<8x64xf32>
    %782 = arith.divf %780, %781 : vector<8x64xf32>
    %783 = vector.extract_strided_slice %782 {offsets = [0, 0], sizes = [8, 32], strides = [1, 1]} : vector<8x64xf32> to vector<8x32xf32>
    %784 = vector.extract_strided_slice %782 {offsets = [0, 32], sizes = [8, 32], strides = [1, 1]} : vector<8x64xf32> to vector<8x32xf32>
    %785 = vector.extract_strided_slice %776 {offsets = [0, 64], sizes = [8, 32], strides = [1, 1]} : vector<8x128xf32> to vector<8x32xf32>
    %786 = vector.extract_strided_slice %776 {offsets = [0, 96], sizes = [8, 32], strides = [1, 1]} : vector<8x128xf32> to vector<8x32xf32>
    %787 = arith.mulf %783, %786 : vector<8x32xf32>
    %788 = arith.addf %785, %787 : vector<8x32xf32>
    %789 = math.tanh %788 : vector<8x32xf32>
    %cst_225 = arith.constant 1.000000e+00 : f32
    %790 = vector.broadcast %cst_225 : f32 to vector<8x32xf32>
    %791 = arith.subf %790, %784 : vector<8x32xf32>
    %792 = arith.mulf %791, %789 : vector<8x32xf32>
    %793 = arith.mulf %784, %696 : vector<8x32xf32>
    %794 = arith.addf %792, %793 : vector<8x32xf32>
    %cst_226 = arith.constant 5.000000e+00 : f32
    %795 = vector.broadcast %cst_226 : f32 to vector<8x32xf32>
    %796 = arith.minimumf %794, %795 : vector<8x32xf32>
    %797 = vector.extract_strided_slice %754 {offsets = [0, 0], sizes = [8, 128], strides = [1, 1]} : vector<8x256xf32> to vector<8x128xf32>
    %798 = vector.extract_strided_slice %797 {offsets = [0, 0], sizes = [8, 64], strides = [1, 1]} : vector<8x128xf32> to vector<8x64xf32>
    %799 = arith.negf %798 : vector<8x64xf32>
    %800 = math.exp %799 : vector<8x64xf32>
    %cst_227 = arith.constant 1.000000e+00 : f32
    %801 = vector.broadcast %cst_227 : f32 to vector<8x64xf32>
    %802 = arith.addf %801, %800 : vector<8x64xf32>
    %803 = arith.divf %801, %802 : vector<8x64xf32>
    %804 = vector.extract_strided_slice %803 {offsets = [0, 0], sizes = [8, 32], strides = [1, 1]} : vector<8x64xf32> to vector<8x32xf32>
    %805 = vector.extract_strided_slice %803 {offsets = [0, 32], sizes = [8, 32], strides = [1, 1]} : vector<8x64xf32> to vector<8x32xf32>
    %806 = vector.extract_strided_slice %797 {offsets = [0, 64], sizes = [8, 32], strides = [1, 1]} : vector<8x128xf32> to vector<8x32xf32>
    %807 = vector.extract_strided_slice %797 {offsets = [0, 96], sizes = [8, 32], strides = [1, 1]} : vector<8x128xf32> to vector<8x32xf32>
    %808 = arith.mulf %804, %807 : vector<8x32xf32>
    %809 = arith.addf %806, %808 : vector<8x32xf32>
    %810 = math.tanh %809 : vector<8x32xf32>
    %cst_228 = arith.constant 1.000000e+00 : f32
    %811 = vector.broadcast %cst_228 : f32 to vector<8x32xf32>
    %812 = arith.subf %811, %805 : vector<8x32xf32>
    %813 = arith.mulf %812, %810 : vector<8x32xf32>
    %814 = arith.mulf %805, %717 : vector<8x32xf32>
    %815 = arith.addf %813, %814 : vector<8x32xf32>
    %cst_229 = arith.constant 5.000000e+00 : f32
    %816 = vector.broadcast %cst_229 : f32 to vector<8x32xf32>
    %817 = arith.minimumf %815, %816 : vector<8x32xf32>
    %818 = vector.extract_strided_slice %754 {offsets = [0, 128], sizes = [8, 128], strides = [1, 1]} : vector<8x256xf32> to vector<8x128xf32>
    %819 = vector.extract_strided_slice %818 {offsets = [0, 0], sizes = [8, 64], strides = [1, 1]} : vector<8x128xf32> to vector<8x64xf32>
    %820 = arith.negf %819 : vector<8x64xf32>
    %821 = math.exp %820 : vector<8x64xf32>
    %cst_230 = arith.constant 1.000000e+00 : f32
    %822 = vector.broadcast %cst_230 : f32 to vector<8x64xf32>
    %823 = arith.addf %822, %821 : vector<8x64xf32>
    %824 = arith.divf %822, %823 : vector<8x64xf32>
    %825 = vector.extract_strided_slice %824 {offsets = [0, 0], sizes = [8, 32], strides = [1, 1]} : vector<8x64xf32> to vector<8x32xf32>
    %826 = vector.extract_strided_slice %824 {offsets = [0, 32], sizes = [8, 32], strides = [1, 1]} : vector<8x64xf32> to vector<8x32xf32>
    %827 = vector.extract_strided_slice %818 {offsets = [0, 64], sizes = [8, 32], strides = [1, 1]} : vector<8x128xf32> to vector<8x32xf32>
    %828 = vector.extract_strided_slice %818 {offsets = [0, 96], sizes = [8, 32], strides = [1, 1]} : vector<8x128xf32> to vector<8x32xf32>
    %829 = arith.mulf %825, %828 : vector<8x32xf32>
    %830 = arith.addf %827, %829 : vector<8x32xf32>
    %831 = math.tanh %830 : vector<8x32xf32>
    %cst_231 = arith.constant 1.000000e+00 : f32
    %832 = vector.broadcast %cst_231 : f32 to vector<8x32xf32>
    %833 = arith.subf %832, %826 : vector<8x32xf32>
    %834 = arith.mulf %833, %831 : vector<8x32xf32>
    %835 = arith.mulf %826, %738 : vector<8x32xf32>
    %836 = arith.addf %834, %835 : vector<8x32xf32>
    %cst_232 = arith.constant 5.000000e+00 : f32
    %837 = vector.broadcast %cst_232 : f32 to vector<8x32xf32>
    %838 = arith.minimumf %836, %837 : vector<8x32xf32>
    %c7_233 = arith.constant 7 : index
    %c0_234 = arith.constant 0 : index
    %c0_235 = arith.constant 0 : index
    %839 = vector.load %arg26[%c7_233, %c0_234, %c0_235] : memref<8x8x32xf32, #tpu.memory_space<vmem>>, vector<1x8x32xf32>
    %840 = vector.shape_cast %839 : vector<1x8x32xf32> to vector<8x32xf32>
    %841 = vector.shape_cast %796 : vector<8x32xf32> to vector<1x8x32xf32>
    tpu.vector_store %arg26[%c7_233, %c0_234, %c0_235], %841 {strides = array<i32>} : memref<8x8x32xf32, #tpu.memory_space<vmem>>, vector<1x8x32xf32>,
    %c0_236 = arith.constant 0 : index
    %c0_237 = arith.constant 0 : index
    %c0_238 = arith.constant 0 : index
    %842 = vector.load %arg27[%c0_236, %c0_237, %c0_238] : memref<8x8x32xf32, #tpu.memory_space<vmem>>, vector<1x8x32xf32>
    %843 = vector.shape_cast %842 : vector<1x8x32xf32> to vector<8x32xf32>
    %844 = vector.shape_cast %838 : vector<8x32xf32> to vector<1x8x32xf32>
    tpu.vector_store %arg27[%c0_236, %c0_237, %c0_238], %844 {strides = array<i32>} : memref<8x8x32xf32, #tpu.memory_space<vmem>>, vector<1x8x32xf32>,
    %845 = tpu.concatenate %775, %817 in 1 : vector<8x32xf32>, vector<8x32xf32> -> vector<8x64xf32>
    %c0_239 = arith.constant 0 : index
    %c0_240 = arith.constant 0 : index
    %846 = vector.load %arg13[%c0_239, %c0_240] : memref<64x64xf32, #tpu.memory_space<vmem>>, vector<64x64xf32>
    %cst_241 = arith.constant dense<0.000000e+00> : vector<8x64xf32>
    %847 = tpu.matmul %845, %846, %cst_241 {dimension_numbers = #tpu.dot_dimension_numbers<[1], [0], [0], [1], [0, 0, 1, 1], [], []>} : vector<8x64xf32>, vector<64x64xf32>, vector<8x64xf32> -> vector<8x64xf32>
    %c0_242 = arith.constant 0 : index
    %c0_243 = arith.constant 0 : index
    %848 = vector.load %arg14[%c0_242, %c0_243] : memref<1x64xf32, #tpu.memory_space<vmem>>, vector<1x64xf32>
    %849 = vector.shape_cast %848 : vector<1x64xf32> to vector<1x64xf32>
    %850 = vector.broadcast %849 : vector<1x64xf32> to vector<8x64xf32>
    %851 = arith.addf %847, %850 : vector<8x64xf32>
    %852 = vector.extract_strided_slice %851 {offsets = [0, 0], sizes = [8, 32], strides = [1, 1]} : vector<8x64xf32> to vector<8x32xf32>
    %853 = vector.extract_strided_slice %851 {offsets = [0, 32], sizes = [8, 32], strides = [1, 1]} : vector<8x64xf32> to vector<8x32xf32>
    %cst_244 = arith.constant -9.21034049 : f32
    %854 = vector.broadcast %cst_244 : f32 to vector<8x32xf32>
    %855 = arith.maximumf %853, %854 : vector<8x32xf32>
    %c0_245 = arith.constant 0 : index
    %c0_246 = arith.constant 0 : index
    %856 = vector.load %arg2[%c0_245, %c0_246] : memref<8x32xf32, #tpu.memory_space<vmem>>, vector<8x32xf32>
    %cst_247 = arith.constant 5.000000e-01 : f32
    %857 = vector.broadcast %cst_247 : f32 to vector<8x32xf32>
    %858 = arith.mulf %857, %855 : vector<8x32xf32>
    %859 = math.exp %858 : vector<8x32xf32>
    %860 = arith.mulf %856, %859 : vector<8x32xf32>
    %861 = arith.addf %860, %852 : vector<8x32xf32>
    %cst_248 = arith.constant 0.000000e+00 : f32
    %862 = vector.broadcast %cst_248 : f32 to vector<8x32xf32>
    %863 = vector.broadcast %38 : f32 to vector<8x32xf32>
    %864 = arith.addf %862, %863 : vector<8x32xf32>
    %cst_249 = arith.constant 0.000000e+00 : f32
    %865 = vector.broadcast %cst_249 : f32 to vector<8x32xf32>
    %866 = vector.broadcast %37 : f32 to vector<8x32xf32>
    %867 = arith.addf %865, %866 : vector<8x32xf32>
    %868 = arith.subf %864, %855 : vector<8x32xf32>
    %869 = arith.subf %855, %864 : vector<8x32xf32>
    %870 = math.exp %869 : vector<8x32xf32>
    %871 = arith.addf %868, %870 : vector<8x32xf32>
    %872 = arith.subf %852, %867 : vector<8x32xf32>
    %cst_250 = arith.constant -5.000000e-01 : f32
    %873 = vector.broadcast %cst_250 : f32 to vector<8x32xf32>
    %874 = arith.mulf %873, %864 : vector<8x32xf32>
    %875 = math.exp %874 : vector<8x32xf32>
    %876 = arith.mulf %872, %875 : vector<8x32xf32>
    %877 = arith.mulf %876, %876 : vector<8x32xf32>
    %878 = arith.addf %871, %877 : vector<8x32xf32>
    %cst_251 = arith.constant 1.000000e+00 : f32
    %879 = vector.broadcast %cst_251 : f32 to vector<8x32xf32>
    %880 = arith.subf %878, %879 : vector<8x32xf32>
    %881 = vector.broadcast %4 : vector<8x1xf32> to vector<8x32xf32>
    %882 = arith.mulf %880, %881 : vector<8x32xf32>
    %883 = vector.shape_cast %882 : vector<8x32xf32> to vector<1x8x32xf32>
    %cst_252 = arith.constant dense<0.000000e+00> : vector<1xf32>
    %884 = vector.multi_reduction <add>, %883, %cst_252 [1, 2] : vector<1x8x32xf32> to vector<1xf32>
    %885 = vector.shape_cast %884 : vector<1xf32> to vector<1x1x1xf32>
    %886 = vector.extract %885[0, 0, 0] : f32 from vector<1x1x1xf32>
    %887 = vector.broadcast %886 : f32 to vector<1x1xf32>
    %cst_253 = arith.constant 5.000000e-01 : f32
    %888 = vector.broadcast %cst_253 : f32 to vector<1x1xf32>
    %889 = arith.mulf %888, %887 : vector<1x1xf32>
    %cst_254 = arith.constant dense<0.000000e+00> : vector<8x8xf32>
    %890 = tpu.matmul %861, %25, %cst_254 {dimension_numbers = #tpu.dot_dimension_numbers<[1], [0], [0], [1], [0, 0, 1, 1], [], []>} : vector<8x32xf32>, vector<32x8xf32>, vector<8x8xf32> -> vector<8x8xf32>
    %891 = arith.addf %890, %28 : vector<8x8xf32>
    %cst_255 = arith.constant 0.000000e+00 : f32
    %892 = vector.broadcast %cst_255 : f32 to vector<8x2xf32>
    %893 = vector.broadcast %40 : f32 to vector<8x2xf32>
    %894 = arith.addf %892, %893 : vector<8x2xf32>
    %cst_256 = arith.constant 0.000000e+00 : f32
    %895 = vector.broadcast %cst_256 : f32 to vector<8x2xf32>
    %896 = vector.broadcast %39 : f32 to vector<8x2xf32>
    %897 = arith.addf %895, %896 : vector<8x2xf32>
    %cst_257 = arith.constant -5.000000e-01 : f32
    %898 = vector.broadcast %cst_257 : f32 to vector<8x2xf32>
    %899 = arith.mulf %898, %894 : vector<8x2xf32>
    %900 = math.exp %899 : vector<8x2xf32>
    %cst_258 = arith.constant 0.000000e+00 : f32
    %901 = vector.broadcast %cst_258 : f32 to vector<8x32xf32>
    %cst_259 = arith.constant 0.000000e+00 : f32
    %902 = vector.broadcast %cst_259 : f32 to vector<1x1xf32>
    %c0_260 = arith.constant 0 : index
    %c0_261 = arith.constant 0 : index
    %c0_262 = arith.constant 0 : index
    %903 = vector.load %arg26[%c0_260, %c0_261, %c0_262] : memref<8x8x32xf32, #tpu.memory_space<vmem>>, vector<1x8x32xf32>
    %904 = vector.shape_cast %903 : vector<1x8x32xf32> to vector<8x32xf32>
    %c0_263 = arith.constant 0 : index
    %c0_264 = arith.constant 0 : index
    %c0_265 = arith.constant 0 : index
    %905 = vector.load %arg27[%c0_263, %c0_264, %c0_265] : memref<8x8x32xf32, #tpu.memory_space<vmem>>, vector<1x8x32xf32>
    %906 = vector.shape_cast %905 : vector<1x8x32xf32> to vector<8x32xf32>
    %907 = tpu.concatenate %904, %906, %891, %901 in 1 : vector<8x32xf32>, vector<8x32xf32>, vector<8x8xf32>, vector<8x32xf32> -> vector<8x104xf32>
    %cst_266 = arith.constant dense<0.000000e+00> : vector<8x128xf32>
    %908 = tpu.matmul %907, %13, %cst_266 {dimension_numbers = #tpu.dot_dimension_numbers<[1], [0], [0], [1], [0, 0, 1, 1], [], []>} : vector<8x104xf32>, vector<104x128xf32>, vector<8x128xf32> -> vector<8x128xf32>
    %909 = arith.addf %908, %16 : vector<8x128xf32>
    %910 = vector.extract_strided_slice %909 {offsets = [0, 0], sizes = [8, 64], strides = [1, 1]} : vector<8x128xf32> to vector<8x64xf32>
    %911 = arith.negf %910 : vector<8x64xf32>
    %912 = math.exp %911 : vector<8x64xf32>
    %cst_267 = arith.constant 1.000000e+00 : f32
    %913 = vector.broadcast %cst_267 : f32 to vector<8x64xf32>
    %914 = arith.addf %913, %912 : vector<8x64xf32>
    %915 = arith.divf %913, %914 : vector<8x64xf32>
    %916 = vector.extract_strided_slice %915 {offsets = [0, 0], sizes = [8, 32], strides = [1, 1]} : vector<8x64xf32> to vector<8x32xf32>
    %917 = vector.extract_strided_slice %915 {offsets = [0, 32], sizes = [8, 32], strides = [1, 1]} : vector<8x64xf32> to vector<8x32xf32>
    %918 = vector.extract_strided_slice %909 {offsets = [0, 64], sizes = [8, 32], strides = [1, 1]} : vector<8x128xf32> to vector<8x32xf32>
    %919 = vector.extract_strided_slice %909 {offsets = [0, 96], sizes = [8, 32], strides = [1, 1]} : vector<8x128xf32> to vector<8x32xf32>
    %920 = arith.mulf %916, %919 : vector<8x32xf32>
    %921 = arith.addf %918, %920 : vector<8x32xf32>
    %922 = math.tanh %921 : vector<8x32xf32>
    %cst_268 = arith.constant 1.000000e+00 : f32
    %923 = vector.broadcast %cst_268 : f32 to vector<8x32xf32>
    %924 = arith.subf %923, %917 : vector<8x32xf32>
    %925 = arith.mulf %924, %922 : vector<8x32xf32>
    %926 = arith.mulf %917, %901 : vector<8x32xf32>
    %927 = arith.addf %925, %926 : vector<8x32xf32>
    %cst_269 = arith.constant 5.000000e+00 : f32
    %928 = vector.broadcast %cst_269 : f32 to vector<8x32xf32>
    %929 = arith.minimumf %927, %928 : vector<8x32xf32>
    %cst_270 = arith.constant dense<0.000000e+00> : vector<8x4xf32>
    %930 = tpu.matmul %929, %21, %cst_270 {dimension_numbers = #tpu.dot_dimension_numbers<[1], [0], [0], [1], [0, 0, 1, 1], [], []>} : vector<8x32xf32>, vector<32x4xf32>, vector<8x4xf32> -> vector<8x4xf32>
    %931 = arith.addf %930, %24 : vector<8x4xf32>
    %932 = vector.extract_strided_slice %931 {offsets = [0, 0], sizes = [8, 2], strides = [1, 1]} : vector<8x4xf32> to vector<8x2xf32>
    %933 = vector.extract_strided_slice %931 {offsets = [0, 2], sizes = [8, 2], strides = [1, 1]} : vector<8x4xf32> to vector<8x2xf32>
    %c0_271 = arith.constant 0 : index
    %c0_272 = arith.constant 0 : index
    %c0_273 = arith.constant 0 : index
    %934 = vector.load %arg3[%c0_271, %c0_272, %c0_273] : memref<8x8x2xf32, #tpu.memory_space<vmem>>, vector<1x8x2xf32>
    %935 = vector.shape_cast %934 : vector<1x8x2xf32> to vector<8x2xf32>
    %cst_274 = arith.constant 5.000000e-01 : f32
    %936 = vector.broadcast %cst_274 : f32 to vector<8x2xf32>
    %937 = arith.mulf %936, %933 : vector<8x2xf32>
    %938 = math.exp %937 : vector<8x2xf32>
    %939 = arith.mulf %935, %938 : vector<8x2xf32>
    %940 = arith.addf %939, %932 : vector<8x2xf32>
    %941 = arith.subf %894, %933 : vector<8x2xf32>
    %942 = arith.subf %933, %894 : vector<8x2xf32>
    %943 = math.exp %942 : vector<8x2xf32>
    %944 = arith.addf %941, %943 : vector<8x2xf32>
    %945 = arith.subf %932, %897 : vector<8x2xf32>
    %946 = arith.mulf %945, %900 : vector<8x2xf32>
    %947 = arith.mulf %946, %946 : vector<8x2xf32>
    %948 = arith.addf %944, %947 : vector<8x2xf32>
    %cst_275 = arith.constant 1.000000e+00 : f32
    %949 = vector.broadcast %cst_275 : f32 to vector<8x2xf32>
    %950 = arith.subf %948, %949 : vector<8x2xf32>
    %951 = vector.broadcast %4 : vector<8x1xf32> to vector<8x2xf32>
    %952 = arith.mulf %950, %951 : vector<8x2xf32>
    %953 = vector.shape_cast %952 : vector<8x2xf32> to vector<1x8x2xf32>
    %cst_276 = arith.constant dense<0.000000e+00> : vector<1xf32>
    %954 = vector.multi_reduction <add>, %953, %cst_276 [1, 2] : vector<1x8x2xf32> to vector<1xf32>
    %955 = vector.shape_cast %954 : vector<1xf32> to vector<1x1x1xf32>
    %956 = vector.extract %955[0, 0, 0] : f32 from vector<1x1x1xf32>
    %957 = vector.broadcast %956 : f32 to vector<1x1xf32>
    %cst_277 = arith.constant 5.000000e-01 : f32
    %958 = vector.broadcast %cst_277 : f32 to vector<1x1xf32>
    %959 = arith.mulf %958, %957 : vector<1x1xf32>
    %960 = arith.addf %889, %959 : vector<1x1xf32>
    %961 = tpu.concatenate %940, %861 in 1 : vector<8x2xf32>, vector<8x32xf32> -> vector<8x34xf32>
    %cst_278 = arith.constant dense<0.000000e+00> : vector<8x128xf32>
    %962 = tpu.matmul %961, %17, %cst_278 {dimension_numbers = #tpu.dot_dimension_numbers<[1], [0], [0], [1], [0, 0, 1, 1], [], []>} : vector<8x34xf32>, vector<34x128xf32>, vector<8x128xf32> -> vector<8x128xf32>
    %963 = arith.addf %962, %20 : vector<8x128xf32>
    %964 = vector.extract_strided_slice %963 {offsets = [0, 0], sizes = [8, 64], strides = [1, 1]} : vector<8x128xf32> to vector<8x64xf32>
    %965 = arith.negf %964 : vector<8x64xf32>
    %966 = math.exp %965 : vector<8x64xf32>
    %cst_279 = arith.constant 1.000000e+00 : f32
    %967 = vector.broadcast %cst_279 : f32 to vector<8x64xf32>
    %968 = arith.addf %967, %966 : vector<8x64xf32>
    %969 = arith.divf %967, %968 : vector<8x64xf32>
    %970 = vector.extract_strided_slice %969 {offsets = [0, 0], sizes = [8, 32], strides = [1, 1]} : vector<8x64xf32> to vector<8x32xf32>
    %971 = vector.extract_strided_slice %969 {offsets = [0, 32], sizes = [8, 32], strides = [1, 1]} : vector<8x64xf32> to vector<8x32xf32>
    %972 = vector.extract_strided_slice %963 {offsets = [0, 64], sizes = [8, 32], strides = [1, 1]} : vector<8x128xf32> to vector<8x32xf32>
    %973 = vector.extract_strided_slice %963 {offsets = [0, 96], sizes = [8, 32], strides = [1, 1]} : vector<8x128xf32> to vector<8x32xf32>
    %974 = arith.mulf %970, %973 : vector<8x32xf32>
    %975 = arith.addf %972, %974 : vector<8x32xf32>
    %976 = math.tanh %975 : vector<8x32xf32>
    %cst_280 = arith.constant 1.000000e+00 : f32
    %977 = vector.broadcast %cst_280 : f32 to vector<8x32xf32>
    %978 = arith.subf %977, %971 : vector<8x32xf32>
    %979 = arith.mulf %978, %976 : vector<8x32xf32>
    %980 = arith.mulf %971, %861 : vector<8x32xf32>
    %981 = arith.addf %979, %980 : vector<8x32xf32>
    %cst_281 = arith.constant 0.000000e+00 : f32
    %cst_282 = arith.constant 5.000000e+00 : f32
    %982 = vector.broadcast %cst_281 : f32 to vector<8x32xf32>
    %983 = arith.maximumf %982, %981 : vector<8x32xf32>
    %984 = vector.broadcast %cst_282 : f32 to vector<8x32xf32>
    %985 = arith.minimumf %984, %983 : vector<8x32xf32>
    %cst_283 = arith.constant dense<0.000000e+00> : vector<8x8xf32>
    %986 = tpu.matmul %985, %25, %cst_283 {dimension_numbers = #tpu.dot_dimension_numbers<[1], [0], [0], [1], [0, 0, 1, 1], [], []>} : vector<8x32xf32>, vector<32x8xf32>, vector<8x8xf32> -> vector<8x8xf32>
    %987 = arith.addf %986, %28 : vector<8x8xf32>
    %cst_284 = arith.constant dense<0.000000e+00> : vector<8x80xf32>
    %988 = tpu.matmul %987, %29, %cst_284 {dimension_numbers = #tpu.dot_dimension_numbers<[1], [0], [0], [1], [0, 0, 1, 1], [], []>} : vector<8x8xf32>, vector<8x80xf32>, vector<8x80xf32> -> vector<8x80xf32>
    %989 = arith.addf %988, %32 : vector<8x80xf32>
    %cst_285 = arith.constant 0.000000e+00 : f32
    %990 = vector.broadcast %cst_285 : f32 to vector<8x80xf32>
    %991 = arith.maximumf %989, %990 : vector<8x80xf32>
    %cst_286 = arith.constant dense<0.000000e+00> : vector<8x16xf32>
    %992 = tpu.matmul %991, %33, %cst_286 {dimension_numbers = #tpu.dot_dimension_numbers<[1], [0], [0], [1], [0, 0, 1, 1], [], []>} : vector<8x80xf32>, vector<80x16xf32>, vector<8x16xf32> -> vector<8x16xf32>
    %993 = arith.addf %992, %36 : vector<8x16xf32>
    %c0_287 = arith.constant 0 : index
    %c0_288 = arith.constant 0 : index
    %c0_289 = arith.constant 0 : index
    %994 = vector.load %arg1[%c0_287, %c0_288, %c0_289] : memref<8x8x16xf32, #tpu.memory_space<vmem>>, vector<1x8x16xf32>
    %995 = vector.shape_cast %994 : vector<1x8x16xf32> to vector<8x16xf32>
    %996 = arith.subf %995, %993 : vector<8x16xf32>
    %997 = arith.mulf %996, %996 : vector<8x16xf32>
    %998 = vector.broadcast %4 : vector<8x1xf32> to vector<8x16xf32>
    %999 = arith.mulf %997, %998 : vector<8x16xf32>
    %1000 = vector.shape_cast %999 : vector<8x16xf32> to vector<1x8x16xf32>
    %cst_290 = arith.constant dense<0.000000e+00> : vector<1xf32>
    %1001 = vector.multi_reduction <add>, %1000, %cst_290 [1, 2] : vector<1x8x16xf32> to vector<1xf32>
    %1002 = vector.shape_cast %1001 : vector<1xf32> to vector<1x1x1xf32>
    %1003 = vector.extract %1002[0, 0, 0] : f32 from vector<1x1x1xf32>
    %1004 = vector.broadcast %1003 : f32 to vector<1x1xf32>
    %1005 = arith.addf %902, %1004 : vector<1x1xf32>
    %1006 = tpu.concatenate %993, %987, %940 in 1 : vector<8x16xf32>, vector<8x8xf32>, vector<8x2xf32> -> vector<8x26xf32>
    %c0_291 = arith.constant 0 : index
    %c0_292 = arith.constant 0 : index
    %c0_293 = arith.constant 0 : index
    %1007 = vector.load %arg23[%c0_291, %c0_292, %c0_293] : memref<8x8x26xf32, #tpu.memory_space<vmem>>, vector<1x8x26xf32>
    %1008 = vector.shape_cast %1007 : vector<1x8x26xf32> to vector<8x26xf32>
    %1009 = vector.shape_cast %1006 : vector<8x26xf32> to vector<1x8x26xf32>
    tpu.vector_store %arg23[%c0_291, %c0_292, %c0_293], %1009 {strides = array<i32>} : memref<8x8x26xf32, #tpu.memory_space<vmem>>, vector<1x8x26xf32>,
    %c1_294 = arith.constant 1 : index
    %c0_295 = arith.constant 0 : index
    %c0_296 = arith.constant 0 : index
    %1010 = vector.load %arg26[%c1_294, %c0_295, %c0_296] : memref<8x8x32xf32, #tpu.memory_space<vmem>>, vector<1x8x32xf32>
    %1011 = vector.shape_cast %1010 : vector<1x8x32xf32> to vector<8x32xf32>
    %c1_297 = arith.constant 1 : index
    %c0_298 = arith.constant 0 : index
    %c0_299 = arith.constant 0 : index
    %1012 = vector.load %arg27[%c1_297, %c0_298, %c0_299] : memref<8x8x32xf32, #tpu.memory_space<vmem>>, vector<1x8x32xf32>
    %1013 = vector.shape_cast %1012 : vector<1x8x32xf32> to vector<8x32xf32>
    %1014 = tpu.concatenate %1011, %1013, %987, %929 in 1 : vector<8x32xf32>, vector<8x32xf32>, vector<8x8xf32>, vector<8x32xf32> -> vector<8x104xf32>
    %cst_300 = arith.constant dense<0.000000e+00> : vector<8x128xf32>
    %1015 = tpu.matmul %1014, %13, %cst_300 {dimension_numbers = #tpu.dot_dimension_numbers<[1], [0], [0], [1], [0, 0, 1, 1], [], []>} : vector<8x104xf32>, vector<104x128xf32>, vector<8x128xf32> -> vector<8x128xf32>
    %1016 = arith.addf %1015, %16 : vector<8x128xf32>
    %1017 = vector.extract_strided_slice %1016 {offsets = [0, 0], sizes = [8, 64], strides = [1, 1]} : vector<8x128xf32> to vector<8x64xf32>
    %1018 = arith.negf %1017 : vector<8x64xf32>
    %1019 = math.exp %1018 : vector<8x64xf32>
    %cst_301 = arith.constant 1.000000e+00 : f32
    %1020 = vector.broadcast %cst_301 : f32 to vector<8x64xf32>
    %1021 = arith.addf %1020, %1019 : vector<8x64xf32>
    %1022 = arith.divf %1020, %1021 : vector<8x64xf32>
    %1023 = vector.extract_strided_slice %1022 {offsets = [0, 0], sizes = [8, 32], strides = [1, 1]} : vector<8x64xf32> to vector<8x32xf32>
    %1024 = vector.extract_strided_slice %1022 {offsets = [0, 32], sizes = [8, 32], strides = [1, 1]} : vector<8x64xf32> to vector<8x32xf32>
    %1025 = vector.extract_strided_slice %1016 {offsets = [0, 64], sizes = [8, 32], strides = [1, 1]} : vector<8x128xf32> to vector<8x32xf32>
    %1026 = vector.extract_strided_slice %1016 {offsets = [0, 96], sizes = [8, 32], strides = [1, 1]} : vector<8x128xf32> to vector<8x32xf32>
    %1027 = arith.mulf %1023, %1026 : vector<8x32xf32>
    %1028 = arith.addf %1025, %1027 : vector<8x32xf32>
    %1029 = math.tanh %1028 : vector<8x32xf32>
    %cst_302 = arith.constant 1.000000e+00 : f32
    %1030 = vector.broadcast %cst_302 : f32 to vector<8x32xf32>
    %1031 = arith.subf %1030, %1024 : vector<8x32xf32>
    %1032 = arith.mulf %1031, %1029 : vector<8x32xf32>
    %1033 = arith.mulf %1024, %929 : vector<8x32xf32>
    %1034 = arith.addf %1032, %1033 : vector<8x32xf32>
    %cst_303 = arith.constant 5.000000e+00 : f32
    %1035 = vector.broadcast %cst_303 : f32 to vector<8x32xf32>
    %1036 = arith.minimumf %1034, %1035 : vector<8x32xf32>
    %cst_304 = arith.constant dense<0.000000e+00> : vector<8x4xf32>
    %1037 = tpu.matmul %1036, %21, %cst_304 {dimension_numbers = #tpu.dot_dimension_numbers<[1], [0], [0], [1], [0, 0, 1, 1], [], []>} : vector<8x32xf32>, vector<32x4xf32>, vector<8x4xf32> -> vector<8x4xf32>
    %1038 = arith.addf %1037, %24 : vector<8x4xf32>
    %1039 = vector.extract_strided_slice %1038 {offsets = [0, 0], sizes = [8, 2], strides = [1, 1]} : vector<8x4xf32> to vector<8x2xf32>
    %1040 = vector.extract_strided_slice %1038 {offsets = [0, 2], sizes = [8, 2], strides = [1, 1]} : vector<8x4xf32> to vector<8x2xf32>
    %c1_305 = arith.constant 1 : index
    %c0_306 = arith.constant 0 : index
    %c0_307 = arith.constant 0 : index
    %1041 = vector.load %arg3[%c1_305, %c0_306, %c0_307] : memref<8x8x2xf32, #tpu.memory_space<vmem>>, vector<1x8x2xf32>
    %1042 = vector.shape_cast %1041 : vector<1x8x2xf32> to vector<8x2xf32>
    %cst_308 = arith.constant 5.000000e-01 : f32
    %1043 = vector.broadcast %cst_308 : f32 to vector<8x2xf32>
    %1044 = arith.mulf %1043, %1040 : vector<8x2xf32>
    %1045 = math.exp %1044 : vector<8x2xf32>
    %1046 = arith.mulf %1042, %1045 : vector<8x2xf32>
    %1047 = arith.addf %1046, %1039 : vector<8x2xf32>
    %1048 = arith.subf %894, %1040 : vector<8x2xf32>
    %1049 = arith.subf %1040, %894 : vector<8x2xf32>
    %1050 = math.exp %1049 : vector<8x2xf32>
    %1051 = arith.addf %1048, %1050 : vector<8x2xf32>
    %1052 = arith.subf %1039, %897 : vector<8x2xf32>
    %1053 = arith.mulf %1052, %900 : vector<8x2xf32>
    %1054 = arith.mulf %1053, %1053 : vector<8x2xf32>
    %1055 = arith.addf %1051, %1054 : vector<8x2xf32>
    %cst_309 = arith.constant 1.000000e+00 : f32
    %1056 = vector.broadcast %cst_309 : f32 to vector<8x2xf32>
    %1057 = arith.subf %1055, %1056 : vector<8x2xf32>
    %1058 = vector.broadcast %4 : vector<8x1xf32> to vector<8x2xf32>
    %1059 = arith.mulf %1057, %1058 : vector<8x2xf32>
    %1060 = vector.shape_cast %1059 : vector<8x2xf32> to vector<1x8x2xf32>
    %cst_310 = arith.constant dense<0.000000e+00> : vector<1xf32>
    %1061 = vector.multi_reduction <add>, %1060, %cst_310 [1, 2] : vector<1x8x2xf32> to vector<1xf32>
    %1062 = vector.shape_cast %1061 : vector<1xf32> to vector<1x1x1xf32>
    %1063 = vector.extract %1062[0, 0, 0] : f32 from vector<1x1x1xf32>
    %1064 = vector.broadcast %1063 : f32 to vector<1x1xf32>
    %cst_311 = arith.constant 5.000000e-01 : f32
    %1065 = vector.broadcast %cst_311 : f32 to vector<1x1xf32>
    %1066 = arith.mulf %1065, %1064 : vector<1x1xf32>
    %1067 = arith.addf %960, %1066 : vector<1x1xf32>
    %1068 = tpu.concatenate %1047, %985 in 1 : vector<8x2xf32>, vector<8x32xf32> -> vector<8x34xf32>
    %cst_312 = arith.constant dense<0.000000e+00> : vector<8x128xf32>
    %1069 = tpu.matmul %1068, %17, %cst_312 {dimension_numbers = #tpu.dot_dimension_numbers<[1], [0], [0], [1], [0, 0, 1, 1], [], []>} : vector<8x34xf32>, vector<34x128xf32>, vector<8x128xf32> -> vector<8x128xf32>
    %1070 = arith.addf %1069, %20 : vector<8x128xf32>
    %1071 = vector.extract_strided_slice %1070 {offsets = [0, 0], sizes = [8, 64], strides = [1, 1]} : vector<8x128xf32> to vector<8x64xf32>
    %1072 = arith.negf %1071 : vector<8x64xf32>
    %1073 = math.exp %1072 : vector<8x64xf32>
    %cst_313 = arith.constant 1.000000e+00 : f32
    %1074 = vector.broadcast %cst_313 : f32 to vector<8x64xf32>
    %1075 = arith.addf %1074, %1073 : vector<8x64xf32>
    %1076 = arith.divf %1074, %1075 : vector<8x64xf32>
    %1077 = vector.extract_strided_slice %1076 {offsets = [0, 0], sizes = [8, 32], strides = [1, 1]} : vector<8x64xf32> to vector<8x32xf32>
    %1078 = vector.extract_strided_slice %1076 {offsets = [0, 32], sizes = [8, 32], strides = [1, 1]} : vector<8x64xf32> to vector<8x32xf32>
    %1079 = vector.extract_strided_slice %1070 {offsets = [0, 64], sizes = [8, 32], strides = [1, 1]} : vector<8x128xf32> to vector<8x32xf32>
    %1080 = vector.extract_strided_slice %1070 {offsets = [0, 96], sizes = [8, 32], strides = [1, 1]} : vector<8x128xf32> to vector<8x32xf32>
    %1081 = arith.mulf %1077, %1080 : vector<8x32xf32>
    %1082 = arith.addf %1079, %1081 : vector<8x32xf32>
    %1083 = math.tanh %1082 : vector<8x32xf32>
    %cst_314 = arith.constant 1.000000e+00 : f32
    %1084 = vector.broadcast %cst_314 : f32 to vector<8x32xf32>
    %1085 = arith.subf %1084, %1078 : vector<8x32xf32>
    %1086 = arith.mulf %1085, %1083 : vector<8x32xf32>
    %1087 = arith.mulf %1078, %985 : vector<8x32xf32>
    %1088 = arith.addf %1086, %1087 : vector<8x32xf32>
    %cst_315 = arith.constant 0.000000e+00 : f32
    %cst_316 = arith.constant 5.000000e+00 : f32
    %1089 = vector.broadcast %cst_315 : f32 to vector<8x32xf32>
    %1090 = arith.maximumf %1089, %1088 : vector<8x32xf32>
    %1091 = vector.broadcast %cst_316 : f32 to vector<8x32xf32>
    %1092 = arith.minimumf %1091, %1090 : vector<8x32xf32>
    %cst_317 = arith.constant dense<0.000000e+00> : vector<8x8xf32>
    %1093 = tpu.matmul %1092, %25, %cst_317 {dimension_numbers = #tpu.dot_dimension_numbers<[1], [0], [0], [1], [0, 0, 1, 1], [], []>} : vector<8x32xf32>, vector<32x8xf32>, vector<8x8xf32> -> vector<8x8xf32>
    %1094 = arith.addf %1093, %28 : vector<8x8xf32>
    %cst_318 = arith.constant dense<0.000000e+00> : vector<8x80xf32>
    %1095 = tpu.matmul %1094, %29, %cst_318 {dimension_numbers = #tpu.dot_dimension_numbers<[1], [0], [0], [1], [0, 0, 1, 1], [], []>} : vector<8x8xf32>, vector<8x80xf32>, vector<8x80xf32> -> vector<8x80xf32>
    %1096 = arith.addf %1095, %32 : vector<8x80xf32>
    %cst_319 = arith.constant 0.000000e+00 : f32
    %1097 = vector.broadcast %cst_319 : f32 to vector<8x80xf32>
    %1098 = arith.maximumf %1096, %1097 : vector<8x80xf32>
    %cst_320 = arith.constant dense<0.000000e+00> : vector<8x16xf32>
    %1099 = tpu.matmul %1098, %33, %cst_320 {dimension_numbers = #tpu.dot_dimension_numbers<[1], [0], [0], [1], [0, 0, 1, 1], [], []>} : vector<8x80xf32>, vector<80x16xf32>, vector<8x16xf32> -> vector<8x16xf32>
    %1100 = arith.addf %1099, %36 : vector<8x16xf32>
    %c1_321 = arith.constant 1 : index
    %c0_322 = arith.constant 0 : index
    %c0_323 = arith.constant 0 : index
    %1101 = vector.load %arg1[%c1_321, %c0_322, %c0_323] : memref<8x8x16xf32, #tpu.memory_space<vmem>>, vector<1x8x16xf32>
    %1102 = vector.shape_cast %1101 : vector<1x8x16xf32> to vector<8x16xf32>
    %1103 = arith.subf %1102, %1100 : vector<8x16xf32>
    %1104 = arith.mulf %1103, %1103 : vector<8x16xf32>
    %1105 = vector.broadcast %4 : vector<8x1xf32> to vector<8x16xf32>
    %1106 = arith.mulf %1104, %1105 : vector<8x16xf32>
    %1107 = vector.shape_cast %1106 : vector<8x16xf32> to vector<1x8x16xf32>
    %cst_324 = arith.constant dense<0.000000e+00> : vector<1xf32>
    %1108 = vector.multi_reduction <add>, %1107, %cst_324 [1, 2] : vector<1x8x16xf32> to vector<1xf32>
    %1109 = vector.shape_cast %1108 : vector<1xf32> to vector<1x1x1xf32>
    %1110 = vector.extract %1109[0, 0, 0] : f32 from vector<1x1x1xf32>
    %1111 = vector.broadcast %1110 : f32 to vector<1x1xf32>
    %1112 = arith.addf %1005, %1111 : vector<1x1xf32>
    %1113 = tpu.concatenate %1100, %1094, %1047 in 1 : vector<8x16xf32>, vector<8x8xf32>, vector<8x2xf32> -> vector<8x26xf32>
    %c1_325 = arith.constant 1 : index
    %c0_326 = arith.constant 0 : index
    %c0_327 = arith.constant 0 : index
    %1114 = vector.load %arg23[%c1_325, %c0_326, %c0_327] : memref<8x8x26xf32, #tpu.memory_space<vmem>>, vector<1x8x26xf32>
    %1115 = vector.shape_cast %1114 : vector<1x8x26xf32> to vector<8x26xf32>
    %1116 = vector.shape_cast %1113 : vector<8x26xf32> to vector<1x8x26xf32>
    tpu.vector_store %arg23[%c1_325, %c0_326, %c0_327], %1116 {strides = array<i32>} : memref<8x8x26xf32, #tpu.memory_space<vmem>>, vector<1x8x26xf32>,
    %c2_328 = arith.constant 2 : index
    %c0_329 = arith.constant 0 : index
    %c0_330 = arith.constant 0 : index
    %1117 = vector.load %arg26[%c2_328, %c0_329, %c0_330] : memref<8x8x32xf32, #tpu.memory_space<vmem>>, vector<1x8x32xf32>
    %1118 = vector.shape_cast %1117 : vector<1x8x32xf32> to vector<8x32xf32>
    %c2_331 = arith.constant 2 : index
    %c0_332 = arith.constant 0 : index
    %c0_333 = arith.constant 0 : index
    %1119 = vector.load %arg27[%c2_331, %c0_332, %c0_333] : memref<8x8x32xf32, #tpu.memory_space<vmem>>, vector<1x8x32xf32>
    %1120 = vector.shape_cast %1119 : vector<1x8x32xf32> to vector<8x32xf32>
    %1121 = tpu.concatenate %1118, %1120, %1094, %1036 in 1 : vector<8x32xf32>, vector<8x32xf32>, vector<8x8xf32>, vector<8x32xf32> -> vector<8x104xf32>
    %cst_334 = arith.constant dense<0.000000e+00> : vector<8x128xf32>
    %1122 = tpu.matmul %1121, %13, %cst_334 {dimension_numbers = #tpu.dot_dimension_numbers<[1], [0], [0], [1], [0, 0, 1, 1], [], []>} : vector<8x104xf32>, vector<104x128xf32>, vector<8x128xf32> -> vector<8x128xf32>
    %1123 = arith.addf %1122, %16 : vector<8x128xf32>
    %1124 = vector.extract_strided_slice %1123 {offsets = [0, 0], sizes = [8, 64], strides = [1, 1]} : vector<8x128xf32> to vector<8x64xf32>
    %1125 = arith.negf %1124 : vector<8x64xf32>
    %1126 = math.exp %1125 : vector<8x64xf32>
    %cst_335 = arith.constant 1.000000e+00 : f32
    %1127 = vector.broadcast %cst_335 : f32 to vector<8x64xf32>
    %1128 = arith.addf %1127, %1126 : vector<8x64xf32>
    %1129 = arith.divf %1127, %1128 : vector<8x64xf32>
    %1130 = vector.extract_strided_slice %1129 {offsets = [0, 0], sizes = [8, 32], strides = [1, 1]} : vector<8x64xf32> to vector<8x32xf32>
    %1131 = vector.extract_strided_slice %1129 {offsets = [0, 32], sizes = [8, 32], strides = [1, 1]} : vector<8x64xf32> to vector<8x32xf32>
    %1132 = vector.extract_strided_slice %1123 {offsets = [0, 64], sizes = [8, 32], strides = [1, 1]} : vector<8x128xf32> to vector<8x32xf32>
    %1133 = vector.extract_strided_slice %1123 {offsets = [0, 96], sizes = [8, 32], strides = [1, 1]} : vector<8x128xf32> to vector<8x32xf32>
    %1134 = arith.mulf %1130, %1133 : vector<8x32xf32>
    %1135 = arith.addf %1132, %1134 : vector<8x32xf32>
    %1136 = math.tanh %1135 : vector<8x32xf32>
    %cst_336 = arith.constant 1.000000e+00 : f32
    %1137 = vector.broadcast %cst_336 : f32 to vector<8x32xf32>
    %1138 = arith.subf %1137, %1131 : vector<8x32xf32>
    %1139 = arith.mulf %1138, %1136 : vector<8x32xf32>
    %1140 = arith.mulf %1131, %1036 : vector<8x32xf32>
    %1141 = arith.addf %1139, %1140 : vector<8x32xf32>
    %cst_337 = arith.constant 5.000000e+00 : f32
    %1142 = vector.broadcast %cst_337 : f32 to vector<8x32xf32>
    %1143 = arith.minimumf %1141, %1142 : vector<8x32xf32>
    %cst_338 = arith.constant dense<0.000000e+00> : vector<8x4xf32>
    %1144 = tpu.matmul %1143, %21, %cst_338 {dimension_numbers = #tpu.dot_dimension_numbers<[1], [0], [0], [1], [0, 0, 1, 1], [], []>} : vector<8x32xf32>, vector<32x4xf32>, vector<8x4xf32> -> vector<8x4xf32>
    %1145 = arith.addf %1144, %24 : vector<8x4xf32>
    %1146 = vector.extract_strided_slice %1145 {offsets = [0, 0], sizes = [8, 2], strides = [1, 1]} : vector<8x4xf32> to vector<8x2xf32>
    %1147 = vector.extract_strided_slice %1145 {offsets = [0, 2], sizes = [8, 2], strides = [1, 1]} : vector<8x4xf32> to vector<8x2xf32>
    %c2_339 = arith.constant 2 : index
    %c0_340 = arith.constant 0 : index
    %c0_341 = arith.constant 0 : index
    %1148 = vector.load %arg3[%c2_339, %c0_340, %c0_341] : memref<8x8x2xf32, #tpu.memory_space<vmem>>, vector<1x8x2xf32>
    %1149 = vector.shape_cast %1148 : vector<1x8x2xf32> to vector<8x2xf32>
    %cst_342 = arith.constant 5.000000e-01 : f32
    %1150 = vector.broadcast %cst_342 : f32 to vector<8x2xf32>
    %1151 = arith.mulf %1150, %1147 : vector<8x2xf32>
    %1152 = math.exp %1151 : vector<8x2xf32>
    %1153 = arith.mulf %1149, %1152 : vector<8x2xf32>
    %1154 = arith.addf %1153, %1146 : vector<8x2xf32>
    %1155 = arith.subf %894, %1147 : vector<8x2xf32>
    %1156 = arith.subf %1147, %894 : vector<8x2xf32>
    %1157 = math.exp %1156 : vector<8x2xf32>
    %1158 = arith.addf %1155, %1157 : vector<8x2xf32>
    %1159 = arith.subf %1146, %897 : vector<8x2xf32>
    %1160 = arith.mulf %1159, %900 : vector<8x2xf32>
    %1161 = arith.mulf %1160, %1160 : vector<8x2xf32>
    %1162 = arith.addf %1158, %1161 : vector<8x2xf32>
    %cst_343 = arith.constant 1.000000e+00 : f32
    %1163 = vector.broadcast %cst_343 : f32 to vector<8x2xf32>
    %1164 = arith.subf %1162, %1163 : vector<8x2xf32>
    %1165 = vector.broadcast %4 : vector<8x1xf32> to vector<8x2xf32>
    %1166 = arith.mulf %1164, %1165 : vector<8x2xf32>
    %1167 = vector.shape_cast %1166 : vector<8x2xf32> to vector<1x8x2xf32>
    %cst_344 = arith.constant dense<0.000000e+00> : vector<1xf32>
    %1168 = vector.multi_reduction <add>, %1167, %cst_344 [1, 2] : vector<1x8x2xf32> to vector<1xf32>
    %1169 = vector.shape_cast %1168 : vector<1xf32> to vector<1x1x1xf32>
    %1170 = vector.extract %1169[0, 0, 0] : f32 from vector<1x1x1xf32>
    %1171 = vector.broadcast %1170 : f32 to vector<1x1xf32>
    %cst_345 = arith.constant 5.000000e-01 : f32
    %1172 = vector.broadcast %cst_345 : f32 to vector<1x1xf32>
    %1173 = arith.mulf %1172, %1171 : vector<1x1xf32>
    %1174 = arith.addf %1067, %1173 : vector<1x1xf32>
    %1175 = tpu.concatenate %1154, %1092 in 1 : vector<8x2xf32>, vector<8x32xf32> -> vector<8x34xf32>
    %cst_346 = arith.constant dense<0.000000e+00> : vector<8x128xf32>
    %1176 = tpu.matmul %1175, %17, %cst_346 {dimension_numbers = #tpu.dot_dimension_numbers<[1], [0], [0], [1], [0, 0, 1, 1], [], []>} : vector<8x34xf32>, vector<34x128xf32>, vector<8x128xf32> -> vector<8x128xf32>
    %1177 = arith.addf %1176, %20 : vector<8x128xf32>
    %1178 = vector.extract_strided_slice %1177 {offsets = [0, 0], sizes = [8, 64], strides = [1, 1]} : vector<8x128xf32> to vector<8x64xf32>
    %1179 = arith.negf %1178 : vector<8x64xf32>
    %1180 = math.exp %1179 : vector<8x64xf32>
    %cst_347 = arith.constant 1.000000e+00 : f32
    %1181 = vector.broadcast %cst_347 : f32 to vector<8x64xf32>
    %1182 = arith.addf %1181, %1180 : vector<8x64xf32>
    %1183 = arith.divf %1181, %1182 : vector<8x64xf32>
    %1184 = vector.extract_strided_slice %1183 {offsets = [0, 0], sizes = [8, 32], strides = [1, 1]} : vector<8x64xf32> to vector<8x32xf32>
    %1185 = vector.extract_strided_slice %1183 {offsets = [0, 32], sizes = [8, 32], strides = [1, 1]} : vector<8x64xf32> to vector<8x32xf32>
    %1186 = vector.extract_strided_slice %1177 {offsets = [0, 64], sizes = [8, 32], strides = [1, 1]} : vector<8x128xf32> to vector<8x32xf32>
    %1187 = vector.extract_strided_slice %1177 {offsets = [0, 96], sizes = [8, 32], strides = [1, 1]} : vector<8x128xf32> to vector<8x32xf32>
    %1188 = arith.mulf %1184, %1187 : vector<8x32xf32>
    %1189 = arith.addf %1186, %1188 : vector<8x32xf32>
    %1190 = math.tanh %1189 : vector<8x32xf32>
    %cst_348 = arith.constant 1.000000e+00 : f32
    %1191 = vector.broadcast %cst_348 : f32 to vector<8x32xf32>
    %1192 = arith.subf %1191, %1185 : vector<8x32xf32>
    %1193 = arith.mulf %1192, %1190 : vector<8x32xf32>
    %1194 = arith.mulf %1185, %1092 : vector<8x32xf32>
    %1195 = arith.addf %1193, %1194 : vector<8x32xf32>
    %cst_349 = arith.constant 0.000000e+00 : f32
    %cst_350 = arith.constant 5.000000e+00 : f32
    %1196 = vector.broadcast %cst_349 : f32 to vector<8x32xf32>
    %1197 = arith.maximumf %1196, %1195 : vector<8x32xf32>
    %1198 = vector.broadcast %cst_350 : f32 to vector<8x32xf32>
    %1199 = arith.minimumf %1198, %1197 : vector<8x32xf32>
    %cst_351 = arith.constant dense<0.000000e+00> : vector<8x8xf32>
    %1200 = tpu.matmul %1199, %25, %cst_351 {dimension_numbers = #tpu.dot_dimension_numbers<[1], [0], [0], [1], [0, 0, 1, 1], [], []>} : vector<8x32xf32>, vector<32x8xf32>, vector<8x8xf32> -> vector<8x8xf32>
    %1201 = arith.addf %1200, %28 : vector<8x8xf32>
    %cst_352 = arith.constant dense<0.000000e+00> : vector<8x80xf32>
    %1202 = tpu.matmul %1201, %29, %cst_352 {dimension_numbers = #tpu.dot_dimension_numbers<[1], [0], [0], [1], [0, 0, 1, 1], [], []>} : vector<8x8xf32>, vector<8x80xf32>, vector<8x80xf32> -> vector<8x80xf32>
    %1203 = arith.addf %1202, %32 : vector<8x80xf32>
    %cst_353 = arith.constant 0.000000e+00 : f32
    %1204 = vector.broadcast %cst_353 : f32 to vector<8x80xf32>
    %1205 = arith.maximumf %1203, %1204 : vector<8x80xf32>
    %cst_354 = arith.constant dense<0.000000e+00> : vector<8x16xf32>
    %1206 = tpu.matmul %1205, %33, %cst_354 {dimension_numbers = #tpu.dot_dimension_numbers<[1], [0], [0], [1], [0, 0, 1, 1], [], []>} : vector<8x80xf32>, vector<80x16xf32>, vector<8x16xf32> -> vector<8x16xf32>
    %1207 = arith.addf %1206, %36 : vector<8x16xf32>
    %c2_355 = arith.constant 2 : index
    %c0_356 = arith.constant 0 : index
    %c0_357 = arith.constant 0 : index
    %1208 = vector.load %arg1[%c2_355, %c0_356, %c0_357] : memref<8x8x16xf32, #tpu.memory_space<vmem>>, vector<1x8x16xf32>
    %1209 = vector.shape_cast %1208 : vector<1x8x16xf32> to vector<8x16xf32>
    %1210 = arith.subf %1209, %1207 : vector<8x16xf32>
    %1211 = arith.mulf %1210, %1210 : vector<8x16xf32>
    %1212 = vector.broadcast %4 : vector<8x1xf32> to vector<8x16xf32>
    %1213 = arith.mulf %1211, %1212 : vector<8x16xf32>
    %1214 = vector.shape_cast %1213 : vector<8x16xf32> to vector<1x8x16xf32>
    %cst_358 = arith.constant dense<0.000000e+00> : vector<1xf32>
    %1215 = vector.multi_reduction <add>, %1214, %cst_358 [1, 2] : vector<1x8x16xf32> to vector<1xf32>
    %1216 = vector.shape_cast %1215 : vector<1xf32> to vector<1x1x1xf32>
    %1217 = vector.extract %1216[0, 0, 0] : f32 from vector<1x1x1xf32>
    %1218 = vector.broadcast %1217 : f32 to vector<1x1xf32>
    %1219 = arith.addf %1112, %1218 : vector<1x1xf32>
    %1220 = tpu.concatenate %1207, %1201, %1154 in 1 : vector<8x16xf32>, vector<8x8xf32>, vector<8x2xf32> -> vector<8x26xf32>
    %c2_359 = arith.constant 2 : index
    %c0_360 = arith.constant 0 : index
    %c0_361 = arith.constant 0 : index
    %1221 = vector.load %arg23[%c2_359, %c0_360, %c0_361] : memref<8x8x26xf32, #tpu.memory_space<vmem>>, vector<1x8x26xf32>
    %1222 = vector.shape_cast %1221 : vector<1x8x26xf32> to vector<8x26xf32>
    %1223 = vector.shape_cast %1220 : vector<8x26xf32> to vector<1x8x26xf32>
    tpu.vector_store %arg23[%c2_359, %c0_360, %c0_361], %1223 {strides = array<i32>} : memref<8x8x26xf32, #tpu.memory_space<vmem>>, vector<1x8x26xf32>,
    %c3_362 = arith.constant 3 : index
    %c0_363 = arith.constant 0 : index
    %c0_364 = arith.constant 0 : index
    %1224 = vector.load %arg26[%c3_362, %c0_363, %c0_364] : memref<8x8x32xf32, #tpu.memory_space<vmem>>, vector<1x8x32xf32>
    %1225 = vector.shape_cast %1224 : vector<1x8x32xf32> to vector<8x32xf32>
    %c3_365 = arith.constant 3 : index
    %c0_366 = arith.constant 0 : index
    %c0_367 = arith.constant 0 : index
    %1226 = vector.load %arg27[%c3_365, %c0_366, %c0_367] : memref<8x8x32xf32, #tpu.memory_space<vmem>>, vector<1x8x32xf32>
    %1227 = vector.shape_cast %1226 : vector<1x8x32xf32> to vector<8x32xf32>
    %1228 = tpu.concatenate %1225, %1227, %1201, %1143 in 1 : vector<8x32xf32>, vector<8x32xf32>, vector<8x8xf32>, vector<8x32xf32> -> vector<8x104xf32>
    %cst_368 = arith.constant dense<0.000000e+00> : vector<8x128xf32>
    %1229 = tpu.matmul %1228, %13, %cst_368 {dimension_numbers = #tpu.dot_dimension_numbers<[1], [0], [0], [1], [0, 0, 1, 1], [], []>} : vector<8x104xf32>, vector<104x128xf32>, vector<8x128xf32> -> vector<8x128xf32>
    %1230 = arith.addf %1229, %16 : vector<8x128xf32>
    %1231 = vector.extract_strided_slice %1230 {offsets = [0, 0], sizes = [8, 64], strides = [1, 1]} : vector<8x128xf32> to vector<8x64xf32>
    %1232 = arith.negf %1231 : vector<8x64xf32>
    %1233 = math.exp %1232 : vector<8x64xf32>
    %cst_369 = arith.constant 1.000000e+00 : f32
    %1234 = vector.broadcast %cst_369 : f32 to vector<8x64xf32>
    %1235 = arith.addf %1234, %1233 : vector<8x64xf32>
    %1236 = arith.divf %1234, %1235 : vector<8x64xf32>
    %1237 = vector.extract_strided_slice %1236 {offsets = [0, 0], sizes = [8, 32], strides = [1, 1]} : vector<8x64xf32> to vector<8x32xf32>
    %1238 = vector.extract_strided_slice %1236 {offsets = [0, 32], sizes = [8, 32], strides = [1, 1]} : vector<8x64xf32> to vector<8x32xf32>
    %1239 = vector.extract_strided_slice %1230 {offsets = [0, 64], sizes = [8, 32], strides = [1, 1]} : vector<8x128xf32> to vector<8x32xf32>
    %1240 = vector.extract_strided_slice %1230 {offsets = [0, 96], sizes = [8, 32], strides = [1, 1]} : vector<8x128xf32> to vector<8x32xf32>
    %1241 = arith.mulf %1237, %1240 : vector<8x32xf32>
    %1242 = arith.addf %1239, %1241 : vector<8x32xf32>
    %1243 = math.tanh %1242 : vector<8x32xf32>
    %cst_370 = arith.constant 1.000000e+00 : f32
    %1244 = vector.broadcast %cst_370 : f32 to vector<8x32xf32>
    %1245 = arith.subf %1244, %1238 : vector<8x32xf32>
    %1246 = arith.mulf %1245, %1243 : vector<8x32xf32>
    %1247 = arith.mulf %1238, %1143 : vector<8x32xf32>
    %1248 = arith.addf %1246, %1247 : vector<8x32xf32>
    %cst_371 = arith.constant 5.000000e+00 : f32
    %1249 = vector.broadcast %cst_371 : f32 to vector<8x32xf32>
    %1250 = arith.minimumf %1248, %1249 : vector<8x32xf32>
    %cst_372 = arith.constant dense<0.000000e+00> : vector<8x4xf32>
    %1251 = tpu.matmul %1250, %21, %cst_372 {dimension_numbers = #tpu.dot_dimension_numbers<[1], [0], [0], [1], [0, 0, 1, 1], [], []>} : vector<8x32xf32>, vector<32x4xf32>, vector<8x4xf32> -> vector<8x4xf32>
    %1252 = arith.addf %1251, %24 : vector<8x4xf32>
    %1253 = vector.extract_strided_slice %1252 {offsets = [0, 0], sizes = [8, 2], strides = [1, 1]} : vector<8x4xf32> to vector<8x2xf32>
    %1254 = vector.extract_strided_slice %1252 {offsets = [0, 2], sizes = [8, 2], strides = [1, 1]} : vector<8x4xf32> to vector<8x2xf32>
    %c3_373 = arith.constant 3 : index
    %c0_374 = arith.constant 0 : index
    %c0_375 = arith.constant 0 : index
    %1255 = vector.load %arg3[%c3_373, %c0_374, %c0_375] : memref<8x8x2xf32, #tpu.memory_space<vmem>>, vector<1x8x2xf32>
    %1256 = vector.shape_cast %1255 : vector<1x8x2xf32> to vector<8x2xf32>
    %cst_376 = arith.constant 5.000000e-01 : f32
    %1257 = vector.broadcast %cst_376 : f32 to vector<8x2xf32>
    %1258 = arith.mulf %1257, %1254 : vector<8x2xf32>
    %1259 = math.exp %1258 : vector<8x2xf32>
    %1260 = arith.mulf %1256, %1259 : vector<8x2xf32>
    %1261 = arith.addf %1260, %1253 : vector<8x2xf32>
    %1262 = arith.subf %894, %1254 : vector<8x2xf32>
    %1263 = arith.subf %1254, %894 : vector<8x2xf32>
    %1264 = math.exp %1263 : vector<8x2xf32>
    %1265 = arith.addf %1262, %1264 : vector<8x2xf32>
    %1266 = arith.subf %1253, %897 : vector<8x2xf32>
    %1267 = arith.mulf %1266, %900 : vector<8x2xf32>
    %1268 = arith.mulf %1267, %1267 : vector<8x2xf32>
    %1269 = arith.addf %1265, %1268 : vector<8x2xf32>
    %cst_377 = arith.constant 1.000000e+00 : f32
    %1270 = vector.broadcast %cst_377 : f32 to vector<8x2xf32>
    %1271 = arith.subf %1269, %1270 : vector<8x2xf32>
    %1272 = vector.broadcast %4 : vector<8x1xf32> to vector<8x2xf32>
    %1273 = arith.mulf %1271, %1272 : vector<8x2xf32>
    %1274 = vector.shape_cast %1273 : vector<8x2xf32> to vector<1x8x2xf32>
    %cst_378 = arith.constant dense<0.000000e+00> : vector<1xf32>
    %1275 = vector.multi_reduction <add>, %1274, %cst_378 [1, 2] : vector<1x8x2xf32> to vector<1xf32>
    %1276 = vector.shape_cast %1275 : vector<1xf32> to vector<1x1x1xf32>
    %1277 = vector.extract %1276[0, 0, 0] : f32 from vector<1x1x1xf32>
    %1278 = vector.broadcast %1277 : f32 to vector<1x1xf32>
    %cst_379 = arith.constant 5.000000e-01 : f32
    %1279 = vector.broadcast %cst_379 : f32 to vector<1x1xf32>
    %1280 = arith.mulf %1279, %1278 : vector<1x1xf32>
    %1281 = arith.addf %1174, %1280 : vector<1x1xf32>
    %1282 = tpu.concatenate %1261, %1199 in 1 : vector<8x2xf32>, vector<8x32xf32> -> vector<8x34xf32>
    %cst_380 = arith.constant dense<0.000000e+00> : vector<8x128xf32>
    %1283 = tpu.matmul %1282, %17, %cst_380 {dimension_numbers = #tpu.dot_dimension_numbers<[1], [0], [0], [1], [0, 0, 1, 1], [], []>} : vector<8x34xf32>, vector<34x128xf32>, vector<8x128xf32> -> vector<8x128xf32>
    %1284 = arith.addf %1283, %20 : vector<8x128xf32>
    %1285 = vector.extract_strided_slice %1284 {offsets = [0, 0], sizes = [8, 64], strides = [1, 1]} : vector<8x128xf32> to vector<8x64xf32>
    %1286 = arith.negf %1285 : vector<8x64xf32>
    %1287 = math.exp %1286 : vector<8x64xf32>
    %cst_381 = arith.constant 1.000000e+00 : f32
    %1288 = vector.broadcast %cst_381 : f32 to vector<8x64xf32>
    %1289 = arith.addf %1288, %1287 : vector<8x64xf32>
    %1290 = arith.divf %1288, %1289 : vector<8x64xf32>
    %1291 = vector.extract_strided_slice %1290 {offsets = [0, 0], sizes = [8, 32], strides = [1, 1]} : vector<8x64xf32> to vector<8x32xf32>
    %1292 = vector.extract_strided_slice %1290 {offsets = [0, 32], sizes = [8, 32], strides = [1, 1]} : vector<8x64xf32> to vector<8x32xf32>
    %1293 = vector.extract_strided_slice %1284 {offsets = [0, 64], sizes = [8, 32], strides = [1, 1]} : vector<8x128xf32> to vector<8x32xf32>
    %1294 = vector.extract_strided_slice %1284 {offsets = [0, 96], sizes = [8, 32], strides = [1, 1]} : vector<8x128xf32> to vector<8x32xf32>
    %1295 = arith.mulf %1291, %1294 : vector<8x32xf32>
    %1296 = arith.addf %1293, %1295 : vector<8x32xf32>
    %1297 = math.tanh %1296 : vector<8x32xf32>
    %cst_382 = arith.constant 1.000000e+00 : f32
    %1298 = vector.broadcast %cst_382 : f32 to vector<8x32xf32>
    %1299 = arith.subf %1298, %1292 : vector<8x32xf32>
    %1300 = arith.mulf %1299, %1297 : vector<8x32xf32>
    %1301 = arith.mulf %1292, %1199 : vector<8x32xf32>
    %1302 = arith.addf %1300, %1301 : vector<8x32xf32>
    %cst_383 = arith.constant 0.000000e+00 : f32
    %cst_384 = arith.constant 5.000000e+00 : f32
    %1303 = vector.broadcast %cst_383 : f32 to vector<8x32xf32>
    %1304 = arith.maximumf %1303, %1302 : vector<8x32xf32>
    %1305 = vector.broadcast %cst_384 : f32 to vector<8x32xf32>
    %1306 = arith.minimumf %1305, %1304 : vector<8x32xf32>
    %cst_385 = arith.constant dense<0.000000e+00> : vector<8x8xf32>
    %1307 = tpu.matmul %1306, %25, %cst_385 {dimension_numbers = #tpu.dot_dimension_numbers<[1], [0], [0], [1], [0, 0, 1, 1], [], []>} : vector<8x32xf32>, vector<32x8xf32>, vector<8x8xf32> -> vector<8x8xf32>
    %1308 = arith.addf %1307, %28 : vector<8x8xf32>
    %cst_386 = arith.constant dense<0.000000e+00> : vector<8x80xf32>
    %1309 = tpu.matmul %1308, %29, %cst_386 {dimension_numbers = #tpu.dot_dimension_numbers<[1], [0], [0], [1], [0, 0, 1, 1], [], []>} : vector<8x8xf32>, vector<8x80xf32>, vector<8x80xf32> -> vector<8x80xf32>
    %1310 = arith.addf %1309, %32 : vector<8x80xf32>
    %cst_387 = arith.constant 0.000000e+00 : f32
    %1311 = vector.broadcast %cst_387 : f32 to vector<8x80xf32>
    %1312 = arith.maximumf %1310, %1311 : vector<8x80xf32>
    %cst_388 = arith.constant dense<0.000000e+00> : vector<8x16xf32>
    %1313 = tpu.matmul %1312, %33, %cst_388 {dimension_numbers = #tpu.dot_dimension_numbers<[1], [0], [0], [1], [0, 0, 1, 1], [], []>} : vector<8x80xf32>, vector<80x16xf32>, vector<8x16xf32> -> vector<8x16xf32>
    %1314 = arith.addf %1313, %36 : vector<8x16xf32>
    %c3_389 = arith.constant 3 : index
    %c0_390 = arith.constant 0 : index
    %c0_391 = arith.constant 0 : index
    %1315 = vector.load %arg1[%c3_389, %c0_390, %c0_391] : memref<8x8x16xf32, #tpu.memory_space<vmem>>, vector<1x8x16xf32>
    %1316 = vector.shape_cast %1315 : vector<1x8x16xf32> to vector<8x16xf32>
    %1317 = arith.subf %1316, %1314 : vector<8x16xf32>
    %1318 = arith.mulf %1317, %1317 : vector<8x16xf32>
    %1319 = vector.broadcast %4 : vector<8x1xf32> to vector<8x16xf32>
    %1320 = arith.mulf %1318, %1319 : vector<8x16xf32>
    %1321 = vector.shape_cast %1320 : vector<8x16xf32> to vector<1x8x16xf32>
    %cst_392 = arith.constant dense<0.000000e+00> : vector<1xf32>
    %1322 = vector.multi_reduction <add>, %1321, %cst_392 [1, 2] : vector<1x8x16xf32> to vector<1xf32>
    %1323 = vector.shape_cast %1322 : vector<1xf32> to vector<1x1x1xf32>
    %1324 = vector.extract %1323[0, 0, 0] : f32 from vector<1x1x1xf32>
    %1325 = vector.broadcast %1324 : f32 to vector<1x1xf32>
    %1326 = arith.addf %1219, %1325 : vector<1x1xf32>
    %1327 = tpu.concatenate %1314, %1308, %1261 in 1 : vector<8x16xf32>, vector<8x8xf32>, vector<8x2xf32> -> vector<8x26xf32>
    %c3_393 = arith.constant 3 : index
    %c0_394 = arith.constant 0 : index
    %c0_395 = arith.constant 0 : index
    %1328 = vector.load %arg23[%c3_393, %c0_394, %c0_395] : memref<8x8x26xf32, #tpu.memory_space<vmem>>, vector<1x8x26xf32>
    %1329 = vector.shape_cast %1328 : vector<1x8x26xf32> to vector<8x26xf32>
    %1330 = vector.shape_cast %1327 : vector<8x26xf32> to vector<1x8x26xf32>
    tpu.vector_store %arg23[%c3_393, %c0_394, %c0_395], %1330 {strides = array<i32>} : memref<8x8x26xf32, #tpu.memory_space<vmem>>, vector<1x8x26xf32>,
    %c4_396 = arith.constant 4 : index
    %c0_397 = arith.constant 0 : index
    %c0_398 = arith.constant 0 : index
    %1331 = vector.load %arg26[%c4_396, %c0_397, %c0_398] : memref<8x8x32xf32, #tpu.memory_space<vmem>>, vector<1x8x32xf32>
    %1332 = vector.shape_cast %1331 : vector<1x8x32xf32> to vector<8x32xf32>
    %c4_399 = arith.constant 4 : index
    %c0_400 = arith.constant 0 : index
    %c0_401 = arith.constant 0 : index
    %1333 = vector.load %arg27[%c4_399, %c0_400, %c0_401] : memref<8x8x32xf32, #tpu.memory_space<vmem>>, vector<1x8x32xf32>
    %1334 = vector.shape_cast %1333 : vector<1x8x32xf32> to vector<8x32xf32>
    %1335 = tpu.concatenate %1332, %1334, %1308, %1250 in 1 : vector<8x32xf32>, vector<8x32xf32>, vector<8x8xf32>, vector<8x32xf32> -> vector<8x104xf32>
    %cst_402 = arith.constant dense<0.000000e+00> : vector<8x128xf32>
    %1336 = tpu.matmul %1335, %13, %cst_402 {dimension_numbers = #tpu.dot_dimension_numbers<[1], [0], [0], [1], [0, 0, 1, 1], [], []>} : vector<8x104xf32>, vector<104x128xf32>, vector<8x128xf32> -> vector<8x128xf32>
    %1337 = arith.addf %1336, %16 : vector<8x128xf32>
    %1338 = vector.extract_strided_slice %1337 {offsets = [0, 0], sizes = [8, 64], strides = [1, 1]} : vector<8x128xf32> to vector<8x64xf32>
    %1339 = arith.negf %1338 : vector<8x64xf32>
    %1340 = math.exp %1339 : vector<8x64xf32>
    %cst_403 = arith.constant 1.000000e+00 : f32
    %1341 = vector.broadcast %cst_403 : f32 to vector<8x64xf32>
    %1342 = arith.addf %1341, %1340 : vector<8x64xf32>
    %1343 = arith.divf %1341, %1342 : vector<8x64xf32>
    %1344 = vector.extract_strided_slice %1343 {offsets = [0, 0], sizes = [8, 32], strides = [1, 1]} : vector<8x64xf32> to vector<8x32xf32>
    %1345 = vector.extract_strided_slice %1343 {offsets = [0, 32], sizes = [8, 32], strides = [1, 1]} : vector<8x64xf32> to vector<8x32xf32>
    %1346 = vector.extract_strided_slice %1337 {offsets = [0, 64], sizes = [8, 32], strides = [1, 1]} : vector<8x128xf32> to vector<8x32xf32>
    %1347 = vector.extract_strided_slice %1337 {offsets = [0, 96], sizes = [8, 32], strides = [1, 1]} : vector<8x128xf32> to vector<8x32xf32>
    %1348 = arith.mulf %1344, %1347 : vector<8x32xf32>
    %1349 = arith.addf %1346, %1348 : vector<8x32xf32>
    %1350 = math.tanh %1349 : vector<8x32xf32>
    %cst_404 = arith.constant 1.000000e+00 : f32
    %1351 = vector.broadcast %cst_404 : f32 to vector<8x32xf32>
    %1352 = arith.subf %1351, %1345 : vector<8x32xf32>
    %1353 = arith.mulf %1352, %1350 : vector<8x32xf32>
    %1354 = arith.mulf %1345, %1250 : vector<8x32xf32>
    %1355 = arith.addf %1353, %1354 : vector<8x32xf32>
    %cst_405 = arith.constant 5.000000e+00 : f32
    %1356 = vector.broadcast %cst_405 : f32 to vector<8x32xf32>
    %1357 = arith.minimumf %1355, %1356 : vector<8x32xf32>
    %cst_406 = arith.constant dense<0.000000e+00> : vector<8x4xf32>
    %1358 = tpu.matmul %1357, %21, %cst_406 {dimension_numbers = #tpu.dot_dimension_numbers<[1], [0], [0], [1], [0, 0, 1, 1], [], []>} : vector<8x32xf32>, vector<32x4xf32>, vector<8x4xf32> -> vector<8x4xf32>
    %1359 = arith.addf %1358, %24 : vector<8x4xf32>
    %1360 = vector.extract_strided_slice %1359 {offsets = [0, 0], sizes = [8, 2], strides = [1, 1]} : vector<8x4xf32> to vector<8x2xf32>
    %1361 = vector.extract_strided_slice %1359 {offsets = [0, 2], sizes = [8, 2], strides = [1, 1]} : vector<8x4xf32> to vector<8x2xf32>
    %c4_407 = arith.constant 4 : index
    %c0_408 = arith.constant 0 : index
    %c0_409 = arith.constant 0 : index
    %1362 = vector.load %arg3[%c4_407, %c0_408, %c0_409] : memref<8x8x2xf32, #tpu.memory_space<vmem>>, vector<1x8x2xf32>
    %1363 = vector.shape_cast %1362 : vector<1x8x2xf32> to vector<8x2xf32>
    %cst_410 = arith.constant 5.000000e-01 : f32
    %1364 = vector.broadcast %cst_410 : f32 to vector<8x2xf32>
    %1365 = arith.mulf %1364, %1361 : vector<8x2xf32>
    %1366 = math.exp %1365 : vector<8x2xf32>
    %1367 = arith.mulf %1363, %1366 : vector<8x2xf32>
    %1368 = arith.addf %1367, %1360 : vector<8x2xf32>
    %1369 = arith.subf %894, %1361 : vector<8x2xf32>
    %1370 = arith.subf %1361, %894 : vector<8x2xf32>
    %1371 = math.exp %1370 : vector<8x2xf32>
    %1372 = arith.addf %1369, %1371 : vector<8x2xf32>
    %1373 = arith.subf %1360, %897 : vector<8x2xf32>
    %1374 = arith.mulf %1373, %900 : vector<8x2xf32>
    %1375 = arith.mulf %1374, %1374 : vector<8x2xf32>
    %1376 = arith.addf %1372, %1375 : vector<8x2xf32>
    %cst_411 = arith.constant 1.000000e+00 : f32
    %1377 = vector.broadcast %cst_411 : f32 to vector<8x2xf32>
    %1378 = arith.subf %1376, %1377 : vector<8x2xf32>
    %1379 = vector.broadcast %4 : vector<8x1xf32> to vector<8x2xf32>
    %1380 = arith.mulf %1378, %1379 : vector<8x2xf32>
    %1381 = vector.shape_cast %1380 : vector<8x2xf32> to vector<1x8x2xf32>
    %cst_412 = arith.constant dense<0.000000e+00> : vector<1xf32>
    %1382 = vector.multi_reduction <add>, %1381, %cst_412 [1, 2] : vector<1x8x2xf32> to vector<1xf32>
    %1383 = vector.shape_cast %1382 : vector<1xf32> to vector<1x1x1xf32>
    %1384 = vector.extract %1383[0, 0, 0] : f32 from vector<1x1x1xf32>
    %1385 = vector.broadcast %1384 : f32 to vector<1x1xf32>
    %cst_413 = arith.constant 5.000000e-01 : f32
    %1386 = vector.broadcast %cst_413 : f32 to vector<1x1xf32>
    %1387 = arith.mulf %1386, %1385 : vector<1x1xf32>
    %1388 = arith.addf %1281, %1387 : vector<1x1xf32>
    %1389 = tpu.concatenate %1368, %1306 in 1 : vector<8x2xf32>, vector<8x32xf32> -> vector<8x34xf32>
    %cst_414 = arith.constant dense<0.000000e+00> : vector<8x128xf32>
    %1390 = tpu.matmul %1389, %17, %cst_414 {dimension_numbers = #tpu.dot_dimension_numbers<[1], [0], [0], [1], [0, 0, 1, 1], [], []>} : vector<8x34xf32>, vector<34x128xf32>, vector<8x128xf32> -> vector<8x128xf32>
    %1391 = arith.addf %1390, %20 : vector<8x128xf32>
    %1392 = vector.extract_strided_slice %1391 {offsets = [0, 0], sizes = [8, 64], strides = [1, 1]} : vector<8x128xf32> to vector<8x64xf32>
    %1393 = arith.negf %1392 : vector<8x64xf32>
    %1394 = math.exp %1393 : vector<8x64xf32>
    %cst_415 = arith.constant 1.000000e+00 : f32
    %1395 = vector.broadcast %cst_415 : f32 to vector<8x64xf32>
    %1396 = arith.addf %1395, %1394 : vector<8x64xf32>
    %1397 = arith.divf %1395, %1396 : vector<8x64xf32>
    %1398 = vector.extract_strided_slice %1397 {offsets = [0, 0], sizes = [8, 32], strides = [1, 1]} : vector<8x64xf32> to vector<8x32xf32>
    %1399 = vector.extract_strided_slice %1397 {offsets = [0, 32], sizes = [8, 32], strides = [1, 1]} : vector<8x64xf32> to vector<8x32xf32>
    %1400 = vector.extract_strided_slice %1391 {offsets = [0, 64], sizes = [8, 32], strides = [1, 1]} : vector<8x128xf32> to vector<8x32xf32>
    %1401 = vector.extract_strided_slice %1391 {offsets = [0, 96], sizes = [8, 32], strides = [1, 1]} : vector<8x128xf32> to vector<8x32xf32>
    %1402 = arith.mulf %1398, %1401 : vector<8x32xf32>
    %1403 = arith.addf %1400, %1402 : vector<8x32xf32>
    %1404 = math.tanh %1403 : vector<8x32xf32>
    %cst_416 = arith.constant 1.000000e+00 : f32
    %1405 = vector.broadcast %cst_416 : f32 to vector<8x32xf32>
    %1406 = arith.subf %1405, %1399 : vector<8x32xf32>
    %1407 = arith.mulf %1406, %1404 : vector<8x32xf32>
    %1408 = arith.mulf %1399, %1306 : vector<8x32xf32>
    %1409 = arith.addf %1407, %1408 : vector<8x32xf32>
    %cst_417 = arith.constant 0.000000e+00 : f32
    %cst_418 = arith.constant 5.000000e+00 : f32
    %1410 = vector.broadcast %cst_417 : f32 to vector<8x32xf32>
    %1411 = arith.maximumf %1410, %1409 : vector<8x32xf32>
    %1412 = vector.broadcast %cst_418 : f32 to vector<8x32xf32>
    %1413 = arith.minimumf %1412, %1411 : vector<8x32xf32>
    %cst_419 = arith.constant dense<0.000000e+00> : vector<8x8xf32>
    %1414 = tpu.matmul %1413, %25, %cst_419 {dimension_numbers = #tpu.dot_dimension_numbers<[1], [0], [0], [1], [0, 0, 1, 1], [], []>} : vector<8x32xf32>, vector<32x8xf32>, vector<8x8xf32> -> vector<8x8xf32>
    %1415 = arith.addf %1414, %28 : vector<8x8xf32>
    %cst_420 = arith.constant dense<0.000000e+00> : vector<8x80xf32>
    %1416 = tpu.matmul %1415, %29, %cst_420 {dimension_numbers = #tpu.dot_dimension_numbers<[1], [0], [0], [1], [0, 0, 1, 1], [], []>} : vector<8x8xf32>, vector<8x80xf32>, vector<8x80xf32> -> vector<8x80xf32>
    %1417 = arith.addf %1416, %32 : vector<8x80xf32>
    %cst_421 = arith.constant 0.000000e+00 : f32
    %1418 = vector.broadcast %cst_421 : f32 to vector<8x80xf32>
    %1419 = arith.maximumf %1417, %1418 : vector<8x80xf32>
    %cst_422 = arith.constant dense<0.000000e+00> : vector<8x16xf32>
    %1420 = tpu.matmul %1419, %33, %cst_422 {dimension_numbers = #tpu.dot_dimension_numbers<[1], [0], [0], [1], [0, 0, 1, 1], [], []>} : vector<8x80xf32>, vector<80x16xf32>, vector<8x16xf32> -> vector<8x16xf32>
    %1421 = arith.addf %1420, %36 : vector<8x16xf32>
    %c4_423 = arith.constant 4 : index
    %c0_424 = arith.constant 0 : index
    %c0_425 = arith.constant 0 : index
    %1422 = vector.load %arg1[%c4_423, %c0_424, %c0_425] : memref<8x8x16xf32, #tpu.memory_space<vmem>>, vector<1x8x16xf32>
    %1423 = vector.shape_cast %1422 : vector<1x8x16xf32> to vector<8x16xf32>
    %1424 = arith.subf %1423, %1421 : vector<8x16xf32>
    %1425 = arith.mulf %1424, %1424 : vector<8x16xf32>
    %1426 = vector.broadcast %4 : vector<8x1xf32> to vector<8x16xf32>
    %1427 = arith.mulf %1425, %1426 : vector<8x16xf32>
    %1428 = vector.shape_cast %1427 : vector<8x16xf32> to vector<1x8x16xf32>
    %cst_426 = arith.constant dense<0.000000e+00> : vector<1xf32>
    %1429 = vector.multi_reduction <add>, %1428, %cst_426 [1, 2] : vector<1x8x16xf32> to vector<1xf32>
    %1430 = vector.shape_cast %1429 : vector<1xf32> to vector<1x1x1xf32>
    %1431 = vector.extract %1430[0, 0, 0] : f32 from vector<1x1x1xf32>
    %1432 = vector.broadcast %1431 : f32 to vector<1x1xf32>
    %1433 = arith.addf %1326, %1432 : vector<1x1xf32>
    %1434 = tpu.concatenate %1421, %1415, %1368 in 1 : vector<8x16xf32>, vector<8x8xf32>, vector<8x2xf32> -> vector<8x26xf32>
    %c4_427 = arith.constant 4 : index
    %c0_428 = arith.constant 0 : index
    %c0_429 = arith.constant 0 : index
    %1435 = vector.load %arg23[%c4_427, %c0_428, %c0_429] : memref<8x8x26xf32, #tpu.memory_space<vmem>>, vector<1x8x26xf32>
    %1436 = vector.shape_cast %1435 : vector<1x8x26xf32> to vector<8x26xf32>
    %1437 = vector.shape_cast %1434 : vector<8x26xf32> to vector<1x8x26xf32>
    tpu.vector_store %arg23[%c4_427, %c0_428, %c0_429], %1437 {strides = array<i32>} : memref<8x8x26xf32, #tpu.memory_space<vmem>>, vector<1x8x26xf32>,
    %c5_430 = arith.constant 5 : index
    %c0_431 = arith.constant 0 : index
    %c0_432 = arith.constant 0 : index
    %1438 = vector.load %arg26[%c5_430, %c0_431, %c0_432] : memref<8x8x32xf32, #tpu.memory_space<vmem>>, vector<1x8x32xf32>
    %1439 = vector.shape_cast %1438 : vector<1x8x32xf32> to vector<8x32xf32>
    %c5_433 = arith.constant 5 : index
    %c0_434 = arith.constant 0 : index
    %c0_435 = arith.constant 0 : index
    %1440 = vector.load %arg27[%c5_433, %c0_434, %c0_435] : memref<8x8x32xf32, #tpu.memory_space<vmem>>, vector<1x8x32xf32>
    %1441 = vector.shape_cast %1440 : vector<1x8x32xf32> to vector<8x32xf32>
    %1442 = tpu.concatenate %1439, %1441, %1415, %1357 in 1 : vector<8x32xf32>, vector<8x32xf32>, vector<8x8xf32>, vector<8x32xf32> -> vector<8x104xf32>
    %cst_436 = arith.constant dense<0.000000e+00> : vector<8x128xf32>
    %1443 = tpu.matmul %1442, %13, %cst_436 {dimension_numbers = #tpu.dot_dimension_numbers<[1], [0], [0], [1], [0, 0, 1, 1], [], []>} : vector<8x104xf32>, vector<104x128xf32>, vector<8x128xf32> -> vector<8x128xf32>
    %1444 = arith.addf %1443, %16 : vector<8x128xf32>
    %1445 = vector.extract_strided_slice %1444 {offsets = [0, 0], sizes = [8, 64], strides = [1, 1]} : vector<8x128xf32> to vector<8x64xf32>
    %1446 = arith.negf %1445 : vector<8x64xf32>
    %1447 = math.exp %1446 : vector<8x64xf32>
    %cst_437 = arith.constant 1.000000e+00 : f32
    %1448 = vector.broadcast %cst_437 : f32 to vector<8x64xf32>
    %1449 = arith.addf %1448, %1447 : vector<8x64xf32>
    %1450 = arith.divf %1448, %1449 : vector<8x64xf32>
    %1451 = vector.extract_strided_slice %1450 {offsets = [0, 0], sizes = [8, 32], strides = [1, 1]} : vector<8x64xf32> to vector<8x32xf32>
    %1452 = vector.extract_strided_slice %1450 {offsets = [0, 32], sizes = [8, 32], strides = [1, 1]} : vector<8x64xf32> to vector<8x32xf32>
    %1453 = vector.extract_strided_slice %1444 {offsets = [0, 64], sizes = [8, 32], strides = [1, 1]} : vector<8x128xf32> to vector<8x32xf32>
    %1454 = vector.extract_strided_slice %1444 {offsets = [0, 96], sizes = [8, 32], strides = [1, 1]} : vector<8x128xf32> to vector<8x32xf32>
    %1455 = arith.mulf %1451, %1454 : vector<8x32xf32>
    %1456 = arith.addf %1453, %1455 : vector<8x32xf32>
    %1457 = math.tanh %1456 : vector<8x32xf32>
    %cst_438 = arith.constant 1.000000e+00 : f32
    %1458 = vector.broadcast %cst_438 : f32 to vector<8x32xf32>
    %1459 = arith.subf %1458, %1452 : vector<8x32xf32>
    %1460 = arith.mulf %1459, %1457 : vector<8x32xf32>
    %1461 = arith.mulf %1452, %1357 : vector<8x32xf32>
    %1462 = arith.addf %1460, %1461 : vector<8x32xf32>
    %cst_439 = arith.constant 5.000000e+00 : f32
    %1463 = vector.broadcast %cst_439 : f32 to vector<8x32xf32>
    %1464 = arith.minimumf %1462, %1463 : vector<8x32xf32>
    %cst_440 = arith.constant dense<0.000000e+00> : vector<8x4xf32>
    %1465 = tpu.matmul %1464, %21, %cst_440 {dimension_numbers = #tpu.dot_dimension_numbers<[1], [0], [0], [1], [0, 0, 1, 1], [], []>} : vector<8x32xf32>, vector<32x4xf32>, vector<8x4xf32> -> vector<8x4xf32>
    %1466 = arith.addf %1465, %24 : vector<8x4xf32>
    %1467 = vector.extract_strided_slice %1466 {offsets = [0, 0], sizes = [8, 2], strides = [1, 1]} : vector<8x4xf32> to vector<8x2xf32>
    %1468 = vector.extract_strided_slice %1466 {offsets = [0, 2], sizes = [8, 2], strides = [1, 1]} : vector<8x4xf32> to vector<8x2xf32>
    %c5_441 = arith.constant 5 : index
    %c0_442 = arith.constant 0 : index
    %c0_443 = arith.constant 0 : index
    %1469 = vector.load %arg3[%c5_441, %c0_442, %c0_443] : memref<8x8x2xf32, #tpu.memory_space<vmem>>, vector<1x8x2xf32>
    %1470 = vector.shape_cast %1469 : vector<1x8x2xf32> to vector<8x2xf32>
    %cst_444 = arith.constant 5.000000e-01 : f32
    %1471 = vector.broadcast %cst_444 : f32 to vector<8x2xf32>
    %1472 = arith.mulf %1471, %1468 : vector<8x2xf32>
    %1473 = math.exp %1472 : vector<8x2xf32>
    %1474 = arith.mulf %1470, %1473 : vector<8x2xf32>
    %1475 = arith.addf %1474, %1467 : vector<8x2xf32>
    %1476 = arith.subf %894, %1468 : vector<8x2xf32>
    %1477 = arith.subf %1468, %894 : vector<8x2xf32>
    %1478 = math.exp %1477 : vector<8x2xf32>
    %1479 = arith.addf %1476, %1478 : vector<8x2xf32>
    %1480 = arith.subf %1467, %897 : vector<8x2xf32>
    %1481 = arith.mulf %1480, %900 : vector<8x2xf32>
    %1482 = arith.mulf %1481, %1481 : vector<8x2xf32>
    %1483 = arith.addf %1479, %1482 : vector<8x2xf32>
    %cst_445 = arith.constant 1.000000e+00 : f32
    %1484 = vector.broadcast %cst_445 : f32 to vector<8x2xf32>
    %1485 = arith.subf %1483, %1484 : vector<8x2xf32>
    %1486 = vector.broadcast %4 : vector<8x1xf32> to vector<8x2xf32>
    %1487 = arith.mulf %1485, %1486 : vector<8x2xf32>
    %1488 = vector.shape_cast %1487 : vector<8x2xf32> to vector<1x8x2xf32>
    %cst_446 = arith.constant dense<0.000000e+00> : vector<1xf32>
    %1489 = vector.multi_reduction <add>, %1488, %cst_446 [1, 2] : vector<1x8x2xf32> to vector<1xf32>
    %1490 = vector.shape_cast %1489 : vector<1xf32> to vector<1x1x1xf32>
    %1491 = vector.extract %1490[0, 0, 0] : f32 from vector<1x1x1xf32>
    %1492 = vector.broadcast %1491 : f32 to vector<1x1xf32>
    %cst_447 = arith.constant 5.000000e-01 : f32
    %1493 = vector.broadcast %cst_447 : f32 to vector<1x1xf32>
    %1494 = arith.mulf %1493, %1492 : vector<1x1xf32>
    %1495 = arith.addf %1388, %1494 : vector<1x1xf32>
    %1496 = tpu.concatenate %1475, %1413 in 1 : vector<8x2xf32>, vector<8x32xf32> -> vector<8x34xf32>
    %cst_448 = arith.constant dense<0.000000e+00> : vector<8x128xf32>
    %1497 = tpu.matmul %1496, %17, %cst_448 {dimension_numbers = #tpu.dot_dimension_numbers<[1], [0], [0], [1], [0, 0, 1, 1], [], []>} : vector<8x34xf32>, vector<34x128xf32>, vector<8x128xf32> -> vector<8x128xf32>
    %1498 = arith.addf %1497, %20 : vector<8x128xf32>
    %1499 = vector.extract_strided_slice %1498 {offsets = [0, 0], sizes = [8, 64], strides = [1, 1]} : vector<8x128xf32> to vector<8x64xf32>
    %1500 = arith.negf %1499 : vector<8x64xf32>
    %1501 = math.exp %1500 : vector<8x64xf32>
    %cst_449 = arith.constant 1.000000e+00 : f32
    %1502 = vector.broadcast %cst_449 : f32 to vector<8x64xf32>
    %1503 = arith.addf %1502, %1501 : vector<8x64xf32>
    %1504 = arith.divf %1502, %1503 : vector<8x64xf32>
    %1505 = vector.extract_strided_slice %1504 {offsets = [0, 0], sizes = [8, 32], strides = [1, 1]} : vector<8x64xf32> to vector<8x32xf32>
    %1506 = vector.extract_strided_slice %1504 {offsets = [0, 32], sizes = [8, 32], strides = [1, 1]} : vector<8x64xf32> to vector<8x32xf32>
    %1507 = vector.extract_strided_slice %1498 {offsets = [0, 64], sizes = [8, 32], strides = [1, 1]} : vector<8x128xf32> to vector<8x32xf32>
    %1508 = vector.extract_strided_slice %1498 {offsets = [0, 96], sizes = [8, 32], strides = [1, 1]} : vector<8x128xf32> to vector<8x32xf32>
    %1509 = arith.mulf %1505, %1508 : vector<8x32xf32>
    %1510 = arith.addf %1507, %1509 : vector<8x32xf32>
    %1511 = math.tanh %1510 : vector<8x32xf32>
    %cst_450 = arith.constant 1.000000e+00 : f32
    %1512 = vector.broadcast %cst_450 : f32 to vector<8x32xf32>
    %1513 = arith.subf %1512, %1506 : vector<8x32xf32>
    %1514 = arith.mulf %1513, %1511 : vector<8x32xf32>
    %1515 = arith.mulf %1506, %1413 : vector<8x32xf32>
    %1516 = arith.addf %1514, %1515 : vector<8x32xf32>
    %cst_451 = arith.constant 0.000000e+00 : f32
    %cst_452 = arith.constant 5.000000e+00 : f32
    %1517 = vector.broadcast %cst_451 : f32 to vector<8x32xf32>
    %1518 = arith.maximumf %1517, %1516 : vector<8x32xf32>
    %1519 = vector.broadcast %cst_452 : f32 to vector<8x32xf32>
    %1520 = arith.minimumf %1519, %1518 : vector<8x32xf32>
    %cst_453 = arith.constant dense<0.000000e+00> : vector<8x8xf32>
    %1521 = tpu.matmul %1520, %25, %cst_453 {dimension_numbers = #tpu.dot_dimension_numbers<[1], [0], [0], [1], [0, 0, 1, 1], [], []>} : vector<8x32xf32>, vector<32x8xf32>, vector<8x8xf32> -> vector<8x8xf32>
    %1522 = arith.addf %1521, %28 : vector<8x8xf32>
    %cst_454 = arith.constant dense<0.000000e+00> : vector<8x80xf32>
    %1523 = tpu.matmul %1522, %29, %cst_454 {dimension_numbers = #tpu.dot_dimension_numbers<[1], [0], [0], [1], [0, 0, 1, 1], [], []>} : vector<8x8xf32>, vector<8x80xf32>, vector<8x80xf32> -> vector<8x80xf32>
    %1524 = arith.addf %1523, %32 : vector<8x80xf32>
    %cst_455 = arith.constant 0.000000e+00 : f32
    %1525 = vector.broadcast %cst_455 : f32 to vector<8x80xf32>
    %1526 = arith.maximumf %1524, %1525 : vector<8x80xf32>
    %cst_456 = arith.constant dense<0.000000e+00> : vector<8x16xf32>
    %1527 = tpu.matmul %1526, %33, %cst_456 {dimension_numbers = #tpu.dot_dimension_numbers<[1], [0], [0], [1], [0, 0, 1, 1], [], []>} : vector<8x80xf32>, vector<80x16xf32>, vector<8x16xf32> -> vector<8x16xf32>
    %1528 = arith.addf %1527, %36 : vector<8x16xf32>
    %c5_457 = arith.constant 5 : index
    %c0_458 = arith.constant 0 : index
    %c0_459 = arith.constant 0 : index
    %1529 = vector.load %arg1[%c5_457, %c0_458, %c0_459] : memref<8x8x16xf32, #tpu.memory_space<vmem>>, vector<1x8x16xf32>
    %1530 = vector.shape_cast %1529 : vector<1x8x16xf32> to vector<8x16xf32>
    %1531 = arith.subf %1530, %1528 : vector<8x16xf32>
    %1532 = arith.mulf %1531, %1531 : vector<8x16xf32>
    %1533 = vector.broadcast %4 : vector<8x1xf32> to vector<8x16xf32>
    %1534 = arith.mulf %1532, %1533 : vector<8x16xf32>
    %1535 = vector.shape_cast %1534 : vector<8x16xf32> to vector<1x8x16xf32>
    %cst_460 = arith.constant dense<0.000000e+00> : vector<1xf32>
    %1536 = vector.multi_reduction <add>, %1535, %cst_460 [1, 2] : vector<1x8x16xf32> to vector<1xf32>
    %1537 = vector.shape_cast %1536 : vector<1xf32> to vector<1x1x1xf32>
    %1538 = vector.extract %1537[0, 0, 0] : f32 from vector<1x1x1xf32>
    %1539 = vector.broadcast %1538 : f32 to vector<1x1xf32>
    %1540 = arith.addf %1433, %1539 : vector<1x1xf32>
    %1541 = tpu.concatenate %1528, %1522, %1475 in 1 : vector<8x16xf32>, vector<8x8xf32>, vector<8x2xf32> -> vector<8x26xf32>
    %c5_461 = arith.constant 5 : index
    %c0_462 = arith.constant 0 : index
    %c0_463 = arith.constant 0 : index
    %1542 = vector.load %arg23[%c5_461, %c0_462, %c0_463] : memref<8x8x26xf32, #tpu.memory_space<vmem>>, vector<1x8x26xf32>
    %1543 = vector.shape_cast %1542 : vector<1x8x26xf32> to vector<8x26xf32>
    %1544 = vector.shape_cast %1541 : vector<8x26xf32> to vector<1x8x26xf32>
    tpu.vector_store %arg23[%c5_461, %c0_462, %c0_463], %1544 {strides = array<i32>} : memref<8x8x26xf32, #tpu.memory_space<vmem>>, vector<1x8x26xf32>,
    %c6_464 = arith.constant 6 : index
    %c0_465 = arith.constant 0 : index
    %c0_466 = arith.constant 0 : index
    %1545 = vector.load %arg26[%c6_464, %c0_465, %c0_466] : memref<8x8x32xf32, #tpu.memory_space<vmem>>, vector<1x8x32xf32>
    %1546 = vector.shape_cast %1545 : vector<1x8x32xf32> to vector<8x32xf32>
    %c6_467 = arith.constant 6 : index
    %c0_468 = arith.constant 0 : index
    %c0_469 = arith.constant 0 : index
    %1547 = vector.load %arg27[%c6_467, %c0_468, %c0_469] : memref<8x8x32xf32, #tpu.memory_space<vmem>>, vector<1x8x32xf32>
    %1548 = vector.shape_cast %1547 : vector<1x8x32xf32> to vector<8x32xf32>
    %1549 = tpu.concatenate %1546, %1548, %1522, %1464 in 1 : vector<8x32xf32>, vector<8x32xf32>, vector<8x8xf32>, vector<8x32xf32> -> vector<8x104xf32>
    %cst_470 = arith.constant dense<0.000000e+00> : vector<8x128xf32>
    %1550 = tpu.matmul %1549, %13, %cst_470 {dimension_numbers = #tpu.dot_dimension_numbers<[1], [0], [0], [1], [0, 0, 1, 1], [], []>} : vector<8x104xf32>, vector<104x128xf32>, vector<8x128xf32> -> vector<8x128xf32>
    %1551 = arith.addf %1550, %16 : vector<8x128xf32>
    %1552 = vector.extract_strided_slice %1551 {offsets = [0, 0], sizes = [8, 64], strides = [1, 1]} : vector<8x128xf32> to vector<8x64xf32>
    %1553 = arith.negf %1552 : vector<8x64xf32>
    %1554 = math.exp %1553 : vector<8x64xf32>
    %cst_471 = arith.constant 1.000000e+00 : f32
    %1555 = vector.broadcast %cst_471 : f32 to vector<8x64xf32>
    %1556 = arith.addf %1555, %1554 : vector<8x64xf32>
    %1557 = arith.divf %1555, %1556 : vector<8x64xf32>
    %1558 = vector.extract_strided_slice %1557 {offsets = [0, 0], sizes = [8, 32], strides = [1, 1]} : vector<8x64xf32> to vector<8x32xf32>
    %1559 = vector.extract_strided_slice %1557 {offsets = [0, 32], sizes = [8, 32], strides = [1, 1]} : vector<8x64xf32> to vector<8x32xf32>
    %1560 = vector.extract_strided_slice %1551 {offsets = [0, 64], sizes = [8, 32], strides = [1, 1]} : vector<8x128xf32> to vector<8x32xf32>
    %1561 = vector.extract_strided_slice %1551 {offsets = [0, 96], sizes = [8, 32], strides = [1, 1]} : vector<8x128xf32> to vector<8x32xf32>
    %1562 = arith.mulf %1558, %1561 : vector<8x32xf32>
    %1563 = arith.addf %1560, %1562 : vector<8x32xf32>
    %1564 = math.tanh %1563 : vector<8x32xf32>
    %cst_472 = arith.constant 1.000000e+00 : f32
    %1565 = vector.broadcast %cst_472 : f32 to vector<8x32xf32>
    %1566 = arith.subf %1565, %1559 : vector<8x32xf32>
    %1567 = arith.mulf %1566, %1564 : vector<8x32xf32>
    %1568 = arith.mulf %1559, %1464 : vector<8x32xf32>
    %1569 = arith.addf %1567, %1568 : vector<8x32xf32>
    %cst_473 = arith.constant 5.000000e+00 : f32
    %1570 = vector.broadcast %cst_473 : f32 to vector<8x32xf32>
    %1571 = arith.minimumf %1569, %1570 : vector<8x32xf32>
    %cst_474 = arith.constant dense<0.000000e+00> : vector<8x4xf32>
    %1572 = tpu.matmul %1571, %21, %cst_474 {dimension_numbers = #tpu.dot_dimension_numbers<[1], [0], [0], [1], [0, 0, 1, 1], [], []>} : vector<8x32xf32>, vector<32x4xf32>, vector<8x4xf32> -> vector<8x4xf32>
    %1573 = arith.addf %1572, %24 : vector<8x4xf32>
    %1574 = vector.extract_strided_slice %1573 {offsets = [0, 0], sizes = [8, 2], strides = [1, 1]} : vector<8x4xf32> to vector<8x2xf32>
    %1575 = vector.extract_strided_slice %1573 {offsets = [0, 2], sizes = [8, 2], strides = [1, 1]} : vector<8x4xf32> to vector<8x2xf32>
    %c6_475 = arith.constant 6 : index
    %c0_476 = arith.constant 0 : index
    %c0_477 = arith.constant 0 : index
    %1576 = vector.load %arg3[%c6_475, %c0_476, %c0_477] : memref<8x8x2xf32, #tpu.memory_space<vmem>>, vector<1x8x2xf32>
    %1577 = vector.shape_cast %1576 : vector<1x8x2xf32> to vector<8x2xf32>
    %cst_478 = arith.constant 5.000000e-01 : f32
    %1578 = vector.broadcast %cst_478 : f32 to vector<8x2xf32>
    %1579 = arith.mulf %1578, %1575 : vector<8x2xf32>
    %1580 = math.exp %1579 : vector<8x2xf32>
    %1581 = arith.mulf %1577, %1580 : vector<8x2xf32>
    %1582 = arith.addf %1581, %1574 : vector<8x2xf32>
    %1583 = arith.subf %894, %1575 : vector<8x2xf32>
    %1584 = arith.subf %1575, %894 : vector<8x2xf32>
    %1585 = math.exp %1584 : vector<8x2xf32>
    %1586 = arith.addf %1583, %1585 : vector<8x2xf32>
    %1587 = arith.subf %1574, %897 : vector<8x2xf32>
    %1588 = arith.mulf %1587, %900 : vector<8x2xf32>
    %1589 = arith.mulf %1588, %1588 : vector<8x2xf32>
    %1590 = arith.addf %1586, %1589 : vector<8x2xf32>
    %cst_479 = arith.constant 1.000000e+00 : f32
    %1591 = vector.broadcast %cst_479 : f32 to vector<8x2xf32>
    %1592 = arith.subf %1590, %1591 : vector<8x2xf32>
    %1593 = vector.broadcast %4 : vector<8x1xf32> to vector<8x2xf32>
    %1594 = arith.mulf %1592, %1593 : vector<8x2xf32>
    %1595 = vector.shape_cast %1594 : vector<8x2xf32> to vector<1x8x2xf32>
    %cst_480 = arith.constant dense<0.000000e+00> : vector<1xf32>
    %1596 = vector.multi_reduction <add>, %1595, %cst_480 [1, 2] : vector<1x8x2xf32> to vector<1xf32>
    %1597 = vector.shape_cast %1596 : vector<1xf32> to vector<1x1x1xf32>
    %1598 = vector.extract %1597[0, 0, 0] : f32 from vector<1x1x1xf32>
    %1599 = vector.broadcast %1598 : f32 to vector<1x1xf32>
    %cst_481 = arith.constant 5.000000e-01 : f32
    %1600 = vector.broadcast %cst_481 : f32 to vector<1x1xf32>
    %1601 = arith.mulf %1600, %1599 : vector<1x1xf32>
    %1602 = arith.addf %1495, %1601 : vector<1x1xf32>
    %1603 = tpu.concatenate %1582, %1520 in 1 : vector<8x2xf32>, vector<8x32xf32> -> vector<8x34xf32>
    %cst_482 = arith.constant dense<0.000000e+00> : vector<8x128xf32>
    %1604 = tpu.matmul %1603, %17, %cst_482 {dimension_numbers = #tpu.dot_dimension_numbers<[1], [0], [0], [1], [0, 0, 1, 1], [], []>} : vector<8x34xf32>, vector<34x128xf32>, vector<8x128xf32> -> vector<8x128xf32>
    %1605 = arith.addf %1604, %20 : vector<8x128xf32>
    %1606 = vector.extract_strided_slice %1605 {offsets = [0, 0], sizes = [8, 64], strides = [1, 1]} : vector<8x128xf32> to vector<8x64xf32>
    %1607 = arith.negf %1606 : vector<8x64xf32>
    %1608 = math.exp %1607 : vector<8x64xf32>
    %cst_483 = arith.constant 1.000000e+00 : f32
    %1609 = vector.broadcast %cst_483 : f32 to vector<8x64xf32>
    %1610 = arith.addf %1609, %1608 : vector<8x64xf32>
    %1611 = arith.divf %1609, %1610 : vector<8x64xf32>
    %1612 = vector.extract_strided_slice %1611 {offsets = [0, 0], sizes = [8, 32], strides = [1, 1]} : vector<8x64xf32> to vector<8x32xf32>
    %1613 = vector.extract_strided_slice %1611 {offsets = [0, 32], sizes = [8, 32], strides = [1, 1]} : vector<8x64xf32> to vector<8x32xf32>
    %1614 = vector.extract_strided_slice %1605 {offsets = [0, 64], sizes = [8, 32], strides = [1, 1]} : vector<8x128xf32> to vector<8x32xf32>
    %1615 = vector.extract_strided_slice %1605 {offsets = [0, 96], sizes = [8, 32], strides = [1, 1]} : vector<8x128xf32> to vector<8x32xf32>
    %1616 = arith.mulf %1612, %1615 : vector<8x32xf32>
    %1617 = arith.addf %1614, %1616 : vector<8x32xf32>
    %1618 = math.tanh %1617 : vector<8x32xf32>
    %cst_484 = arith.constant 1.000000e+00 : f32
    %1619 = vector.broadcast %cst_484 : f32 to vector<8x32xf32>
    %1620 = arith.subf %1619, %1613 : vector<8x32xf32>
    %1621 = arith.mulf %1620, %1618 : vector<8x32xf32>
    %1622 = arith.mulf %1613, %1520 : vector<8x32xf32>
    %1623 = arith.addf %1621, %1622 : vector<8x32xf32>
    %cst_485 = arith.constant 0.000000e+00 : f32
    %cst_486 = arith.constant 5.000000e+00 : f32
    %1624 = vector.broadcast %cst_485 : f32 to vector<8x32xf32>
    %1625 = arith.maximumf %1624, %1623 : vector<8x32xf32>
    %1626 = vector.broadcast %cst_486 : f32 to vector<8x32xf32>
    %1627 = arith.minimumf %1626, %1625 : vector<8x32xf32>
    %cst_487 = arith.constant dense<0.000000e+00> : vector<8x8xf32>
    %1628 = tpu.matmul %1627, %25, %cst_487 {dimension_numbers = #tpu.dot_dimension_numbers<[1], [0], [0], [1], [0, 0, 1, 1], [], []>} : vector<8x32xf32>, vector<32x8xf32>, vector<8x8xf32> -> vector<8x8xf32>
    %1629 = arith.addf %1628, %28 : vector<8x8xf32>
    %cst_488 = arith.constant dense<0.000000e+00> : vector<8x80xf32>
    %1630 = tpu.matmul %1629, %29, %cst_488 {dimension_numbers = #tpu.dot_dimension_numbers<[1], [0], [0], [1], [0, 0, 1, 1], [], []>} : vector<8x8xf32>, vector<8x80xf32>, vector<8x80xf32> -> vector<8x80xf32>
    %1631 = arith.addf %1630, %32 : vector<8x80xf32>
    %cst_489 = arith.constant 0.000000e+00 : f32
    %1632 = vector.broadcast %cst_489 : f32 to vector<8x80xf32>
    %1633 = arith.maximumf %1631, %1632 : vector<8x80xf32>
    %cst_490 = arith.constant dense<0.000000e+00> : vector<8x16xf32>
    %1634 = tpu.matmul %1633, %33, %cst_490 {dimension_numbers = #tpu.dot_dimension_numbers<[1], [0], [0], [1], [0, 0, 1, 1], [], []>} : vector<8x80xf32>, vector<80x16xf32>, vector<8x16xf32> -> vector<8x16xf32>
    %1635 = arith.addf %1634, %36 : vector<8x16xf32>
    %c6_491 = arith.constant 6 : index
    %c0_492 = arith.constant 0 : index
    %c0_493 = arith.constant 0 : index
    %1636 = vector.load %arg1[%c6_491, %c0_492, %c0_493] : memref<8x8x16xf32, #tpu.memory_space<vmem>>, vector<1x8x16xf32>
    %1637 = vector.shape_cast %1636 : vector<1x8x16xf32> to vector<8x16xf32>
    %1638 = arith.subf %1637, %1635 : vector<8x16xf32>
    %1639 = arith.mulf %1638, %1638 : vector<8x16xf32>
    %1640 = vector.broadcast %4 : vector<8x1xf32> to vector<8x16xf32>
    %1641 = arith.mulf %1639, %1640 : vector<8x16xf32>
    %1642 = vector.shape_cast %1641 : vector<8x16xf32> to vector<1x8x16xf32>
    %cst_494 = arith.constant dense<0.000000e+00> : vector<1xf32>
    %1643 = vector.multi_reduction <add>, %1642, %cst_494 [1, 2] : vector<1x8x16xf32> to vector<1xf32>
    %1644 = vector.shape_cast %1643 : vector<1xf32> to vector<1x1x1xf32>
    %1645 = vector.extract %1644[0, 0, 0] : f32 from vector<1x1x1xf32>
    %1646 = vector.broadcast %1645 : f32 to vector<1x1xf32>
    %1647 = arith.addf %1540, %1646 : vector<1x1xf32>
    %1648 = tpu.concatenate %1635, %1629, %1582 in 1 : vector<8x16xf32>, vector<8x8xf32>, vector<8x2xf32> -> vector<8x26xf32>
    %c6_495 = arith.constant 6 : index
    %c0_496 = arith.constant 0 : index
    %c0_497 = arith.constant 0 : index
    %1649 = vector.load %arg23[%c6_495, %c0_496, %c0_497] : memref<8x8x26xf32, #tpu.memory_space<vmem>>, vector<1x8x26xf32>
    %1650 = vector.shape_cast %1649 : vector<1x8x26xf32> to vector<8x26xf32>
    %1651 = vector.shape_cast %1648 : vector<8x26xf32> to vector<1x8x26xf32>
    tpu.vector_store %arg23[%c6_495, %c0_496, %c0_497], %1651 {strides = array<i32>} : memref<8x8x26xf32, #tpu.memory_space<vmem>>, vector<1x8x26xf32>,
    %c7_498 = arith.constant 7 : index
    %c0_499 = arith.constant 0 : index
    %c0_500 = arith.constant 0 : index
    %1652 = vector.load %arg26[%c7_498, %c0_499, %c0_500] : memref<8x8x32xf32, #tpu.memory_space<vmem>>, vector<1x8x32xf32>
    %1653 = vector.shape_cast %1652 : vector<1x8x32xf32> to vector<8x32xf32>
    %c7_501 = arith.constant 7 : index
    %c0_502 = arith.constant 0 : index
    %c0_503 = arith.constant 0 : index
    %1654 = vector.load %arg27[%c7_501, %c0_502, %c0_503] : memref<8x8x32xf32, #tpu.memory_space<vmem>>, vector<1x8x32xf32>
    %1655 = vector.shape_cast %1654 : vector<1x8x32xf32> to vector<8x32xf32>
    %1656 = tpu.concatenate %1653, %1655, %1629, %1571 in 1 : vector<8x32xf32>, vector<8x32xf32>, vector<8x8xf32>, vector<8x32xf32> -> vector<8x104xf32>
    %cst_504 = arith.constant dense<0.000000e+00> : vector<8x128xf32>
    %1657 = tpu.matmul %1656, %13, %cst_504 {dimension_numbers = #tpu.dot_dimension_numbers<[1], [0], [0], [1], [0, 0, 1, 1], [], []>} : vector<8x104xf32>, vector<104x128xf32>, vector<8x128xf32> -> vector<8x128xf32>
    %1658 = arith.addf %1657, %16 : vector<8x128xf32>
    %1659 = vector.extract_strided_slice %1658 {offsets = [0, 0], sizes = [8, 64], strides = [1, 1]} : vector<8x128xf32> to vector<8x64xf32>
    %1660 = arith.negf %1659 : vector<8x64xf32>
    %1661 = math.exp %1660 : vector<8x64xf32>
    %cst_505 = arith.constant 1.000000e+00 : f32
    %1662 = vector.broadcast %cst_505 : f32 to vector<8x64xf32>
    %1663 = arith.addf %1662, %1661 : vector<8x64xf32>
    %1664 = arith.divf %1662, %1663 : vector<8x64xf32>
    %1665 = vector.extract_strided_slice %1664 {offsets = [0, 0], sizes = [8, 32], strides = [1, 1]} : vector<8x64xf32> to vector<8x32xf32>
    %1666 = vector.extract_strided_slice %1664 {offsets = [0, 32], sizes = [8, 32], strides = [1, 1]} : vector<8x64xf32> to vector<8x32xf32>
    %1667 = vector.extract_strided_slice %1658 {offsets = [0, 64], sizes = [8, 32], strides = [1, 1]} : vector<8x128xf32> to vector<8x32xf32>
    %1668 = vector.extract_strided_slice %1658 {offsets = [0, 96], sizes = [8, 32], strides = [1, 1]} : vector<8x128xf32> to vector<8x32xf32>
    %1669 = arith.mulf %1665, %1668 : vector<8x32xf32>
    %1670 = arith.addf %1667, %1669 : vector<8x32xf32>
    %1671 = math.tanh %1670 : vector<8x32xf32>
    %cst_506 = arith.constant 1.000000e+00 : f32
    %1672 = vector.broadcast %cst_506 : f32 to vector<8x32xf32>
    %1673 = arith.subf %1672, %1666 : vector<8x32xf32>
    %1674 = arith.mulf %1673, %1671 : vector<8x32xf32>
    %1675 = arith.mulf %1666, %1571 : vector<8x32xf32>
    %1676 = arith.addf %1674, %1675 : vector<8x32xf32>
    %cst_507 = arith.constant 5.000000e+00 : f32
    %1677 = vector.broadcast %cst_507 : f32 to vector<8x32xf32>
    %1678 = arith.minimumf %1676, %1677 : vector<8x32xf32>
    %cst_508 = arith.constant dense<0.000000e+00> : vector<8x4xf32>
    %1679 = tpu.matmul %1678, %21, %cst_508 {dimension_numbers = #tpu.dot_dimension_numbers<[1], [0], [0], [1], [0, 0, 1, 1], [], []>} : vector<8x32xf32>, vector<32x4xf32>, vector<8x4xf32> -> vector<8x4xf32>
    %1680 = arith.addf %1679, %24 : vector<8x4xf32>
    %1681 = vector.extract_strided_slice %1680 {offsets = [0, 0], sizes = [8, 2], strides = [1, 1]} : vector<8x4xf32> to vector<8x2xf32>
    %1682 = vector.extract_strided_slice %1680 {offsets = [0, 2], sizes = [8, 2], strides = [1, 1]} : vector<8x4xf32> to vector<8x2xf32>
    %c7_509 = arith.constant 7 : index
    %c0_510 = arith.constant 0 : index
    %c0_511 = arith.constant 0 : index
    %1683 = vector.load %arg3[%c7_509, %c0_510, %c0_511] : memref<8x8x2xf32, #tpu.memory_space<vmem>>, vector<1x8x2xf32>
    %1684 = vector.shape_cast %1683 : vector<1x8x2xf32> to vector<8x2xf32>
    %cst_512 = arith.constant 5.000000e-01 : f32
    %1685 = vector.broadcast %cst_512 : f32 to vector<8x2xf32>
    %1686 = arith.mulf %1685, %1682 : vector<8x2xf32>
    %1687 = math.exp %1686 : vector<8x2xf32>
    %1688 = arith.mulf %1684, %1687 : vector<8x2xf32>
    %1689 = arith.addf %1688, %1681 : vector<8x2xf32>
    %1690 = arith.subf %894, %1682 : vector<8x2xf32>
    %1691 = arith.subf %1682, %894 : vector<8x2xf32>
    %1692 = math.exp %1691 : vector<8x2xf32>
    %1693 = arith.addf %1690, %1692 : vector<8x2xf32>
    %1694 = arith.subf %1681, %897 : vector<8x2xf32>
    %1695 = arith.mulf %1694, %900 : vector<8x2xf32>
    %1696 = arith.mulf %1695, %1695 : vector<8x2xf32>
    %1697 = arith.addf %1693, %1696 : vector<8x2xf32>
    %cst_513 = arith.constant 1.000000e+00 : f32
    %1698 = vector.broadcast %cst_513 : f32 to vector<8x2xf32>
    %1699 = arith.subf %1697, %1698 : vector<8x2xf32>
    %1700 = vector.broadcast %4 : vector<8x1xf32> to vector<8x2xf32>
    %1701 = arith.mulf %1699, %1700 : vector<8x2xf32>
    %1702 = vector.shape_cast %1701 : vector<8x2xf32> to vector<1x8x2xf32>
    %cst_514 = arith.constant dense<0.000000e+00> : vector<1xf32>
    %1703 = vector.multi_reduction <add>, %1702, %cst_514 [1, 2] : vector<1x8x2xf32> to vector<1xf32>
    %1704 = vector.shape_cast %1703 : vector<1xf32> to vector<1x1x1xf32>
    %1705 = vector.extract %1704[0, 0, 0] : f32 from vector<1x1x1xf32>
    %1706 = vector.broadcast %1705 : f32 to vector<1x1xf32>
    %cst_515 = arith.constant 5.000000e-01 : f32
    %1707 = vector.broadcast %cst_515 : f32 to vector<1x1xf32>
    %1708 = arith.mulf %1707, %1706 : vector<1x1xf32>
    %1709 = arith.addf %1602, %1708 : vector<1x1xf32>
    %1710 = tpu.concatenate %1689, %1627 in 1 : vector<8x2xf32>, vector<8x32xf32> -> vector<8x34xf32>
    %cst_516 = arith.constant dense<0.000000e+00> : vector<8x128xf32>
    %1711 = tpu.matmul %1710, %17, %cst_516 {dimension_numbers = #tpu.dot_dimension_numbers<[1], [0], [0], [1], [0, 0, 1, 1], [], []>} : vector<8x34xf32>, vector<34x128xf32>, vector<8x128xf32> -> vector<8x128xf32>
    %1712 = arith.addf %1711, %20 : vector<8x128xf32>
    %1713 = vector.extract_strided_slice %1712 {offsets = [0, 0], sizes = [8, 64], strides = [1, 1]} : vector<8x128xf32> to vector<8x64xf32>
    %1714 = arith.negf %1713 : vector<8x64xf32>
    %1715 = math.exp %1714 : vector<8x64xf32>
    %cst_517 = arith.constant 1.000000e+00 : f32
    %1716 = vector.broadcast %cst_517 : f32 to vector<8x64xf32>
    %1717 = arith.addf %1716, %1715 : vector<8x64xf32>
    %1718 = arith.divf %1716, %1717 : vector<8x64xf32>
    %1719 = vector.extract_strided_slice %1718 {offsets = [0, 0], sizes = [8, 32], strides = [1, 1]} : vector<8x64xf32> to vector<8x32xf32>
    %1720 = vector.extract_strided_slice %1718 {offsets = [0, 32], sizes = [8, 32], strides = [1, 1]} : vector<8x64xf32> to vector<8x32xf32>
    %1721 = vector.extract_strided_slice %1712 {offsets = [0, 64], sizes = [8, 32], strides = [1, 1]} : vector<8x128xf32> to vector<8x32xf32>
    %1722 = vector.extract_strided_slice %1712 {offsets = [0, 96], sizes = [8, 32], strides = [1, 1]} : vector<8x128xf32> to vector<8x32xf32>
    %1723 = arith.mulf %1719, %1722 : vector<8x32xf32>
    %1724 = arith.addf %1721, %1723 : vector<8x32xf32>
    %1725 = math.tanh %1724 : vector<8x32xf32>
    %cst_518 = arith.constant 1.000000e+00 : f32
    %1726 = vector.broadcast %cst_518 : f32 to vector<8x32xf32>
    %1727 = arith.subf %1726, %1720 : vector<8x32xf32>
    %1728 = arith.mulf %1727, %1725 : vector<8x32xf32>
    %1729 = arith.mulf %1720, %1627 : vector<8x32xf32>
    %1730 = arith.addf %1728, %1729 : vector<8x32xf32>
    %cst_519 = arith.constant 0.000000e+00 : f32
    %cst_520 = arith.constant 5.000000e+00 : f32
    %1731 = vector.broadcast %cst_519 : f32 to vector<8x32xf32>
    %1732 = arith.maximumf %1731, %1730 : vector<8x32xf32>
    %1733 = vector.broadcast %cst_520 : f32 to vector<8x32xf32>
    %1734 = arith.minimumf %1733, %1732 : vector<8x32xf32>
    %cst_521 = arith.constant dense<0.000000e+00> : vector<8x8xf32>
    %1735 = tpu.matmul %1734, %25, %cst_521 {dimension_numbers = #tpu.dot_dimension_numbers<[1], [0], [0], [1], [0, 0, 1, 1], [], []>} : vector<8x32xf32>, vector<32x8xf32>, vector<8x8xf32> -> vector<8x8xf32>
    %1736 = arith.addf %1735, %28 : vector<8x8xf32>
    %cst_522 = arith.constant dense<0.000000e+00> : vector<8x80xf32>
    %1737 = tpu.matmul %1736, %29, %cst_522 {dimension_numbers = #tpu.dot_dimension_numbers<[1], [0], [0], [1], [0, 0, 1, 1], [], []>} : vector<8x8xf32>, vector<8x80xf32>, vector<8x80xf32> -> vector<8x80xf32>
    %1738 = arith.addf %1737, %32 : vector<8x80xf32>
    %cst_523 = arith.constant 0.000000e+00 : f32
    %1739 = vector.broadcast %cst_523 : f32 to vector<8x80xf32>
    %1740 = arith.maximumf %1738, %1739 : vector<8x80xf32>
    %cst_524 = arith.constant dense<0.000000e+00> : vector<8x16xf32>
    %1741 = tpu.matmul %1740, %33, %cst_524 {dimension_numbers = #tpu.dot_dimension_numbers<[1], [0], [0], [1], [0, 0, 1, 1], [], []>} : vector<8x80xf32>, vector<80x16xf32>, vector<8x16xf32> -> vector<8x16xf32>
    %1742 = arith.addf %1741, %36 : vector<8x16xf32>
    %c7_525 = arith.constant 7 : index
    %c0_526 = arith.constant 0 : index
    %c0_527 = arith.constant 0 : index
    %1743 = vector.load %arg1[%c7_525, %c0_526, %c0_527] : memref<8x8x16xf32, #tpu.memory_space<vmem>>, vector<1x8x16xf32>
    %1744 = vector.shape_cast %1743 : vector<1x8x16xf32> to vector<8x16xf32>
    %1745 = arith.subf %1744, %1742 : vector<8x16xf32>
    %1746 = arith.mulf %1745, %1745 : vector<8x16xf32>
    %1747 = vector.broadcast %4 : vector<8x1xf32> to vector<8x16xf32>
    %1748 = arith.mulf %1746, %1747 : vector<8x16xf32>
    %1749 = vector.shape_cast %1748 : vector<8x16xf32> to vector<1x8x16xf32>
    %cst_528 = arith.constant dense<0.000000e+00> : vector<1xf32>
    %1750 = vector.multi_reduction <add>, %1749, %cst_528 [1, 2] : vector<1x8x16xf32> to vector<1xf32>
    %1751 = vector.shape_cast %1750 : vector<1xf32> to vector<1x1x1xf32>
    %1752 = vector.extract %1751[0, 0, 0] : f32 from vector<1x1x1xf32>
    %1753 = vector.broadcast %1752 : f32 to vector<1x1xf32>
    %1754 = arith.addf %1647, %1753 : vector<1x1xf32>
    %1755 = tpu.concatenate %1742, %1736, %1689 in 1 : vector<8x16xf32>, vector<8x8xf32>, vector<8x2xf32> -> vector<8x26xf32>
    %c7_529 = arith.constant 7 : index
    %c0_530 = arith.constant 0 : index
    %c0_531 = arith.constant 0 : index
    %1756 = vector.load %arg23[%c7_529, %c0_530, %c0_531] : memref<8x8x26xf32, #tpu.memory_space<vmem>>, vector<1x8x26xf32>
    %1757 = vector.shape_cast %1756 : vector<1x8x26xf32> to vector<8x26xf32>
    %1758 = vector.shape_cast %1755 : vector<8x26xf32> to vector<1x8x26xf32>
    tpu.vector_store %arg23[%c7_529, %c0_530, %c0_531], %1758 {strides = array<i32>} : memref<8x8x26xf32, #tpu.memory_space<vmem>>, vector<1x8x26xf32>,
    %cst_532 = arith.constant 2.000000e+00 : f32
    %1759 = vector.broadcast %cst_532 : f32 to vector<1x1xf32>
    %1760 = arith.divf %1709, %1759 : vector<1x1xf32>
    %c0_533 = arith.constant 0 : index
    %c0_534 = arith.constant 0 : index
    %1761 = vector.load %arg24[%c0_533, %c0_534] : memref<1x1xf32, #tpu.memory_space<vmem>>, vector<1x1xf32>
    tpu.vector_store %arg24[%c0_533, %c0_534], %1760 {strides = array<i32>} : memref<1x1xf32, #tpu.memory_space<vmem>>, vector<1x1xf32>,
    %cst_535 = arith.constant 2.560000e+02 : f32
    %1762 = vector.broadcast %cst_535 : f32 to vector<1x1xf32>
    %1763 = arith.divf %1754, %1762 : vector<1x1xf32>
    %c0_536 = arith.constant 0 : index
    %c0_537 = arith.constant 0 : index
    %1764 = vector.load %arg25[%c0_536, %c0_537] : memref<1x1xf32, #tpu.memory_space<vmem>>, vector<1x1xf32>
    tpu.vector_store %arg25[%c0_536, %c0_537], %1763 {strides = array<i32>} : memref<1x1xf32, #tpu.memory_space<vmem>>, vector<1x1xf32>,
    return
  }
}

</mosaic_0001>

<bundles_post_ra>
// kernel: lfads_forward.1
= control target key start
LH: loop header
LB: loop body
LE: loop exit
PB: predicated region body
PF: predicated region fallthrough
CT: control target
= control target key end

     0   :  { %s13057_s0 = inlined_call_operand.vmem [shape: f32[8,8,16], index: 0, kind: input, shape index: {}]   ;;  %s13058_s1 = inlined_call_operand.vmem [shape: f32[8,8,16], index: 1, kind: input, shape index: {}]   ;;  %s13059_s2 = inlined_call_operand.vmem [shape: f32[8,32], index: 2, kind: input, shape index: {}]   ;;  %s13060_s3 = inlined_call_operand.vmem [shape: f32[8,8,2], index: 3, kind: input, shape index: {}]   ;;  %s13061_s4 = inlined_call_operand.vmem [shape: f32[4], index: 4, kind: input, shape index: {}]   ;;  %s13062_s5 = inlined_call_operand.vmem [shape: f32[80,256], index: 5, kind: input, shape index: {}]   ;;  %s13063_s6 = inlined_call_operand.hbm [shape: f32[1,256], index: 6, kind: input, shape index: {}]   ;;  %s13064_s7 = inlined_call_operand.vmem [shape: f32[80,256], index: 7, kind: input, shape index: {}]   ;;  %s13065_s8 = inlined_call_operand.hbm [shape: f32[1,256], index: 8, kind: input, shape index: {}]   ;;  %s13066_s9 = inlined_call_operand.vmem [shape: f32[104,128], index: 9, kind: input, shape index: {}]   ;;  %s13067_s10 = inlined_call_operand.hbm [shape: f32[1,128], index: 10, kind: input, shape index: {}]   ;;  %s13068_s11 = inlined_call_operand.vmem [shape: f32[34,128], index: 11, kind: input, shape index: {}]   ;;  %s13069_s12 = inlined_call_operand.hbm [shape: f32[1,128], index: 12, kind: input, shape index: {}]   ;;  %s13070_s13 = inlined_call_operand.vmem [shape: f32[64,64], index: 13, kind: input, shape index: {}]   ;;  %s13071_s14 = inlined_call_operand.hbm [shape: f32[1,64], index: 14, kind: input, shape index: {}]   ;;  %s13072_s15 = inlined_call_operand.vmem [shape: f32[32,4], index: 15, kind: input, shape index: {}]   ;;  %s13073_s16 = inlined_call_operand.hbm [shape: f32[1,4], index: 16, kind: input, shape index: {}]   ;;  %s13074_s17 = inlined_call_operand.vmem [shape: f32[32,8], index: 17, kind: input, shape index: {}]   ;;  %s13075_s18 = inlined_call_operand.hbm [shape: f32[1,8], index: 18, kind: input, shape index: {}]   ;;  %s13076_s19 = inlined_call_operand.hbm [shape: f32[8,80], index: 19, kind: input, shape index: {}]   ;;  %s13077_s20 = inlined_call_operand.hbm [shape: f32[1,80], index: 20, kind: input, shape index: {}]   ;;  %s13078_s21 = inlined_call_operand.vmem [shape: f32[80,16], index: 21, kind: input, shape index: {}]   ;;  %s13079_s22 = inlined_call_operand.hbm [shape: f32[1,16], index: 22, kind: input, shape index: {}]   ;;  %s13080_s23 = inlined_call_operand.vmem [shape: f32[8,8,26], index: 23, kind: output, shape index: {0}]   ;;  %s13081_s24 = inlined_call_operand.hbm [shape: f32[1,1], index: 24, kind: output, shape index: {1}]   ;;  %s13082_s25 = inlined_call_operand.hbm [shape: f32[1,1], index: 25, kind: output, shape index: {2}]  }
   0x1   :  { %13156 = sst [smem:[#allocation59_spill]] %s13057_s0 }
   0x2   :  { %13157 = sst [smem:[#allocation60_spill]] %s13058_s1 }
   0x3   :  { %13158 = sst [smem:[#allocation61_spill]] %s13059_s2 }
   0x4   :  { %13159 = sst [smem:[#allocation62_spill]] %s13060_s3 }
   0x5   :  { %13160 = sst [smem:[#allocation63_spill]] %s13061_s4 }
   0x6   :  { %13161 = sst [smem:[#allocation64_spill]] %s13062_s5 }
   0x7   :  { %13162 = sst [smem:[#allocation65_spill]] %s13063_s6 }
   0x8   :  { %13163 = sst [smem:[#allocation66_spill]] %s13064_s7 }
   0x9   :  { %13164 = sst [smem:[#allocation67_spill]] %s13065_s8 }
   0xa   :  { %13165 = sst [smem:[#allocation68_spill]] %s13066_s9 }
   0xb   :  { %31 = vsyncpa [#allocation7], 0 }
   0xc   :  { %32 = vsyncpa [#allocation5], 0 }
   0xd   :  { %33 = vsyncpa [#allocation10], 0 }
   0xe   :  { %34 = vsyncpa [#allocation13], 0 }
   0xf   :  { %35 = vsyncpa [#allocation16], 0 }
  0x10   :  { %36 = vsyncpa [#allocation19], 0 }
  0x11   :  { %37 = vsyncpa [#allocation22], 0 }
  0x12   :  { %38 = vsyncpa [#allocation6], 0 }
  0x13   :  { %39 = vsyncpa [#allocation25], 0  ;;  %s9675_s29 = smov [#allocation9]   ;;  %s9676_s6 = smov [#allocation12]  }
  0x14   :  { %s78_s2 = sshll.u32 %s9675_s29, 4  ;;  %s102_s30 = sshll.u32 %s9676_s6, 4  ;;  %s79_s2 = int_to_ptr.vmem [resolvable:$true] %s78_s2  ;;  %s103_s30 = int_to_ptr.vmem [resolvable:$true] %s102_s30 }
  0x15   :  { %s9413_s7 = scalar_lea.vmem %s79_s2, 32  ;;  %p9418_p1 = scmp.lt.s32.totalorder %s79_s2, %s79_s2 }
  0x16   :  { %p9414_p0 = scmp.ne.s32.totalorder %s79_s2, %s9413_s7  ;;  %p9419_p2 = scmp.lt.s32.totalorder %s9413_s7, %s9413_s7 }
  0x18   :  { %p9420_p3 = por %p9419_p2, %p9418_p1 }
  0x1a   :  { %p9421_p4 = pnand %p9420_p3, %p9414_p0 }
  0x1c   :  { %9424 = shalt.err (!%p9421_p4)
}
  0x1d   :  { %s13166_s1 = sld [smem:[#allocation67_spill]]  ;;  %s9433_s8 = scalar_lea.vmem %s103_s30, 16 }
  0x1e   :  { %p9434_p5 = scmp.ne.s32.totalorder %s103_s30, %s9433_s8  ;;  %s9437_s27 = scalar_lea.vmem %s103_s30, 32 }
  0x1f   :  { %p9438_p6 = scmp.lt.s32.totalorder %s103_s30, %s103_s30  ;;  %p9439_p7 = scmp.lt.s32.totalorder %s9437_s27, %s9433_s8 }
  0x21   :  { %p9440_p8 = por %p9439_p7, %p9438_p6 }
  0x23   :  { %81 = dma.hbm_to_vmem [thread:$0]  %s13166_s1, 32, %s79_s2, [#allocation10]  }
  0x24   :  { %p9441_p9 = pnand %p9440_p8, %p9434_p5 }
  0x26   :  { %9444 = shalt.err (!%p9441_p9)
}
  0x27   :  { %105 = dma.hbm_to_vmem [thread:$0]  %s13069_s12, 16, %s103_s30, [#allocation13]  }
  0x28   :  { %s9677_s9 = smov [#allocation15]   ;;  %s9678_s0 = smov [#allocation18]  }
  0x29   :  { %s126_s5 = sshll.u32 %s9677_s9, 4  ;;  %s148_s29 = sshll.u32 %s9678_s0, 4  ;;  %s127_s5 = int_to_ptr.vmem [resolvable:$true] %s126_s5  ;;  %s149_s29 = int_to_ptr.vmem [resolvable:$true] %s148_s29 }
  0x2a   :  { %s9453_s6 = scalar_lea.vmem %s127_s5, 16  ;;  %s9457_s2 = scalar_lea.vmem %s127_s5, 32 }
  0x2b   :  { %p9454_p10 = scmp.ne.s32.totalorder %s127_s5, %s9453_s6  ;;  %p9458_p11 = scmp.lt.s32.totalorder %s127_s5, %s127_s5 }
  0x2c   :  { %p9459_p12 = scmp.lt.s32.totalorder %s9457_s2, %s9453_s6 }
  0x2e   :  { %p9460_p13 = por %p9459_p12, %p9458_p11 }
  0x30   :  { %p9461_p0 = pnand %p9460_p13, %p9454_p10 }
  0x32   :  { %9464 = shalt.err (!%p9461_p0)
}
  0x33   :  { %129 = dma.hbm_to_vmem [thread:$0]  %s13073_s16, 16, %s127_s5, [#allocation16]  }
  0x34   :  { %s9473_s26 = scalar_lea.vmem %s149_s29, 128  ;;  %p9478_p2 = scmp.lt.s32.totalorder %s149_s29, %s149_s29 }
  0x35   :  { %p9474_p1 = scmp.ne.s32.totalorder %s149_s29, %s9473_s26  ;;  %p9479_p3 = scmp.lt.s32.totalorder %s9473_s26, %s9473_s26 }
  0x37   :  { %p9480_p4 = por %p9479_p3, %p9478_p2 }
  0x39   :  { %p9481_p5 = pnand %p9480_p4, %p9474_p1 }
  0x3b   :  { %9484 = shalt.err (!%p9481_p5)
}
  0x3c   :  { %151 = dma.hbm_to_vmem [thread:$0]  %s13076_s19, 128, %s149_s29, [#allocation19]  }
  0x3d   :  { %s13167_s27 = sld [smem:[#allocation63_spill]] }
  0x43   :  { %s54_s4 = sshll.u32 %s13167_s27, 4  ;;  %s55_s4 = int_to_ptr.vmem [resolvable:$true] %s54_s4 }
  0x44   :  { %s9485_s28 = scalar_lea.vmem %s55_s4, 16  ;;  %p9490_p7 = scmp.lt.s32.totalorder %s55_s4, %s55_s4 }
  0x45   :  { %p9486_p6 = scmp.ne.s32.totalorder %s55_s4, %s9485_s28  ;;  %p9491_p8 = scmp.lt.s32.totalorder %s9485_s28, %s9485_s28 }
  0x47   :  { %p9492_p9 = por %p9491_p8, %p9490_p7 }
  0x49   :  { %p9493_p10 = pnand %p9492_p9, %p9486_p6 }
  0x4b   :  { %9496 = shalt.err (!%p9493_p10)
}
  0x4c   :  { %s9679_s16 = smov [#allocation4]   ;;  %s9680_s9 = smov [#allocation8]  }
  0x4d   :  { %57 = dma.vmem_to_smem %s55_s4, 16, %s9679_s16, [#allocation7]  }
  0x4e   :  { %s66_s5 = sshll.u32 %s9680_s9, 4  ;;  %s9681_s0 = smov [#allocation11]   ;;  %s67_s5 = int_to_ptr.vmem [resolvable:$true] %s66_s5 }
  0x4f   :  { %s90_s6 = sshll.u32 %s9681_s0, 4  ;;  %s9505_s19 = scalar_lea.vmem %s67_s5, 32  ;;  %s91_s6 = int_to_ptr.vmem [resolvable:$true] %s90_s6 }
  0x50   :  { %p9506_p11 = scmp.ne.s32.totalorder %s67_s5, %s9505_s19  ;;  %p9510_p12 = scmp.lt.s32.totalorder %s67_s5, %s67_s5 }
  0x51   :  { %p9511_p13 = scmp.lt.s32.totalorder %s9505_s19, %s9505_s19 }
  0x53   :  { %p9512_p0 = por %p9511_p13, %p9510_p12 }
  0x55   :  { %p9513_p1 = pnand %p9512_p0, %p9506_p11 }
  0x57   :  { %9516 = shalt.err (!%p9513_p1)
}
  0x58   :  { %s13168_s7 = sld [smem:[#allocation65_spill]]  ;;  %s9525_s3 = scalar_lea.vmem %s91_s6, 16 }
  0x59   :  { %p9526_p2 = scmp.ne.s32.totalorder %s91_s6, %s9525_s3  ;;  %s9529_s26 = scalar_lea.vmem %s91_s6, 32 }
  0x5a   :  { %p9530_p3 = scmp.lt.s32.totalorder %s91_s6, %s91_s6  ;;  %p9531_p4 = scmp.lt.s32.totalorder %s9529_s26, %s9525_s3 }
  0x5c   :  { %p9532_p5 = por %p9531_p4, %p9530_p3 }
  0x5e   :  { %69 = dma.hbm_to_vmem [thread:$0]  %s13168_s7, 32, %s67_s5, [#allocation5]  }
  0x5f   :  { %p9533_p6 = pnand %p9532_p5, %p9526_p2 }
  0x61   :  { %9536 = shalt.err (!%p9533_p6)
}
  0x62   :  { %93 = dma.hbm_to_vmem [thread:$0]  %s13067_s10, 16, %s91_s6, [#allocation10]  }
  0x63   :  { %s9682_s1 = smov [#allocation14]   ;;  %s9683_s27 = smov [#allocation17]  }
  0x64   :  { %s114_s8 = sshll.u32 %s9682_s1, 4  ;;  %s138_s4 = sshll.u32 %s9683_s27, 4  ;;  %s115_s8 = int_to_ptr.vmem [resolvable:$true] %s114_s8  ;;  %s139_s4 = int_to_ptr.vmem [resolvable:$true] %s138_s4 }
  0x65   :  { %s9545_s28 = scalar_lea.vmem %s115_s8, 16  ;;  %s9549_s16 = scalar_lea.vmem %s115_s8, 32 }
  0x66   :  { %p9546_p7 = scmp.ne.s32.totalorder %s115_s8, %s9545_s28  ;;  %p9550_p8 = scmp.lt.s32.totalorder %s115_s8, %s115_s8 }
  0x67   :  { %p9551_p9 = scmp.lt.s32.totalorder %s9549_s16, %s9545_s28 }
  0x69   :  { %p9552_p10 = por %p9551_p9, %p9550_p8 }
  0x6b   :  { %p9553_p11 = pnand %p9552_p10, %p9546_p7 }
  0x6d   :  { %9556 = shalt.err (!%p9553_p11)
}
  0x6e   :  { %117 = dma.hbm_to_vmem [thread:$0]  %s13071_s14, 16, %s115_s8, [#allocation13]  }
  0x6f   :  { %s9565_s0 = scalar_lea.vmem %s139_s4, 16  ;;  %s9569_s10 = scalar_lea.vmem %s139_s4, 32 }
  0x70   :  { %p9566_p12 = scmp.ne.s32.totalorder %s139_s4, %s9565_s0  ;;  %p9570_p13 = scmp.lt.s32.totalorder %s139_s4, %s139_s4 }
  0x71   :  { %p9571_p0 = scmp.lt.s32.totalorder %s9569_s10, %s9565_s0 }
  0x73   :  { %p9572_p1 = por %p9571_p0, %p9570_p13 }
  0x75   :  { %p9573_p2 = pnand %p9572_p1, %p9566_p12 }
  0x77   :  { %9576 = shalt.err (!%p9573_p2)
}
  0x78   :  { %141 = dma.hbm_to_vmem [thread:$0]  %s13075_s18, 16, %s139_s4, [#allocation16]  }
  0x79   :  { %s9684_s29 = smov [#allocation20]   ;;  %s9685_s7 = smov [#allocation21]  }
  0x7a   :  { %s158_s2 = sshll.u32 %s9684_s29, 4  ;;  %s170_s3 = sshll.u32 %s9685_s7, 4  ;;  %s159_s2 = int_to_ptr.vmem [resolvable:$true] %s158_s2  ;;  %s171_s3 = int_to_ptr.vmem [resolvable:$true] %s170_s3 }
  0x7b   :  { %s9585_s26 = scalar_lea.vmem %s159_s2, 16  ;;  %s9589_s14 = scalar_lea.vmem %s159_s2, 32 }
  0x7c   :  { %p9586_p3 = scmp.ne.s32.totalorder %s159_s2, %s9585_s26  ;;  %p9590_p4 = scmp.lt.s32.totalorder %s159_s2, %s159_s2 }
  0x7d   :  { %p9591_p5 = scmp.lt.s32.totalorder %s9589_s14, %s9585_s26 }
  0x7f   :  { %p9592_p6 = por %p9591_p5, %p9590_p4 }
  0x81   :  { %p9593_p7 = pnand %p9592_p6, %p9586_p3 }
  0x83   :  { %9596 = shalt.err (!%p9593_p7)
}
  0x84   :  { %161 = dma.hbm_to_vmem [thread:$0]  %s13077_s20, 16, %s159_s2, [#allocation19]  }
  0x85   :  { %s9605_s1 = scalar_lea.vmem %s171_s3, 16  ;;  %s9609_s18 = scalar_lea.vmem %s171_s3, 32 }
  0x86   :  { %p9606_p8 = scmp.ne.s32.totalorder %s171_s3, %s9605_s1  ;;  %p9610_p9 = scmp.lt.s32.totalorder %s171_s3, %s171_s3 }
  0x87   :  { %p9611_p10 = scmp.lt.s32.totalorder %s9609_s18, %s9605_s1 }
  0x89   :  { %p9612_p11 = por %p9611_p10, %p9610_p9 }
  0x8b   :  { %p9613_p12 = pnand %p9612_p11, %p9606_p8 }
  0x8d   :  { %9616 = shalt.err (!%p9613_p12)
}
  0x8e   :  { %173 = dma.hbm_to_vmem [thread:$0]  %s13079_s22, 16, %s171_s3, [#allocation22]  }
  0x8f   :  { %9657 = dma.done.wait [#allocation7], 16  }
  0x90   :  { %9658 = vsyncadd [#allocation7], 4294967280 }
  0x91   :  { %9659 = dma.done.wait [#allocation5], 32  }
  0x92   :  { %9660 = vsyncadd [#allocation5], 4294967264 }
  0x93   :  { %9661 = dma.done.wait [#allocation10], 48  }
  0x94   :  { %9662 = vsyncadd [#allocation10], 4294967248 }
  0x95   :  { %9663 = dma.done.wait [#allocation13], 32  }
  0x96   :  { %9664 = vsyncadd [#allocation13], 4294967264 }
  0x97   :  { %9665 = dma.done.wait [#allocation16], 32  }
  0x98   :  { %9666 = vsyncadd [#allocation16], 4294967264 }
  0x99   :  { %9667 = dma.done.wait [#allocation19], 144  }
  0x9a   :  { %9668 = vsyncadd [#allocation19], 4294967152 }
  0x9b   :  { %9669 = dma.done.wait [#allocation22], 16  }
  0x9c   :  { %9670 = vsyncadd [#allocation22], 4294967280 }
  0x9d   :  { %207 = sfence }
  0x9e   :  { %s13169_s28 = sld [smem:[#allocation64_spill]]  ;;  %v13089_v5 = vmov 0.0   ;;  %vm363_vm0 = vcmask 130048   ;;  %vm365_vm1 = vcmask 392192   ;;  %vm367_vm2 = vcmask 654336   ;;  %s9687_s22 = smov 32  }
  0x9f   :  { %s13170_s29 = sld [smem:[#allocation66_spill]]  ;;  %435 = vmatprep.mubr.f32.mxu0 %v13089_v5  ;;  %511 = vmatprep.mubr.f32.mxu1 %v13089_v5  ;;  %v208_v47 = vlaneseq  ;;  %v233_v50 = vld [vmem:[#allocation8] sm:$0x3]  ;;  %v265_v51 = vld [vmem:[#allocation9] sm:$0x3]  ;;  %s9688_s16 = smov 64  }
  0xa0   :  { %s13172_s18 = sld [smem:[#allocation59_spill]]  ;;  %s9689_s9 = smov 96   ;;  %vm9692_vm3 = vmmov 0   ;;  %vm626_vm4 = vcmask 261120   ;;  %vm2647_vm5 = vcmask 523264   ;;  %vm2862_vm6 = vcmask 588800  }
  0xa1   :  { %v10161_v48 = vshrl.u32 %v208_v47, 7  ;;  %s9690_s5 = smov 112   ;;  %s9691_s0 = smov 16   ;;  %vm2864_vm7 = vcmask 850944   ;;  %vm3090_vm8 = vcmask 1041408   ;;  %vm3068_vm9 = vcmask 15360  }
  0xa2   :  { %s13240_s27 = sld [smem:[#allocation61_spill]]  ;;  %s9693_s30 = smov 2   ;;  %vm3086_vm10 = vcmask 277504   ;;  %vm3269_vm11 = vcmask 64512   ;;  %vm3441_vm13 = vcmask 195584   ;;  %vm3443_vm14 = vcmask 211968  }
  0xa3   :  { %13175 = vst [vmem:[#allocation38_spill] sm:$0xff] %v10161_v48  ;;  %v237_v49 = vsub.s32 0, %v10161_v48  ;;  %v241_v53 = vsub.s32 1, %v10161_v48  ;;  %s13241_s10 = sld [smem:[#allocation68_spill]]  ;;  %s9694_s7 = smov 126   ;;  %vm7549_vm15 = vcmask 0  }
  0xa4   :  { %v9866_v0 = vld [vmem:[%s13169_s28 + $0x98] sm:$0xff]  ;;  %v9871_v1 = vld [vmem:[%s13169_s28 + $0x90] sm:$0xff]  ;;  %v9876_v2 = vld [vmem:[%s13169_s28 + $0x88] sm:$0xff]  ;;  %s13243_s26 = sld [smem:[#allocation62_spill]]  ;;  %s9695_s14 = smov 40  }
  0xa5   :  { %383 = vmatprep.subr.mxu0 %v9866_v0  ;;  %v9882_v3 = vld [vmem:[%s13169_s28 + $0x80] sm:$0xff]  ;;  %v9887_v4 = vld [vmem:[%s13170_s29 + $0x98] sm:$0xff]  ;;  %v9900_v7 = vld [vmem:[%s13170_s29 + $0x90] sm:$0xff]  ;;  %v10164_v52 = vrot.slane %v233_v50, %v237_v49  ;;  %v10167_v54 = vrot.slane %v265_v51, %v237_v49  ;;  %v10170_v57 = vrot.slane %v233_v50, %v241_v53  ;;  %v10172_v58 = vrot.slane %v265_v51, %v241_v53 }
  0xa6   :  { %13171 = vst [vmem:[#allocation35_spill] sm:$0xff] %v9887_v4  ;;  %384 = vmatpush1.msra.mxu0 %v9871_v1  ;;  %v9894_v6 = vld [vmem:[%s13169_s28 + $0x78] sm:$0xff]  ;;  %459 = vmatprep.subr.mxu1 %v9887_v4  ;;  %v9906_v8 = vld [vmem:[%s13169_s28 + $0x70] sm:$0xff]  ;;  %v9912_v9 = vld [vmem:[%s13170_s29 + $0x88] sm:$0xff] }
  0xa7   :  { %385 = vmatprep.subr.mxu0 %v9876_v2  ;;  %460 = vmatpush1.msra.mxu1 %v9900_v7  ;;  %v9917_v10 = vld [vmem:[%s13170_s29 + $0x80] sm:$0xff]  ;;  %v9923_v11 = vld [vmem:[%s13169_s28 + $0x68] sm:$0xff]  ;;  %v9929_v12 = vld [vmem:[%s13170_s29 + $0x78] sm:$0xff]  ;;  %13176 = vst [vmem:[#allocation39_spill] sm:$0xff] %v10164_v52 }
  0xa8   :  { %386 = vmatpush1.msra.mxu0 %v9882_v3  ;;  %461 = vmatprep.subr.mxu1 %v9912_v9  ;;  %v9935_v13 = vld [vmem:[%s13169_s28 + $0x60] sm:$0xff]  ;;  %v9941_v14 = vld [vmem:[%s13170_s29 + $0x70] sm:$0xff]  ;;  %v9946_v15 = vld [vmem:[%s13170_s29 + $0x68] sm:$0xff]  ;;  %13177 = vst [vmem:[#allocation40_spill] sm:$0xff] %v10167_v54 }
  0xa9   :  { %387 = vmatprep.subr.mxu0 %v9894_v6  ;;  %462 = vmatpush1.msra.mxu1 %v9917_v10  ;;  %v9952_v16 = vld [vmem:[%s13169_s28 + $0x58] sm:$0xff]  ;;  %v9958_v17 = vld [vmem:[%s13170_s29 + $0x60] sm:$0xff]  ;;  %v9964_v18 = vld [vmem:[%s13169_s28 + $0x50] sm:$0xff]  ;;  %13178 = vst [vmem:[#allocation41_spill] sm:$0xff] %v10170_v57 }
  0xaa   :  { %388 = vmatpush1.msra.mxu0 %v9906_v8  ;;  %463 = vmatprep.subr.mxu1 %v9929_v12  ;;  %v9970_v19 = vld [vmem:[%s13170_s29 + $0x58] sm:$0xff]  ;;  %v9976_v20 = vld [vmem:[%s13169_s28 + $0x48] sm:$0xff]  ;;  %v9982_v21 = vld [vmem:[%s13170_s29 + $0x50] sm:$0xff]  ;;  %13179 = vst [vmem:[#allocation42_spill] sm:$0xff] %v10172_v58 }
  0xab   :  { %389 = vmatprep.subr.mxu0 %v9923_v11  ;;  %464 = vmatpush1.msra.mxu1 %v9941_v14  ;;  %v9988_v22 = vld [vmem:[%s13169_s28 + $0x40] sm:$0xff]  ;;  %v9994_v23 = vld [vmem:[%s13170_s29 + $0x48] sm:$0xff]  ;;  %v10000_v24 = vld [vmem:[%s13169_s28 + $0x38] sm:$0xff] }
  0xac   :  { %390 = vmatpush1.msra.mxu0 %v9935_v13  ;;  %465 = vmatprep.subr.mxu1 %v9946_v15  ;;  %v10006_v25 = vld [vmem:[%s13170_s29 + $0x40] sm:$0xff]  ;;  %v10012_v26 = vld [vmem:[%s13169_s28 + $0x30] sm:$0xff]  ;;  %v10018_v27 = vld [vmem:[%s13170_s29 + $0x38] sm:$0xff] }
  0xad   :  { %391 = vmatprep.subr.mxu0 %v9952_v16  ;;  %466 = vmatpush1.msra.mxu1 %v9958_v17  ;;  %v10024_v28 = vld [vmem:[%s13169_s28 + $0x28] sm:$0xff]  ;;  %v10030_v29 = vld [vmem:[%s13170_s29 + $0x30] sm:$0xff]  ;;  %v360_v30 = vld [vmem:[%s13172_s18] sm:$0xff] }
  0xae   :  { %392 = vmatpush1.msra.mxu0 %v9964_v18  ;;  %467 = vmatprep.subr.mxu1 %v9970_v19  ;;  %v10039_v31 = vld [vmem:[%s13169_s28 + $0x20] sm:$0xff]  ;;  %v10045_v32 = vld [vmem:[%s13170_s29 + $0x28] sm:$0xff]  ;;  %v10051_v33 = vld [vmem:[%s13169_s28 + $0x18] sm:$0xff]  ;;  %v364_v37 = vsel %vm363_vm0, %v360_v30, 0.0 }
  0xaf   :  { %393 = vmatprep.subr.mxu0 %v9976_v20  ;;  %468 = vmatpush1.msra.mxu1 %v9982_v21  ;;  %v10057_v34 = vld [vmem:[%s13170_s29 + $0x20] sm:$0xff]  ;;  %v7603_v35 = vld [vmem:[%s13172_s18 + $0x38] sm:$0xff]  ;;  %v10066_v36 = vld [vmem:[%s13169_s28 + $0x10] sm:$0xff]  ;;  %v366_v44 = vsel %vm365_vm1, %v364_v37, 0.0 }
  0xb0   :  { %394 = vmatpush1.msra.mxu0 %v9988_v22  ;;  %469 = vmatprep.subr.mxu1 %v9994_v23  ;;  %v10073_v38 = vld [vmem:[%s13170_s29 + $0x18] sm:$0xff]  ;;  %v10079_v39 = vld [vmem:[%s13169_s28 + $0x8] sm:$0xff]  ;;  %v10085_v40 = vld [vmem:[%s13170_s29 + $0x10] sm:$0xff]  ;;  %v442_v43 = vsel %vm363_vm0, %v7603_v35, 0.0 }
  0xb1   :  { %395 = vmatprep.subr.mxu0 %v10000_v24  ;;  %470 = vmatpush1.msra.mxu1 %v10006_v25  ;;  %v10091_v41 = vld [vmem:[%s13169_s28] sm:$0xff]  ;;  %v10097_v42 = vld [vmem:[%s13170_s29 + $0x8] sm:$0xff]  ;;  %v443_v46 = vsel %vm365_vm1, %v442_v43, 0.0 }
  0xb2   :  { %396 = vmatpush1.msra.mxu0 %v10012_v26  ;;  %471 = vmatprep.subr.mxu1 %v10018_v27  ;;  %13173 = vst [vmem:[#allocation36_spill] sm:$0xff] %v10097_v42  ;;  %v10106_v45 = vld [vmem:[%s13170_s29] sm:$0xff] }
  0xb3   :  { %397 = vmatprep.subr.mxu0 %v10024_v28  ;;  %472 = vmatpush1.msra.mxu1 %v10030_v29  ;;  %13174 = vst [vmem:[#allocation37_spill] sm:$0xff] %v10106_v45 }
  0xb4   :  { %398 = vmatpush1.msra.mxu0 %v10039_v31  ;;  %473 = vmatprep.subr.mxu1 %v10045_v32 }
  0xb5   :  { %399 = vmatprep.subr.mxu0 %v10051_v33  ;;  %474 = vmatpush1.msra.mxu1 %v10057_v34 }
  0xb6   :  { %400 = vmatpush1.msra.mxu0 %v10066_v36  ;;  %475 = vmatprep.subr.mxu1 %v10073_v38 }
  0xb7   :  { %401 = vmatprep.subr.mxu0 %v10079_v39  ;;  %476 = vmatpush1.msra.mxu1 %v10085_v40 }
  0xb8   :  { %402 = vmatpush1.msra.mxu0 %v10091_v41  ;;  %477 = vmatprep.subr.mxu1 %v10097_v42 }
  0xb9   :  { %7604 = vmatmul.mubr.msk.f32.vlgmr.msra.gmra.mxu0 %vm367_vm2, %v366_v44  ;;  %478 = vmatpush1.msra.mxu1 %v10106_v45 }
  0xba   :  { %662 = vmatprep.subr.mxu0 %v9866_v0  ;;  %7605 = vmatmul.mubr.msk.f32.vlgmr.msra.gmra.mxu1 %vm367_vm2, %v443_v46 }
  0xbb   :  { %663 = vmatpush1.msra.mxu0 %v9871_v1  ;;  %745 = vmatprep.subr.mxu1 %v9887_v4 }
  0xbc   :  { %664 = vmatprep.subr.mxu0 %v9876_v2  ;;  %746 = vmatpush1.msra.mxu1 %v9900_v7 }
  0xbd   :  { %665 = vmatpush1.msra.mxu0 %v9882_v3  ;;  %747 = vmatprep.subr.mxu1 %v9912_v9 }
  0xbe   :  { %666 = vmatprep.subr.mxu0 %v9894_v6  ;;  %748 = vmatpush1.msra.mxu1 %v9917_v10 }
  0xbf   :  { %667 = vmatpush1.msra.mxu0 %v9906_v8  ;;  %749 = vmatprep.subr.mxu1 %v9929_v12 }
  0xc0   :  { %668 = vmatprep.subr.mxu0 %v9923_v11  ;;  %750 = vmatpush1.msra.mxu1 %v9941_v14 }
  0xc1   :  { %669 = vmatpush1.msra.mxu0 %v9935_v13  ;;  %751 = vmatprep.subr.mxu1 %v9946_v15 }
  0xc2   :  { %670 = vmatprep.subr.mxu0 %v9952_v16  ;;  %752 = vmatpush1.msra.mxu1 %v9958_v17 }
  0xc3   :  { %671 = vmatpush1.msra.mxu0 %v9964_v18  ;;  %753 = vmatprep.subr.mxu1 %v9970_v19 }
  0xc4   :  { %672 = vmatprep.subr.mxu0 %v9976_v20  ;;  %754 = vmatpush1.msra.mxu1 %v9982_v21 }
  0xc5   :  { %673 = vmatpush1.msra.mxu0 %v9988_v22  ;;  %755 = vmatprep.subr.mxu1 %v9994_v23 }
  0xc6   :  { %674 = vmatprep.subr.mxu0 %v10000_v24  ;;  %756 = vmatpush1.msra.mxu1 %v10006_v25 }
  0xc7   :  { %675 = vmatpush1.msra.mxu0 %v10012_v26  ;;  %757 = vmatprep.subr.mxu1 %v10018_v27 }
  0xc8   :  { %676 = vmatprep.subr.mxu0 %v10024_v28  ;;  %758 = vmatpush1.msra.mxu1 %v10030_v29 }
  0xc9   :  { %677 = vmatpush1.msra.mxu0 %v10039_v31  ;;  %759 = vmatprep.subr.mxu1 %v10045_v32 }
  0xca   :  { %678 = vmatprep.subr.mxu0 %v10051_v33  ;;  %714 = vmatprep.mubr.f32.mxu0 %v13089_v5 }
  0xcb   :  { %679 = vmatpush1.msra.mxu0 %v10066_v36  ;;  %760 = vmatpush1.msra.mxu1 %v10057_v34 }
  0xcc   :  { %680 = vmatprep.subr.mxu0 %v10079_v39  ;;  %761 = vmatprep.subr.mxu1 %v10073_v38 }
  0xcd   :  { %681 = vmatpush1.msra.mxu0 %v10091_v41  ;;  %762 = vmatpush1.msra.mxu1 %v10085_v40 }
  0xce   :  { %797 = vmatprep.mubr.f32.mxu1 %v13089_v5  ;;  %763 = vmatprep.subr.mxu1 %v10097_v42 }
  0xcf   :  { %948 = vmatprep.subr.mxu0 %v9866_v0  ;;  %764 = vmatpush1.msra.mxu1 %v10106_v45 }
  0xd0   :  { %1031 = vmatprep.subr.mxu1 %v9887_v4 }
 0x179   :  { %v437_v55 = vpop.f32.mrf.mxu0 }
 0x17a   :  { %v438_v56 = vadd.f32 %v437_v55, %v10164_v52  ;;  %v513_v60 = vpop.f32.mrf.mxu1 }
 0x17b   :  { %v439_v59 = vpop.f32.mrf.mxu0  ;;  %v514_v61 = vadd.f32 %v513_v60, %v10167_v54 }
 0x17c   :  { %525 = vrot.lane.b32.xlu0 %v438_v56, %s9687_s22  ;;  %v515_v62 = vpop.f32.mrf.mxu1  ;;  %v440_v63 = vadd.f32 %v439_v59, %v10170_v57  ;;  %v7606_v35 = vmul.f32 -1.442695, %v438_v56 }
 0x17d   :  { %577 = vrot.lane.b32.xlu1 %v514_v61, %s9687_s22  ;;  %v516_v30 = vadd.f32 %v515_v62, %v10172_v58  ;;  %v7608_v37 = vmul.f32 -1.442695, %v514_v61 }
 0x17e   :  { %8953 = vpow2.f32 %v7606_v35  ;;  %v7607_v43 = vmul.f32 -1.442695, %v440_v63 }
 0x17f   :  { %8955 = vpow2.f32 %v7608_v37  ;;  %v7609_v44 = vmul.f32 -1.442695, %v516_v30 }
 0x180   :  { %551 = vrot.lane.b32.xlu0 %v440_v63, %s9687_s22  ;;  %8957 = vpow2.f32 %v7607_v43 }
 0x181   :  { %603 = vrot.lane.b32.xlu1 %v516_v30, %s9687_s22  ;;  %8959 = vpow2.f32 %v7609_v44 }
 0x18b   :  { %v8954_v46 = vpop.eup %8953 }
 0x18c   :  { %v8956_v47 = vpop.eup %8955  ;;  %v521_v49 = vadd.f32 1.0, %v8954_v46 }
 0x18d   :  { %v8958_v50 = vpop.eup %8957  ;;  %v573_v51 = vadd.f32 1.0, %v8956_v47 }
 0x18e   :  { %v8960_v53 = vpop.eup %8959  ;;  %8961 = vrcp.f32 %v521_v49  ;;  %v547_v55 = vadd.f32 1.0, %v8958_v50 }
 0x18f   :  { %8963 = vrcp.f32 %v573_v51  ;;  %v599_v59 = vadd.f32 1.0, %v8960_v53 }
 0x190   :  { %8965 = vrcp.f32 %v547_v55 }
 0x191   :  { %8967 = vrcp.f32 %v599_v59 }
 0x19b   :  { %v8962_v60 = vpop.eup %8961 }
 0x19c   :  { %v8964_v62 = vpop.eup %8963 }
 0x19d   :  { %v8966_v48 = vpop.eup %8965 }
 0x19e   :  { %v8968_v44 = vpop.eup %8967 }
 0x1ee   :  { %v526_v35 = vpop.permute.xlu0 %525 }
 0x1ef   :  { %v528_v5 = vmul.f32 %v8962_v60, %v526_v35  ;;  %v578_v37 = vpop.permute.xlu1 %577 }
 0x1f0   :  { %v580_v43 = vmul.f32 %v8964_v62, %v578_v37 }
 0x1f1   :  { %530 = vrot.lane.b32.xlu0 %v528_v5, %s9688_s16 }
 0x1f2   :  { %v552_v46 = vpop.permute.xlu0 %551 }
 0x1f3   :  { %v554_v47 = vmul.f32 %v8966_v48, %v552_v46  ;;  %v604_v58 = vpop.permute.xlu1 %603 }
 0x1f4   :  { %v606_v49 = vmul.f32 %v8968_v44, %v604_v58 }
 0x1f5   :  { %556 = vrot.lane.b32.xlu1 %v554_v47, %s9688_s16  ;;  %582 = vrot.lane.b32.xlu0 %v580_v43, %s9688_s16  ;;  %v541_v47 = vmul.f32 0.0, %v8962_v60 }
 0x1f9   :  { %608 = vrot.lane.b32.xlu1 %v606_v49, %s9688_s16 }
 0x263   :  { %v531_v50 = vpop.permute.xlu0 %530 }
 0x264   :  { %v533_v51 = vadd.f32 %v531_v50, %v438_v56 }
 0x266   :  { %8969 = vtanh.f32 %v533_v51 }
 0x267   :  { %v557_v53 = vpop.permute.xlu1 %556  ;;  %v583_v55 = vpop.permute.xlu0 %582 }
 0x268   :  { %v559_v59 = vadd.f32 %v557_v53, %v440_v63  ;;  %v585_v35 = vadd.f32 %v583_v55, %v514_v61  ;;  %v535_v63 = vsub.f32 1.0, %v8962_v60  ;;  %v587_v53 = vsub.f32 1.0, %v8964_v62 }
 0x269   :  { %v567_v55 = vmul.f32 0.0, %v8966_v48  ;;  %v613_v60 = vsub.f32 1.0, %v8968_v44 }
 0x26a   :  { %8971 = vtanh.f32 %v559_v59 }
 0x26b   :  { %8973 = vtanh.f32 %v585_v35  ;;  %v609_v5 = vpop.permute.xlu1 %608 }
 0x26c   :  { %v611_v37 = vadd.f32 %v609_v5, %v516_v30  ;;  %v561_v30 = vsub.f32 1.0, %v8966_v48 }
 0x26e   :  { %8975 = vtanh.f32 %v611_v37  ;;  %v593_v37 = vmul.f32 0.0, %v8964_v62 }
 0x273   :  { %v8970_v46 = vpop.eup %8969 }
 0x274   :  { %537 = vrot.lane.b32.xlu0 %v8970_v46, %s9689_s9 }
 0x277   :  { %v8972_v43 = vpop.eup %8971 }
 0x278   :  { %v8974_v58 = vpop.eup %8973  ;;  %563 = vrot.lane.b32.xlu1 %v8972_v43, %s9689_s9 }
 0x279   :  { %589 = vrot.lane.b32.xlu0 %v8974_v58, %s9689_s9 }
 0x27b   :  { %v8976_v56 = vpop.eup %8975 }
 0x27c   :  { %615 = vrot.lane.b32.xlu1 %v8976_v56, %s9689_s9 }
 0x2e6   :  { %v538_v61 = vpop.permute.xlu0 %537 }
 0x2e7   :  { %v540_v49 = vmul.f32 %v538_v61, %v535_v63  ;;  %v619_v63 = vmul.f32 0.0, %v8968_v44 }
 0x2e9   :  { %v10189_v50 = vadd.f32 %v541_v47, %v540_v49 }
 0x2ea   :  { %v564_v51 = vpop.permute.xlu1 %563 }
 0x2eb   :  { %v566_v59 = vmul.f32 %v564_v51, %v561_v30  ;;  %v590_v35 = vpop.permute.xlu0 %589  ;;  %v13095_v5 = vmin.f32 %v10189_v50, 5.0  ;;  %v7610_v30 = vld [vmem:[%s13172_s18 + $0x8] sm:$0xff] }
 0x2ec   :  { %v592_v46 = vmul.f32 %v590_v35, %v587_v53 }
 0x2ed   :  { %v568_v43 = vadd.f32 %v567_v55, %v566_v59  ;;  %639 = vrot.lane.b32.xlu0 %v13095_v5, %s9690_s5  ;;  %v7611_v59 = vld [vmem:[%s13172_s18 + $0x30] sm:$0xff] }
 0x2ee   :  { %v10195_v58 = vadd.f32 %v593_v37, %v592_v46  ;;  %v616_v56 = vpop.permute.xlu1 %615  ;;  %v13182_v37 = vmov 0.0  }
 0x2ef   :  { %v618_v61 = vmul.f32 %v616_v56, %v613_v60  ;;  %v10197_v47 = vmin.f32 %v568_v43, 5.0 }
 0x2f0   :  { %v13094_v48 = vmin.f32 %v10195_v58, 5.0 }
 0x2f1   :  { %13180 = vst [vmem:[#allocation43_spill] sm:$0xff] %v10197_v47  ;;  %v620_v49 = vadd.f32 %v619_v63, %v618_v61  ;;  %642 = vrot.lane.b32.xlu1 %v10197_v47, %s9691_s0 }
 0x2f2   :  { %722 = vrot.lane.b32.xlu0 %v13094_v48, %s9690_s5 }
 0x2f3   :  { %v10205_v62 = vmin.f32 %v620_v49, 5.0 }
 0x2f5   :  { %13181 = vst [vmem:[#allocation44_spill] sm:$0xff] %v10205_v62  ;;  %725 = vrot.lane.b32.xlu1 %v10205_v62, %s9691_s0 }
 0x35f   :  { %v640_v44 = vpop.permute.xlu0 %639 }
 0x360   :  { %v645_v51 = vsel %vm363_vm0, %v7610_v30, %v640_v44 }
 0x363   :  { %v643_v53 = vpop.permute.xlu1 %642 }
 0x364   :  { %v646_v55 = vsel %vm365_vm1, %v645_v51, %v643_v53  ;;  %v723_v35 = vpop.permute.xlu0 %722  ;;  %v13183_v53 = vld [vmem:[#allocation42_spill] sm:$0xff] }
 0x365   :  { %7612 = vmatmul.mubr.msk.f32.vlgmr.msra.gmra.mxu0 %vm367_vm2, %v646_v55  ;;  %v728_v46 = vsel %vm363_vm0, %v7611_v59, %v723_v35 }
 0x366   :  { %949 = vmatpush1.msra.mxu0 %v9871_v1  ;;  %1000 = vmatprep.mubr.f32.mxu0 %v13182_v37 }
 0x367   :  { %v726_v43 = vpop.permute.xlu1 %725  ;;  %950 = vmatprep.subr.mxu0 %v9876_v2 }
 0x368   :  { %v729_v60 = vsel %vm365_vm1, %v728_v46, %v726_v43  ;;  %951 = vmatpush1.msra.mxu0 %v9882_v3 }
 0x369   :  { %7613 = vmatmul.mubr.msk.f32.vlgmr.msra.gmra.mxu1 %vm367_vm2, %v729_v60  ;;  %952 = vmatprep.subr.mxu0 %v9894_v6 }
 0x36a   :  { %953 = vmatpush1.msra.mxu0 %v9906_v8  ;;  %1032 = vmatpush1.msra.mxu1 %v9900_v7 }
 0x36b   :  { %954 = vmatprep.subr.mxu0 %v9923_v11  ;;  %1033 = vmatprep.subr.mxu1 %v9912_v9 }
 0x36c   :  { %955 = vmatpush1.msra.mxu0 %v9935_v13  ;;  %1034 = vmatpush1.msra.mxu1 %v9917_v10 }
 0x36d   :  { %956 = vmatprep.subr.mxu0 %v9952_v16  ;;  %1035 = vmatprep.subr.mxu1 %v9929_v12 }
 0x36e   :  { %957 = vmatpush1.msra.mxu0 %v9964_v18  ;;  %1036 = vmatpush1.msra.mxu1 %v9941_v14 }
 0x36f   :  { %958 = vmatprep.subr.mxu0 %v9976_v20  ;;  %1037 = vmatprep.subr.mxu1 %v9946_v15 }
 0x370   :  { %959 = vmatpush1.msra.mxu0 %v9988_v22  ;;  %1038 = vmatpush1.msra.mxu1 %v9958_v17 }
 0x371   :  { %960 = vmatprep.subr.mxu0 %v10000_v24  ;;  %1039 = vmatprep.subr.mxu1 %v9970_v19 }
 0x372   :  { %961 = vmatpush1.msra.mxu0 %v10012_v26  ;;  %1040 = vmatpush1.msra.mxu1 %v9982_v21 }
 0x373   :  { %962 = vmatprep.subr.mxu0 %v10024_v28  ;;  %1041 = vmatprep.subr.mxu1 %v9994_v23 }
 0x374   :  { %963 = vmatpush1.msra.mxu0 %v10039_v31  ;;  %1042 = vmatpush1.msra.mxu1 %v10006_v25 }
 0x375   :  { %964 = vmatprep.subr.mxu0 %v10051_v33  ;;  %1043 = vmatprep.subr.mxu1 %v10018_v27 }
 0x376   :  { %965 = vmatpush1.msra.mxu0 %v10066_v36  ;;  %1044 = vmatpush1.msra.mxu1 %v10030_v29 }
 0x377   :  { %966 = vmatprep.subr.mxu0 %v10079_v39  ;;  %1045 = vmatprep.subr.mxu1 %v10045_v32 }
 0x378   :  { %967 = vmatpush1.msra.mxu0 %v10091_v41  ;;  %1046 = vmatpush1.msra.mxu1 %v10057_v34 }
 0x379   :  { %1047 = vmatprep.subr.mxu1 %v10073_v38  ;;  %1083 = vmatprep.mubr.f32.mxu1 %v13182_v37 }
 0x37a   :  { %1048 = vmatpush1.msra.mxu1 %v10085_v40  ;;  %1234 = vmatprep.subr.mxu0 %v9866_v0 }
 0x37b   :  { %1049 = vmatprep.subr.mxu1 %v10097_v42 }
 0x37c   :  { %1050 = vmatpush1.msra.mxu1 %v10106_v45 }
 0x37d   :  { %1317 = vmatprep.subr.mxu1 %v9887_v4 }
 0x425   :  { %v716_v56 = vpop.f32.mrf.mxu0 }
 0x426   :  { %v717_v63 = vadd.f32 %v716_v56, %v10164_v52 }
 0x427   :  { %v718_v61 = vpop.f32.mrf.mxu0 }
 0x428   :  { %v719_v49 = vadd.f32 %v718_v61, %v10170_v57  ;;  %811 = vrot.lane.b32.xlu0 %v717_v63, %s9687_s22  ;;  %v7614_v59 = vmul.f32 -1.442695, %v717_v63 }
 0x429   :  { %v799_v44 = vpop.f32.mrf.mxu1 }
 0x42a   :  { %v800_v30 = vadd.f32 %v799_v44, %v10167_v54  ;;  %837 = vrot.lane.b32.xlu1 %v719_v49, %s9687_s22  ;;  %v7615_v35 = vmul.f32 -1.442695, %v719_v49  ;;  %8977 = vpow2.f32 %v7614_v59 }
 0x42b   :  { %v801_v51 = vpop.f32.mrf.mxu1 }
 0x42c   :  { %v802_v55 = vadd.f32 %v801_v51, %v13183_v53  ;;  %863 = vrot.lane.b32.xlu0 %v800_v30, %s9687_s22  ;;  %v7616_v46 = vmul.f32 -1.442695, %v800_v30  ;;  %8979 = vpow2.f32 %v7615_v35 }
 0x42e   :  { %889 = vrot.lane.b32.xlu1 %v802_v55, %s9687_s22  ;;  %v7617_v43 = vmul.f32 -1.442695, %v802_v55  ;;  %8981 = vpow2.f32 %v7616_v46 }
 0x430   :  { %8983 = vpow2.f32 %v7617_v43 }
 0x437   :  { %v8978_v60 = vpop.eup %8977 }
 0x438   :  { %v807_v61 = vadd.f32 1.0, %v8978_v60 }
 0x439   :  { %v8980_v56 = vpop.eup %8979 }
 0x43a   :  { %v833_v48 = vadd.f32 1.0, %v8980_v56  ;;  %8985 = vrcp.f32 %v807_v61 }
 0x43b   :  { %v8982_v44 = vpop.eup %8981 }
 0x43c   :  { %v859_v51 = vadd.f32 1.0, %v8982_v44  ;;  %8987 = vrcp.f32 %v833_v48 }
 0x43d   :  { %v8984_v5 = vpop.eup %8983 }
 0x43e   :  { %v885_v53 = vadd.f32 1.0, %v8984_v5  ;;  %8989 = vrcp.f32 %v859_v51 }
 0x440   :  { %8991 = vrcp.f32 %v885_v53 }
 0x447   :  { %v8986_v54 = vpop.eup %8985 }
 0x449   :  { %v8988_v52 = vpop.eup %8987 }
 0x44b   :  { %v8990_v46 = vpop.eup %8989 }
 0x44d   :  { %v8992_v56 = vpop.eup %8991 }
 0x44e   :  { %v899_v45 = vsub.f32 1.0, %v8992_v56 }
 0x49a   :  { %v812_v57 = vpop.permute.xlu0 %811 }
 0x49b   :  { %v814_v59 = vmul.f32 %v8986_v54, %v812_v57 }
 0x49c   :  { %v838_v35 = vpop.permute.xlu1 %837 }
 0x49d   :  { %v840_v4 = vmul.f32 %v8988_v52, %v838_v35  ;;  %816 = vrot.lane.b32.xlu0 %v814_v59, %s9688_s16 }
 0x49e   :  { %v864_v43 = vpop.permute.xlu0 %863 }
 0x49f   :  { %v866_v60 = vmul.f32 %v8990_v46, %v864_v43  ;;  %842 = vrot.lane.b32.xlu1 %v840_v4, %s9688_s16 }
 0x4a0   :  { %v890_v61 = vpop.permute.xlu1 %889 }
 0x4a1   :  { %v892_v44 = vmul.f32 %v8992_v56, %v890_v61  ;;  %868 = vrot.lane.b32.xlu0 %v866_v60, %s9688_s16 }
 0x4a3   :  { %894 = vrot.lane.b32.xlu1 %v892_v44, %s9688_s16 }
 0x50f   :  { %v817_v5 = vpop.permute.xlu0 %816 }
 0x510   :  { %v819_v48 = vadd.f32 %v817_v5, %v717_v63 }
 0x511   :  { %v843_v57 = vpop.permute.xlu1 %842 }
 0x512   :  { %8993 = vtanh.f32 %v819_v48  ;;  %v845_v53 = vadd.f32 %v843_v57, %v719_v49  ;;  %v821_v49 = vsub.f32 1.0, %v8986_v54 }
 0x513   :  { %v869_v51 = vpop.permute.xlu0 %868 }
 0x514   :  { %8995 = vtanh.f32 %v845_v53  ;;  %v871_v59 = vadd.f32 %v869_v51, %v800_v30  ;;  %v13184_v30 = vmin.f32 %v10189_v50, 5.0  ;;  %v853_v51 = vmul.f32 %v8988_v52, %v10197_v47 }
 0x515   :  { %v895_v35 = vpop.permute.xlu1 %894 }
 0x516   :  { %8997 = vtanh.f32 %v871_v59  ;;  %v897_v43 = vadd.f32 %v895_v35, %v802_v55  ;;  %v827_v5 = vmul.f32 %v8986_v54, %v13184_v30  ;;  %v847_v55 = vsub.f32 1.0, %v8988_v52 }
 0x517   :  { %v873_v35 = vsub.f32 1.0, %v8990_v46 }
 0x518   :  { %8999 = vtanh.f32 %v897_v43  ;;  %v13185_v43 = vmin.f32 %v10195_v58, 5.0 }
 0x51f   :  { %v8994_v4 = vpop.eup %8993 }
 0x520   :  { %823 = vrot.lane.b32.xlu0 %v8994_v4, %s9689_s9  ;;  %v879_v4 = vmul.f32 %v8990_v46, %v13185_v43 }
 0x521   :  { %v8996_v61 = vpop.eup %8995 }
 0x522   :  { %849 = vrot.lane.b32.xlu1 %v8996_v61, %s9689_s9 }
 0x523   :  { %v8998_v60 = vpop.eup %8997 }
 0x524   :  { %875 = vrot.lane.b32.xlu0 %v8998_v60, %s9689_s9 }
 0x525   :  { %v9000_v63 = vpop.eup %8999 }
 0x526   :  { %901 = vrot.lane.b32.xlu1 %v9000_v63, %s9689_s9 }
 0x592   :  { %v824_v44 = vpop.permute.xlu0 %823 }
 0x593   :  { %v826_v48 = vmul.f32 %v824_v44, %v821_v49  ;;  %v905_v49 = vmul.f32 %v8992_v56, %v10205_v62 }
 0x594   :  { %v850_v57 = vpop.permute.xlu1 %849 }
 0x595   :  { %v10281_v53 = vadd.f32 %v827_v5, %v826_v48  ;;  %v852_v59 = vmul.f32 %v850_v57, %v847_v55  ;;  %v10315_v55 = vld [vmem:[%s13172_s18 + $0x28] sm:$0xff] }
 0x596   :  { %v876_v61 = vpop.permute.xlu0 %875  ;;  %13189 = vst [vmem:[#allocation48_spill] sm:$0xff] %v10315_v55 }
 0x597   :  { %v854_v60 = vadd.f32 %v853_v51, %v852_v59  ;;  %v878_v63 = vmul.f32 %v876_v61, %v873_v35  ;;  %v829_v42 = vmin.f32 %v10281_v53, 5.0 }
 0x598   :  { %v902_v50 = vpop.permute.xlu1 %901 }
 0x599   :  { %v10287_v54 = vadd.f32 %v879_v4, %v878_v63  ;;  %v904_v44 = vmul.f32 %v902_v50, %v899_v45  ;;  %925 = vrot.lane.b32.xlu0 %v829_v42, %s9690_s5  ;;  %v10293_v52 = vmin.f32 %v854_v60, 5.0  ;;  %v10308_v45 = vld [vmem:[%s13172_s18 + $0x10] sm:$0xff] }
 0x59a   :  { %13188 = vst [vmem:[#allocation47_spill] sm:$0xff] %v10308_v45 }
 0x59b   :  { %13186 = vst [vmem:[#allocation45_spill] sm:$0xff] %v10293_v52  ;;  %v906_v58 = vadd.f32 %v905_v49, %v904_v44  ;;  %928 = vrot.lane.b32.xlu1 %v10293_v52, %s9691_s0  ;;  %v881_v46 = vmin.f32 %v10287_v54, 5.0 }
 0x59d   :  { %1008 = vrot.lane.b32.xlu0 %v881_v46, %s9690_s5  ;;  %v10301_v30 = vmin.f32 %v906_v58, 5.0 }
 0x59f   :  { %13187 = vst [vmem:[#allocation46_spill] sm:$0xff] %v10301_v30  ;;  %1011 = vrot.lane.b32.xlu1 %v10301_v30, %s9691_s0 }
 0x60b   :  { %v926_v56 = vpop.permute.xlu0 %925 }
 0x60c   :  { %v931_v5 = vsel %vm363_vm0, %v10308_v45, %v926_v56 }
 0x60d   :  { %v929_v48 = vpop.permute.xlu1 %928 }
 0x60e   :  { %v932_v57 = vsel %vm365_vm1, %v931_v5, %v929_v48 }
 0x60f   :  { %7620 = vmatmul.mubr.msk.f32.vlgmr.msra.gmra.mxu0 %vm367_vm2, %v932_v57  ;;  %v1009_v51 = vpop.permute.xlu0 %1008 }
 0x610   :  { %v1014_v59 = vsel %vm363_vm0, %v10315_v55, %v1009_v51  ;;  %1235 = vmatpush1.msra.mxu0 %v9871_v1  ;;  %1286 = vmatprep.mubr.f32.mxu0 %v13182_v37  ;;  %v13190_v1 = vld [vmem:[#allocation36_spill] sm:$0xff] }
 0x611   :  { %v1012_v35 = vpop.permute.xlu1 %1011  ;;  %1236 = vmatprep.subr.mxu0 %v9876_v2  ;;  %v13191_v2 = vld [vmem:[#allocation37_spill] sm:$0xff] }
 0x612   :  { %v1015_v43 = vsel %vm365_vm1, %v1014_v59, %v1012_v35  ;;  %1237 = vmatpush1.msra.mxu0 %v9882_v3  ;;  %v13192_v3 = vld [vmem:[#allocation35_spill] sm:$0xff] }
 0x613   :  { %7621 = vmatmul.mubr.msk.f32.vlgmr.msra.gmra.mxu1 %vm367_vm2, %v1015_v43  ;;  %1238 = vmatprep.subr.mxu0 %v9894_v6 }
 0x614   :  { %1239 = vmatpush1.msra.mxu0 %v9906_v8  ;;  %1318 = vmatpush1.msra.mxu1 %v9900_v7  ;;  %v13193_v7 = vld [vmem:[#allocation39_spill] sm:$0xff] }
 0x615   :  { %1240 = vmatprep.subr.mxu0 %v9923_v11  ;;  %1319 = vmatprep.subr.mxu1 %v9912_v9 }
 0x616   :  { %1241 = vmatpush1.msra.mxu0 %v9935_v13  ;;  %1320 = vmatpush1.msra.mxu1 %v9917_v10  ;;  %v13194_v10 = vld [vmem:[#allocation41_spill] sm:$0xff]  ;;  %v13195_v13 = vld [vmem:[#allocation40_spill] sm:$0xff] }
 0x617   :  { %1242 = vmatprep.subr.mxu0 %v9952_v16  ;;  %1321 = vmatprep.subr.mxu1 %v9929_v12 }
 0x618   :  { %1243 = vmatpush1.msra.mxu0 %v9964_v18  ;;  %1322 = vmatpush1.msra.mxu1 %v9941_v14 }
 0x619   :  { %1244 = vmatprep.subr.mxu0 %v9976_v20  ;;  %1323 = vmatprep.subr.mxu1 %v9946_v15  ;;  %v13196_v15 = vld [vmem:[#allocation42_spill] sm:$0xff] }
 0x61a   :  { %1245 = vmatpush1.msra.mxu0 %v9988_v22  ;;  %1324 = vmatpush1.msra.mxu1 %v9958_v17 }
 0x61b   :  { %1246 = vmatprep.subr.mxu0 %v10000_v24  ;;  %1325 = vmatprep.subr.mxu1 %v9970_v19 }
 0x61c   :  { %1247 = vmatpush1.msra.mxu0 %v10012_v26  ;;  %1326 = vmatpush1.msra.mxu1 %v9982_v21 }
 0x61d   :  { %1248 = vmatprep.subr.mxu0 %v10024_v28  ;;  %1327 = vmatprep.subr.mxu1 %v9994_v23 }
 0x61e   :  { %1249 = vmatpush1.msra.mxu0 %v10039_v31  ;;  %1328 = vmatpush1.msra.mxu1 %v10006_v25 }
 0x61f   :  { %1250 = vmatprep.subr.mxu0 %v10051_v33  ;;  %1329 = vmatprep.subr.mxu1 %v10018_v27 }
 0x620   :  { %1251 = vmatpush1.msra.mxu0 %v10066_v36  ;;  %1330 = vmatpush1.msra.mxu1 %v10030_v29 }
 0x621   :  { %1252 = vmatprep.subr.mxu0 %v10079_v39  ;;  %1331 = vmatprep.subr.mxu1 %v10045_v32 }
 0x622   :  { %1253 = vmatpush1.msra.mxu0 %v10091_v41  ;;  %1332 = vmatpush1.msra.mxu1 %v10057_v34 }
 0x623   :  { %1333 = vmatprep.subr.mxu1 %v10073_v38  ;;  %1369 = vmatprep.mubr.f32.mxu1 %v13182_v37 }
 0x624   :  { %1334 = vmatpush1.msra.mxu1 %v10085_v40  ;;  %1518 = vmatprep.subr.mxu0 %v9866_v0 }
 0x625   :  { %1335 = vmatprep.subr.mxu1 %v13190_v1 }
 0x626   :  { %1336 = vmatpush1.msra.mxu1 %v13191_v2 }
 0x627   :  { %1601 = vmatprep.subr.mxu1 %v13192_v3 }
 0x6cf   :  { %v1002_v6 = vpop.f32.mrf.mxu0 }
 0x6d0   :  { %v1003_v8 = vadd.f32 %v1002_v6, %v13193_v7 }
 0x6d1   :  { %v1004_v9 = vpop.f32.mrf.mxu0 }
 0x6d2   :  { %v1005_v11 = vadd.f32 %v1004_v9, %v13194_v10  ;;  %1097 = vrot.lane.b32.xlu0 %v1003_v8, %s9687_s22  ;;  %v7622_v17 = vmul.f32 -1.442695, %v1003_v8 }
 0x6d3   :  { %v1085_v12 = vpop.f32.mrf.mxu1 }
 0x6d4   :  { %v1086_v14 = vadd.f32 %v1085_v12, %v13195_v13  ;;  %1123 = vrot.lane.b32.xlu1 %v1005_v11, %s9687_s22  ;;  %v7623_v18 = vmul.f32 -1.442695, %v1005_v11  ;;  %9001 = vpow2.f32 %v7622_v17 }
 0x6d5   :  { %v1087_v0 = vpop.f32.mrf.mxu1 }
 0x6d6   :  { %v1088_v16 = vadd.f32 %v1087_v0, %v13196_v15  ;;  %1149 = vrot.lane.b32.xlu0 %v1086_v14, %s9687_s22  ;;  %v7624_v19 = vmul.f32 -1.442695, %v1086_v14  ;;  %9003 = vpow2.f32 %v7623_v18 }
 0x6d8   :  { %1175 = vrot.lane.b32.xlu1 %v1088_v16, %s9687_s22  ;;  %v7625_v20 = vmul.f32 -1.442695, %v1088_v16  ;;  %9005 = vpow2.f32 %v7624_v19 }
 0x6da   :  { %9007 = vpow2.f32 %v7625_v20 }
 0x6e1   :  { %v9002_v21 = vpop.eup %9001 }
 0x6e2   :  { %v1093_v23 = vadd.f32 1.0, %v9002_v21 }
 0x6e3   :  { %v9004_v22 = vpop.eup %9003 }
 0x6e4   :  { %v1119_v25 = vadd.f32 1.0, %v9004_v22  ;;  %9009 = vrcp.f32 %v1093_v23 }
 0x6e5   :  { %v9006_v24 = vpop.eup %9005 }
 0x6e6   :  { %v1145_v27 = vadd.f32 1.0, %v9006_v24  ;;  %9011 = vrcp.f32 %v1119_v25  ;;  %v10410_v24 = vld [vmem:[%s13172_s18 + $0x18] sm:$0xff] }
 0x6e7   :  { %v9008_v26 = vpop.eup %9007 }
 0x6e8   :  { %v1171_v28 = vadd.f32 1.0, %v9008_v26  ;;  %9013 = vrcp.f32 %v1145_v27 }
 0x6ea   :  { %9015 = vrcp.f32 %v1171_v28  ;;  %v10417_v28 = vld [vmem:[%s13172_s18 + $0x20] sm:$0xff] }
 0x6f1   :  { %v9010_v29 = vpop.eup %9009 }
 0x6f2   :  { %v1107_v35 = vsub.f32 1.0, %v9010_v29  ;;  %v1113_v1 = vmul.f32 %v9010_v29, %v829_v42 }
 0x6f3   :  { %v9012_v33 = vpop.eup %9011 }
 0x6f4   :  { %v1133_v3 = vsub.f32 1.0, %v9012_v33  ;;  %v1139_v9 = vmul.f32 %v9012_v33, %v10293_v52 }
 0x6f5   :  { %v9014_v38 = vpop.eup %9013 }
 0x6f6   :  { %v1159_v12 = vsub.f32 1.0, %v9014_v38 }
 0x6f7   :  { %v9016_v41 = vpop.eup %9015 }
 0x6f8   :  { %v1185_v18 = vsub.f32 1.0, %v9016_v41  ;;  %v1191_v20 = vmul.f32 %v9016_v41, %v10301_v30 }
 0x744   :  { %v1098_v31 = vpop.permute.xlu0 %1097 }
 0x745   :  { %v1100_v32 = vmul.f32 %v9010_v29, %v1098_v31 }
 0x746   :  { %v1124_v34 = vpop.permute.xlu1 %1123 }
 0x747   :  { %v1126_v36 = vmul.f32 %v9012_v33, %v1124_v34  ;;  %1102 = vrot.lane.b32.xlu0 %v1100_v32, %s9688_s16  ;;  %v10426_v33 = vld [vmem:[%s13169_s28 + $0x90] sm:$0xff] }
 0x748   :  { %v1150_v39 = vpop.permute.xlu0 %1149 }
 0x749   :  { %v1152_v40 = vmul.f32 %v9014_v38, %v1150_v39  ;;  %1128 = vrot.lane.b32.xlu1 %v1126_v36, %s9688_s16  ;;  %v10433_v36 = vld [vmem:[%s13169_s28 + $0x88] sm:$0xff]  ;;  %v10440_v39 = vld [vmem:[%s13169_s28 + $0x80] sm:$0xff] }
 0x74a   :  { %v1176_v4 = vpop.permute.xlu1 %1175 }
 0x74b   :  { %v1178_v61 = vmul.f32 %v9016_v41, %v1176_v4  ;;  %1154 = vrot.lane.b32.xlu0 %v1152_v40, %s9688_s16  ;;  %v10447_v40 = vld [vmem:[%s13169_s28 + $0x78] sm:$0xff]  ;;  %v10453_v41 = vld [vmem:[%s13169_s28 + $0x70] sm:$0xff] }
 0x74c   :  { %v10459_v4 = vld [vmem:[%s13170_s29 + $0x90] sm:$0xff] }
 0x74d   :  { %1180 = vrot.lane.b32.xlu1 %v1178_v61, %s9688_s16  ;;  %v10465_v61 = vld [vmem:[%s13169_s28 + $0x68] sm:$0xff] }
 0x7b9   :  { %v1103_v60 = vpop.permute.xlu0 %1102 }
 0x7ba   :  { %v1105_v63 = vadd.f32 %v1103_v60, %v1003_v8  ;;  %v10471_v60 = vld [vmem:[%s13170_s29 + $0x88] sm:$0xff] }
 0x7bb   :  { %v1129_v50 = vpop.permute.xlu1 %1128 }
 0x7bc   :  { %9017 = vtanh.f32 %v1105_v63  ;;  %v1131_v49 = vadd.f32 %v1129_v50, %v1005_v11  ;;  %v10477_v63 = vld [vmem:[%s13169_s28 + $0x60] sm:$0xff] }
 0x7bd   :  { %v1155_v44 = vpop.permute.xlu0 %1154  ;;  %v10483_v50 = vld [vmem:[%s13170_s29 + $0x80] sm:$0xff] }
 0x7be   :  { %9019 = vtanh.f32 %v1131_v49  ;;  %v1157_v58 = vadd.f32 %v1155_v44, %v1086_v14  ;;  %v1165_v14 = vmul.f32 %v9014_v38, %v881_v46  ;;  %v10489_v49 = vld [vmem:[%s13169_s28 + $0x58] sm:$0xff] }
 0x7bf   :  { %v1181_v56 = vpop.permute.xlu1 %1180  ;;  %v10495_v44 = vld [vmem:[%s13170_s29 + $0x78] sm:$0xff] }
 0x7c0   :  { %9021 = vtanh.f32 %v1157_v58  ;;  %v1183_v5 = vadd.f32 %v1181_v56, %v1088_v16  ;;  %v10501_v58 = vld [vmem:[%s13169_s28 + $0x50] sm:$0xff] }
 0x7c1   :  { %v10507_v56 = vld [vmem:[%s13170_s29 + $0x70] sm:$0xff] }
 0x7c2   :  { %9023 = vtanh.f32 %v1183_v5  ;;  %v10513_v5 = vld [vmem:[%s13169_s28 + $0x48] sm:$0xff] }
 0x7c9   :  { %v9018_v48 = vpop.eup %9017 }
 0x7ca   :  { %1109 = vrot.lane.b32.xlu0 %v9018_v48, %s9689_s9  ;;  %v10519_v48 = vld [vmem:[%s13170_s29 + $0x68] sm:$0xff] }
 0x7cb   :  { %v9020_v57 = vpop.eup %9019 }
 0x7cc   :  { %1135 = vrot.lane.b32.xlu1 %v9020_v57, %s9689_s9  ;;  %v10525_v57 = vld [vmem:[%s13169_s28 + $0x40] sm:$0xff] }
 0x7cd   :  { %v9022_v51 = vpop.eup %9021 }
 0x7ce   :  { %1161 = vrot.lane.b32.xlu0 %v9022_v51, %s9689_s9  ;;  %v10531_v51 = vld [vmem:[%s13170_s29 + $0x60] sm:$0xff] }
 0x7cf   :  { %v9024_v59 = vpop.eup %9023 }
 0x7d0   :  { %1187 = vrot.lane.b32.xlu1 %v9024_v59, %s9689_s9  ;;  %v10537_v59 = vld [vmem:[%s13169_s28 + $0x38] sm:$0xff] }
 0x83c   :  { %v1110_v43 = vpop.permute.xlu0 %1109 }
 0x83d   :  { %v1112_v2 = vmul.f32 %v1110_v43, %v1107_v35  ;;  %v10543_v35 = vld [vmem:[%s13170_s29 + $0x58] sm:$0xff]  ;;  %v10549_v43 = vld [vmem:[%s13169_s28 + $0x30] sm:$0xff] }
 0x83e   :  { %v1136_v6 = vpop.permute.xlu1 %1135 }
 0x83f   :  { %v10383_v8 = vadd.f32 %v1113_v1, %v1112_v2  ;;  %v1138_v11 = vmul.f32 %v1136_v6, %v1133_v3  ;;  %v10555_v1 = vld [vmem:[%s13170_s29 + $0x50] sm:$0xff]  ;;  %v10561_v2 = vld [vmem:[%s13169_s28 + $0x28] sm:$0xff]  ;;  %v10573_v6 = vld [vmem:[%s13169_s28 + $0x20] sm:$0xff] }
 0x840   :  { %v1162_v0 = vpop.permute.xlu0 %1161  ;;  %v10567_v3 = vld [vmem:[%s13170_s29 + $0x48] sm:$0xff] }
 0x841   :  { %v1140_v16 = vadd.f32 %v1139_v9, %v1138_v11  ;;  %v1164_v17 = vmul.f32 %v1162_v0, %v1159_v12  ;;  %v13106_v19 = vmin.f32 %v10383_v8, 5.0  ;;  %v10579_v9 = vld [vmem:[%s13170_s29 + $0x40] sm:$0xff]  ;;  %v10585_v11 = vld [vmem:[%s13169_s28 + $0x18] sm:$0xff]  ;;  %v10603_v0 = vld [vmem:[%s13170_s29 + $0x30] sm:$0xff] }
 0x842   :  { %v1188_v53 = vpop.permute.xlu1 %1187  ;;  %v10591_v12 = vld [vmem:[%s13170_s29 + $0x38] sm:$0xff] }
 0x843   :  { %v10389_v42 = vadd.f32 %v1165_v14, %v1164_v17  ;;  %v1190_v21 = vmul.f32 %v1188_v53, %v1185_v18  ;;  %1211 = vrot.lane.b32.xlu0 %v13106_v19, %s9690_s5  ;;  %v10395_v22 = vmin.f32 %v1140_v16, 5.0  ;;  %v10597_v14 = vld [vmem:[%s13169_s28 + $0x10] sm:$0xff]  ;;  %v10609_v16 = vld [vmem:[%s13169_s28 + $0x8] sm:$0xff]  ;;  %v10621_v18 = vld [vmem:[%s13169_s28] sm:$0xff] }
 0x844   :  { %v10615_v17 = vld [vmem:[%s13170_s29 + $0x28] sm:$0xff]  ;;  %v10627_v53 = vld [vmem:[%s13170_s29 + $0x20] sm:$0xff] }
 0x845   :  { %13197 = vst [vmem:[#allocation36_spill] sm:$0xff] %v10395_v22  ;;  %v1192_v54 = vadd.f32 %v1191_v20, %v1190_v21  ;;  %1214 = vrot.lane.b32.xlu1 %v10395_v22, %s9691_s0  ;;  %v13105_v46 = vmin.f32 %v10389_v42, 5.0  ;;  %v10633_v20 = vld [vmem:[%s13170_s29 + $0x18] sm:$0xff]  ;;  %v10640_v21 = vld [vmem:[%s13170_s29 + $0x10] sm:$0xff] }
 0x846   :  { %13199 = vst [vmem:[#allocation35_spill] sm:$0xff] %v10640_v21 }
 0x847   :  { %1294 = vrot.lane.b32.xlu0 %v13105_v46, %s9690_s5  ;;  %v10403_v23 = vmin.f32 %v1192_v54, 5.0  ;;  %v10646_v54 = vld [vmem:[%s13169_s28 + $0x98] sm:$0xff] }
 0x848   :  { %13200 = vst [vmem:[#allocation49_spill] sm:$0xff] %v10646_v54 }
 0x849   :  { %13198 = vst [vmem:[#allocation37_spill] sm:$0xff] %v10403_v23  ;;  %1297 = vrot.lane.b32.xlu1 %v10403_v23, %s9691_s0 }
 0x8b5   :  { %v1212_v25 = vpop.permute.xlu0 %1211 }
 0x8b6   :  { %v1217_v26 = vsel %vm363_vm0, %v10410_v24, %v1212_v25  ;;  %v10652_v25 = vld [vmem:[%s13170_s29 + $0x8] sm:$0xff] }
 0x8b7   :  { %v1215_v27 = vpop.permute.xlu1 %1214  ;;  %13201 = vst [vmem:[#allocation50_spill] sm:$0xff] %v10652_v25 }
 0x8b8   :  { %v1218_v29 = vsel %vm365_vm1, %v1217_v26, %v1215_v27  ;;  %v10658_v26 = vld [vmem:[%s13170_s29] sm:$0xff]  ;;  %v10664_v27 = vld [vmem:[%s13170_s29 + $0x98] sm:$0xff] }
 0x8b9   :  { %7628 = vmatmul.mubr.msk.f32.vlgmr.msra.gmra.mxu0 %vm367_vm2, %v1218_v29  ;;  %v1295_v31 = vpop.permute.xlu0 %1294  ;;  %13202 = vst [vmem:[#allocation51_spill] sm:$0xff] %v10658_v26  ;;  %13203 = vst [vmem:[#allocation52_spill] sm:$0xff] %v10664_v27 }
 0x8ba   :  { %v1300_v32 = vsel %vm363_vm0, %v10417_v28, %v1295_v31  ;;  %1519 = vmatpush1.msra.mxu0 %v10426_v33  ;;  %1570 = vmatprep.mubr.f32.mxu0 %v13182_v37 }
 0x8bb   :  { %v1298_v34 = vpop.permute.xlu1 %1297  ;;  %1520 = vmatprep.subr.mxu0 %v10433_v36 }
 0x8bc   :  { %v1301_v38 = vsel %vm365_vm1, %v1300_v32, %v1298_v34  ;;  %1521 = vmatpush1.msra.mxu0 %v10440_v39 }
 0x8bd   :  { %7629 = vmatmul.mubr.msk.f32.vlgmr.msra.gmra.mxu1 %vm367_vm2, %v1301_v38  ;;  %1522 = vmatprep.subr.mxu0 %v10447_v40 }
 0x8be   :  { %1523 = vmatpush1.msra.mxu0 %v10453_v41  ;;  %1602 = vmatpush1.msra.mxu1 %v10459_v4 }
 0x8bf   :  { %1524 = vmatprep.subr.mxu0 %v10465_v61  ;;  %1603 = vmatprep.subr.mxu1 %v10471_v60 }
 0x8c0   :  { %1525 = vmatpush1.msra.mxu0 %v10477_v63  ;;  %1604 = vmatpush1.msra.mxu1 %v10483_v50 }
 0x8c1   :  { %1526 = vmatprep.subr.mxu0 %v10489_v49  ;;  %1605 = vmatprep.subr.mxu1 %v10495_v44 }
 0x8c2   :  { %1527 = vmatpush1.msra.mxu0 %v10501_v58  ;;  %1606 = vmatpush1.msra.mxu1 %v10507_v56 }
 0x8c3   :  { %1528 = vmatprep.subr.mxu0 %v10513_v5  ;;  %1607 = vmatprep.subr.mxu1 %v10519_v48 }
 0x8c4   :  { %1529 = vmatpush1.msra.mxu0 %v10525_v57  ;;  %1608 = vmatpush1.msra.mxu1 %v10531_v51 }
 0x8c5   :  { %1530 = vmatprep.subr.mxu0 %v10537_v59  ;;  %1609 = vmatprep.subr.mxu1 %v10543_v35 }
 0x8c6   :  { %1531 = vmatpush1.msra.mxu0 %v10549_v43  ;;  %1610 = vmatpush1.msra.mxu1 %v10555_v1 }
 0x8c7   :  { %1532 = vmatprep.subr.mxu0 %v10561_v2  ;;  %1611 = vmatprep.subr.mxu1 %v10567_v3 }
 0x8c8   :  { %1533 = vmatpush1.msra.mxu0 %v10573_v6  ;;  %1612 = vmatpush1.msra.mxu1 %v10579_v9 }
 0x8c9   :  { %1534 = vmatprep.subr.mxu0 %v10585_v11  ;;  %1613 = vmatprep.subr.mxu1 %v10591_v12 }
 0x8ca   :  { %1535 = vmatpush1.msra.mxu0 %v10597_v14  ;;  %1614 = vmatpush1.msra.mxu1 %v10603_v0 }
 0x8cb   :  { %1536 = vmatprep.subr.mxu0 %v10609_v16  ;;  %1615 = vmatprep.subr.mxu1 %v10615_v17 }
 0x8cc   :  { %1537 = vmatpush1.msra.mxu0 %v10621_v18  ;;  %1616 = vmatpush1.msra.mxu1 %v10627_v53 }
 0x8cd   :  { %1617 = vmatprep.subr.mxu1 %v10633_v20  ;;  %1653 = vmatprep.mubr.f32.mxu1 %v13182_v37 }
 0x8ce   :  { %1618 = vmatpush1.msra.mxu1 %v10640_v21  ;;  %1802 = vmatprep.subr.mxu0 %v10646_v54 }
 0x8cf   :  { %1619 = vmatprep.subr.mxu1 %v10652_v25 }
 0x8d0   :  { %1620 = vmatpush1.msra.mxu1 %v10658_v26 }
 0x8d1   :  { %1885 = vmatprep.subr.mxu1 %v10664_v27 }
 0x979   :  { %v1288_v29 = vpop.f32.mrf.mxu0 }
 0x97a   :  { %v1289_v31 = vadd.f32 %v1288_v29, %v13193_v7 }
 0x97b   :  { %v1290_v32 = vpop.f32.mrf.mxu0 }
 0x97c   :  { %v1291_v34 = vadd.f32 %v1290_v32, %v13194_v10  ;;  %1383 = vrot.lane.b32.xlu0 %v1289_v31, %s9687_s22  ;;  %v7630_v30 = vmul.f32 -1.442695, %v1289_v31 }
 0x97d   :  { %v1371_v38 = vpop.f32.mrf.mxu1 }
 0x97e   :  { %v1372_v46 = vadd.f32 %v1371_v38, %v13195_v13  ;;  %1409 = vrot.lane.b32.xlu1 %v1291_v34, %s9687_s22  ;;  %v7631_v52 = vmul.f32 -1.442695, %v1291_v34  ;;  %9025 = vpow2.f32 %v7630_v30 }
 0x97f   :  { %v1373_v19 = vpop.f32.mrf.mxu1 }
 0x980   :  { %v1374_v62 = vadd.f32 %v1373_v19, %v13196_v15  ;;  %1435 = vrot.lane.b32.xlu0 %v1372_v46, %s9687_s22  ;;  %v7632_v29 = vmul.f32 -1.442695, %v1372_v46  ;;  %9027 = vpow2.f32 %v7631_v52 }
 0x982   :  { %1461 = vrot.lane.b32.xlu1 %v1374_v62, %s9687_s22  ;;  %v7633_v32 = vmul.f32 -1.442695, %v1374_v62  ;;  %9029 = vpow2.f32 %v7632_v29 }
 0x984   :  { %9031 = vpow2.f32 %v7633_v32 }
 0x98b   :  { %v9026_v47 = vpop.eup %9025 }
 0x98c   :  { %v1379_v38 = vadd.f32 1.0, %v9026_v47 }
 0x98d   :  { %v9028_v45 = vpop.eup %9027 }
 0x98e   :  { %v1405_v13 = vadd.f32 1.0, %v9028_v45  ;;  %9033 = vrcp.f32 %v1379_v38 }
 0x98f   :  { %v9030_v55 = vpop.eup %9029 }
 0x990   :  { %v1431_v19 = vadd.f32 1.0, %v9030_v55  ;;  %9035 = vrcp.f32 %v1405_v13 }
 0x991   :  { %v9032_v10 = vpop.eup %9031 }
 0x992   :  { %v1457_v15 = vadd.f32 1.0, %v9032_v10  ;;  %9037 = vrcp.f32 %v1431_v19 }
 0x994   :  { %9039 = vrcp.f32 %v1457_v15 }
 0x99b   :  { %v9034_v7 = vpop.eup %9033 }
 0x99d   :  { %v9036_v26 = vpop.eup %9035 }
 0x99f   :  { %v9038_v29 = vpop.eup %9037 }
 0x9a1   :  { %v9040_v45 = vpop.eup %9039 }
 0x9a2   :  { %v1471_v54 = vsub.f32 1.0, %v9040_v45 }
 0x9ee   :  { %v1384_v27 = vpop.permute.xlu0 %1383 }
 0x9ef   :  { %v1386_v30 = vmul.f32 %v9034_v7, %v1384_v27 }
 0x9f0   :  { %v1410_v52 = vpop.permute.xlu1 %1409 }
 0x9f1   :  { %v1412_v25 = vmul.f32 %v9036_v26, %v1410_v52  ;;  %1388 = vrot.lane.b32.xlu0 %v1386_v30, %s9688_s16 }
 0x9f2   :  { %v1436_v32 = vpop.permute.xlu0 %1435 }
 0x9f3   :  { %v1438_v47 = vmul.f32 %v9038_v29, %v1436_v32  ;;  %1414 = vrot.lane.b32.xlu1 %v1412_v25, %s9688_s16 }
 0x9f4   :  { %v1462_v38 = vpop.permute.xlu1 %1461 }
 0x9f5   :  { %v1464_v55 = vmul.f32 %v9040_v45, %v1462_v38  ;;  %1440 = vrot.lane.b32.xlu0 %v1438_v47, %s9688_s16 }
 0x9f7   :  { %1466 = vrot.lane.b32.xlu1 %v1464_v55, %s9688_s16 }
 0xa63   :  { %v1389_v10 = vpop.permute.xlu0 %1388 }
 0xa64   :  { %v1391_v13 = vadd.f32 %v1389_v10, %v1289_v31 }
 0xa65   :  { %v1415_v15 = vpop.permute.xlu1 %1414 }
 0xa66   :  { %9041 = vtanh.f32 %v1391_v13  ;;  %v1417_v27 = vadd.f32 %v1415_v15, %v1291_v34  ;;  %v1393_v34 = vsub.f32 1.0, %v9034_v7 }
 0xa67   :  { %v1441_v19 = vpop.permute.xlu0 %1440 }
 0xa68   :  { %9043 = vtanh.f32 %v1417_v27  ;;  %v1443_v30 = vadd.f32 %v1441_v19, %v1372_v46  ;;  %v13204_v46 = vmin.f32 %v10383_v8, 5.0  ;;  %v1425_v19 = vmul.f32 %v9036_v26, %v10395_v22 }
 0xa69   :  { %v1467_v52 = vpop.permute.xlu1 %1466 }
 0xa6a   :  { %9045 = vtanh.f32 %v1443_v30  ;;  %v1469_v32 = vadd.f32 %v1467_v52, %v1374_v62  ;;  %v1399_v10 = vmul.f32 %v9034_v7, %v13204_v46  ;;  %v1419_v62 = vsub.f32 1.0, %v9036_v26 }
 0xa6b   :  { %v1445_v52 = vsub.f32 1.0, %v9038_v29 }
 0xa6c   :  { %9047 = vtanh.f32 %v1469_v32  ;;  %v13205_v32 = vmin.f32 %v10389_v42, 5.0 }
 0xa73   :  { %v9042_v25 = vpop.eup %9041 }
 0xa74   :  { %1395 = vrot.lane.b32.xlu0 %v9042_v25, %s9689_s9  ;;  %v1451_v25 = vmul.f32 %v9038_v29, %v13205_v32  ;;  %v13211_v32 = vld [vmem:[#allocation51_spill] sm:$0xff] }
 0xa75   :  { %v9044_v38 = vpop.eup %9043 }
 0xa76   :  { %1421 = vrot.lane.b32.xlu1 %v9044_v38, %s9689_s9 }
 0xa77   :  { %v9046_v47 = vpop.eup %9045 }
 0xa78   :  { %1447 = vrot.lane.b32.xlu0 %v9046_v47, %s9689_s9 }
 0xa79   :  { %v9048_v31 = vpop.eup %9047 }
 0xa7a   :  { %1473 = vrot.lane.b32.xlu1 %v9048_v31, %s9689_s9 }
 0xae6   :  { %v1396_v55 = vpop.permute.xlu0 %1395 }
 0xae7   :  { %v1398_v13 = vmul.f32 %v1396_v55, %v1393_v34  ;;  %v1477_v34 = vmul.f32 %v9040_v45, %v10403_v23 }
 0xae8   :  { %v1422_v15 = vpop.permute.xlu1 %1421 }
 0xae9   :  { %v10685_v27 = vadd.f32 %v1399_v10, %v1398_v13  ;;  %v1424_v30 = vmul.f32 %v1422_v15, %v1419_v62 }
 0xaea   :  { %v1448_v38 = vpop.permute.xlu0 %1447 }
 0xaeb   :  { %v1426_v47 = vadd.f32 %v1425_v19, %v1424_v30  ;;  %v1450_v31 = vmul.f32 %v1448_v38, %v1445_v52  ;;  %v13128_v21 = vmin.f32 %v10685_v27, 5.0  ;;  %v13210_v52 = vld [vmem:[#allocation50_spill] sm:$0xff] }
 0xaec   :  { %v1474_v8 = vpop.permute.xlu1 %1473 }
 0xaed   :  { %v10691_v7 = vadd.f32 %v1451_v25, %v1450_v31  ;;  %v1476_v55 = vmul.f32 %v1474_v8, %v1471_v54  ;;  %1495 = vrot.lane.b32.xlu0 %v13128_v21, %s9690_s5  ;;  %v10697_v26 = vmin.f32 %v1426_v47, 5.0  ;;  %v13212_v25 = vld [vmem:[#allocation52_spill] sm:$0xff]  ;;  %v13213_v47 = vld [vmem:[#allocation39_spill] sm:$0xff] }
 0xaef   :  { %13206 = vst [vmem:[#allocation53_spill] sm:$0xff] %v10697_v26  ;;  %v1478_v42 = vadd.f32 %v1477_v34, %v1476_v55  ;;  %1498 = vrot.lane.b32.xlu1 %v10697_v26, %s9691_s0  ;;  %v13127_v29 = vmin.f32 %v10691_v7, 5.0  ;;  %v13214_v34 = vld [vmem:[#allocation41_spill] sm:$0xff] }
 0xaf1   :  { %1578 = vrot.lane.b32.xlu0 %v13127_v29, %s9690_s5  ;;  %v10705_v46 = vmin.f32 %v1478_v42, 5.0 }
 0xaf3   :  { %13207 = vst [vmem:[#allocation54_spill] sm:$0xff] %v10705_v46  ;;  %1581 = vrot.lane.b32.xlu1 %v10705_v46, %s9691_s0 }
 0xb5f   :  { %v1496_v54 = vpop.permute.xlu0 %1495 }
 0xb60   :  { %v1501_v45 = vsel %vm363_vm0, %v10417_v28, %v1496_v54  ;;  %v13209_v28 = vld [vmem:[#allocation49_spill] sm:$0xff]  ;;  %v13215_v54 = vld [vmem:[#allocation40_spill] sm:$0xff] }
 0xb61   :  { %v1499_v10 = vpop.permute.xlu1 %1498 }
 0xb62   :  { %v1502_v13 = vsel %vm365_vm1, %v1501_v45, %v1499_v10 }
 0xb63   :  { %7636 = vmatmul.mubr.msk.f32.vlgmr.msra.gmra.mxu0 %vm367_vm2, %v1502_v13  ;;  %v1579_v62 = vpop.permute.xlu0 %1578  ;;  %v13216_v13 = vld [vmem:[#allocation42_spill] sm:$0xff] }
 0xb64   :  { %v1584_v15 = vsel %vm363_vm0, %v10410_v24, %v1579_v62  ;;  %1803 = vmatpush1.msra.mxu0 %v10426_v33  ;;  %1854 = vmatprep.mubr.f32.mxu0 %v13182_v37  ;;  %v13208_v24 = vld [vmem:[#allocation35_spill] sm:$0xff] }
 0xb65   :  { %v1582_v19 = vpop.permute.xlu1 %1581  ;;  %1804 = vmatprep.subr.mxu0 %v10433_v36 }
 0xb66   :  { %v1585_v30 = vsel %vm365_vm1, %v1584_v15, %v1582_v19  ;;  %1805 = vmatpush1.msra.mxu0 %v10440_v39 }
 0xb67   :  { %7637 = vmatmul.mubr.msk.f32.vlgmr.msra.gmra.mxu1 %vm367_vm2, %v1585_v30  ;;  %1806 = vmatprep.subr.mxu0 %v10447_v40 }
 0xb68   :  { %1807 = vmatpush1.msra.mxu0 %v10453_v41  ;;  %1886 = vmatpush1.msra.mxu1 %v10459_v4 }
 0xb69   :  { %1808 = vmatprep.subr.mxu0 %v10465_v61  ;;  %1887 = vmatprep.subr.mxu1 %v10471_v60 }
 0xb6a   :  { %1809 = vmatpush1.msra.mxu0 %v10477_v63  ;;  %1888 = vmatpush1.msra.mxu1 %v10483_v50 }
 0xb6b   :  { %1810 = vmatprep.subr.mxu0 %v10489_v49  ;;  %1889 = vmatprep.subr.mxu1 %v10495_v44 }
 0xb6c   :  { %1811 = vmatpush1.msra.mxu0 %v10501_v58  ;;  %1890 = vmatpush1.msra.mxu1 %v10507_v56 }
 0xb6d   :  { %1812 = vmatprep.subr.mxu0 %v10513_v5  ;;  %1891 = vmatprep.subr.mxu1 %v10519_v48 }
 0xb6e   :  { %1813 = vmatpush1.msra.mxu0 %v10525_v57  ;;  %1892 = vmatpush1.msra.mxu1 %v10531_v51 }
 0xb6f   :  { %1814 = vmatprep.subr.mxu0 %v10537_v59  ;;  %1893 = vmatprep.subr.mxu1 %v10543_v35 }
 0xb70   :  { %1815 = vmatpush1.msra.mxu0 %v10549_v43  ;;  %1894 = vmatpush1.msra.mxu1 %v10555_v1 }
 0xb71   :  { %1816 = vmatprep.subr.mxu0 %v10561_v2  ;;  %1895 = vmatprep.subr.mxu1 %v10567_v3 }
 0xb72   :  { %1817 = vmatpush1.msra.mxu0 %v10573_v6  ;;  %1896 = vmatpush1.msra.mxu1 %v10579_v9 }
 0xb73   :  { %1818 = vmatprep.subr.mxu0 %v10585_v11  ;;  %1897 = vmatprep.subr.mxu1 %v10591_v12 }
 0xb74   :  { %1819 = vmatpush1.msra.mxu0 %v10597_v14  ;;  %1898 = vmatpush1.msra.mxu1 %v10603_v0 }
 0xb75   :  { %1820 = vmatprep.subr.mxu0 %v10609_v16  ;;  %1899 = vmatprep.subr.mxu1 %v10615_v17 }
 0xb76   :  { %1821 = vmatpush1.msra.mxu0 %v10621_v18  ;;  %1900 = vmatpush1.msra.mxu1 %v10627_v53 }
 0xb77   :  { %1901 = vmatprep.subr.mxu1 %v10633_v20  ;;  %1937 = vmatprep.mubr.f32.mxu1 %v13182_v37 }
 0xb78   :  { %1902 = vmatpush1.msra.mxu1 %v13208_v24  ;;  %2086 = vmatprep.subr.mxu0 %v13209_v28 }
 0xb79   :  { %1903 = vmatprep.subr.mxu1 %v13210_v52 }
 0xb7a   :  { %1904 = vmatpush1.msra.mxu1 %v13211_v32 }
 0xb7b   :  { %2169 = vmatprep.subr.mxu1 %v13212_v25 }
 0xc23   :  { %v1572_v38 = vpop.f32.mrf.mxu0 }
 0xc24   :  { %v1573_v31 = vadd.f32 %v1572_v38, %v13213_v47 }
 0xc25   :  { %v1574_v8 = vpop.f32.mrf.mxu0 }
 0xc26   :  { %v1575_v55 = vadd.f32 %v1574_v8, %v13214_v34  ;;  %1667 = vrot.lane.b32.xlu0 %v1573_v31, %s9687_s22  ;;  %v7638_v15 = vmul.f32 -1.442695, %v1573_v31 }
 0xc27   :  { %v1655_v42 = vpop.f32.mrf.mxu1 }
 0xc28   :  { %v1656_v45 = vadd.f32 %v1655_v42, %v13215_v54  ;;  %1693 = vrot.lane.b32.xlu1 %v1575_v55, %s9687_s22  ;;  %v7639_v19 = vmul.f32 -1.442695, %v1575_v55  ;;  %9049 = vpow2.f32 %v7638_v15 }
 0xc29   :  { %v1657_v10 = vpop.f32.mrf.mxu1 }
 0xc2a   :  { %v1658_v62 = vadd.f32 %v1657_v10, %v13216_v13  ;;  %1719 = vrot.lane.b32.xlu0 %v1656_v45, %s9687_s22  ;;  %v7640_v30 = vmul.f32 -1.442695, %v1656_v45  ;;  %9051 = vpow2.f32 %v7639_v19 }
 0xc2c   :  { %1745 = vrot.lane.b32.xlu1 %v1658_v62, %s9687_s22  ;;  %v7641_v38 = vmul.f32 -1.442695, %v1658_v62  ;;  %9053 = vpow2.f32 %v7640_v30 }
 0xc2e   :  { %9055 = vpow2.f32 %v7641_v38 }
 0xc35   :  { %v9050_v8 = vpop.eup %9049 }
 0xc36   :  { %v1663_v42 = vadd.f32 1.0, %v9050_v8 }
 0xc37   :  { %v9052_v29 = vpop.eup %9051 }
 0xc38   :  { %v1689_v23 = vadd.f32 1.0, %v9052_v29  ;;  %9057 = vrcp.f32 %v1663_v42 }
 0xc39   :  { %v9054_v21 = vpop.eup %9053 }
 0xc3a   :  { %v1715_v10 = vadd.f32 1.0, %v9054_v21  ;;  %9059 = vrcp.f32 %v1689_v23 }
 0xc3b   :  { %v9056_v22 = vpop.eup %9055 }
 0xc3c   :  { %v1741_v13 = vadd.f32 1.0, %v9056_v22  ;;  %9061 = vrcp.f32 %v1715_v10 }
 0xc3e   :  { %9063 = vrcp.f32 %v1741_v13 }
 0xc45   :  { %v9058_v54 = vpop.eup %9057 }
 0xc47   :  { %v9060_v47 = vpop.eup %9059 }
 0xc49   :  { %v9062_v30 = vpop.eup %9061 }
 0xc4b   :  { %v9064_v29 = vpop.eup %9063 }
 0xc4c   :  { %v1755_v32 = vsub.f32 1.0, %v9064_v29 }
 0xc98   :  { %v1668_v34 = vpop.permute.xlu0 %1667 }
 0xc99   :  { %v1670_v15 = vmul.f32 %v9058_v54, %v1668_v34 }
 0xc9a   :  { %v1694_v19 = vpop.permute.xlu1 %1693 }
 0xc9b   :  { %v1696_v25 = vmul.f32 %v9060_v47, %v1694_v19  ;;  %1672 = vrot.lane.b32.xlu0 %v1670_v15, %s9688_s16 }
 0xc9c   :  { %v1720_v38 = vpop.permute.xlu0 %1719 }
 0xc9d   :  { %v1722_v8 = vmul.f32 %v9062_v30, %v1720_v38  ;;  %1698 = vrot.lane.b32.xlu1 %v1696_v25, %s9688_s16 }
 0xc9e   :  { %v1746_v42 = vpop.permute.xlu1 %1745 }
 0xc9f   :  { %v1748_v21 = vmul.f32 %v9064_v29, %v1746_v42  ;;  %1724 = vrot.lane.b32.xlu0 %v1722_v8, %s9688_s16 }
 0xca1   :  { %1750 = vrot.lane.b32.xlu1 %v1748_v21, %s9688_s16 }
 0xd0d   :  { %v1673_v22 = vpop.permute.xlu0 %1672 }
 0xd0e   :  { %v1675_v23 = vadd.f32 %v1673_v22, %v1573_v31 }
 0xd0f   :  { %v1699_v34 = vpop.permute.xlu1 %1698 }
 0xd10   :  { %9065 = vtanh.f32 %v1675_v23  ;;  %v1701_v13 = vadd.f32 %v1699_v34, %v1575_v55  ;;  %v1677_v55 = vsub.f32 1.0, %v9058_v54 }
 0xd11   :  { %v1725_v10 = vpop.permute.xlu0 %1724 }
 0xd12   :  { %9067 = vtanh.f32 %v1701_v13  ;;  %v1727_v15 = vadd.f32 %v1725_v10, %v1656_v45  ;;  %v13217_v45 = vmin.f32 %v10685_v27, 5.0  ;;  %v1709_v10 = vmul.f32 %v9060_v47, %v10697_v26 }
 0xd13   :  { %v1751_v19 = vpop.permute.xlu1 %1750 }
 0xd14   :  { %9069 = vtanh.f32 %v1727_v15  ;;  %v1753_v38 = vadd.f32 %v1751_v19, %v1658_v62  ;;  %v1683_v22 = vmul.f32 %v9058_v54, %v13217_v45  ;;  %v1703_v62 = vsub.f32 1.0, %v9060_v47 }
 0xd15   :  { %v1729_v19 = vsub.f32 1.0, %v9062_v30 }
 0xd16   :  { %9071 = vtanh.f32 %v1753_v38  ;;  %v13218_v38 = vmin.f32 %v10691_v7, 5.0 }
 0xd1d   :  { %v9066_v25 = vpop.eup %9065 }
 0xd1e   :  { %1679 = vrot.lane.b32.xlu0 %v9066_v25, %s9689_s9  ;;  %v1735_v25 = vmul.f32 %v9062_v30, %v13218_v38 }
 0xd1f   :  { %v9068_v42 = vpop.eup %9067 }
 0xd20   :  { %1705 = vrot.lane.b32.xlu1 %v9068_v42, %s9689_s9 }
 0xd21   :  { %v9070_v8 = vpop.eup %9069 }
 0xd22   :  { %1731 = vrot.lane.b32.xlu0 %v9070_v8, %s9689_s9 }
 0xd23   :  { %v9072_v31 = vpop.eup %9071 }
 0xd24   :  { %1757 = vrot.lane.b32.xlu1 %v9072_v31, %s9689_s9 }
 0xd90   :  { %v1680_v21 = vpop.permute.xlu0 %1679 }
 0xd91   :  { %v1682_v23 = vmul.f32 %v1680_v21, %v1677_v55  ;;  %v1761_v55 = vmul.f32 %v9064_v29, %v10705_v46  ;;  %v13219_v29 = vld [vmem:[#allocation48_spill] sm:$0xff] }
 0xd92   :  { %v1706_v34 = vpop.permute.xlu1 %1705 }
 0xd93   :  { %v10777_v13 = vadd.f32 %v1683_v22, %v1682_v23  ;;  %v1708_v15 = vmul.f32 %v1706_v34, %v1703_v62 }
 0xd94   :  { %v1732_v42 = vpop.permute.xlu0 %1731 }
 0xd95   :  { %v1710_v8 = vadd.f32 %v1709_v10, %v1708_v15  ;;  %v1734_v31 = vmul.f32 %v1732_v42, %v1729_v19  ;;  %v13132_v52 = vmin.f32 %v10777_v13, 5.0  ;;  %v13220_v10 = vld [vmem:[#allocation47_spill] sm:$0xff] }
 0xd96   :  { %v1758_v27 = vpop.permute.xlu1 %1757  ;;  %v13222_v42 = vld [vmem:[#allocation51_spill] sm:$0xff] }
 0xd97   :  { %v10783_v54 = vadd.f32 %v1735_v25, %v1734_v31  ;;  %v1760_v21 = vmul.f32 %v1758_v27, %v1755_v32  ;;  %1779 = vrot.lane.b32.xlu0 %v13132_v52, %s9690_s5  ;;  %v10789_v47 = vmin.f32 %v1710_v8, 5.0  ;;  %v13221_v25 = vld [vmem:[#allocation50_spill] sm:$0xff]  ;;  %v13223_v8 = vld [vmem:[#allocation52_spill] sm:$0xff]  ;;  %v13224_v27 = vld [vmem:[#allocation39_spill] sm:$0xff] }
 0xd99   :  { %v1762_v7 = vadd.f32 %v1761_v55, %v1760_v21  ;;  %1782 = vrot.lane.b32.xlu1 %v10789_v47, %s9691_s0  ;;  %v13131_v30 = vmin.f32 %v10783_v54, 5.0 }
 0xd9b   :  { %1862 = vrot.lane.b32.xlu0 %v13131_v30, %s9690_s5  ;;  %v10797_v45 = vmin.f32 %v1762_v7, 5.0  ;;  %v13225_v7 = vld [vmem:[#allocation41_spill] sm:$0xff] }
 0xd9d   :  { %1865 = vrot.lane.b32.xlu1 %v10797_v45, %s9691_s0 }
 0xe09   :  { %v1780_v32 = vpop.permute.xlu0 %1779 }
 0xe0a   :  { %v1785_v22 = vsel %vm363_vm0, %v13219_v29, %v1780_v32 }
 0xe0b   :  { %v1783_v23 = vpop.permute.xlu1 %1782 }
 0xe0c   :  { %v1786_v62 = vsel %vm365_vm1, %v1785_v22, %v1783_v23  ;;  %v13226_v22 = vld [vmem:[#allocation40_spill] sm:$0xff] }
 0xe0d   :  { %7644 = vmatmul.mubr.msk.f32.vlgmr.msra.gmra.mxu0 %vm367_vm2, %v1786_v62  ;;  %v1863_v34 = vpop.permute.xlu0 %1862  ;;  %v13227_v62 = vld [vmem:[#allocation42_spill] sm:$0xff] }
 0xe0e   :  { %v1868_v15 = vsel %vm363_vm0, %v13220_v10, %v1863_v34  ;;  %2087 = vmatpush1.msra.mxu0 %v10426_v33  ;;  %2138 = vmatprep.mubr.f32.mxu0 %v13182_v37 }
 0xe0f   :  { %v1866_v19 = vpop.permute.xlu1 %1865  ;;  %2088 = vmatprep.subr.mxu0 %v10433_v36 }
 0xe10   :  { %v1869_v38 = vsel %vm365_vm1, %v1868_v15, %v1866_v19  ;;  %2089 = vmatpush1.msra.mxu0 %v10440_v39 }
 0xe11   :  { %7645 = vmatmul.mubr.msk.f32.vlgmr.msra.gmra.mxu1 %vm367_vm2, %v1869_v38  ;;  %2090 = vmatprep.subr.mxu0 %v10447_v40 }
 0xe12   :  { %2091 = vmatpush1.msra.mxu0 %v10453_v41  ;;  %2170 = vmatpush1.msra.mxu1 %v10459_v4 }
 0xe13   :  { %2092 = vmatprep.subr.mxu0 %v10465_v61  ;;  %2171 = vmatprep.subr.mxu1 %v10471_v60 }
 0xe14   :  { %2093 = vmatpush1.msra.mxu0 %v10477_v63  ;;  %2172 = vmatpush1.msra.mxu1 %v10483_v50 }
 0xe15   :  { %2094 = vmatprep.subr.mxu0 %v10489_v49  ;;  %2173 = vmatprep.subr.mxu1 %v10495_v44 }
 0xe16   :  { %2095 = vmatpush1.msra.mxu0 %v10501_v58  ;;  %2174 = vmatpush1.msra.mxu1 %v10507_v56 }
 0xe17   :  { %2096 = vmatprep.subr.mxu0 %v10513_v5  ;;  %2175 = vmatprep.subr.mxu1 %v10519_v48 }
 0xe18   :  { %2097 = vmatpush1.msra.mxu0 %v10525_v57  ;;  %2176 = vmatpush1.msra.mxu1 %v10531_v51 }
 0xe19   :  { %2098 = vmatprep.subr.mxu0 %v10537_v59  ;;  %2177 = vmatprep.subr.mxu1 %v10543_v35 }
 0xe1a   :  { %2099 = vmatpush1.msra.mxu0 %v10549_v43  ;;  %2178 = vmatpush1.msra.mxu1 %v10555_v1 }
 0xe1b   :  { %2100 = vmatprep.subr.mxu0 %v10561_v2  ;;  %2179 = vmatprep.subr.mxu1 %v10567_v3 }
 0xe1c   :  { %2101 = vmatpush1.msra.mxu0 %v10573_v6  ;;  %2180 = vmatpush1.msra.mxu1 %v10579_v9 }
 0xe1d   :  { %2102 = vmatprep.subr.mxu0 %v10585_v11  ;;  %2181 = vmatprep.subr.mxu1 %v10591_v12 }
 0xe1e   :  { %2103 = vmatpush1.msra.mxu0 %v10597_v14  ;;  %2182 = vmatpush1.msra.mxu1 %v10603_v0 }
 0xe1f   :  { %2104 = vmatprep.subr.mxu0 %v10609_v16  ;;  %2183 = vmatprep.subr.mxu1 %v10615_v17 }
 0xe20   :  { %2105 = vmatpush1.msra.mxu0 %v10621_v18  ;;  %2184 = vmatpush1.msra.mxu1 %v10627_v53 }
 0xe21   :  { %2185 = vmatprep.subr.mxu1 %v10633_v20  ;;  %2221 = vmatprep.mubr.f32.mxu1 %v13182_v37 }
 0xe22   :  { %2186 = vmatpush1.msra.mxu1 %v13208_v24  ;;  %2370 = vmatprep.subr.mxu0 %v13209_v28 }
 0xe23   :  { %2187 = vmatprep.subr.mxu1 %v13221_v25 }
 0xe24   :  { %2188 = vmatpush1.msra.mxu1 %v13222_v42 }
 0xe25   :  { %2453 = vmatprep.subr.mxu1 %v13223_v8 }
 0xecd   :  { %v1856_v31 = vpop.f32.mrf.mxu0 }
 0xece   :  { %v1857_v55 = vadd.f32 %v1856_v31, %v13224_v27 }
 0xecf   :  { %v1858_v21 = vpop.f32.mrf.mxu0 }
 0xed0   :  { %v1859_v32 = vadd.f32 %v1858_v21, %v13225_v7  ;;  %1951 = vrot.lane.b32.xlu0 %v1857_v55, %s9687_s22  ;;  %v7646_v10 = vmul.f32 -1.442695, %v1857_v55 }
 0xed1   :  { %v1939_v29 = vpop.f32.mrf.mxu1 }
 0xed2   :  { %v1940_v23 = vadd.f32 %v1939_v29, %v13226_v22  ;;  %1977 = vrot.lane.b32.xlu1 %v1859_v32, %s9687_s22  ;;  %v7647_v15 = vmul.f32 -1.442695, %v1859_v32  ;;  %9073 = vpow2.f32 %v7646_v10 }
 0xed3   :  { %v1941_v28 = vpop.f32.mrf.mxu1 }
 0xed4   :  { %v1942_v34 = vadd.f32 %v1941_v28, %v13227_v62  ;;  %2003 = vrot.lane.b32.xlu0 %v1940_v23, %s9687_s22  ;;  %v7648_v19 = vmul.f32 -1.442695, %v1940_v23  ;;  %9075 = vpow2.f32 %v7647_v15 }
 0xed6   :  { %2029 = vrot.lane.b32.xlu1 %v1942_v34, %s9687_s22  ;;  %v7649_v38 = vmul.f32 -1.442695, %v1942_v34  ;;  %9077 = vpow2.f32 %v7648_v19 }
 0xed8   :  { %9079 = vpow2.f32 %v7649_v38 }
 0xedf   :  { %v9074_v8 = vpop.eup %9073 }
 0xee0   :  { %v1947_v21 = vadd.f32 1.0, %v9074_v8 }
 0xee1   :  { %v9076_v31 = vpop.eup %9075 }
 0xee2   :  { %v1973_v30 = vadd.f32 1.0, %v9076_v31  ;;  %9081 = vrcp.f32 %v1947_v21 }
 0xee3   :  { %v9078_v29 = vpop.eup %9077 }
 0xee4   :  { %v1999_v28 = vadd.f32 1.0, %v9078_v29  ;;  %9083 = vrcp.f32 %v1973_v30 }
 0xee5   :  { %v9080_v52 = vpop.eup %9079 }
 0xee6   :  { %v2025_v46 = vadd.f32 1.0, %v9080_v52  ;;  %9085 = vrcp.f32 %v1999_v28 }
 0xee8   :  { %9087 = vrcp.f32 %v2025_v46 }
 0xeef   :  { %v9082_v26 = vpop.eup %9081 }
 0xef1   :  { %v9084_v22 = vpop.eup %9083 }
 0xef3   :  { %v9086_v19 = vpop.eup %9085 }
 0xef5   :  { %v9088_v31 = vpop.eup %9087 }
 0xef6   :  { %v2039_v27 = vsub.f32 1.0, %v9088_v31 }
 0xf42   :  { %v1952_v62 = vpop.permute.xlu0 %1951 }
 0xf43   :  { %v1954_v10 = vmul.f32 %v9082_v26, %v1952_v62 }
 0xf44   :  { %v1978_v15 = vpop.permute.xlu1 %1977 }
 0xf45   :  { %v1980_v7 = vmul.f32 %v9084_v22, %v1978_v15  ;;  %1956 = vrot.lane.b32.xlu0 %v1954_v10, %s9688_s16 }
 0xf46   :  { %v2004_v38 = vpop.permute.xlu0 %2003 }
 0xf47   :  { %v2006_v8 = vmul.f32 %v9086_v19, %v2004_v38  ;;  %1982 = vrot.lane.b32.xlu1 %v1980_v7, %s9688_s16 }
 0xf48   :  { %v2030_v21 = vpop.permute.xlu1 %2029 }
 0xf49   :  { %v2032_v29 = vmul.f32 %v9088_v31, %v2030_v21  ;;  %2008 = vrot.lane.b32.xlu0 %v2006_v8, %s9688_s16 }
 0xf4b   :  { %2034 = vrot.lane.b32.xlu1 %v2032_v29, %s9688_s16 }
 0xfb7   :  { %v1957_v46 = vpop.permute.xlu0 %1956 }
 0xfb8   :  { %v1959_v52 = vadd.f32 %v1957_v46, %v1857_v55 }
 0xfb9   :  { %v1983_v30 = vpop.permute.xlu1 %1982 }
 0xfba   :  { %9089 = vtanh.f32 %v1959_v52  ;;  %v1985_v62 = vadd.f32 %v1983_v30, %v1859_v32  ;;  %v1961_v32 = vsub.f32 1.0, %v9082_v26 }
 0xfbb   :  { %v2009_v28 = vpop.permute.xlu0 %2008 }
 0xfbc   :  { %9091 = vtanh.f32 %v1985_v62  ;;  %v2011_v10 = vadd.f32 %v2009_v28, %v1940_v23  ;;  %v13228_v23 = vmin.f32 %v10777_v13, 5.0  ;;  %v1993_v28 = vmul.f32 %v9084_v22, %v10789_v47 }
 0xfbd   :  { %v2035_v15 = vpop.permute.xlu1 %2034 }
 0xfbe   :  { %9093 = vtanh.f32 %v2011_v10  ;;  %v2037_v38 = vadd.f32 %v2035_v15, %v1942_v34  ;;  %v1967_v46 = vmul.f32 %v9082_v26, %v13228_v23  ;;  %v1987_v34 = vsub.f32 1.0, %v9084_v22 }
 0xfbf   :  { %v2013_v15 = vsub.f32 1.0, %v9086_v19 }
 0xfc0   :  { %9095 = vtanh.f32 %v2037_v38  ;;  %v13229_v38 = vmin.f32 %v10783_v54, 5.0 }
 0xfc7   :  { %v9090_v7 = vpop.eup %9089 }
 0xfc8   :  { %1963 = vrot.lane.b32.xlu0 %v9090_v7, %s9689_s9  ;;  %v2019_v7 = vmul.f32 %v9086_v19, %v13229_v38 }
 0xfc9   :  { %v9092_v21 = vpop.eup %9091 }
 0xfca   :  { %1989 = vrot.lane.b32.xlu1 %v9092_v21, %s9689_s9 }
 0xfcb   :  { %v9094_v8 = vpop.eup %9093 }
 0xfcc   :  { %2015 = vrot.lane.b32.xlu0 %v9094_v8, %s9689_s9 }
 0xfcd   :  { %v9096_v55 = vpop.eup %9095 }
 0xfce   :  { %2041 = vrot.lane.b32.xlu1 %v9096_v55, %s9689_s9 }
0x103a   :  { %v1964_v29 = vpop.permute.xlu0 %1963 }
0x103b   :  { %v1966_v52 = vmul.f32 %v1964_v29, %v1961_v32  ;;  %v2045_v32 = vmul.f32 %v9088_v31, %v10797_v45 }
0x103c   :  { %v1990_v30 = vpop.permute.xlu1 %1989 }
0x103d   :  { %v10869_v62 = vadd.f32 %v1967_v46, %v1966_v52  ;;  %v1992_v10 = vmul.f32 %v1990_v30, %v1987_v34  ;;  %v7651_v34 = vld [vmem:[%s13172_s18 + $0x8] sm:$0xff] }
0x103e   :  { %v2016_v21 = vpop.permute.xlu0 %2015 }
0x103f   :  { %v1994_v8 = vadd.f32 %v1993_v28, %v1992_v10  ;;  %v2018_v55 = vmul.f32 %v2016_v21, %v2013_v15  ;;  %v1969_v42 = vmin.f32 %v10869_v62, 5.0 }
0x1040   :  { %v2042_v13 = vpop.permute.xlu1 %2041 }
0x1041   :  { %v10875_v26 = vadd.f32 %v2019_v7, %v2018_v55  ;;  %v2044_v29 = vmul.f32 %v2042_v13, %v2039_v27  ;;  %2063 = vrot.lane.b32.xlu0 %v1969_v42, %s9690_s5  ;;  %v10881_v22 = vmin.f32 %v1994_v8, 5.0  ;;  %v7650_v27 = vld [vmem:[%s13172_s18 + $0x30] sm:$0xff] }
0x1043   :  { %v2046_v54 = vadd.f32 %v2045_v32, %v2044_v29  ;;  %2066 = vrot.lane.b32.xlu1 %v10881_v22, %s9691_s0  ;;  %v2021_v19 = vmin.f32 %v10875_v26, 5.0 }
0x1045   :  { %2146 = vrot.lane.b32.xlu0 %v2021_v19, %s9690_s5  ;;  %v10889_v23 = vmin.f32 %v2046_v54, 5.0 }
0x1047   :  { %2149 = vrot.lane.b32.xlu1 %v10889_v23, %s9691_s0 }
0x10b3   :  { %v2064_v31 = vpop.permute.xlu0 %2063 }
0x10b4   :  { %v2069_v46 = vsel %vm363_vm0, %v7650_v27, %v2064_v31 }
0x10b5   :  { %v2067_v52 = vpop.permute.xlu1 %2066 }
0x10b6   :  { %v2070_v30 = vsel %vm365_vm1, %v2069_v46, %v2067_v52 }
0x10b7   :  { %7652 = vmatmul.mubr.msk.f32.vlgmr.msra.gmra.mxu0 %vm367_vm2, %v2070_v30  ;;  %v2147_v28 = vpop.permute.xlu0 %2146 }
0x10b8   :  { %v2152_v10 = vsel %vm363_vm0, %v7651_v34, %v2147_v28  ;;  %2371 = vmatpush1.msra.mxu0 %v10426_v33  ;;  %2422 = vmatprep.mubr.f32.mxu0 %v13182_v37  ;;  %v13230_v33 = vld [vmem:[#allocation51_spill] sm:$0xff] }
0x10b9   :  { %v2150_v15 = vpop.permute.xlu1 %2149  ;;  %2372 = vmatprep.subr.mxu0 %v10433_v36 }
0x10ba   :  { %v2153_v38 = vsel %vm365_vm1, %v2152_v10, %v2150_v15  ;;  %2373 = vmatpush1.msra.mxu0 %v10440_v39  ;;  %v13231_v39 = vld [vmem:[#allocation39_spill] sm:$0xff] }
0x10bb   :  { %7653 = vmatmul.mubr.msk.f32.vlgmr.msra.gmra.mxu1 %vm367_vm2, %v2153_v38  ;;  %2374 = vmatprep.subr.mxu0 %v10447_v40 }
0x10bc   :  { %2375 = vmatpush1.msra.mxu0 %v10453_v41  ;;  %2454 = vmatpush1.msra.mxu1 %v10459_v4  ;;  %v13232_v4 = vld [vmem:[#allocation41_spill] sm:$0xff] }
0x10bd   :  { %2376 = vmatprep.subr.mxu0 %v10465_v61  ;;  %2455 = vmatprep.subr.mxu1 %v10471_v60 }
0x10be   :  { %2377 = vmatpush1.msra.mxu0 %v10477_v63  ;;  %2456 = vmatpush1.msra.mxu1 %v10483_v50  ;;  %v13233_v63 = vld [vmem:[#allocation40_spill] sm:$0xff] }
0x10bf   :  { %2378 = vmatprep.subr.mxu0 %v10489_v49  ;;  %2457 = vmatprep.subr.mxu1 %v10495_v44  ;;  %v13234_v44 = vld [vmem:[#allocation42_spill] sm:$0xff] }
0x10c0   :  { %2379 = vmatpush1.msra.mxu0 %v10501_v58  ;;  %2458 = vmatpush1.msra.mxu1 %v10507_v56 }
0x10c1   :  { %2380 = vmatprep.subr.mxu0 %v10513_v5  ;;  %2459 = vmatprep.subr.mxu1 %v10519_v48 }
0x10c2   :  { %2381 = vmatpush1.msra.mxu0 %v10525_v57  ;;  %2460 = vmatpush1.msra.mxu1 %v10531_v51 }
0x10c3   :  { %2382 = vmatprep.subr.mxu0 %v10537_v59  ;;  %2461 = vmatprep.subr.mxu1 %v10543_v35 }
0x10c4   :  { %2383 = vmatpush1.msra.mxu0 %v10549_v43  ;;  %2462 = vmatpush1.msra.mxu1 %v10555_v1 }
0x10c5   :  { %2384 = vmatprep.subr.mxu0 %v10561_v2  ;;  %2463 = vmatprep.subr.mxu1 %v10567_v3 }
0x10c6   :  { %2385 = vmatpush1.msra.mxu0 %v10573_v6  ;;  %2464 = vmatpush1.msra.mxu1 %v10579_v9 }
0x10c7   :  { %2386 = vmatprep.subr.mxu0 %v10585_v11  ;;  %2465 = vmatprep.subr.mxu1 %v10591_v12 }
0x10c8   :  { %2387 = vmatpush1.msra.mxu0 %v10597_v14  ;;  %2466 = vmatpush1.msra.mxu1 %v10603_v0 }
0x10c9   :  { %2388 = vmatprep.subr.mxu0 %v10609_v16  ;;  %2467 = vmatprep.subr.mxu1 %v10615_v17 }
0x10ca   :  { %2389 = vmatpush1.msra.mxu0 %v10621_v18  ;;  %2468 = vmatpush1.msra.mxu1 %v10627_v53 }
0x10cb   :  { %2469 = vmatprep.subr.mxu1 %v10633_v20  ;;  %2505 = vmatprep.mubr.f32.mxu1 %v13182_v37 }
0x10cc   :  { %2470 = vmatpush1.msra.mxu1 %v13208_v24  ;;  %8128 = vmatprep.subr.mxu0 %v13182_v37 }
0x10cd   :  { %2471 = vmatprep.subr.mxu1 %v13221_v25 }
0x10ce   :  { %2472 = vmatpush1.msra.mxu1 %v13230_v33 }
0x10cf   :  { %8158 = vmatprep.subr.mxu1 %v13182_v37 }
0x1177   :  { %v2140_v36 = vpop.f32.mrf.mxu0 }
0x1178   :  { %v2141_v40 = vadd.f32 %v2140_v36, %v13231_v39 }
0x1179   :  { %v2142_v41 = vpop.f32.mrf.mxu0 }
0x117a   :  { %v2143_v61 = vadd.f32 %v2142_v41, %v13232_v4  ;;  %2235 = vrot.lane.b32.xlu0 %v2141_v40, %s9687_s22  ;;  %v7654_v56 = vmul.f32 -1.442695, %v2141_v40 }
0x117b   :  { %v2223_v60 = vpop.f32.mrf.mxu1 }
0x117c   :  { %v2224_v50 = vadd.f32 %v2223_v60, %v13233_v63  ;;  %2261 = vrot.lane.b32.xlu1 %v2143_v61, %s9687_s22  ;;  %v7655_v5 = vmul.f32 -1.442695, %v2143_v61  ;;  %9097 = vpow2.f32 %v7654_v56 }
0x117d   :  { %v2225_v49 = vpop.f32.mrf.mxu1 }
0x117e   :  { %v2226_v58 = vadd.f32 %v2225_v49, %v13234_v44  ;;  %2287 = vrot.lane.b32.xlu0 %v2224_v50, %s9687_s22  ;;  %v7656_v48 = vmul.f32 -1.442695, %v2224_v50  ;;  %9099 = vpow2.f32 %v7655_v5 }
0x1180   :  { %2313 = vrot.lane.b32.xlu1 %v2226_v58, %s9687_s22  ;;  %v7657_v57 = vmul.f32 -1.442695, %v2226_v58  ;;  %9101 = vpow2.f32 %v7656_v48 }
0x1182   :  { %9103 = vpow2.f32 %v7657_v57 }
0x1189   :  { %v9098_v51 = vpop.eup %9097 }
0x118a   :  { %v2231_v35 = vadd.f32 1.0, %v9098_v51 }
0x118b   :  { %v9100_v59 = vpop.eup %9099 }
0x118c   :  { %v2257_v1 = vadd.f32 1.0, %v9100_v59  ;;  %9105 = vrcp.f32 %v2231_v35  ;;  %v7658_v59 = vld [vmem:[%s13172_s18 + $0x38] sm:$0xff] }
0x118d   :  { %v9102_v43 = vpop.eup %9101 }
0x118e   :  { %v2283_v3 = vadd.f32 1.0, %v9102_v43  ;;  %9107 = vrcp.f32 %v2257_v1 }
0x118f   :  { %v9104_v2 = vpop.eup %9103 }
0x1190   :  { %v2309_v6 = vadd.f32 1.0, %v9104_v2  ;;  %9109 = vrcp.f32 %v2283_v3  ;;  %v2345_v2 = vld [vmem:[%s13172_s18] sm:$0xff] }
0x1192   :  { %9111 = vrcp.f32 %v2309_v6 }
0x1199   :  { %v9106_v9 = vpop.eup %9105 }
0x119a   :  { %v2245_v34 = vsub.f32 1.0, %v9106_v9  ;;  %v2251_v28 = vmul.f32 %v9106_v9, %v1969_v42 }
0x119b   :  { %v9108_v14 = vpop.eup %9107 }
0x119c   :  { %v2271_v15 = vsub.f32 1.0, %v9108_v14  ;;  %v2277_v36 = vmul.f32 %v9108_v14, %v10881_v22 }
0x119d   :  { %v9110_v17 = vpop.eup %9109 }
0x119e   :  { %v2297_v41 = vsub.f32 1.0, %v9110_v17 }
0x119f   :  { %v9112_v20 = vpop.eup %9111 }
0x11a0   :  { %v2323_v56 = vsub.f32 1.0, %v9112_v20  ;;  %v2329_v48 = vmul.f32 %v9112_v20, %v10889_v23 }
0x11ec   :  { %v2236_v11 = vpop.permute.xlu0 %2235 }
0x11ed   :  { %v2238_v12 = vmul.f32 %v9106_v9, %v2236_v11 }
0x11ee   :  { %v2262_v0 = vpop.permute.xlu1 %2261 }
0x11ef   :  { %v2264_v16 = vmul.f32 %v9108_v14, %v2262_v0  ;;  %2240 = vrot.lane.b32.xlu0 %v2238_v12, %s9688_s16 }
0x11f0   :  { %v2288_v18 = vpop.permute.xlu0 %2287 }
0x11f1   :  { %v2290_v53 = vmul.f32 %v9110_v17, %v2288_v18  ;;  %2266 = vrot.lane.b32.xlu1 %v2264_v16, %s9688_s16 }
0x11f2   :  { %v2314_v24 = vpop.permute.xlu1 %2313 }
0x11f3   :  { %v2316_v25 = vmul.f32 %v9112_v20, %v2314_v24  ;;  %2292 = vrot.lane.b32.xlu0 %v2290_v53, %s9688_s16 }
0x11f5   :  { %2318 = vrot.lane.b32.xlu1 %v2316_v25, %s9688_s16 }
0x1261   :  { %v2241_v7 = vpop.permute.xlu0 %2240 }
0x1262   :  { %v2243_v21 = vadd.f32 %v2241_v7, %v2141_v40 }
0x1263   :  { %v2267_v8 = vpop.permute.xlu1 %2266 }
0x1264   :  { %9113 = vtanh.f32 %v2243_v21  ;;  %v2269_v55 = vadd.f32 %v2267_v8, %v2143_v61  ;;  %v2303_v61 = vmul.f32 %v9110_v17, %v2021_v19 }
0x1265   :  { %v2293_v13 = vpop.permute.xlu0 %2292 }
0x1266   :  { %9115 = vtanh.f32 %v2269_v55  ;;  %v2295_v32 = vadd.f32 %v2293_v13, %v2224_v50 }
0x1267   :  { %v2319_v29 = vpop.permute.xlu1 %2318 }
0x1268   :  { %9117 = vtanh.f32 %v2295_v32  ;;  %v2321_v54 = vadd.f32 %v2319_v29, %v2226_v58 }
0x126a   :  { %9119 = vtanh.f32 %v2321_v54 }
0x1271   :  { %v9114_v27 = vpop.eup %9113 }
0x1272   :  { %2247 = vrot.lane.b32.xlu0 %v9114_v27, %s9689_s9 }
0x1273   :  { %v9116_v31 = vpop.eup %9115 }
0x1274   :  { %2273 = vrot.lane.b32.xlu1 %v9116_v31, %s9689_s9  ;;  %v2639_v31 = vld [vmem:[%s13070_s13 + $0x38] sm:$0xff] }
0x1275   :  { %v9118_v46 = vpop.eup %9117 }
0x1276   :  { %2299 = vrot.lane.b32.xlu0 %v9118_v46, %s9689_s9  ;;  %v2638_v46 = vld [vmem:[%s13070_s13 + $0x30] sm:$0xff] }
0x1277   :  { %v9120_v52 = vpop.eup %9119 }
0x1278   :  { %2325 = vrot.lane.b32.xlu1 %v9120_v52, %s9689_s9 }
0x12e4   :  { %v2248_v30 = vpop.permute.xlu0 %2247 }
0x12e5   :  { %v2250_v10 = vmul.f32 %v2248_v30, %v2245_v34  ;;  %v2637_v34 = vld [vmem:[%s13070_s13 + $0x28] sm:$0xff]  ;;  %v2636_v30 = vld [vmem:[%s13070_s13 + $0x20] sm:$0xff] }
0x12e6   :  { %v2274_v38 = vpop.permute.xlu1 %2273 }
0x12e7   :  { %v10965_v33 = vadd.f32 %v2251_v28, %v2250_v10  ;;  %v2276_v40 = vmul.f32 %v2274_v38, %v2271_v15  ;;  %v2635_v15 = vld [vmem:[%s13070_s13 + $0x18] sm:$0xff]  ;;  %v2634_v38 = vld [vmem:[%s13070_s13 + $0x10] sm:$0xff] }
0x12e8   :  { %v2300_v60 = vpop.permute.xlu0 %2299 }
0x12e9   :  { %v2253_v50 = vmin.f32 %v10965_v33, 5.0  ;;  %v2278_v49 = vadd.f32 %v2277_v36, %v2276_v40  ;;  %v2302_v58 = vmul.f32 %v2300_v60, %v2297_v41  ;;  %v2633_v40 = vld [vmem:[%s13070_s13 + $0x8] sm:$0xff] }
0x12ea   :  { %v2326_v62 = vpop.permute.xlu1 %2325 }
0x12eb   :  { %v10971_v42 = vmin.f32 %v2278_v49, 5.0  ;;  %v10973_v5 = vadd.f32 %v2303_v61, %v2302_v58  ;;  %v2328_v57 = vmul.f32 %v2326_v62, %v2323_v56  ;;  %2347 = vrot.lane.b32.xlu0 %v2253_v50, %s9690_s5 }
0x12ed   :  { %13235 = vst [vmem:[#allocation35_spill] sm:$0xff] %v10971_v42  ;;  %v2305_v26 = vmin.f32 %v10973_v5, 5.0  ;;  %v2330_v19 = vadd.f32 %v2329_v48, %v2328_v57  ;;  %2350 = vrot.lane.b32.xlu1 %v10971_v42, %s9691_s0  ;;  %v11070_v5 = vld [vmem:[%s13074_s17 + $0x10] sm:$0xff] }
0x12ef   :  { %v10982_v51 = vmin.f32 %v2330_v19, 5.0  ;;  %2430 = vrot.lane.b32.xlu0 %v2305_v26, %s9690_s5 }
0x12f1   :  { %2433 = vrot.lane.b32.xlu1 %v10982_v51, %s9691_s0 }
0x135d   :  { %v2348_v35 = vpop.permute.xlu0 %2347 }
0x135e   :  { %v2353_v43 = vsel %vm363_vm0, %v7658_v59, %v2348_v35 }
0x135f   :  { %v2351_v1 = vpop.permute.xlu1 %2350 }
0x1360   :  { %v2354_v3 = vsel %vm365_vm1, %v2353_v43, %v2351_v1 }
0x1361   :  { %7659 = vmatmul.mubr.msk.f32.vlgmr.msra.gmra.mxu0 %vm367_vm2, %v2354_v3  ;;  %v2431_v6 = vpop.permute.xlu0 %2430 }
0x1362   :  { %v2436_v9 = vsel %vm363_vm0, %v2345_v2, %v2431_v6  ;;  %8129 = vmatpush3.msra.mxu0 %v2639_v31  ;;  %8144 = vmatprep.mubr.msk.f32.mxu0 %vm9692_vm3, %v13182_v37 }
0x1363   :  { %v2434_v11 = vpop.permute.xlu1 %2433  ;;  %8130 = vmatprep.subr.mxu0 %v13182_v37 }
0x1364   :  { %v2437_v12 = vsel %vm365_vm1, %v2436_v9, %v2434_v11  ;;  %8131 = vmatpush3.msra.mxu0 %v2638_v46  ;;  %v11065_v11 = vld [vmem:[%s13074_s17 + $0x18] sm:$0xff] }
0x1365   :  { %7660 = vmatmul.mubr.msk.f32.vlgmr.msra.gmra.mxu1 %vm367_vm2, %v2437_v12  ;;  %8132 = vmatprep.subr.mxu0 %v13182_v37  ;;  %v7665_v12 = vld [vmem:[#allocation14] ss:$0 sm:$0xff] }
0x1366   :  { %8133 = vmatpush3.msra.mxu0 %v2637_v34  ;;  %8184 = vmatprep.mubr.msk.f32.mxu1 %vm9692_vm3, %v13182_v37 }
0x1367   :  { %8134 = vmatprep.subr.mxu0 %v13182_v37 }
0x1368   :  { %8135 = vmatpush3.msra.mxu0 %v2636_v30  ;;  %v11118_v30 = vld [vmem:[%s13241_s10 + $0x60] sm:$0xff] }
0x1369   :  { %8136 = vmatprep.subr.mxu0 %v13182_v37  ;;  %8159 = vmatpush3.msra.mxu1 %v11118_v30 }
0x136a   :  { %8137 = vmatpush3.msra.mxu0 %v2635_v15  ;;  %8160 = vmatprep.subr.mxu1 %v13182_v37 }
0x136b   :  { %8138 = vmatprep.subr.mxu0 %v13182_v37 }
0x136c   :  { %8139 = vmatpush3.msra.mxu0 %v2634_v38  ;;  %v11137_v38 = vld [vmem:[%s13241_s10 + $0x48] sm:$0xff] }
0x136d   :  { %8140 = vmatprep.subr.mxu0 %v13182_v37 }
0x136e   :  { %8141 = vmatpush3.msra.mxu0 %v2633_v40  ;;  %v11152_v40 = vld [vmem:[%s13241_s10 + $0x38] sm:$0xff] }
0x136f   :  { %8142 = vmatprep.subr.mxu0 %v13182_v37 }
0x1421   :  { %v2424_v14 = vpop.f32.mrf.mxu0 }
0x1422   :  { %v2425_v0 = vadd.f32 %v2424_v14, %v13231_v39 }
0x1424   :  { %2519 = vrot.lane.b32.xlu0 %v2425_v0, %s9687_s22  ;;  %v7661_v18 = vmul.f32 -1.442695, %v2425_v0 }
0x1425   :  { %v2507_v16 = vpop.f32.mrf.mxu1 }
0x1426   :  { %v2508_v17 = vadd.f32 %v2507_v16, %v13233_v63  ;;  %9121 = vpow2.f32 %v7661_v18 }
0x1427   :  { %v2509_v10 = vpop.f32.mrf.mxu1 }
0x1428   :  { %2571 = vrot.lane.b32.xlu1 %v2508_v17, %s9687_s22  ;;  %v7663_v53 = vmul.f32 -1.442695, %v2508_v17  ;;  %v2510_v36 = vadd.f32 %v2509_v10, %v13234_v44  ;;  %v2632_v44 = vld [vmem:[%s13070_s13] sm:$0xff]  ;;  %v11130_v10 = vld [vmem:[%s13241_s10 + $0x50] sm:$0xff] }
0x1429   :  { %8143 = vmatpush3.msra.mxu0 %v2632_v44  ;;  %v11174_v44 = vld [vmem:[%s13241_s10 + $0x20] sm:$0xff] }
0x142a   :  { %9123 = vpow2.f32 %v7663_v53  ;;  %v7664_v41 = vmul.f32 -1.442695, %v2510_v36  ;;  %8147 = vmatprep.subr.mxu0 %v13182_v37 }
0x1433   :  { %v9122_v20 = vpop.eup %9121 }
0x1434   :  { %v2515_v24 = vadd.f32 1.0, %v9122_v20 }
0x1436   :  { %9125 = vrcp.f32 %v2515_v24 }
0x1437   :  { %v9124_v25 = vpop.eup %9123 }
0x1438   :  { %v2567_v7 = vadd.f32 1.0, %v9124_v25  ;;  %v11087_v25 = vld [vmem:[%s13074_s17 + $0x8] sm:$0xff] }
0x143a   :  { %9127 = vrcp.f32 %v2567_v7  ;;  %v11093_v7 = vld [vmem:[%s13074_s17] sm:$0xff] }
0x1443   :  { %v9126_v21 = vpop.eup %9125 }
0x1444   :  { %v2529_v49 = vsub.f32 1.0, %v9126_v21  ;;  %v2535_v56 = vmul.f32 %v9126_v21, %v2253_v50 }
0x1447   :  { %v11006_v55 = vpop.eup %9127 }
0x1448   :  { %v2581_v1 = vsub.f32 1.0, %v11006_v55  ;;  %v2587_v3 = vmul.f32 %v11006_v55, %v2305_v26  ;;  %v11076_v26 = vpop.f32.mrf.mxu0 }
0x1449   :  { %13236 = vst [vmem:[#allocation49_spill] sm:$0xff] %v11076_v26 }
0x1496   :  { %v2520_v8 = vpop.permute.xlu0 %2519 }
0x1497   :  { %v2522_v39 = vmul.f32 %v9126_v21, %v2520_v8 }
0x1499   :  { %2524 = vrot.lane.b32.xlu0 %v2522_v39, %s9688_s16  ;;  %v13239_v39 = vld [vmem:[#allocation43_spill] sm:$0xff] }
0x149a   :  { %v2572_v63 = vpop.permute.xlu1 %2571 }
0x149b   :  { %v2574_v13 = vmul.f32 %v11006_v55, %v2572_v63  ;;  %v2722_v55 = vld [vmem:[%s13240_s27] sm:$0xff]  ;;  %s9696_s27 = smov 98  }
0x149d   :  { %2576 = vrot.lane.b32.xlu1 %v2574_v13, %s9688_s16 }
0x150b   :  { %v2525_v32 = vpop.permute.xlu0 %2524 }
0x150c   :  { %v2527_v29 = vadd.f32 %v2525_v32, %v2425_v0 }
0x150e   :  { %9129 = vtanh.f32 %v2527_v29 }
0x150f   :  { %v2577_v54 = vpop.permute.xlu1 %2576 }
0x1510   :  { %v2579_v27 = vadd.f32 %v2577_v54, %v2508_v17 }
0x1512   :  { %9131 = vtanh.f32 %v2579_v27 }
0x1513   :  { %9133 = vpow2.f32 %v7664_v41  ;;  %v11159_v41 = vld [vmem:[%s13241_s10 + $0x30] sm:$0xff] }
0x151b   :  { %v9130_v52 = vpop.eup %9129 }
0x151c   :  { %2531 = vrot.lane.b32.xlu0 %v9130_v52, %s9689_s9 }
0x151f   :  { %v9132_v28 = vpop.eup %9131 }
0x1520   :  { %2583 = vrot.lane.b32.xlu1 %v9132_v28, %s9689_s9  ;;  %v9134_v61 = vpop.eup %9133  ;;  %v11123_v28 = vld [vmem:[%s13241_s10 + $0x58] sm:$0xff] }
0x1521   :  { %v2593_v60 = vadd.f32 1.0, %v9134_v61  ;;  %8161 = vmatpush3.msra.mxu1 %v11123_v28 }
0x1522   :  { %8162 = vmatprep.subr.mxu1 %v13182_v37 }
0x1523   :  { %9135 = vrcp.f32 %v2593_v60  ;;  %8163 = vmatpush3.msra.mxu1 %v11130_v10  ;;  %v11166_v60 = vld [vmem:[%s13241_s10 + $0x28] sm:$0xff] }
0x1524   :  { %2597 = vrot.lane.b32.xlu1 %v2510_v36, %s9687_s22  ;;  %8164 = vmatprep.subr.mxu1 %v13182_v37 }
0x1525   :  { %8165 = vmatpush3.msra.mxu1 %v11137_v38 }
0x1526   :  { %8166 = vmatprep.subr.mxu1 %v13182_v37 }
0x1530   :  { %v9136_v59 = vpop.eup %9135 }
0x1531   :  { %v2607_v29 = vsub.f32 1.0, %v9136_v59  ;;  %v2613_v27 = vmul.f32 %v9136_v59, %v10982_v51 }
0x158e   :  { %v2532_v58 = vpop.permute.xlu0 %2531 }
0x158f   :  { %v2534_v62 = vmul.f32 %v2532_v58, %v2529_v49  ;;  %v11181_v49 = vld [vmem:[%s13241_s10 + $0x18] sm:$0xff]  ;;  %v11188_v58 = vld [vmem:[%s13241_s10 + $0x10] sm:$0xff] }
0x1591   :  { %v2536_v48 = vadd.f32 %v2535_v56, %v2534_v62  ;;  %v11195_v56 = vld [vmem:[%s13241_s10 + $0x8] sm:$0xff]  ;;  %v11204_v62 = vld [vmem:[%s13241_s10] sm:$0xff] }
0x1592   :  { %v2584_v57 = vpop.permute.xlu1 %2583 }
0x1593   :  { %v2537_v19 = vmin.f32 %v2536_v48, 5.0  ;;  %v2586_v2 = vmul.f32 %v2584_v57, %v2581_v1  ;;  %v11208_v48 = vld [vmem:[#allocation17] ss:$0 sm:$0xff] }
0x1595   :  { %2628 = vrot.lane.b32.xlu0 %v2537_v19, %s9689_s9  ;;  %v2588_v33 = vadd.f32 %v2587_v3, %v2586_v2 }
0x1596   :  { %v2598_v35 = vpop.permute.xlu1 %2597 }
0x1597   :  { %v2600_v43 = vmul.f32 %v9136_v59, %v2598_v35  ;;  %v2589_v50 = vmin.f32 %v2588_v33, 5.0 }
0x1599   :  { %2602 = vrot.lane.b32.xlu1 %v2600_v43, %s9688_s16 }
0x1607   :  { %v2629_v6 = vpop.permute.xlu0 %2628 }
0x1608   :  { %v2631_v9 = vsel %vm626_vm4, %v2629_v6, %v2589_v50  ;;  %v11218_v50 = vld [vmem:[#allocation11] ss:$0 sm:$0xff] }
0x1609   :  { %8145 = vmatmul.mubr.msk.f32.vlgmr.msra.gmra.mxu0 %vm2647_vm5, %v2631_v9 }
0x160a   :  { %8155 = vmatprep.mubr.msk.f32.mxu0 %vm9692_vm3, %v13182_v37  ;;  %8148 = vmatpush3.msra.mxu0 %v11065_v11 }
0x160b   :  { %8149 = vmatprep.subr.mxu0 %v13182_v37  ;;  %v2603_v53 = vpop.permute.xlu1 %2602 }
0x160c   :  { %8150 = vmatpush3.msra.mxu0 %v11070_v5  ;;  %v2605_v24 = vadd.f32 %v2603_v53, %v2510_v36  ;;  %v11145_v36 = vld [vmem:[%s13241_s10 + $0x40] sm:$0xff] }
0x160d   :  { %8151 = vmatprep.subr.mxu0 %v13182_v37  ;;  %8167 = vmatpush3.msra.mxu1 %v11145_v36 }
0x160e   :  { %8152 = vmatpush3.msra.mxu0 %v11087_v25  ;;  %8168 = vmatprep.subr.mxu1 %v13182_v37 }
0x160f   :  { %8153 = vmatprep.subr.mxu0 %v13182_v37  ;;  %8169 = vmatpush3.msra.mxu1 %v11152_v40 }
0x1610   :  { %8154 = vmatpush3.msra.mxu0 %v11093_v7  ;;  %8170 = vmatprep.subr.mxu1 %v13182_v37 }
0x1611   :  { %8187 = vmatprep.subr.mxu0 %v13182_v37  ;;  %8171 = vmatpush3.msra.mxu1 %v11159_v41 }
0x1612   :  { %8172 = vmatprep.subr.mxu1 %v13182_v37 }
0x1613   :  { %8173 = vmatpush3.msra.mxu1 %v11166_v60 }
0x1614   :  { %8174 = vmatprep.subr.mxu1 %v13182_v37 }
0x1615   :  { %8175 = vmatpush3.msra.mxu1 %v11174_v44 }
0x1616   :  { %8176 = vmatprep.subr.mxu1 %v13182_v37 }
0x1617   :  { %8177 = vmatpush3.msra.mxu1 %v11181_v49 }
0x1618   :  { %8178 = vmatprep.subr.mxu1 %v13182_v37 }
0x1619   :  { %8179 = vmatpush3.msra.mxu1 %v11188_v58 }
0x161a   :  { %8180 = vmatprep.subr.mxu1 %v13182_v37 }
0x161b   :  { %8181 = vmatpush3.msra.mxu1 %v11195_v56 }
0x161c   :  { %8182 = vmatprep.subr.mxu1 %v13182_v37 }
0x161d   :  { %8183 = vmatpush3.msra.mxu1 %v11204_v62 }
0x161e   :  { %8222 = vmatprep.subr.mxu1 %v13182_v37 }
0x16c9   :  { %v2717_v14 = vpop.f32.mrf.mxu0 }
0x16ca   :  { %v11078_v0 = vadd.f32 %v7665_v12, %v2717_v14 }
0x16cb   :  { %v8146_v16 = vpop.f32.mrf.mxu0 }
0x16cc   :  { %13237 = vst [vmem:[#allocation48_spill] sm:$0xff] %v11078_v0  ;;  %v11081_v17 = vmax.f32 %v11078_v0, -9.2103405 }
0x16ce   :  { %13238 = vst [vmem:[#allocation47_spill] sm:$0xff] %v11081_v17  ;;  %v2723_v18 = vmul.f32 0.5, %v11081_v17 }
0x16d0   :  { %v2724_v20 = vmul.f32 1.442695, %v2723_v18 }
0x16d2   :  { %9137 = vpow2.f32 %v2724_v20 }
0x16d3   :  { %9139 = vtanh.f32 %v2605_v24 }
0x16df   :  { %v9138_v21 = vpop.eup %9137 }
0x16e0   :  { %2727 = vrot.lane.b32.xlu0 %v9138_v21, %s9689_s9  ;;  %v9140_v8 = vpop.eup %9139 }
0x16e4   :  { %2609 = vrot.lane.b32.xlu0 %v9140_v8, %s9689_s9 }
0x16e8   :  { %623 = vrot.lane.b32.xlu0 %v13239_v39, %s9689_s9  ;;  %v11226_v39 = vld [vmem:[%s13072_s15 + $0x18] sm:$0xff] }
0x1752   :  { %v2728_v63 = vpop.permute.xlu0 %2727 }
0x1753   :  { %v2730_v13 = vmul.f32 %v2728_v63, %v2722_v55  ;;  %v11231_v55 = vld [vmem:[%s13072_s15 + $0x10] sm:$0xff] }
0x1755   :  { %v11106_v32 = vadd.f32 %v2730_v13, %v11078_v0  ;;  %v11238_v13 = vld [vmem:[%s13072_s15 + $0x8] sm:$0xff] }
0x1756   :  { %v2610_v54 = vpop.permute.xlu0 %2609 }
0x1757   :  { %v2612_v31 = vmul.f32 %v2610_v54, %v2607_v29  ;;  %8156 = vmatmul.mubr.msk.f32.vlgmr.msra.gmra.mxu0 %vm626_vm4, %v11106_v32  ;;  %v11246_v29 = vld [vmem:[%s13072_s15] sm:$0xff] }
0x1758   :  { %8195 = vmatprep.mubr.msk.f32.mxu0 %vm9692_vm3, %v13182_v37  ;;  %8188 = vmatpush3.msra.mxu0 %v11226_v39 }
0x1759   :  { %v2614_v46 = vadd.f32 %v2613_v27, %v2612_v31  ;;  %8189 = vmatprep.subr.mxu0 %v13182_v37 }
0x175a   :  { %v624_v52 = vpop.permute.xlu0 %623  ;;  %8190 = vmatpush3.msra.mxu0 %v11231_v55 }
0x175b   :  { %v2615_v34 = vmin.f32 %v2614_v46, 5.0  ;;  %627 = vst.msk [vmem:[#allocation2] sm:$0xff] %vm626_vm4, %v624_v52  ;;  %8191 = vmatprep.subr.mxu0 %v13182_v37 }
0x175c   :  { %8192 = vmatpush3.msra.mxu0 %v11238_v13 }
0x175d   :  { %2623 = vrot.lane.b32.xlu1 %v2615_v34, %s9689_s9  ;;  %8193 = vmatprep.subr.mxu0 %v13182_v37 }
0x175e   :  { %8194 = vmatpush3.msra.mxu0 %v11246_v29 }
0x175f   :  { %8198 = vmatprep.subr.mxu0 %v13182_v37 }
0x1762   :  { %v2850_v43 = vld [vmem:[#allocation2] sm:$0xff] }
0x17cf   :  { %v2624_v15 = vpop.permute.xlu1 %2623 }
0x17d0   :  { %2626 = vst.msk [vmem:[#allocation3] sm:$0xff] %vm626_vm4, %v2624_v15 }
0x17d7   :  { %v2851_v61 = vld [vmem:[#allocation3] sm:$0xff] }
0x17d8   :  { %2853 = vrot.lane.b32.xlu1 %v2851_v61, %s9687_s22  ;;  %v11264_v61 = vld [vmem:[%s13068_s11 + $0x20] sm:$0x3] }
0x1817   :  { %v2839_v57 = vpop.f32.mrf.mxu0 }
0x1818   :  { %v2840_v19 = vadd.f32 %v11208_v48, %v2839_v57  ;;  %v11269_v57 = vld [vmem:[%s13068_s11 + $0x18] sm:$0xff] }
0x1819   :  { %v8157_v59 = vpop.f32.mrf.mxu0 }
0x181a   :  { %2857 = vrot.lane.b32.xlu0 %v2840_v19, %s9688_s16  ;;  %v11276_v19 = vld [vmem:[#allocation15] ss:$0 sm:$0xff] }
0x184a   :  { %v2854_v35 = vpop.permute.xlu1 %2853 }
0x184b   :  { %v2860_v1 = vsel %vm626_vm4, %v2850_v43, %v2854_v35 }
0x188c   :  { %v2858_v2 = vpop.permute.xlu0 %2857 }
0x188d   :  { %v2861_v3 = vsel %vm2647_vm5, %v2860_v1, %v2858_v2 }
0x188e   :  { %v2863_v33 = vsel %vm2862_vm6, %v2861_v3, 0.0  ;;  %v11285_v3 = vld [vmem:[%s13068_s11 + $0x10] sm:$0xff] }
0x188f   :  { %8185 = vmatmul.mubr.msk.f32.vlgmr.msra.gmra.mxu1 %vm2864_vm7, %v2863_v33  ;;  %v11292_v33 = vld [vmem:[%s13068_s11 + $0x8] sm:$0xff] }
0x1890   :  { %8224 = vmatprep.mubr.msk.f32.mxu1 %vm9692_vm3, %v13182_v37 }
0x194f   :  { %v2934_v6 = vpop.f32.mrf.mxu1 }
0x1950   :  { %v2935_v9 = vadd.f32 %v11218_v50, %v2934_v6  ;;  %v11297_v6 = vld [vmem:[%s13068_s11] sm:$0xff] }
0x1951   :  { %v8186_v12 = vpop.f32.mrf.mxu1 }
0x1952   :  { %2945 = vrot.lane.b32.xlu1 %v2935_v9, %s9687_s22  ;;  %v7670_v14 = vmul.f32 -1.442695, %v2935_v9  ;;  %v3039_v12 = vld [vmem:[%s13243_s26] sm:$0xff] }
0x1954   :  { %9141 = vpow2.f32 %v7670_v14 }
0x1961   :  { %v9142_v16 = vpop.eup %9141 }
0x1962   :  { %v2941_v18 = vadd.f32 1.0, %v9142_v16 }
0x1964   :  { %9143 = vrcp.f32 %v2941_v18 }
0x1971   :  { %v9144_v53 = vpop.eup %9143 }
0x1972   :  { %v2955_v54 = vsub.f32 1.0, %v9144_v53  ;;  %v2961_v31 = vmul.f32 0.0, %v9144_v53 }
0x19c4   :  { %v2946_v20 = vpop.permute.xlu1 %2945 }
0x19c5   :  { %v2948_v24 = vmul.f32 %v9144_v53, %v2946_v20 }
0x19c7   :  { %2950 = vrot.lane.b32.xlu0 %v2948_v24, %s9688_s16  ;;  %v11323_v24 = vld [vmem:[#allocation12] ss:$0 sm:$0xff] }
0x1a39   :  { %v2951_v21 = vpop.permute.xlu0 %2950 }
0x1a3a   :  { %v2953_v8 = vadd.f32 %v2951_v21, %v2935_v9 }
0x1a3c   :  { %9145 = vtanh.f32 %v2953_v8 }
0x1a49   :  { %v9146_v63 = vpop.eup %9145 }
0x1a4a   :  { %2957 = vrot.lane.b32.xlu1 %v9146_v63, %s9689_s9 }
0x1abc   :  { %v2958_v27 = vpop.permute.xlu1 %2957 }
0x1abd   :  { %v2960_v46 = vmul.f32 %v2958_v27, %v2955_v54 }
0x1abf   :  { %v2962_v52 = vadd.f32 %v2961_v31, %v2960_v46 }
0x1ac1   :  { %v11252_v34 = vmin.f32 %v2962_v52, 5.0 }
0x1ac3   :  { %2965 = vrot.lane.b32.xlu0 %v11252_v34, %s9689_s9 }
0x1ac7   :  { %3082 = vrot.lane.b32.xlu0 %v11106_v32, %s9693_s30 }
0x1b35   :  { %v2966_v15 = vpop.permute.xlu0 %2965 }
0x1b36   :  { %8196 = vmatmul.mubr.msk.f32.vlgmr.msra.gmra.mxu0 %vm626_vm4, %v2966_v15 }
0x1b37   :  { %8208 = vmatprep.mubr.msk.f32.mxu0 %vm9692_vm3, %v13182_v37  ;;  %8199 = vmatpush3.msk.msra.mxu0 %vm3090_vm8, %v11264_v61 }
0x1b38   :  { %8200 = vmatprep.subr.mxu0 %v13182_v37 }
0x1b39   :  { %8201 = vmatpush3.msra.mxu0 %v11269_v57  ;;  %v3083_v53 = vpop.permute.xlu0 %3082 }
0x1b3a   :  { %8202 = vmatprep.subr.mxu0 %v13182_v37 }
0x1b3b   :  { %8203 = vmatpush3.msra.mxu0 %v11285_v3 }
0x1b3c   :  { %8204 = vmatprep.subr.mxu0 %v13182_v37 }
0x1b3d   :  { %8205 = vmatpush3.msra.mxu0 %v11292_v33 }
0x1b3e   :  { %8206 = vmatprep.subr.mxu0 %v13182_v37 }
0x1b3f   :  { %8207 = vmatpush3.msra.mxu0 %v11297_v6 }
0x1b40   :  { %8211 = vmatprep.subr.mxu0 %v13182_v37 }
0x1bf6   :  { %v3035_v59 = vpop.f32.mrf.mxu0 }
0x1bf7   :  { %v11279_v35 = vadd.f32 %v11276_v19, %v3035_v59 }
0x1bf8   :  { %v8197_v43 = vpop.f32.mrf.mxu0 }
0x1bf9   :  { %13242 = vst [vmem:[#allocation50_spill] sm:$0xff] %v11279_v35  ;;  %v3040_v1 = vmul.f32 0.5, %v11279_v35 }
0x1bfb   :  { %v3041_v2 = vmul.f32 1.442695, %v3040_v1 }
0x1bfd   :  { %9147 = vpow2.f32 %v3041_v2 }
0x1c0a   :  { %v9148_v9 = vpop.eup %9147 }
0x1c0b   :  { %3044 = vrot.lane.b32.xlu1 %v9148_v9, %s9694_s7 }
0x1c7d   :  { %v3045_v14 = vpop.permute.xlu1 %3044 }
0x1c7e   :  { %v3047_v16 = vmul.f32 %v3045_v14, %v3039_v12 }
0x1c80   :  { %v11308_v18 = vadd.f32 %v3047_v16, %v11279_v35 }
0x1c82   :  { %13244 = vst [vmem:[#allocation52_spill] sm:$0xff] %v11308_v18  ;;  %v3085_v20 = vsel %vm3068_vm9, %v11308_v18, %v3083_v53 }
0x1c83   :  { %8209 = vmatmul.mubr.msk.f32.vlgmr.msra.gmra.mxu0 %vm3086_vm10, %v3085_v20 }
0x1c84   :  { %8212 = vmatpush3.msra.mxu0 %v11065_v11  ;;  %8219 = vmatprep.mubr.msk.f32.mxu0 %vm9692_vm3, %v13182_v37 }
0x1c85   :  { %8213 = vmatprep.subr.mxu0 %v13182_v37 }
0x1c86   :  { %8214 = vmatpush3.msra.mxu0 %v11070_v5 }
0x1c87   :  { %8215 = vmatprep.subr.mxu0 %v13182_v37 }
0x1c88   :  { %8216 = vmatpush3.msra.mxu0 %v11087_v25 }
0x1c89   :  { %8217 = vmatprep.subr.mxu0 %v13182_v37 }
0x1c8a   :  { %8218 = vmatpush3.msra.mxu0 %v11093_v7 }
0x1c8b   :  { %8250 = vmatprep.subr.mxu0 %v13182_v37 }
0x1d43   :  { %v3160_v21 = vpop.f32.mrf.mxu0 }
0x1d44   :  { %v3161_v8 = vadd.f32 %v11323_v24, %v3160_v21 }
0x1d45   :  { %v8210_v63 = vpop.f32.mrf.mxu0 }
0x1d46   :  { %3171 = vrot.lane.b32.xlu1 %v3161_v8, %s9687_s22  ;;  %v7675_v54 = vmul.f32 -1.442695, %v3161_v8 }
0x1d48   :  { %9149 = vpow2.f32 %v7675_v54 }
0x1d55   :  { %v9150_v27 = vpop.eup %9149 }
0x1d56   :  { %v3167_v31 = vadd.f32 1.0, %v9150_v27  ;;  %v11373_v27 = vld [vmem:[#allocation18] sm:$0xff] }
0x1d57   :  { %8223 = vmatpush3.msra.mxu1 %v11373_v27 }
0x1d58   :  { %9151 = vrcp.f32 %v3167_v31  ;;  %8227 = vmatprep.subr.mxu1 %v13182_v37 }
0x1d65   :  { %v9152_v46 = vpop.eup %9151 }
0x1db8   :  { %v3172_v52 = vpop.permute.xlu1 %3171 }
0x1db9   :  { %v3174_v15 = vmul.f32 %v9152_v46, %v3172_v52  ;;  %v11383_v52 = vld [vmem:[%s13078_s21 + $0x48] sm:$0xff] }
0x1dbb   :  { %3176 = vrot.lane.b32.xlu0 %v3174_v15, %s9688_s16 }
0x1dbf   :  { %3187 = vrot.lane.b32.xlu0 %v11106_v32, %s9687_s22  ;;  %v3181_v32 = vsub.f32 1.0, %v9152_v46 }
0x1dc3   :  { %2339 = vrot.lane.b32.xlu0 %v10982_v51, %s9689_s9 }
0x1e2d   :  { %v3177_v59 = vpop.permute.xlu0 %3176 }
0x1e2e   :  { %v3179_v43 = vadd.f32 %v3177_v59, %v3161_v8  ;;  %v13245_v8 = vld [vmem:[#allocation45_spill] sm:$0xff]  ;;  %v11392_v59 = vld [vmem:[%s13078_s21 + $0x40] sm:$0xff] }
0x1e30   :  { %9153 = vtanh.f32 %v3179_v43  ;;  %v11401_v43 = vld [vmem:[%s13078_s21 + $0x38] sm:$0xff] }
0x1e31   :  { %v3188_v1 = vpop.permute.xlu0 %3187 }
0x1e32   :  { %v3190_v51 = vmul.f32 %v9152_v46, %v3188_v1  ;;  %v11408_v1 = vld [vmem:[%s13078_s21 + $0x30] sm:$0xff] }
0x1e35   :  { %v2340_v2 = vpop.permute.xlu0 %2339 }
0x1e36   :  { %2343 = vst.msk [vmem:[#allocation3 + $0x8] sm:$0xff] %vm626_vm4, %v2340_v2  ;;  %v11415_v2 = vld [vmem:[%s13078_s21 + $0x28] sm:$0xff] }
0x1e3d   :  { %v9154_v9 = vpop.eup %9153  ;;  %v3446_v12 = vld [vmem:[#allocation3 + $0x8] sm:$0xff] }
0x1e3e   :  { %3183 = vrot.lane.b32.xlu1 %v9154_v9, %s9689_s9  ;;  %3448 = vrot.lane.b32.xlu0 %v3446_v12, %s9687_s22  ;;  %v11422_v9 = vld [vmem:[%s13078_s21 + $0x20] sm:$0xff]  ;;  %v11429_v12 = vld [vmem:[%s13078_s21 + $0x18] sm:$0xff] }
0x1e42   :  { %3454 = vrot.lane.b32.xlu0 %v11252_v34, %s9695_s14 }
0x1eb0   :  { %v3184_v14 = vpop.permute.xlu1 %3183 }
0x1eb1   :  { %v3186_v16 = vmul.f32 %v3184_v14, %v3181_v32  ;;  %v11438_v32 = vld [vmem:[%s13078_s21 + $0x10] sm:$0xff]  ;;  %v11445_v14 = vld [vmem:[%s13078_s21 + $0x8] sm:$0xff] }
0x1eb3   :  { %v3191_v53 = vadd.f32 %v3190_v51, %v3186_v16  ;;  %v11451_v51 = vld [vmem:[%s13078_s21] sm:$0xff]  ;;  %v3449_v16 = vpop.permute.xlu0 %3448 }
0x1eb5   :  { %v3192_v20 = vmax.f32 %v3191_v53, 0.0 }
0x1eb7   :  { %v11337_v21 = vmin.f32 %v3192_v20, 5.0 }
0x1eb9   :  { %3195 = vrot.lane.b32.xlu1 %v11337_v21, %s9689_s9 }
0x1ebd   :  { %909 = vrot.lane.b32.xlu1 %v13245_v8, %s9689_s9 }
0x1f2b   :  { %v3196_v63 = vpop.permute.xlu1 %3195 }
0x1f2c   :  { %8220 = vmatmul.mubr.msk.f32.vlgmr.msra.gmra.mxu0 %vm626_vm4, %v3196_v63  ;;  %v3455_v63 = vpop.permute.xlu0 %3454 }
0x1f2d   :  { %8251 = vmatpush3.msra.mxu0 %v11118_v30  ;;  %8276 = vmatprep.mubr.msk.f32.mxu0 %vm9692_vm3, %v13182_v37 }
0x1f2e   :  { %8252 = vmatprep.subr.mxu0 %v13182_v37 }
0x1f2f   :  { %v910_v54 = vpop.permute.xlu1 %909  ;;  %8253 = vmatpush3.msra.mxu0 %v11123_v28 }
0x1f30   :  { %913 = vst.msk [vmem:[#allocation2 + $0x8] sm:$0xff] %vm626_vm4, %v910_v54  ;;  %8254 = vmatprep.subr.mxu0 %v13182_v37 }
0x1f31   :  { %8255 = vmatpush3.msra.mxu0 %v11130_v10 }
0x1f32   :  { %8256 = vmatprep.subr.mxu0 %v13182_v37 }
0x1f33   :  { %8257 = vmatpush3.msra.mxu0 %v11137_v38 }
0x1f34   :  { %8258 = vmatprep.subr.mxu0 %v13182_v37 }
0x1f35   :  { %8259 = vmatpush3.msra.mxu0 %v11145_v36 }
0x1f36   :  { %8260 = vmatprep.subr.mxu0 %v13182_v37 }
0x1f37   :  { %8261 = vmatpush3.msra.mxu0 %v11152_v40  ;;  %v3445_v53 = vld [vmem:[#allocation2 + $0x8] sm:$0xff] }
0x1f38   :  { %8262 = vmatprep.subr.mxu0 %v13182_v37  ;;  %v3457_v20 = vsel %vm626_vm4, %v3445_v53, %v3449_v16 }
0x1f39   :  { %8263 = vmatpush3.msra.mxu0 %v11159_v41 }
0x1f3a   :  { %8264 = vmatprep.subr.mxu0 %v13182_v37 }
0x1f3b   :  { %8265 = vmatpush3.msra.mxu0 %v11166_v60 }
0x1f3c   :  { %8266 = vmatprep.subr.mxu0 %v13182_v37 }
0x1f3d   :  { %8267 = vmatpush3.msra.mxu0 %v11174_v44 }
0x1f3e   :  { %8268 = vmatprep.subr.mxu0 %v13182_v37 }
0x1f3f   :  { %8269 = vmatpush3.msra.mxu0 %v11181_v49 }
0x1f40   :  { %8270 = vmatprep.subr.mxu0 %v13182_v37 }
0x1f41   :  { %8271 = vmatpush3.msra.mxu0 %v11188_v58 }
0x1f42   :  { %8272 = vmatprep.subr.mxu0 %v13182_v37 }
0x1f43   :  { %8273 = vmatpush3.msra.mxu0 %v11195_v56 }
0x1f44   :  { %8274 = vmatprep.subr.mxu0 %v13182_v37 }
0x1f45   :  { %8275 = vmatpush3.msra.mxu0 %v11204_v62 }
0x1f46   :  { %8303 = vmatprep.subr.mxu0 %v13182_v37 }
0x1fec   :  { %v3265_v31 = vpop.f32.mrf.mxu0 }
0x1fed   :  { %v11378_v46 = vadd.f32 %v11208_v48, %v3265_v31 }
0x1fee   :  { %v8221_v15 = vpop.f32.mrf.mxu0 }
0x1fef   :  { %13246 = vst [vmem:[#allocation51_spill] sm:$0xff] %v11378_v46  ;;  %3451 = vrot.lane.b32.xlu1 %v11378_v46, %s9688_s16  ;;  %8225 = vmatmul.mubr.msk.f32.vlgmr.msra.gmra.mxu1 %vm3269_vm11, %v11378_v46  ;;  %v11470_v15 = vld [vmem:[#allocation20] ss:$0 sm:$0xff] }
0x1ff0   :  { %8228 = vmatpush3.msra.mxu1 %v11383_v52  ;;  %8247 = vmatprep.mubr.msk.f32.mxu1 %vm9692_vm3, %v13182_v37 }
0x1ff1   :  { %8229 = vmatprep.subr.mxu1 %v13182_v37 }
0x1ff2   :  { %8230 = vmatpush3.msra.mxu1 %v11392_v59 }
0x1ff3   :  { %8231 = vmatprep.subr.mxu1 %v13182_v37 }
0x1ff4   :  { %8232 = vmatpush3.msra.mxu1 %v11401_v43 }
0x1ff5   :  { %8233 = vmatprep.subr.mxu1 %v13182_v37 }
0x1ff6   :  { %8234 = vmatpush3.msra.mxu1 %v11408_v1 }
0x1ff7   :  { %8235 = vmatprep.subr.mxu1 %v13182_v37 }
0x1ff8   :  { %8236 = vmatpush3.msra.mxu1 %v11415_v2 }
0x1ff9   :  { %8237 = vmatprep.subr.mxu1 %v13182_v37 }
0x1ffa   :  { %8238 = vmatpush3.msra.mxu1 %v11422_v9 }
0x1ffb   :  { %8239 = vmatprep.subr.mxu1 %v13182_v37 }
0x1ffc   :  { %8240 = vmatpush3.msra.mxu1 %v11429_v12 }
0x1ffd   :  { %8241 = vmatprep.subr.mxu1 %v13182_v37 }
0x1ffe   :  { %8242 = vmatpush3.msra.mxu1 %v11438_v32 }
0x1fff   :  { %8243 = vmatprep.subr.mxu1 %v13182_v37 }
0x2000   :  { %8244 = vmatpush3.msra.mxu1 %v11445_v14 }
0x2001   :  { %8245 = vmatprep.subr.mxu1 %v13182_v37 }
0x2002   :  { %8246 = vmatpush3.msra.mxu1 %v11451_v51 }
0x2003   :  { %8279 = vmatprep.subr.mxu1 %v13182_v37 }
0x2061   :  { %v3452_v8 = vpop.permute.xlu1 %3451 }
0x2062   :  { %v3458_v54 = vsel %vm2647_vm5, %v3457_v20, %v3452_v8 }
0x2063   :  { %v3459_v31 = vsel %vm2862_vm6, %v3458_v54, %v3455_v63 }
0x2064   :  { %8277 = vmatmul.mubr.msk.f32.vlgmr.msra.gmra.mxu0 %vm2864_vm7, %v3459_v31 }
0x2065   :  { %8304 = vmatpush3.msra.mxu0 %v11065_v11  ;;  %8311 = vmatprep.mubr.msk.f32.mxu0 %vm9692_vm3, %v13182_v37 }
0x2066   :  { %8305 = vmatprep.subr.mxu0 %v13182_v37 }
0x2067   :  { %8306 = vmatpush3.msra.mxu0 %v11070_v5 }
0x2068   :  { %8307 = vmatprep.subr.mxu0 %v13182_v37 }
0x2069   :  { %8308 = vmatpush3.msra.mxu0 %v11087_v25 }
0x206a   :  { %8309 = vmatprep.subr.mxu0 %v13182_v37 }
0x206b   :  { %8310 = vmatpush3.msra.mxu0 %v11093_v7 }
0x206c   :  { %8314 = vmatprep.subr.mxu0 %v13182_v37 }
0x20af   :  { %v3339_v16 = vpop.f32.mrf.mxu1 }
0x20b0   :  { %v3340_v53 = vadd.f32 %v11470_v15, %v3339_v16 }
0x20b1   :  { %v8226_v20 = vpop.f32.mrf.mxu1 }
0x20b2   :  { %v3343_v8 = vmax.f32 %v3340_v53, 0.0 }
0x20b4   :  { %8248 = vmatmul.mubr.msk.f32.vlgmr.msra.gmra.mxu1 %vm367_vm2, %v3343_v8 }
0x20b5   :  { %8280 = vmatpush3.msra.mxu1 %v11226_v39  ;;  %8287 = vmatprep.mubr.msk.f32.mxu1 %vm9692_vm3, %v13182_v37 }
0x20b6   :  { %8281 = vmatprep.subr.mxu1 %v13182_v37 }
0x20b7   :  { %8282 = vmatpush3.msra.mxu1 %v11231_v55 }
0x20b8   :  { %8283 = vmatprep.subr.mxu1 %v13182_v37 }
0x20b9   :  { %8284 = vmatpush3.msra.mxu1 %v11238_v13 }
0x20ba   :  { %8285 = vmatprep.subr.mxu1 %v13182_v37 }
0x20bb   :  { %8286 = vmatpush3.msra.mxu1 %v11246_v29 }
0x20bc   :  { %8290 = vmatprep.subr.mxu1 %v13182_v37 }
0x2124   :  { %v3529_v63 = vpop.f32.mrf.mxu0 }
0x2125   :  { %v3530_v54 = vadd.f32 %v11218_v50, %v3529_v63 }
0x2126   :  { %v8278_v31 = vpop.f32.mrf.mxu0 }
0x2127   :  { %3540 = vrot.lane.b32.xlu1 %v3530_v54, %s9687_s22  ;;  %v7680_v16 = vmul.f32 -1.442695, %v3530_v54 }
0x2129   :  { %9155 = vpow2.f32 %v7680_v16 }
0x2136   :  { %v9156_v8 = vpop.eup %9155 }
0x2137   :  { %v3536_v18 = vadd.f32 1.0, %v9156_v8 }
0x2139   :  { %9157 = vrcp.f32 %v3536_v18 }
0x2146   :  { %v9158_v46 = vpop.eup %9157 }
0x2147   :  { %v3550_v31 = vsub.f32 1.0, %v9158_v46 }
0x2174   :  { %v11486_v53 = vpop.f32.mrf.mxu1 }
0x2175   :  { %13247 = vst [vmem:[#allocation39_spill] sm:$0xff] %v11486_v53  ;;  %v3556_v53 = vmul.f32 %v9158_v46, %v11252_v34 }
0x2176   :  { %v8249_v20 = vpop.f32.mrf.mxu1 }
0x2199   :  { %v3541_v35 = vpop.permute.xlu1 %3540 }
0x219a   :  { %v3543_v17 = vmul.f32 %v9158_v46, %v3541_v35  ;;  %v7682_v46 = vld [vmem:[%s13243_s26 + $0x8] sm:$0xff] }
0x219c   :  { %3545 = vrot.lane.b32.xlu0 %v3543_v17, %s9688_s16 }
0x220e   :  { %v3546_v0 = vpop.permute.xlu0 %3545 }
0x220f   :  { %v3548_v26 = vadd.f32 %v3546_v0, %v3530_v54 }
0x2211   :  { %9159 = vtanh.f32 %v3548_v26 }
0x221e   :  { %v9160_v63 = vpop.eup %9159 }
0x221f   :  { %3552 = vrot.lane.b32.xlu1 %v9160_v63, %s9689_s9 }
0x2291   :  { %v3553_v4 = vpop.permute.xlu1 %3552 }
0x2292   :  { %v3555_v20 = vmul.f32 %v3553_v4, %v3550_v31 }
0x2294   :  { %v3557_v16 = vadd.f32 %v3556_v53, %v3555_v20 }
0x2296   :  { %v11491_v42 = vmin.f32 %v3557_v16, 5.0 }
0x2298   :  { %3560 = vrot.lane.b32.xlu0 %v11491_v42, %s9689_s9 }
0x229c   :  { %3677 = vrot.lane.b32.xlu0 %v11337_v21, %s9696_s27 }
0x230a   :  { %v3561_v0 = vpop.permute.xlu0 %3560 }
0x230b   :  { %8288 = vmatmul.mubr.msk.f32.vlgmr.msra.gmra.mxu1 %vm626_vm4, %v3561_v0 }
0x230c   :  { %8291 = vmatpush3.msk.msra.mxu1 %vm3090_vm8, %v11264_v61  ;;  %8300 = vmatprep.mubr.msk.f32.mxu1 %vm9692_vm3, %v13182_v37 }
0x230d   :  { %8292 = vmatprep.subr.mxu1 %v13182_v37 }
0x230e   :  { %8293 = vmatpush3.msra.mxu1 %v11269_v57  ;;  %v3678_v63 = vpop.permute.xlu0 %3677 }
0x230f   :  { %8294 = vmatprep.subr.mxu1 %v13182_v37 }
0x2310   :  { %8295 = vmatpush3.msra.mxu1 %v11285_v3 }
0x2311   :  { %8296 = vmatprep.subr.mxu1 %v13182_v37 }
0x2312   :  { %8297 = vmatpush3.msra.mxu1 %v11292_v33 }
0x2313   :  { %8298 = vmatprep.subr.mxu1 %v13182_v37 }
0x2314   :  { %8299 = vmatpush3.msra.mxu1 %v11297_v6 }
0x2315   :  { %8319 = vmatprep.subr.mxu1 %v13182_v37 }
0x23cb   :  { %v3630_v4 = vpop.f32.mrf.mxu1 }
0x23cc   :  { %v11512_v26 = vadd.f32 %v11276_v19, %v3630_v4 }
0x23cd   :  { %v8289_v17 = vpop.f32.mrf.mxu1 }
0x23ce   :  { %v3636_v34 = vmul.f32 0.5, %v11512_v26 }
0x23d0   :  { %v3637_v35 = vmul.f32 1.442695, %v3636_v34 }
0x23d2   :  { %9161 = vpow2.f32 %v3637_v35 }
0x23df   :  { %v9162_v18 = vpop.eup %9161 }
0x23e0   :  { %3640 = vrot.lane.b32.xlu1 %v9162_v18, %s9694_s7 }
0x2452   :  { %v3641_v54 = vpop.permute.xlu1 %3640 }
0x2453   :  { %v3643_v53 = vmul.f32 %v7682_v46, %v3641_v54 }
0x2455   :  { %v11520_v8 = vadd.f32 %v3643_v53, %v11512_v26 }
0x2457   :  { %13248 = vst [vmem:[#allocation40_spill] sm:$0xff] %v11520_v8  ;;  %v3680_v31 = vsel %vm3068_vm9, %v11520_v8, %v3678_v63 }
0x2458   :  { %8301 = vmatmul.mubr.msk.f32.vlgmr.msra.gmra.mxu1 %vm3086_vm10, %v3680_v31 }
0x2459   :  { %8320 = vmatpush3.msra.mxu1 %v11383_v52  ;;  %8339 = vmatprep.mubr.msk.f32.mxu1 %vm9692_vm3, %v13182_v37 }
0x245a   :  { %8321 = vmatprep.subr.mxu1 %v13182_v37 }
0x245b   :  { %8322 = vmatpush3.msra.mxu1 %v11392_v59 }
0x245c   :  { %8323 = vmatprep.subr.mxu1 %v13182_v37 }
0x245d   :  { %8324 = vmatpush3.msra.mxu1 %v11401_v43 }
0x245e   :  { %8325 = vmatprep.subr.mxu1 %v13182_v37 }
0x245f   :  { %8326 = vmatpush3.msra.mxu1 %v11408_v1 }
0x2460   :  { %8327 = vmatprep.subr.mxu1 %v13182_v37 }
0x2461   :  { %8328 = vmatpush3.msra.mxu1 %v11415_v2 }
0x2462   :  { %8329 = vmatprep.subr.mxu1 %v13182_v37 }
0x2463   :  { %8330 = vmatpush3.msra.mxu1 %v11422_v9 }
0x2464   :  { %8331 = vmatprep.subr.mxu1 %v13182_v37 }
0x2465   :  { %8332 = vmatpush3.msra.mxu1 %v11429_v12 }
0x2466   :  { %8333 = vmatprep.subr.mxu1 %v13182_v37 }
0x2467   :  { %8334 = vmatpush3.msra.mxu1 %v11438_v32 }
0x2468   :  { %8335 = vmatprep.subr.mxu1 %v13182_v37 }
0x2469   :  { %8336 = vmatpush3.msra.mxu1 %v11445_v14 }
0x246a   :  { %8337 = vmatprep.subr.mxu1 %v13182_v37 }
0x246b   :  { %8338 = vmatpush3.msra.mxu1 %v11451_v51 }
0x246c   :  { %8371 = vmatprep.subr.mxu1 %v13182_v37 }
0x2518   :  { %v3750_v20 = vpop.f32.mrf.mxu1 }
0x2519   :  { %v3751_v16 = vadd.f32 %v11323_v24, %v3750_v20 }
0x251a   :  { %v8302_v0 = vpop.f32.mrf.mxu1 }
0x251b   :  { %3761 = vrot.lane.b32.xlu1 %v3751_v16, %s9687_s22  ;;  %v7686_v4 = vmul.f32 -1.442695, %v3751_v16 }
0x251d   :  { %9163 = vpow2.f32 %v7686_v4 }
0x252a   :  { %v9164_v17 = vpop.eup %9163 }
0x252b   :  { %v3757_v34 = vadd.f32 1.0, %v9164_v17 }
0x252d   :  { %9165 = vrcp.f32 %v3757_v34 }
0x253a   :  { %v9166_v35 = vpop.eup %9165 }
0x253b   :  { %v3771_v31 = vsub.f32 1.0, %v9166_v35  ;;  %v3777_v0 = vmul.f32 %v9166_v35, %v11337_v21 }
0x258d   :  { %v3762_v18 = vpop.permute.xlu1 %3761 }
0x258e   :  { %v3764_v46 = vmul.f32 %v9166_v35, %v3762_v18 }
0x2590   :  { %3766 = vrot.lane.b32.xlu0 %v3764_v46, %s9688_s16  ;;  %v13249_v46 = vld [vmem:[#allocation36_spill] sm:$0xff] }
0x2602   :  { %v3767_v54 = vpop.permute.xlu0 %3766 }
0x2603   :  { %v3769_v53 = vadd.f32 %v3767_v54, %v3751_v16 }
0x2605   :  { %9167 = vtanh.f32 %v3769_v53 }
0x2612   :  { %v9168_v63 = vpop.eup %9167 }
0x2613   :  { %3773 = vrot.lane.b32.xlu1 %v9168_v63, %s9689_s9 }
0x2617   :  { %2055 = vrot.lane.b32.xlu1 %v10889_v23, %s9689_s9 }
0x2685   :  { %v3774_v20 = vpop.permute.xlu1 %3773 }
0x2686   :  { %v3776_v4 = vmul.f32 %v3774_v20, %v3771_v31 }
0x2688   :  { %v3778_v17 = vadd.f32 %v3777_v0, %v3776_v4 }
0x2689   :  { %v2056_v34 = vpop.permute.xlu1 %2055 }
0x268a   :  { %v3779_v8 = vmax.f32 %v3778_v17, 0.0  ;;  %2059 = vst.msk [vmem:[#allocation3 + $0x10] sm:$0xff] %vm626_vm4, %v2056_v34 }
0x268c   :  { %v11555_v18 = vmin.f32 %v3779_v8, 5.0 }
0x268e   :  { %3782 = vrot.lane.b32.xlu0 %v11555_v18, %s9689_s9 }
0x2691   :  { %v4032_v16 = vld [vmem:[#allocation3 + $0x10] sm:$0xff] }
0x2692   :  { %1195 = vrot.lane.b32.xlu0 %v13249_v46, %s9689_s9  ;;  %4034 = vrot.lane.b32.xlu1 %v4032_v16, %s9687_s22 }
0x2696   :  { %4040 = vrot.lane.b32.xlu1 %v11491_v42, %s9695_s14 }
0x2700   :  { %v3783_v23 = vpop.permute.xlu0 %3782 }
0x2701   :  { %8312 = vmatmul.mubr.msk.f32.vlgmr.msra.gmra.mxu0 %vm626_vm4, %v3783_v23 }
0x2702   :  { %8315 = vmatpush3.msra.mxu0 %v11373_v27  ;;  %8316 = vmatprep.mubr.msk.f32.mxu0 %vm9692_vm3, %v13182_v37 }
0x2703   :  { %8342 = vmatprep.subr.mxu0 %v13182_v37 }
0x2704   :  { %v1196_v21 = vpop.permute.xlu0 %1195 }
0x2705   :  { %1199 = vst.msk [vmem:[#allocation2 + $0x10] sm:$0xff] %vm626_vm4, %v1196_v21 }
0x27c1   :  { %v3852_v8 = vpop.f32.mrf.mxu0 }
0x27c2   :  { %v11571_v35 = vadd.f32 %v11208_v48, %v3852_v8 }
0x27c3   :  { %v8313_v54 = vpop.f32.mrf.mxu0 }
0x27c4   :  { %4037 = vrot.lane.b32.xlu0 %v11571_v35, %s9688_s16  ;;  %8317 = vmatmul.mubr.msk.f32.vlgmr.msra.gmra.mxu0 %vm3269_vm11, %v11571_v35 }
0x27c5   :  { %8343 = vmatpush3.msra.mxu0 %v11118_v30  ;;  %8368 = vmatprep.mubr.msk.f32.mxu0 %vm9692_vm3, %v13182_v37  ;;  %v4035_v30 = vpop.permute.xlu1 %4034 }
0x27c6   :  { %8344 = vmatprep.subr.mxu0 %v13182_v37 }
0x27c7   :  { %8345 = vmatpush3.msra.mxu0 %v11123_v28  ;;  %v4031_v28 = vld [vmem:[#allocation2 + $0x10] sm:$0xff] }
0x27c8   :  { %8346 = vmatprep.subr.mxu0 %v13182_v37 }
0x27c9   :  { %8347 = vmatpush3.msra.mxu0 %v11130_v10  ;;  %v4043_v10 = vsel %vm626_vm4, %v4031_v28, %v4035_v30 }
0x27ca   :  { %8348 = vmatprep.subr.mxu0 %v13182_v37 }
0x27cb   :  { %8349 = vmatpush3.msra.mxu0 %v11137_v38 }
0x27cc   :  { %8350 = vmatprep.subr.mxu0 %v13182_v37 }
0x27cd   :  { %8351 = vmatpush3.msra.mxu0 %v11145_v36  ;;  %v4041_v36 = vpop.permute.xlu1 %4040 }
0x27ce   :  { %8352 = vmatprep.subr.mxu0 %v13182_v37 }
0x27cf   :  { %8353 = vmatpush3.msra.mxu0 %v11152_v40 }
0x27d0   :  { %8354 = vmatprep.subr.mxu0 %v13182_v37 }
0x27d1   :  { %8355 = vmatpush3.msra.mxu0 %v11159_v41 }
0x27d2   :  { %8356 = vmatprep.subr.mxu0 %v13182_v37 }
0x27d3   :  { %8357 = vmatpush3.msra.mxu0 %v11166_v60 }
0x27d4   :  { %8358 = vmatprep.subr.mxu0 %v13182_v37 }
0x27d5   :  { %8359 = vmatpush3.msra.mxu0 %v11174_v44 }
0x27d6   :  { %8360 = vmatprep.subr.mxu0 %v13182_v37 }
0x27d7   :  { %8361 = vmatpush3.msra.mxu0 %v11181_v49 }
0x27d8   :  { %8362 = vmatprep.subr.mxu0 %v13182_v37 }
0x27d9   :  { %8363 = vmatpush3.msra.mxu0 %v11188_v58 }
0x27da   :  { %8364 = vmatprep.subr.mxu0 %v13182_v37 }
0x27db   :  { %8365 = vmatpush3.msra.mxu0 %v11195_v56 }
0x27dc   :  { %8366 = vmatprep.subr.mxu0 %v13182_v37 }
0x27dd   :  { %8367 = vmatpush3.msra.mxu0 %v11204_v62 }
0x27de   :  { %8395 = vmatprep.subr.mxu0 %v13182_v37 }
0x2836   :  { %v4038_v38 = vpop.permute.xlu0 %4037 }
0x2837   :  { %v4044_v40 = vsel %vm2647_vm5, %v4043_v10, %v4038_v38 }
0x2838   :  { %v4045_v41 = vsel %vm2862_vm6, %v4044_v40, %v4041_v36 }
0x2839   :  { %8369 = vmatmul.mubr.msk.f32.vlgmr.msra.gmra.mxu0 %vm2864_vm7, %v4045_v41 }
0x283a   :  { %8396 = vmatpush3.msra.mxu0 %v11065_v11  ;;  %8403 = vmatprep.mubr.msk.f32.mxu0 %vm9692_vm3, %v13182_v37 }
0x283b   :  { %8397 = vmatprep.subr.mxu0 %v13182_v37 }
0x283c   :  { %8398 = vmatpush3.msra.mxu0 %v11070_v5 }
0x283d   :  { %8399 = vmatprep.subr.mxu0 %v13182_v37 }
0x283e   :  { %8400 = vmatpush3.msra.mxu0 %v11087_v25 }
0x283f   :  { %8401 = vmatprep.subr.mxu0 %v13182_v37 }
0x2840   :  { %8402 = vmatpush3.msra.mxu0 %v11093_v7 }
0x2841   :  { %8406 = vmatprep.subr.mxu0 %v13182_v37 }
0x2884   :  { %v3925_v60 = vpop.f32.mrf.mxu0 }
0x2885   :  { %v3926_v11 = vadd.f32 %v11470_v15, %v3925_v60 }
0x2886   :  { %v8318_v44 = vpop.f32.mrf.mxu0 }
0x2887   :  { %v3929_v49 = vmax.f32 %v3926_v11, 0.0 }
0x2889   :  { %8340 = vmatmul.mubr.msk.f32.vlgmr.msra.gmra.mxu1 %vm367_vm2, %v3929_v49 }
0x288a   :  { %8372 = vmatpush3.msra.mxu1 %v11226_v39  ;;  %8379 = vmatprep.mubr.msk.f32.mxu1 %vm9692_vm3, %v13182_v37 }
0x288b   :  { %8373 = vmatprep.subr.mxu1 %v13182_v37 }
0x288c   :  { %8374 = vmatpush3.msra.mxu1 %v11231_v55 }
0x288d   :  { %8375 = vmatprep.subr.mxu1 %v13182_v37 }
0x288e   :  { %8376 = vmatpush3.msra.mxu1 %v11238_v13 }
0x288f   :  { %8377 = vmatprep.subr.mxu1 %v13182_v37 }
0x2890   :  { %8378 = vmatpush3.msra.mxu1 %v11246_v29 }
0x2891   :  { %8382 = vmatprep.subr.mxu1 %v13182_v37 }
0x28f9   :  { %v4115_v5 = vpop.f32.mrf.mxu0 }
0x28fa   :  { %v4116_v25 = vadd.f32 %v11218_v50, %v4115_v5 }
0x28fb   :  { %v8370_v7 = vpop.f32.mrf.mxu0 }
0x28fc   :  { %4126 = vrot.lane.b32.xlu0 %v4116_v25, %s9687_s22  ;;  %v7693_v58 = vmul.f32 -1.442695, %v4116_v25 }
0x28fe   :  { %9169 = vpow2.f32 %v7693_v58 }
0x290b   :  { %v9170_v48 = vpop.eup %9169 }
0x290c   :  { %v4122_v39 = vadd.f32 1.0, %v9170_v48 }
0x290e   :  { %9171 = vrcp.f32 %v4122_v39 }
0x291b   :  { %v9172_v55 = vpop.eup %9171 }
0x291c   :  { %v4136_v31 = vsub.f32 1.0, %v9172_v55  ;;  %v4142_v0 = vmul.f32 %v9172_v55, %v11491_v42 }
0x2949   :  { %v11633_v56 = vpop.f32.mrf.mxu1 }
0x294b   :  { %v8341_v62 = vpop.f32.mrf.mxu1 }
0x296e   :  { %v4127_v13 = vpop.permute.xlu0 %4126 }
0x296f   :  { %v4129_v53 = vmul.f32 %v9172_v55, %v4127_v13 }
0x2971   :  { %4131 = vrot.lane.b32.xlu1 %v4129_v53, %s9688_s16  ;;  %v13252_v53 = vld [vmem:[#allocation53_spill] sm:$0xff] }
0x29e3   :  { %v4132_v29 = vpop.permute.xlu1 %4131 }
0x29e4   :  { %v4134_v63 = vadd.f32 %v4132_v29, %v4116_v25 }
0x29e6   :  { %9173 = vtanh.f32 %v4134_v63  ;;  %v11717_v63 = vld [vmem:[#allocation17] ss:$0 sm:$0xff] }
0x29f3   :  { %v9174_v50 = vpop.eup %9173 }
0x29f4   :  { %4138 = vrot.lane.b32.xlu0 %v9174_v50, %s9689_s9 }
0x2a66   :  { %v4139_v20 = vpop.permute.xlu0 %4138 }
0x2a67   :  { %v4141_v4 = vmul.f32 %v4139_v20, %v4136_v31  ;;  %v11738_v20 = vld [vmem:[%s13241_s10 + $0x58] sm:$0xff] }
0x2a69   :  { %v4143_v17 = vadd.f32 %v4142_v0, %v4141_v4  ;;  %v11745_v0 = vld [vmem:[%s13241_s10 + $0x50] sm:$0xff]  ;;  %v11752_v4 = vld [vmem:[%s13241_s10 + $0x48] sm:$0xff] }
0x2a6b   :  { %v11638_v34 = vmin.f32 %v4143_v17, 5.0  ;;  %v11759_v17 = vld [vmem:[%s13241_s10 + $0x40] sm:$0xff] }
0x2a6d   :  { %4146 = vrot.lane.b32.xlu1 %v11638_v34, %s9689_s9 }
0x2a71   :  { %4263 = vrot.lane.b32.xlu1 %v11555_v18, %s9696_s27 }
0x2adf   :  { %v4147_v16 = vpop.permute.xlu1 %4146 }
0x2ae0   :  { %8380 = vmatmul.mubr.msk.f32.vlgmr.msra.gmra.mxu1 %vm626_vm4, %v4147_v16  ;;  %v11766_v16 = vld [vmem:[%s13241_s10 + $0x38] sm:$0xff] }
0x2ae1   :  { %8383 = vmatpush3.msk.msra.mxu1 %vm3090_vm8, %v11264_v61  ;;  %8392 = vmatprep.mubr.msk.f32.mxu1 %vm9692_vm3, %v13182_v37 }
0x2ae2   :  { %8384 = vmatprep.subr.mxu1 %v13182_v37 }
0x2ae3   :  { %8385 = vmatpush3.msra.mxu1 %v11269_v57  ;;  %v4264_v54 = vpop.permute.xlu1 %4263 }
0x2ae4   :  { %8386 = vmatprep.subr.mxu1 %v13182_v37 }
0x2ae5   :  { %8387 = vmatpush3.msra.mxu1 %v11285_v3 }
0x2ae6   :  { %8388 = vmatprep.subr.mxu1 %v13182_v37 }
0x2ae7   :  { %8389 = vmatpush3.msra.mxu1 %v11292_v33  ;;  %v7695_v33 = vld [vmem:[%s13243_s26 + $0x10] sm:$0xff] }
0x2ae8   :  { %8390 = vmatprep.subr.mxu1 %v13182_v37 }
0x2ae9   :  { %8391 = vmatpush3.msra.mxu1 %v11297_v6 }
0x2aea   :  { %8411 = vmatprep.subr.mxu1 %v13182_v37 }
0x2ba0   :  { %v4216_v42 = vpop.f32.mrf.mxu1 }
0x2ba1   :  { %v11659_v61 = vadd.f32 %v11276_v19, %v4216_v42  ;;  %v11773_v42 = vld [vmem:[%s13241_s10 + $0x30] sm:$0xff] }
0x2ba2   :  { %v8381_v46 = vpop.f32.mrf.mxu1 }
0x2ba3   :  { %13250 = vst [vmem:[#allocation42_spill] sm:$0xff] %v11659_v61  ;;  %v4222_v57 = vmul.f32 0.5, %v11659_v61  ;;  %v11780_v46 = vld [vmem:[%s13241_s10 + $0x28] sm:$0xff] }
0x2ba5   :  { %v4223_v23 = vmul.f32 1.442695, %v4222_v57  ;;  %v11787_v57 = vld [vmem:[%s13241_s10 + $0x20] sm:$0xff] }
0x2ba7   :  { %9175 = vpow2.f32 %v4223_v23  ;;  %v11794_v23 = vld [vmem:[%s13241_s10 + $0x18] sm:$0xff] }
0x2bb4   :  { %v9176_v3 = vpop.eup %9175 }
0x2bb5   :  { %4226 = vrot.lane.b32.xlu0 %v9176_v3, %s9694_s7  ;;  %v11801_v3 = vld [vmem:[%s13241_s10 + $0x10] sm:$0xff] }
0x2c27   :  { %v4227_v21 = vpop.permute.xlu0 %4226 }
0x2c28   :  { %v4229_v6 = vmul.f32 %v7695_v33, %v4227_v21  ;;  %v11808_v33 = vld [vmem:[%s13241_s10 + $0x8] sm:$0xff]  ;;  %v11815_v21 = vld [vmem:[%s13241_s10] sm:$0xff] }
0x2c2a   :  { %v11667_v8 = vadd.f32 %v4229_v6, %v11659_v61 }
0x2c2c   :  { %13251 = vst [vmem:[#allocation43_spill] sm:$0xff] %v11667_v8  ;;  %v4266_v19 = vsel %vm3068_vm9, %v11667_v8, %v4264_v54 }
0x2c2d   :  { %8393 = vmatmul.mubr.msk.f32.vlgmr.msra.gmra.mxu1 %vm3086_vm10, %v4266_v19 }
0x2c2e   :  { %8412 = vmatpush3.msra.mxu1 %v11383_v52  ;;  %8431 = vmatprep.mubr.msk.f32.mxu1 %vm9692_vm3, %v13182_v37 }
0x2c2f   :  { %8413 = vmatprep.subr.mxu1 %v13182_v37 }
0x2c30   :  { %8414 = vmatpush3.msra.mxu1 %v11392_v59 }
0x2c31   :  { %8415 = vmatprep.subr.mxu1 %v13182_v37 }
0x2c32   :  { %8416 = vmatpush3.msra.mxu1 %v11401_v43 }
0x2c33   :  { %8417 = vmatprep.subr.mxu1 %v13182_v37 }
0x2c34   :  { %8418 = vmatpush3.msra.mxu1 %v11408_v1 }
0x2c35   :  { %8419 = vmatprep.subr.mxu1 %v13182_v37 }
0x2c36   :  { %8420 = vmatpush3.msra.mxu1 %v11415_v2 }
0x2c37   :  { %8421 = vmatprep.subr.mxu1 %v13182_v37 }
0x2c38   :  { %8422 = vmatpush3.msra.mxu1 %v11422_v9 }
0x2c39   :  { %8423 = vmatprep.subr.mxu1 %v13182_v37 }
0x2c3a   :  { %8424 = vmatpush3.msra.mxu1 %v11429_v12 }
0x2c3b   :  { %8425 = vmatprep.subr.mxu1 %v13182_v37 }
0x2c3c   :  { %8426 = vmatpush3.msra.mxu1 %v11438_v32 }
0x2c3d   :  { %8427 = vmatprep.subr.mxu1 %v13182_v37 }
0x2c3e   :  { %8428 = vmatpush3.msra.mxu1 %v11445_v14 }
0x2c3f   :  { %8429 = vmatprep.subr.mxu1 %v13182_v37 }
0x2c40   :  { %8430 = vmatpush3.msra.mxu1 %v11451_v51 }
0x2c41   :  { %8463 = vmatprep.subr.mxu1 %v13182_v37 }
0x2ced   :  { %v4336_v30 = vpop.f32.mrf.mxu1 }
0x2cee   :  { %v4337_v28 = vadd.f32 %v11323_v24, %v4336_v30 }
0x2cef   :  { %v8394_v10 = vpop.f32.mrf.mxu1 }
0x2cf0   :  { %4347 = vrot.lane.b32.xlu0 %v4337_v28, %s9687_s22  ;;  %v7699_v38 = vmul.f32 -1.442695, %v4337_v28 }
0x2cf2   :  { %9177 = vpow2.f32 %v7699_v38 }
0x2cff   :  { %v9178_v36 = vpop.eup %9177 }
0x2d00   :  { %v4343_v40 = vadd.f32 1.0, %v9178_v36  ;;  %v11826_v36 = vld [vmem:[%s13074_s17 + $0x18] sm:$0xff] }
0x2d02   :  { %9179 = vrcp.f32 %v4343_v40  ;;  %v11835_v40 = vld [vmem:[%s13074_s17 + $0x10] sm:$0xff] }
0x2d0f   :  { %v9180_v41 = vpop.eup %9179 }
0x2d10   :  { %v4357_v24 = vsub.f32 1.0, %v9180_v41  ;;  %v4363_v7 = vmul.f32 %v9180_v41, %v11555_v18 }
0x2d62   :  { %v4348_v60 = vpop.permute.xlu0 %4347 }
0x2d63   :  { %v4350_v11 = vmul.f32 %v9180_v41, %v4348_v60  ;;  %v11842_v41 = vld [vmem:[%s13074_s17 + $0x8] sm:$0xff]  ;;  %v11849_v60 = vld [vmem:[%s13074_s17] sm:$0xff] }
0x2d65   :  { %4352 = vrot.lane.b32.xlu1 %v4350_v11, %s9688_s16 }
0x2dd7   :  { %v4353_v44 = vpop.permute.xlu1 %4352 }
0x2dd8   :  { %v4355_v49 = vadd.f32 %v4353_v44, %v4337_v28 }
0x2dda   :  { %9181 = vtanh.f32 %v4355_v49 }
0x2de7   :  { %v9182_v5 = vpop.eup %9181 }
0x2de8   :  { %4359 = vrot.lane.b32.xlu0 %v9182_v5, %s9689_s9 }
0x2dec   :  { %1771 = vrot.lane.b32.xlu0 %v10797_v45, %s9689_s9 }
0x2e5a   :  { %v4360_v25 = vpop.permute.xlu0 %4359 }
0x2e5b   :  { %v4362_v58 = vmul.f32 %v4360_v25, %v4357_v24  ;;  %v11858_v24 = vld [vmem:[%s13072_s15 + $0x18] sm:$0xff]  ;;  %v11874_v25 = vld [vmem:[%s13072_s15 + $0x8] sm:$0xff] }
0x2e5d   :  { %v4364_v62 = vadd.f32 %v4363_v7, %v4362_v58  ;;  %v11881_v7 = vld [vmem:[%s13072_s15] sm:$0xff] }
0x2e5e   :  { %v1772_v48 = vpop.permute.xlu0 %1771 }
0x2e5f   :  { %v4365_v39 = vmax.f32 %v4364_v62, 0.0  ;;  %1775 = vst.msk [vmem:[#allocation3 + $0x18] sm:$0xff] %vm626_vm4, %v1772_v48  ;;  %v11885_v62 = vld [vmem:[#allocation11] ss:$0 sm:$0xff] }
0x2e61   :  { %v11702_v55 = vmin.f32 %v4365_v39, 5.0 }
0x2e63   :  { %4368 = vrot.lane.b32.xlu1 %v11702_v55, %s9689_s9 }
0x2e66   :  { %v4618_v13 = vld [vmem:[#allocation3 + $0x18] sm:$0xff] }
0x2e67   :  { %1481 = vrot.lane.b32.xlu1 %v13252_v53, %s9689_s9  ;;  %4620 = vrot.lane.b32.xlu0 %v4618_v13, %s9687_s22 }
0x2e6b   :  { %4626 = vrot.lane.b32.xlu0 %v11638_v34, %s9695_s14 }
0x2ed5   :  { %v4369_v45 = vpop.permute.xlu1 %4368 }
0x2ed6   :  { %8404 = vmatmul.mubr.msk.f32.vlgmr.msra.gmra.mxu0 %vm626_vm4, %v4369_v45 }
0x2ed7   :  { %8407 = vmatpush3.msra.mxu0 %v11373_v27  ;;  %8408 = vmatprep.mubr.msk.f32.mxu0 %vm9692_vm3, %v13182_v37  ;;  %v11729_v27 = vld [vmem:[%s13241_s10 + $0x60] sm:$0xff] }
0x2ed8   :  { %8434 = vmatprep.subr.mxu0 %v13182_v37 }
0x2ed9   :  { %v1482_v18 = vpop.permute.xlu1 %1481  ;;  %v4621_v6 = vpop.permute.xlu0 %4620 }
0x2eda   :  { %1485 = vst.msk [vmem:[#allocation2 + $0x18] sm:$0xff] %vm626_vm4, %v1482_v18 }
0x2edd   :  { %v4627_v28 = vpop.permute.xlu0 %4626 }
0x2ee1   :  { %v4617_v54 = vld [vmem:[#allocation2 + $0x18] sm:$0xff] }
0x2ee2   :  { %v4629_v19 = vsel %vm626_vm4, %v4617_v54, %v4621_v6 }
0x2f96   :  { %v4438_v29 = vpop.f32.mrf.mxu0 }
0x2f97   :  { %v11720_v50 = vadd.f32 %v11717_v63, %v4438_v29 }
0x2f98   :  { %v8405_v31 = vpop.f32.mrf.mxu0 }
0x2f99   :  { %13253 = vst [vmem:[#allocation45_spill] sm:$0xff] %v11720_v50  ;;  %4623 = vrot.lane.b32.xlu1 %v11720_v50, %s9688_s16  ;;  %8409 = vmatmul.mubr.msk.f32.vlgmr.msra.gmra.mxu0 %vm3269_vm11, %v11720_v50 }
0x2f9a   :  { %8435 = vmatpush3.msra.mxu0 %v11729_v27  ;;  %8460 = vmatprep.mubr.msk.f32.mxu0 %vm9692_vm3, %v13182_v37 }
0x2f9b   :  { %8436 = vmatprep.subr.mxu0 %v13182_v37 }
0x2f9c   :  { %8437 = vmatpush3.msra.mxu0 %v11738_v20 }
0x2f9d   :  { %8438 = vmatprep.subr.mxu0 %v13182_v37 }
0x2f9e   :  { %8439 = vmatpush3.msra.mxu0 %v11745_v0 }
0x2f9f   :  { %8440 = vmatprep.subr.mxu0 %v13182_v37 }
0x2fa0   :  { %8441 = vmatpush3.msra.mxu0 %v11752_v4 }
0x2fa1   :  { %8442 = vmatprep.subr.mxu0 %v13182_v37 }
0x2fa2   :  { %8443 = vmatpush3.msra.mxu0 %v11759_v17 }
0x2fa3   :  { %8444 = vmatprep.subr.mxu0 %v13182_v37 }
0x2fa4   :  { %8445 = vmatpush3.msra.mxu0 %v11766_v16 }
0x2fa5   :  { %8446 = vmatprep.subr.mxu0 %v13182_v37 }
0x2fa6   :  { %8447 = vmatpush3.msra.mxu0 %v11773_v42 }
0x2fa7   :  { %8448 = vmatprep.subr.mxu0 %v13182_v37 }
0x2fa8   :  { %8449 = vmatpush3.msra.mxu0 %v11780_v46 }
0x2fa9   :  { %8450 = vmatprep.subr.mxu0 %v13182_v37 }
0x2faa   :  { %8451 = vmatpush3.msra.mxu0 %v11787_v57 }
0x2fab   :  { %8452 = vmatprep.subr.mxu0 %v13182_v37 }
0x2fac   :  { %8453 = vmatpush3.msra.mxu0 %v11794_v23 }
0x2fad   :  { %8454 = vmatprep.subr.mxu0 %v13182_v37 }
0x2fae   :  { %8455 = vmatpush3.msra.mxu0 %v11801_v3 }
0x2faf   :  { %8456 = vmatprep.subr.mxu0 %v13182_v37 }
0x2fb0   :  { %8457 = vmatpush3.msra.mxu0 %v11808_v33 }
0x2fb1   :  { %8458 = vmatprep.subr.mxu0 %v13182_v37 }
0x2fb2   :  { %8459 = vmatpush3.msra.mxu0 %v11815_v21 }
0x2fb3   :  { %8487 = vmatprep.subr.mxu0 %v13182_v37 }
0x300b   :  { %v4624_v30 = vpop.permute.xlu1 %4623 }
0x300c   :  { %v4630_v10 = vsel %vm2647_vm5, %v4629_v19, %v4624_v30 }
0x300d   :  { %v4631_v38 = vsel %vm2862_vm6, %v4630_v10, %v4627_v28 }
0x300e   :  { %8461 = vmatmul.mubr.msk.f32.vlgmr.msra.gmra.mxu0 %vm2864_vm7, %v4631_v38 }
0x300f   :  { %8488 = vmatpush3.msra.mxu0 %v11826_v36  ;;  %8495 = vmatprep.mubr.msk.f32.mxu0 %vm9692_vm3, %v13182_v37 }
0x3010   :  { %8489 = vmatprep.subr.mxu0 %v13182_v37 }
0x3011   :  { %8490 = vmatpush3.msra.mxu0 %v11835_v40 }
0x3012   :  { %8491 = vmatprep.subr.mxu0 %v13182_v37 }
0x3013   :  { %8492 = vmatpush3.msra.mxu0 %v11842_v41 }
0x3014   :  { %8493 = vmatprep.subr.mxu0 %v13182_v37 }
0x3015   :  { %8494 = vmatpush3.msra.mxu0 %v11849_v60 }
0x3016   :  { %8498 = vmatprep.subr.mxu0 %v13182_v37 }
0x3059   :  { %v4511_v11 = vpop.f32.mrf.mxu0 }
0x305a   :  { %v4512_v44 = vadd.f32 %v11470_v15, %v4511_v11  ;;  %v11867_v15 = vld [vmem:[%s13072_s15 + $0x10] sm:$0xff] }
0x305b   :  { %v8410_v49 = vpop.f32.mrf.mxu0 }
0x305c   :  { %v4515_v5 = vmax.f32 %v4512_v44, 0.0 }
0x305e   :  { %8432 = vmatmul.mubr.msk.f32.vlgmr.msra.gmra.mxu1 %vm367_vm2, %v4515_v5 }
0x305f   :  { %8464 = vmatpush3.msra.mxu1 %v11858_v24  ;;  %8471 = vmatprep.mubr.msk.f32.mxu1 %vm9692_vm3, %v13182_v37 }
0x3060   :  { %8465 = vmatprep.subr.mxu1 %v13182_v37 }
0x3061   :  { %8466 = vmatpush3.msra.mxu1 %v11867_v15 }
0x3062   :  { %8467 = vmatprep.subr.mxu1 %v13182_v37 }
0x3063   :  { %8468 = vmatpush3.msra.mxu1 %v11874_v25 }
0x3064   :  { %8469 = vmatprep.subr.mxu1 %v13182_v37 }
0x3065   :  { %8470 = vmatpush3.msra.mxu1 %v11881_v7 }
0x3066   :  { %8474 = vmatprep.subr.mxu1 %v13182_v37 }
0x30ce   :  { %v4701_v58 = vpop.f32.mrf.mxu0 }
0x30cf   :  { %v4702_v48 = vadd.f32 %v11885_v62, %v4701_v58 }
0x30d0   :  { %v8462_v39 = vpop.f32.mrf.mxu0 }
0x30d1   :  { %4712 = vrot.lane.b32.xlu1 %v4702_v48, %s9687_s22  ;;  %v7706_v13 = vmul.f32 -1.442695, %v4702_v48  ;;  %v11921_v39 = vld [vmem:[%s13068_s11 + $0x10] sm:$0xff] }
0x30d3   :  { %9183 = vpow2.f32 %v7706_v13  ;;  %v11928_v13 = vld [vmem:[%s13068_s11 + $0x8] sm:$0xff] }
0x30e0   :  { %v9184_v18 = vpop.eup %9183 }
0x30e1   :  { %v4708_v29 = vadd.f32 1.0, %v9184_v18 }
0x30e3   :  { %9185 = vrcp.f32 %v4708_v29  ;;  %v11939_v29 = vld [vmem:[#allocation15] ss:$0 sm:$0xff] }
0x30f0   :  { %v9186_v31 = vpop.eup %9185 }
0x30f1   :  { %v4722_v10 = vsub.f32 1.0, %v9186_v31  ;;  %v4728_v11 = vmul.f32 %v9186_v31, %v11638_v34  ;;  %v11914_v34 = vld [vmem:[%s13068_s11 + $0x18] sm:$0xff] }
0x311e   :  { %v11889_v53 = vpop.f32.mrf.mxu1 }
0x311f   :  { %13254 = vst [vmem:[#allocation36_spill] sm:$0xff] %v11889_v53 }
0x3120   :  { %v8433_v45 = vpop.f32.mrf.mxu1 }
0x3121   :  { %v11935_v45 = vld [vmem:[%s13068_s11] sm:$0xff] }
0x3143   :  { %v4713_v6 = vpop.permute.xlu1 %4712 }
0x3144   :  { %v4715_v54 = vmul.f32 %v9186_v31, %v4713_v6 }
0x3146   :  { %4717 = vrot.lane.b32.xlu0 %v4715_v54, %s9688_s16 }
0x31b8   :  { %v4718_v19 = vpop.permute.xlu0 %4717 }
0x31b9   :  { %v4720_v30 = vadd.f32 %v4718_v19, %v4702_v48  ;;  %v11904_v48 = vld [vmem:[%s13068_s11 + $0x20] sm:$0x3] }
0x31bb   :  { %9187 = vtanh.f32 %v4720_v30 }
0x31c8   :  { %v9188_v28 = vpop.eup %9187 }
0x31c9   :  { %4724 = vrot.lane.b32.xlu1 %v9188_v28, %s9689_s9  ;;  %v7708_v28 = vld [vmem:[%s13243_s26 + $0x18] sm:$0xff] }
0x323b   :  { %v4725_v38 = vpop.permute.xlu1 %4724 }
0x323c   :  { %v4727_v44 = vmul.f32 %v4725_v38, %v4722_v10 }
0x323e   :  { %v4729_v49 = vadd.f32 %v4728_v11, %v4727_v44 }
0x3240   :  { %v11894_v5 = vmin.f32 %v4729_v49, 5.0 }
0x3242   :  { %4732 = vrot.lane.b32.xlu0 %v11894_v5, %s9689_s9 }
0x3246   :  { %4849 = vrot.lane.b32.xlu0 %v11702_v55, %s9696_s27 }
0x32b4   :  { %v4733_v58 = vpop.permute.xlu0 %4732 }
0x32b5   :  { %8472 = vmatmul.mubr.msk.f32.vlgmr.msra.gmra.mxu1 %vm626_vm4, %v4733_v58 }
0x32b6   :  { %8475 = vmatpush3.msk.msra.mxu1 %vm3090_vm8, %v11904_v48  ;;  %8484 = vmatprep.mubr.msk.f32.mxu1 %vm9692_vm3, %v13182_v37 }
0x32b7   :  { %8476 = vmatprep.subr.mxu1 %v13182_v37 }
0x32b8   :  { %8477 = vmatpush3.msra.mxu1 %v11914_v34  ;;  %v4850_v44 = vpop.permute.xlu0 %4849 }
0x32b9   :  { %8478 = vmatprep.subr.mxu1 %v13182_v37 }
0x32ba   :  { %8479 = vmatpush3.msra.mxu1 %v11921_v39 }
0x32bb   :  { %8480 = vmatprep.subr.mxu1 %v13182_v37 }
0x32bc   :  { %8481 = vmatpush3.msra.mxu1 %v11928_v13 }
0x32bd   :  { %8482 = vmatprep.subr.mxu1 %v13182_v37 }
0x32be   :  { %8483 = vmatpush3.msra.mxu1 %v11935_v45 }
0x32bf   :  { %8503 = vmatprep.subr.mxu1 %v13182_v37 }
0x3375   :  { %v4802_v18 = vpop.f32.mrf.mxu1 }
0x3376   :  { %v11942_v31 = vadd.f32 %v11939_v29, %v4802_v18 }
0x3377   :  { %v8473_v6 = vpop.f32.mrf.mxu1 }
0x3378   :  { %13255 = vst [vmem:[#allocation53_spill] sm:$0xff] %v11942_v31  ;;  %v4808_v54 = vmul.f32 0.5, %v11942_v31 }
0x337a   :  { %v4809_v19 = vmul.f32 1.442695, %v4808_v54  ;;  %v13257_v54 = vld [vmem:[#allocation54_spill] sm:$0xff] }
0x337c   :  { %9189 = vpow2.f32 %v4809_v19 }
0x3389   :  { %v9190_v30 = vpop.eup %9189 }
0x338a   :  { %4812 = vrot.lane.b32.xlu1 %v9190_v30, %s9694_s7 }
0x33fc   :  { %v4813_v10 = vpop.permute.xlu1 %4812 }
0x33fd   :  { %v4815_v38 = vmul.f32 %v7708_v28, %v4813_v10 }
0x33ff   :  { %v11950_v11 = vadd.f32 %v4815_v38, %v11942_v31 }
0x3401   :  { %13256 = vst [vmem:[#allocation55_spill] sm:$0xff] %v11950_v11  ;;  %v4852_v49 = vsel %vm3068_vm9, %v11950_v11, %v4850_v44 }
0x3402   :  { %8485 = vmatmul.mubr.msk.f32.vlgmr.msra.gmra.mxu1 %vm3086_vm10, %v4852_v49 }
0x3403   :  { %8504 = vmatpush3.msra.mxu1 %v11383_v52  ;;  %8523 = vmatprep.mubr.msk.f32.mxu1 %vm9692_vm3, %v13182_v37 }
0x3404   :  { %8505 = vmatprep.subr.mxu1 %v13182_v37 }
0x3405   :  { %8506 = vmatpush3.msra.mxu1 %v11392_v59  ;;  %v11977_v59 = vld [vmem:[#allocation12] ss:$0 sm:$0xff] }
0x3406   :  { %8507 = vmatprep.subr.mxu1 %v13182_v37 }
0x3407   :  { %8508 = vmatpush3.msra.mxu1 %v11401_v43 }
0x3408   :  { %8509 = vmatprep.subr.mxu1 %v13182_v37 }
0x3409   :  { %8510 = vmatpush3.msra.mxu1 %v11408_v1 }
0x340a   :  { %8511 = vmatprep.subr.mxu1 %v13182_v37 }
0x340b   :  { %8512 = vmatpush3.msra.mxu1 %v11415_v2 }
0x340c   :  { %8513 = vmatprep.subr.mxu1 %v13182_v37 }
0x340d   :  { %8514 = vmatpush3.msra.mxu1 %v11422_v9 }
0x340e   :  { %8515 = vmatprep.subr.mxu1 %v13182_v37 }
0x340f   :  { %8516 = vmatpush3.msra.mxu1 %v11429_v12 }
0x3410   :  { %8517 = vmatprep.subr.mxu1 %v13182_v37 }
0x3411   :  { %8518 = vmatpush3.msra.mxu1 %v11438_v32 }
0x3412   :  { %8519 = vmatprep.subr.mxu1 %v13182_v37 }
0x3413   :  { %8520 = vmatpush3.msra.mxu1 %v11445_v14 }
0x3414   :  { %8521 = vmatprep.subr.mxu1 %v13182_v37 }
0x3415   :  { %8522 = vmatpush3.msra.mxu1 %v11451_v51 }
0x3416   :  { %8555 = vmatprep.subr.mxu1 %v13182_v37 }
0x34c2   :  { %v4922_v52 = vpop.f32.mrf.mxu1 }
0x34c3   :  { %v4923_v43 = vadd.f32 %v11977_v59, %v4922_v52 }
0x34c4   :  { %v8486_v1 = vpop.f32.mrf.mxu1 }
0x34c5   :  { %4933 = vrot.lane.b32.xlu1 %v4923_v43, %s9687_s22  ;;  %v7712_v2 = vmul.f32 -1.442695, %v4923_v43  ;;  %v11997_v1 = vld [vmem:[#allocation18] sm:$0xff] }
0x34c7   :  { %9191 = vpow2.f32 %v7712_v2 }
0x34d4   :  { %v9192_v9 = vpop.eup %9191 }
0x34d5   :  { %v4929_v12 = vadd.f32 1.0, %v9192_v9 }
0x34d7   :  { %9193 = vrcp.f32 %v4929_v12 }
0x34e4   :  { %v9194_v32 = vpop.eup %9193 }
0x34e5   :  { %v4943_v19 = vsub.f32 1.0, %v9194_v32  ;;  %v4949_v28 = vmul.f32 %v9194_v32, %v11702_v55 }
0x3537   :  { %v4934_v14 = vpop.permute.xlu1 %4933 }
0x3538   :  { %v4936_v58 = vmul.f32 %v9194_v32, %v4934_v14 }
0x353a   :  { %4938 = vrot.lane.b32.xlu0 %v4936_v58, %s9688_s16 }
0x35ac   :  { %v4939_v51 = vpop.permute.xlu0 %4938 }
0x35ad   :  { %v4941_v18 = vadd.f32 %v4939_v51, %v4923_v43 }
0x35af   :  { %9195 = vtanh.f32 %v4941_v18 }
0x35bc   :  { %v9196_v6 = vpop.eup %9195 }
0x35bd   :  { %4945 = vrot.lane.b32.xlu1 %v9196_v6, %s9689_s9 }
0x35c1   :  { %1487 = vrot.lane.b32.xlu1 %v13257_v54, %s9689_s9 }
0x362f   :  { %v4946_v30 = vpop.permute.xlu1 %4945 }
0x3630   :  { %v4948_v10 = vmul.f32 %v4946_v30, %v4943_v19  ;;  %v12053_v30 = vld [vmem:[#allocation20] ss:$0 sm:$0xff] }
0x3632   :  { %v4950_v38 = vadd.f32 %v4949_v28, %v4948_v10 }
0x3633   :  { %v1488_v44 = vpop.permute.xlu1 %1487 }
0x3634   :  { %v4951_v49 = vmax.f32 %v4950_v38, 0.0  ;;  %1491 = vst.msk [vmem:[#allocation3 + $0x20] sm:$0xff] %vm626_vm4, %v1488_v44 }
0x3636   :  { %v11987_v52 = vmin.f32 %v4951_v49, 5.0 }
0x3638   :  { %4954 = vrot.lane.b32.xlu0 %v11987_v52, %s9689_s9 }
0x363b   :  { %v5204_v43 = vld [vmem:[#allocation3 + $0x20] sm:$0xff] }
0x363c   :  { %1765 = vrot.lane.b32.xlu0 %v10789_v47, %s9689_s9  ;;  %5206 = vrot.lane.b32.xlu1 %v5204_v43, %s9687_s22 }
0x3640   :  { %5212 = vrot.lane.b32.xlu1 %v11894_v5, %s9695_s14 }
0x36aa   :  { %v4955_v55 = vpop.permute.xlu0 %4954 }
0x36ab   :  { %8496 = vmatmul.mubr.msk.f32.vlgmr.msra.gmra.mxu0 %vm626_vm4, %v4955_v55 }
0x36ac   :  { %8499 = vmatpush3.msra.mxu0 %v11997_v1  ;;  %8500 = vmatprep.mubr.msk.f32.mxu0 %vm9692_vm3, %v13182_v37 }
0x36ad   :  { %8526 = vmatprep.subr.mxu0 %v13182_v37 }
0x36ae   :  { %v1766_v2 = vpop.permute.xlu0 %1765  ;;  %v5207_v32 = vpop.permute.xlu1 %5206 }
0x36af   :  { %1769 = vst.msk [vmem:[#allocation2 + $0x20] sm:$0xff] %vm626_vm4, %v1766_v2 }
0x36b2   :  { %v5213_v18 = vpop.permute.xlu1 %5212 }
0x36b6   :  { %v5203_v14 = vld [vmem:[#allocation2 + $0x20] sm:$0xff] }
0x36b7   :  { %v5215_v58 = vsel %vm626_vm4, %v5203_v14, %v5207_v32 }
0x376b   :  { %v5024_v47 = vpop.f32.mrf.mxu0 }
0x376c   :  { %v12005_v9 = vadd.f32 %v11717_v63, %v5024_v47 }
0x376d   :  { %v8497_v12 = vpop.f32.mrf.mxu0 }
0x376e   :  { %13258 = vst [vmem:[#allocation54_spill] sm:$0xff] %v12005_v9  ;;  %5209 = vrot.lane.b32.xlu0 %v12005_v9, %s9688_s16  ;;  %8501 = vmatmul.mubr.msk.f32.vlgmr.msra.gmra.mxu0 %vm3269_vm11, %v12005_v9 }
0x376f   :  { %8527 = vmatpush3.msra.mxu0 %v11729_v27  ;;  %8552 = vmatprep.mubr.msk.f32.mxu0 %vm9692_vm3, %v13182_v37 }
0x3770   :  { %8528 = vmatprep.subr.mxu0 %v13182_v37 }
0x3771   :  { %8529 = vmatpush3.msra.mxu0 %v11738_v20 }
0x3772   :  { %8530 = vmatprep.subr.mxu0 %v13182_v37 }
0x3773   :  { %8531 = vmatpush3.msra.mxu0 %v11745_v0 }
0x3774   :  { %8532 = vmatprep.subr.mxu0 %v13182_v37 }
0x3775   :  { %8533 = vmatpush3.msra.mxu0 %v11752_v4 }
0x3776   :  { %8534 = vmatprep.subr.mxu0 %v13182_v37 }
0x3777   :  { %8535 = vmatpush3.msra.mxu0 %v11759_v17 }
0x3778   :  { %8536 = vmatprep.subr.mxu0 %v13182_v37 }
0x3779   :  { %8537 = vmatpush3.msra.mxu0 %v11766_v16 }
0x377a   :  { %8538 = vmatprep.subr.mxu0 %v13182_v37 }
0x377b   :  { %8539 = vmatpush3.msra.mxu0 %v11773_v42 }
0x377c   :  { %8540 = vmatprep.subr.mxu0 %v13182_v37 }
0x377d   :  { %8541 = vmatpush3.msra.mxu0 %v11780_v46 }
0x377e   :  { %8542 = vmatprep.subr.mxu0 %v13182_v37 }
0x377f   :  { %8543 = vmatpush3.msra.mxu0 %v11787_v57 }
0x3780   :  { %8544 = vmatprep.subr.mxu0 %v13182_v37 }
0x3781   :  { %8545 = vmatpush3.msra.mxu0 %v11794_v23 }
0x3782   :  { %8546 = vmatprep.subr.mxu0 %v13182_v37 }
0x3783   :  { %8547 = vmatpush3.msra.mxu0 %v11801_v3 }
0x3784   :  { %8548 = vmatprep.subr.mxu0 %v13182_v37 }
0x3785   :  { %8549 = vmatpush3.msra.mxu0 %v11808_v33 }
0x3786   :  { %8550 = vmatprep.subr.mxu0 %v13182_v37 }
0x3787   :  { %8551 = vmatpush3.msra.mxu0 %v11815_v21 }
0x3788   :  { %8579 = vmatprep.subr.mxu0 %v13182_v37 }
0x37e0   :  { %v5210_v51 = vpop.permute.xlu0 %5209 }
0x37e1   :  { %v5216_v6 = vsel %vm2647_vm5, %v5215_v58, %v5210_v51 }
0x37e2   :  { %v5217_v54 = vsel %vm2862_vm6, %v5216_v6, %v5213_v18 }
0x37e3   :  { %8553 = vmatmul.mubr.msk.f32.vlgmr.msra.gmra.mxu0 %vm2864_vm7, %v5217_v54 }
0x37e4   :  { %8580 = vmatpush3.msra.mxu0 %v11826_v36  ;;  %8587 = vmatprep.mubr.msk.f32.mxu0 %vm9692_vm3, %v13182_v37 }
0x37e5   :  { %8581 = vmatprep.subr.mxu0 %v13182_v37 }
0x37e6   :  { %8582 = vmatpush3.msra.mxu0 %v11835_v40 }
0x37e7   :  { %8583 = vmatprep.subr.mxu0 %v13182_v37 }
0x37e8   :  { %8584 = vmatpush3.msra.mxu0 %v11842_v41 }
0x37e9   :  { %8585 = vmatprep.subr.mxu0 %v13182_v37 }
0x37ea   :  { %8586 = vmatpush3.msra.mxu0 %v11849_v60 }
0x37eb   :  { %8590 = vmatprep.subr.mxu0 %v13182_v37 }
0x382e   :  { %v5097_v19 = vpop.f32.mrf.mxu0 }
0x382f   :  { %v5098_v28 = vadd.f32 %v12053_v30, %v5097_v19 }
0x3830   :  { %v8502_v10 = vpop.f32.mrf.mxu0 }
0x3831   :  { %v5101_v38 = vmax.f32 %v5098_v28, 0.0 }
0x3833   :  { %8524 = vmatmul.mubr.msk.f32.vlgmr.msra.gmra.mxu1 %vm367_vm2, %v5101_v38 }
0x3834   :  { %8556 = vmatpush3.msra.mxu1 %v11858_v24  ;;  %8563 = vmatprep.mubr.msk.f32.mxu1 %vm9692_vm3, %v13182_v37 }
0x3835   :  { %8557 = vmatprep.subr.mxu1 %v13182_v37 }
0x3836   :  { %8558 = vmatpush3.msra.mxu1 %v11867_v15 }
0x3837   :  { %8559 = vmatprep.subr.mxu1 %v13182_v37 }
0x3838   :  { %8560 = vmatpush3.msra.mxu1 %v11874_v25 }
0x3839   :  { %8561 = vmatprep.subr.mxu1 %v13182_v37 }
0x383a   :  { %8562 = vmatpush3.msra.mxu1 %v11881_v7 }
0x383b   :  { %8566 = vmatprep.subr.mxu1 %v13182_v37 }
0x38a3   :  { %v5287_v44 = vpop.f32.mrf.mxu0 }
0x38a4   :  { %v5288_v49 = vadd.f32 %v11885_v62, %v5287_v44 }
0x38a5   :  { %v8554_v43 = vpop.f32.mrf.mxu0 }
0x38a6   :  { %5298 = vrot.lane.b32.xlu0 %v5288_v49, %s9687_s22  ;;  %v7719_v55 = vmul.f32 -1.442695, %v5288_v49 }
0x38a8   :  { %9197 = vpow2.f32 %v7719_v55 }
0x38b5   :  { %v9198_v12 = vpop.eup %9197 }
0x38b6   :  { %v5294_v32 = vadd.f32 1.0, %v9198_v12 }
0x38b8   :  { %9199 = vrcp.f32 %v5294_v32 }
0x38c5   :  { %v9200_v14 = vpop.eup %9199 }
0x38c6   :  { %v5308_v19 = vsub.f32 1.0, %v9200_v14  ;;  %v5314_v10 = vmul.f32 %v9200_v14, %v11894_v5 }
0x38f3   :  { %v12069_v2 = vpop.f32.mrf.mxu1 }
0x38f4   :  { %13259 = vst [vmem:[#allocation56_spill] sm:$0xff] %v12069_v2 }
0x38f5   :  { %v8525_v47 = vpop.f32.mrf.mxu1 }
0x3918   :  { %v5299_v58 = vpop.permute.xlu0 %5298 }
0x3919   :  { %v5301_v51 = vmul.f32 %v9200_v14, %v5299_v58  ;;  %v7721_v58 = vld [vmem:[%s13243_s26 + $0x20] sm:$0xff] }
0x391b   :  { %5303 = vrot.lane.b32.xlu1 %v5301_v51, %s9688_s16 }
0x398d   :  { %v5304_v18 = vpop.permute.xlu1 %5303 }
0x398e   :  { %v5306_v6 = vadd.f32 %v5304_v18, %v5288_v49 }
0x3990   :  { %9201 = vtanh.f32 %v5306_v6 }
0x399d   :  { %v9202_v54 = vpop.eup %9201 }
0x399e   :  { %5310 = vrot.lane.b32.xlu0 %v9202_v54, %s9689_s9 }
0x3a10   :  { %v5311_v28 = vpop.permute.xlu0 %5310 }
0x3a11   :  { %v5313_v38 = vmul.f32 %v5311_v28, %v5308_v19  ;;  %v12111_v28 = vld [vmem:[%s13078_s21 + $0x48] sm:$0xff] }
0x3a13   :  { %v5315_v44 = vadd.f32 %v5314_v10, %v5313_v38  ;;  %v12120_v10 = vld [vmem:[%s13078_s21 + $0x40] sm:$0xff]  ;;  %v12127_v38 = vld [vmem:[%s13078_s21 + $0x38] sm:$0xff] }
0x3a15   :  { %v12074_v43 = vmin.f32 %v5315_v44, 5.0  ;;  %v12134_v44 = vld [vmem:[%s13078_s21 + $0x30] sm:$0xff] }
0x3a17   :  { %5318 = vrot.lane.b32.xlu1 %v12074_v43, %s9689_s9 }
0x3a1b   :  { %5435 = vrot.lane.b32.xlu1 %v11987_v52, %s9696_s27 }
0x3a89   :  { %v5319_v55 = vpop.permute.xlu1 %5318 }
0x3a8a   :  { %8564 = vmatmul.mubr.msk.f32.vlgmr.msra.gmra.mxu1 %vm626_vm4, %v5319_v55  ;;  %v12141_v55 = vld [vmem:[%s13078_s21 + $0x28] sm:$0xff] }
0x3a8b   :  { %8567 = vmatpush3.msk.msra.mxu1 %vm3090_vm8, %v11904_v48  ;;  %8576 = vmatprep.mubr.msk.f32.mxu1 %vm9692_vm3, %v13182_v37 }
0x3a8c   :  { %8568 = vmatprep.subr.mxu1 %v13182_v37 }
0x3a8d   :  { %8569 = vmatpush3.msra.mxu1 %v11914_v34  ;;  %v5436_v54 = vpop.permute.xlu1 %5435 }
0x3a8e   :  { %8570 = vmatprep.subr.mxu1 %v13182_v37 }
0x3a8f   :  { %8571 = vmatpush3.msra.mxu1 %v11921_v39 }
0x3a90   :  { %8572 = vmatprep.subr.mxu1 %v13182_v37 }
0x3a91   :  { %8573 = vmatpush3.msra.mxu1 %v11928_v13 }
0x3a92   :  { %8574 = vmatprep.subr.mxu1 %v13182_v37 }
0x3a93   :  { %8575 = vmatpush3.msra.mxu1 %v11935_v45 }
0x3a94   :  { %8595 = vmatprep.subr.mxu1 %v13182_v37 }
0x3b4a   :  { %v5388_v5 = vpop.f32.mrf.mxu1 }
0x3b4b   :  { %v12095_v49 = vadd.f32 %v11939_v29, %v5388_v5  ;;  %v12148_v5 = vld [vmem:[%s13078_s21 + $0x20] sm:$0xff] }
0x3b4c   :  { %v8565_v47 = vpop.f32.mrf.mxu1 }
0x3b4d   :  { %13260 = vst [vmem:[#allocation57_spill] sm:$0xff] %v12095_v49  ;;  %v5394_v12 = vmul.f32 0.5, %v12095_v49  ;;  %v12155_v47 = vld [vmem:[%s13078_s21 + $0x18] sm:$0xff] }
0x3b4f   :  { %v5395_v32 = vmul.f32 1.442695, %v5394_v12  ;;  %v12162_v12 = vld [vmem:[%s13078_s21 + $0x10] sm:$0xff] }
0x3b51   :  { %9203 = vpow2.f32 %v5395_v32  ;;  %v12169_v32 = vld [vmem:[%s13078_s21 + $0x8] sm:$0xff] }
0x3b5e   :  { %v9204_v14 = vpop.eup %9203 }
0x3b5f   :  { %5398 = vrot.lane.b32.xlu0 %v9204_v14, %s9694_s7  ;;  %v12176_v14 = vld [vmem:[%s13078_s21] sm:$0xff] }
0x3bd1   :  { %v5399_v51 = vpop.permute.xlu0 %5398 }
0x3bd2   :  { %v5401_v18 = vmul.f32 %v7721_v58, %v5399_v51 }
0x3bd4   :  { %v12103_v6 = vadd.f32 %v5401_v18, %v12095_v49 }
0x3bd6   :  { %13261 = vst [vmem:[#allocation58_spill] sm:$0xff] %v12103_v6  ;;  %v5438_v19 = vsel %vm3068_vm9, %v12103_v6, %v5436_v54 }
0x3bd7   :  { %8577 = vmatmul.mubr.msk.f32.vlgmr.msra.gmra.mxu1 %vm3086_vm10, %v5438_v19 }
0x3bd8   :  { %8596 = vmatpush3.msra.mxu1 %v12111_v28  ;;  %8615 = vmatprep.mubr.msk.f32.mxu1 %vm9692_vm3, %v13182_v37 }
0x3bd9   :  { %8597 = vmatprep.subr.mxu1 %v13182_v37 }
0x3bda   :  { %8598 = vmatpush3.msra.mxu1 %v12120_v10 }
0x3bdb   :  { %8599 = vmatprep.subr.mxu1 %v13182_v37 }
0x3bdc   :  { %8600 = vmatpush3.msra.mxu1 %v12127_v38 }
0x3bdd   :  { %8601 = vmatprep.subr.mxu1 %v13182_v37 }
0x3bde   :  { %8602 = vmatpush3.msra.mxu1 %v12134_v44 }
0x3bdf   :  { %8603 = vmatprep.subr.mxu1 %v13182_v37 }
0x3be0   :  { %8604 = vmatpush3.msra.mxu1 %v12141_v55 }
0x3be1   :  { %8605 = vmatprep.subr.mxu1 %v13182_v37 }
0x3be2   :  { %8606 = vmatpush3.msra.mxu1 %v12148_v5 }
0x3be3   :  { %8607 = vmatprep.subr.mxu1 %v13182_v37 }
0x3be4   :  { %8608 = vmatpush3.msra.mxu1 %v12155_v47 }
0x3be5   :  { %8609 = vmatprep.subr.mxu1 %v13182_v37 }
0x3be6   :  { %8610 = vmatpush3.msra.mxu1 %v12162_v12 }
0x3be7   :  { %8611 = vmatprep.subr.mxu1 %v13182_v37 }
0x3be8   :  { %8612 = vmatpush3.msra.mxu1 %v12169_v32 }
0x3be9   :  { %8613 = vmatprep.subr.mxu1 %v13182_v37 }
0x3bea   :  { %8614 = vmatpush3.msra.mxu1 %v12176_v14 }
0x3beb   :  { %8647 = vmatprep.subr.mxu1 %v13182_v37 }
0x3c97   :  { %v5508_v58 = vpop.f32.mrf.mxu1 }
0x3c98   :  { %v5509_v51 = vadd.f32 %v11977_v59, %v5508_v58  ;;  %v13262_v58 = vld [vmem:[#allocation37_spill] sm:$0xff] }
0x3c99   :  { %v8578_v18 = vpop.f32.mrf.mxu1 }
0x3c9a   :  { %5519 = vrot.lane.b32.xlu0 %v5509_v51, %s9687_s22  ;;  %v7725_v54 = vmul.f32 -1.442695, %v5509_v51 }
0x3c9c   :  { %9205 = vpow2.f32 %v7725_v54 }
0x3ca9   :  { %v9206_v19 = vpop.eup %9205 }
0x3caa   :  { %v5515_v6 = vadd.f32 1.0, %v9206_v19 }
0x3cac   :  { %9207 = vrcp.f32 %v5515_v6 }
0x3cb9   :  { %v9208_v11 = vpop.eup %9207 }
0x3cba   :  { %v5529_v18 = vsub.f32 1.0, %v9208_v11  ;;  %v5535_v54 = vmul.f32 %v9208_v11, %v11987_v52 }
0x3d0c   :  { %v5520_v49 = vpop.permute.xlu0 %5519 }
0x3d0d   :  { %v5522_v9 = vmul.f32 %v9208_v11, %v5520_v49 }
0x3d0f   :  { %5524 = vrot.lane.b32.xlu1 %v5522_v9, %s9688_s16 }
0x3d81   :  { %v5525_v2 = vpop.permute.xlu1 %5524 }
0x3d82   :  { %v5527_v8 = vadd.f32 %v5525_v2, %v5509_v51 }
0x3d84   :  { %9209 = vtanh.f32 %v5527_v8 }
0x3d91   :  { %v9210_v31 = vpop.eup %9209 }
0x3d92   :  { %5531 = vrot.lane.b32.xlu0 %v9210_v31, %s9689_s9 }
0x3d96   :  { %1201 = vrot.lane.b32.xlu0 %v13262_v58, %s9689_s9 }
0x3e04   :  { %v5532_v50 = vpop.permute.xlu0 %5531 }
0x3e05   :  { %v5534_v19 = vmul.f32 %v5532_v50, %v5529_v18 }
0x3e07   :  { %v5536_v6 = vadd.f32 %v5535_v54, %v5534_v19 }
0x3e08   :  { %v1202_v53 = vpop.permute.xlu0 %1201 }
0x3e09   :  { %v5537_v61 = vmax.f32 %v5536_v6, 0.0  ;;  %1205 = vst.msk [vmem:[#allocation3 + $0x28] sm:$0xff] %vm626_vm4, %v1202_v53 }
0x3e0b   :  { %v12188_v9 = vmin.f32 %v5537_v61, 5.0 }
0x3e0d   :  { %5540 = vrot.lane.b32.xlu1 %v12188_v9, %s9689_s9 }
0x3e10   :  { %v5790_v8 = vld [vmem:[#allocation3 + $0x28] sm:$0xff] }
0x3e11   :  { %2049 = vrot.lane.b32.xlu1 %v10881_v22, %s9689_s9  ;;  %5792 = vrot.lane.b32.xlu0 %v5790_v8, %s9687_s22 }
0x3e15   :  { %5798 = vrot.lane.b32.xlu0 %v12074_v43, %s9695_s14 }
0x3e7f   :  { %v5541_v50 = vpop.permute.xlu1 %5540 }
0x3e80   :  { %8588 = vmatmul.mubr.msk.f32.vlgmr.msra.gmra.mxu0 %vm626_vm4, %v5541_v50 }
0x3e81   :  { %8591 = vmatpush3.msra.mxu0 %v11997_v1  ;;  %8592 = vmatprep.mubr.msk.f32.mxu0 %vm9692_vm3, %v13182_v37 }
0x3e82   :  { %8618 = vmatprep.subr.mxu0 %v13182_v37 }
0x3e83   :  { %v2050_v61 = vpop.permute.xlu1 %2049 }
0x3e84   :  { %2053 = vst.msk [vmem:[#allocation2 + $0x28] sm:$0xff] %vm626_vm4, %v2050_v61 }
0x3f40   :  { %v5610_v53 = vpop.f32.mrf.mxu0 }
0x3f41   :  { %v12204_v22 = vadd.f32 %v11717_v63, %v5610_v53  ;;  %v5793_v63 = vpop.permute.xlu0 %5792 }
0x3f42   :  { %v8589_v31 = vpop.f32.mrf.mxu0 }
0x3f43   :  { %5795 = vrot.lane.b32.xlu1 %v12204_v22, %s9688_s16  ;;  %8593 = vmatmul.mubr.msk.f32.vlgmr.msra.gmra.mxu0 %vm3269_vm11, %v12204_v22 }
0x3f44   :  { %8619 = vmatpush3.msra.mxu0 %v11729_v27  ;;  %8644 = vmatprep.mubr.msk.f32.mxu0 %vm9692_vm3, %v13182_v37  ;;  %v5789_v27 = vld [vmem:[#allocation2 + $0x28] sm:$0xff] }
0x3f45   :  { %8620 = vmatprep.subr.mxu0 %v13182_v37 }
0x3f46   :  { %8621 = vmatpush3.msra.mxu0 %v11738_v20  ;;  %v5801_v20 = vsel %vm626_vm4, %v5789_v27, %v5793_v63 }
0x3f47   :  { %8622 = vmatprep.subr.mxu0 %v13182_v37 }
0x3f48   :  { %8623 = vmatpush3.msra.mxu0 %v11745_v0 }
0x3f49   :  { %8624 = vmatprep.subr.mxu0 %v13182_v37 }
0x3f4a   :  { %8625 = vmatpush3.msra.mxu0 %v11752_v4  ;;  %v5799_v4 = vpop.permute.xlu0 %5798 }
0x3f4b   :  { %8626 = vmatprep.subr.mxu0 %v13182_v37 }
0x3f4c   :  { %8627 = vmatpush3.msra.mxu0 %v11759_v17 }
0x3f4d   :  { %8628 = vmatprep.subr.mxu0 %v13182_v37 }
0x3f4e   :  { %8629 = vmatpush3.msra.mxu0 %v11766_v16 }
0x3f4f   :  { %8630 = vmatprep.subr.mxu0 %v13182_v37 }
0x3f50   :  { %8631 = vmatpush3.msra.mxu0 %v11773_v42 }
0x3f51   :  { %8632 = vmatprep.subr.mxu0 %v13182_v37 }
0x3f52   :  { %8633 = vmatpush3.msra.mxu0 %v11780_v46 }
0x3f53   :  { %8634 = vmatprep.subr.mxu0 %v13182_v37 }
0x3f54   :  { %8635 = vmatpush3.msra.mxu0 %v11787_v57 }
0x3f55   :  { %8636 = vmatprep.subr.mxu0 %v13182_v37 }
0x3f56   :  { %8637 = vmatpush3.msra.mxu0 %v11794_v23 }
0x3f57   :  { %8638 = vmatprep.subr.mxu0 %v13182_v37 }
0x3f58   :  { %8639 = vmatpush3.msra.mxu0 %v11801_v3 }
0x3f59   :  { %8640 = vmatprep.subr.mxu0 %v13182_v37 }
0x3f5a   :  { %8641 = vmatpush3.msra.mxu0 %v11808_v33 }
0x3f5b   :  { %8642 = vmatprep.subr.mxu0 %v13182_v37 }
0x3f5c   :  { %8643 = vmatpush3.msra.mxu0 %v11815_v21 }
0x3f5d   :  { %8671 = vmatprep.subr.mxu0 %v13182_v37 }
0x3fb5   :  { %v5796_v0 = vpop.permute.xlu1 %5795 }
0x3fb6   :  { %v5802_v17 = vsel %vm2647_vm5, %v5801_v20, %v5796_v0 }
0x3fb7   :  { %v5803_v16 = vsel %vm2862_vm6, %v5802_v17, %v5799_v4 }
0x3fb8   :  { %8645 = vmatmul.mubr.msk.f32.vlgmr.msra.gmra.mxu0 %vm2864_vm7, %v5803_v16 }
0x3fb9   :  { %8672 = vmatpush3.msra.mxu0 %v11826_v36  ;;  %8679 = vmatprep.mubr.msk.f32.mxu0 %vm9692_vm3, %v13182_v37 }
0x3fba   :  { %8673 = vmatprep.subr.mxu0 %v13182_v37 }
0x3fbb   :  { %8674 = vmatpush3.msra.mxu0 %v11835_v40 }
0x3fbc   :  { %8675 = vmatprep.subr.mxu0 %v13182_v37 }
0x3fbd   :  { %8676 = vmatpush3.msra.mxu0 %v11842_v41 }
0x3fbe   :  { %8677 = vmatprep.subr.mxu0 %v13182_v37 }
0x3fbf   :  { %8678 = vmatpush3.msra.mxu0 %v11849_v60 }
0x3fc0   :  { %8682 = vmatprep.subr.mxu0 %v13182_v37 }
0x4003   :  { %v5683_v42 = vpop.f32.mrf.mxu0 }
0x4004   :  { %v5684_v46 = vadd.f32 %v12053_v30, %v5683_v42 }
0x4005   :  { %v8594_v57 = vpop.f32.mrf.mxu0 }
0x4006   :  { %v5687_v23 = vmax.f32 %v5684_v46, 0.0 }
0x4008   :  { %8616 = vmatmul.mubr.msk.f32.vlgmr.msra.gmra.mxu1 %vm367_vm2, %v5687_v23 }
0x4009   :  { %8648 = vmatpush3.msra.mxu1 %v11858_v24  ;;  %8655 = vmatprep.mubr.msk.f32.mxu1 %vm9692_vm3, %v13182_v37 }
0x400a   :  { %8649 = vmatprep.subr.mxu1 %v13182_v37 }
0x400b   :  { %8650 = vmatpush3.msra.mxu1 %v11867_v15 }
0x400c   :  { %8651 = vmatprep.subr.mxu1 %v13182_v37 }
0x400d   :  { %8652 = vmatpush3.msra.mxu1 %v11874_v25 }
0x400e   :  { %8653 = vmatprep.subr.mxu1 %v13182_v37 }
0x400f   :  { %8654 = vmatpush3.msra.mxu1 %v11881_v7 }
0x4010   :  { %8658 = vmatprep.subr.mxu1 %v13182_v37 }
0x4078   :  { %v5873_v3 = vpop.f32.mrf.mxu0 }
0x4079   :  { %v5874_v33 = vadd.f32 %v11885_v62, %v5873_v3 }
0x407a   :  { %v8646_v21 = vpop.f32.mrf.mxu0 }
0x407b   :  { %5884 = vrot.lane.b32.xlu1 %v5874_v33, %s9687_s22  ;;  %v7732_v36 = vmul.f32 -1.442695, %v5874_v33 }
0x407d   :  { %9211 = vpow2.f32 %v7732_v36 }
0x408a   :  { %v9212_v60 = vpop.eup %9211 }
0x408b   :  { %v5880_v24 = vadd.f32 1.0, %v9212_v60 }
0x408d   :  { %9213 = vrcp.f32 %v5880_v24 }
0x409a   :  { %v9214_v15 = vpop.eup %9213 }
0x409b   :  { %v5894_v2 = vsub.f32 1.0, %v9214_v15  ;;  %v5900_v51 = vmul.f32 %v9214_v15, %v12074_v43 }
0x40c8   :  { %v12266_v40 = vpop.f32.mrf.mxu1 }
0x40ca   :  { %v8617_v41 = vpop.f32.mrf.mxu1 }
0x40ed   :  { %v5885_v25 = vpop.permute.xlu1 %5884 }
0x40ee   :  { %v5887_v11 = vmul.f32 %v9214_v15, %v5885_v25 }
0x40f0   :  { %5889 = vrot.lane.b32.xlu0 %v5887_v11, %s9688_s16  ;;  %v13264_v11 = vld [vmem:[#allocation35_spill] sm:$0xff] }
0x4162   :  { %v5890_v7 = vpop.permute.xlu0 %5889 }
0x4163   :  { %v5892_v52 = vadd.f32 %v5890_v7, %v5874_v33 }
0x4165   :  { %9215 = vtanh.f32 %v5892_v52 }
0x4172   :  { %v9216_v62 = vpop.eup %9215 }
0x4173   :  { %5896 = vrot.lane.b32.xlu1 %v9216_v62, %s9689_s9  ;;  %v12350_v62 = vld [vmem:[#allocation17] ss:$0 sm:$0xff] }
0x41e5   :  { %v5897_v49 = vpop.permute.xlu1 %5896 }
0x41e6   :  { %v5899_v58 = vmul.f32 %v5897_v49, %v5894_v2 }
0x41e8   :  { %v5901_v18 = vadd.f32 %v5900_v51, %v5899_v58  ;;  %v12371_v51 = vld [vmem:[%s13241_s10 + $0x58] sm:$0xff]  ;;  %v12378_v58 = vld [vmem:[%s13241_s10 + $0x50] sm:$0xff] }
0x41ea   :  { %v12271_v54 = vmin.f32 %v5901_v18, 5.0  ;;  %v12385_v18 = vld [vmem:[%s13241_s10 + $0x48] sm:$0xff] }
0x41ec   :  { %5904 = vrot.lane.b32.xlu0 %v12271_v54, %s9689_s9 }
0x41f0   :  { %6021 = vrot.lane.b32.xlu0 %v12188_v9, %s9696_s27 }
0x425e   :  { %v5905_v19 = vpop.permute.xlu0 %5904 }
0x425f   :  { %8656 = vmatmul.mubr.msk.f32.vlgmr.msra.gmra.mxu1 %vm626_vm4, %v5905_v19  ;;  %v12392_v19 = vld [vmem:[%s13241_s10 + $0x40] sm:$0xff] }
0x4260   :  { %8659 = vmatpush3.msk.msra.mxu1 %vm3090_vm8, %v11904_v48  ;;  %8668 = vmatprep.mubr.msk.f32.mxu1 %vm9692_vm3, %v13182_v37 }
0x4261   :  { %8660 = vmatprep.subr.mxu1 %v13182_v37 }
0x4262   :  { %8661 = vmatpush3.msra.mxu1 %v11914_v34  ;;  %v6022_v53 = vpop.permute.xlu0 %6021 }
0x4263   :  { %8662 = vmatprep.subr.mxu1 %v13182_v37 }
0x4264   :  { %8663 = vmatpush3.msra.mxu1 %v11921_v39 }
0x4265   :  { %8664 = vmatprep.subr.mxu1 %v13182_v37 }
0x4266   :  { %8665 = vmatpush3.msra.mxu1 %v11928_v13  ;;  %v7734_v13 = vld [vmem:[%s13243_s26 + $0x28] sm:$0xff] }
0x4267   :  { %8666 = vmatprep.subr.mxu1 %v13182_v37 }
0x4268   :  { %8667 = vmatpush3.msra.mxu1 %v11935_v45 }
0x4269   :  { %8687 = vmatprep.subr.mxu1 %v13182_v37 }
0x431f   :  { %v5974_v48 = vpop.f32.mrf.mxu1 }
0x4320   :  { %v12292_v43 = vadd.f32 %v11939_v29, %v5974_v48  ;;  %v12399_v48 = vld [vmem:[%s13241_s10 + $0x38] sm:$0xff] }
0x4321   :  { %v8657_v6 = vpop.f32.mrf.mxu1 }
0x4322   :  { %v5980_v34 = vmul.f32 0.5, %v12292_v43  ;;  %v12406_v6 = vld [vmem:[%s13241_s10 + $0x30] sm:$0xff] }
0x4324   :  { %v5981_v8 = vmul.f32 1.442695, %v5980_v34  ;;  %v12413_v34 = vld [vmem:[%s13241_s10 + $0x28] sm:$0xff] }
0x4326   :  { %9217 = vpow2.f32 %v5981_v8  ;;  %v12420_v8 = vld [vmem:[%s13241_s10 + $0x20] sm:$0xff] }
0x4333   :  { %v9218_v39 = vpop.eup %9217 }
0x4334   :  { %5984 = vrot.lane.b32.xlu1 %v9218_v39, %s9694_s7  ;;  %v12427_v39 = vld [vmem:[%s13241_s10 + $0x18] sm:$0xff] }
0x43a6   :  { %v5985_v50 = vpop.permute.xlu1 %5984 }
0x43a7   :  { %v5987_v45 = vmul.f32 %v7734_v13, %v5985_v50  ;;  %v12434_v13 = vld [vmem:[%s13241_s10 + $0x10] sm:$0xff]  ;;  %v12441_v50 = vld [vmem:[%s13241_s10 + $0x8] sm:$0xff] }
0x43a9   :  { %v12300_v61 = vadd.f32 %v5987_v45, %v12292_v43  ;;  %v12448_v45 = vld [vmem:[%s13241_s10] sm:$0xff] }
0x43ab   :  { %v6024_v29 = vsel %vm3068_vm9, %v12300_v61, %v6022_v53 }
0x43ac   :  { %8669 = vmatmul.mubr.msk.f32.vlgmr.msra.gmra.mxu1 %vm3086_vm10, %v6024_v29 }
0x43ad   :  { %8688 = vmatpush3.msra.mxu1 %v12111_v28  ;;  %8707 = vmatprep.mubr.msk.f32.mxu1 %vm9692_vm3, %v13182_v37 }
0x43ae   :  { %8689 = vmatprep.subr.mxu1 %v13182_v37 }
0x43af   :  { %8690 = vmatpush3.msra.mxu1 %v12120_v10 }
0x43b0   :  { %8691 = vmatprep.subr.mxu1 %v13182_v37 }
0x43b1   :  { %8692 = vmatpush3.msra.mxu1 %v12127_v38 }
0x43b2   :  { %8693 = vmatprep.subr.mxu1 %v13182_v37 }
0x43b3   :  { %8694 = vmatpush3.msra.mxu1 %v12134_v44 }
0x43b4   :  { %8695 = vmatprep.subr.mxu1 %v13182_v37 }
0x43b5   :  { %8696 = vmatpush3.msra.mxu1 %v12141_v55 }
0x43b6   :  { %8697 = vmatprep.subr.mxu1 %v13182_v37 }
0x43b7   :  { %8698 = vmatpush3.msra.mxu1 %v12148_v5 }
0x43b8   :  { %8699 = vmatprep.subr.mxu1 %v13182_v37 }
0x43b9   :  { %8700 = vmatpush3.msra.mxu1 %v12155_v47 }
0x43ba   :  { %8701 = vmatprep.subr.mxu1 %v13182_v37 }
0x43bb   :  { %8702 = vmatpush3.msra.mxu1 %v12162_v12 }
0x43bc   :  { %8703 = vmatprep.subr.mxu1 %v13182_v37 }
0x43bd   :  { %8704 = vmatpush3.msra.mxu1 %v12169_v32 }
0x43be   :  { %8705 = vmatprep.subr.mxu1 %v13182_v37 }
0x43bf   :  { %8706 = vmatpush3.msra.mxu1 %v12176_v14 }
0x43c0   :  { %8739 = vmatprep.subr.mxu1 %v13182_v37 }
0x446c   :  { %v6094_v31 = vpop.f32.mrf.mxu1 }
0x446d   :  { %v6095_v63 = vadd.f32 %v11977_v59, %v6094_v31  ;;  %v13263_v59 = vld [vmem:[#allocation46_spill] sm:$0xff] }
0x446e   :  { %v8670_v27 = vpop.f32.mrf.mxu1 }
0x446f   :  { %6105 = vrot.lane.b32.xlu1 %v6095_v63, %s9687_s22  ;;  %v7738_v20 = vmul.f32 -1.442695, %v6095_v63 }
0x4471   :  { %9219 = vpow2.f32 %v7738_v20 }
0x447e   :  { %v9220_v0 = vpop.eup %9219 }
0x447f   :  { %v6101_v4 = vadd.f32 1.0, %v9220_v0 }
0x4481   :  { %9221 = vrcp.f32 %v6101_v4  ;;  %v12459_v4 = vld [vmem:[%s13074_s17 + $0x18] sm:$0xff] }
0x448e   :  { %v9222_v17 = vpop.eup %9221 }
0x448f   :  { %v6115_v3 = vsub.f32 1.0, %v9222_v17  ;;  %v6121_v21 = vmul.f32 %v9222_v17, %v12188_v9 }
0x44e1   :  { %v6106_v16 = vpop.permute.xlu1 %6105 }
0x44e2   :  { %v6108_v42 = vmul.f32 %v9222_v17, %v6106_v16  ;;  %v12468_v17 = vld [vmem:[%s13074_s17 + $0x10] sm:$0xff]  ;;  %v12475_v16 = vld [vmem:[%s13074_s17 + $0x8] sm:$0xff] }
0x44e4   :  { %6110 = vrot.lane.b32.xlu0 %v6108_v42, %s9688_s16  ;;  %v12482_v42 = vld [vmem:[%s13074_s17] sm:$0xff]  ;;  %s7601_s17 = sld [smem:[#allocation4 + $0x2]] }
0x4556   :  { %v6111_v46 = vpop.permute.xlu0 %6110 }
0x4557   :  { %v6113_v57 = vadd.f32 %v6111_v46, %v6095_v63 }
0x4559   :  { %9223 = vtanh.f32 %v6113_v57 }
0x4566   :  { %v9224_v23 = vpop.eup %9223 }
0x4567   :  { %6117 = vrot.lane.b32.xlu1 %v9224_v23, %s9689_s9 }
0x456b   :  { %915 = vrot.lane.b32.xlu1 %v13263_v59, %s9689_s9 }
0x45d9   :  { %v6118_v33 = vpop.permute.xlu1 %6117 }
0x45da   :  { %v6120_v36 = vmul.f32 %v6118_v33, %v6115_v3  ;;  %v12491_v3 = vld [vmem:[%s13072_s15 + $0x18] sm:$0xff]  ;;  %v12507_v33 = vld [vmem:[%s13072_s15 + $0x8] sm:$0xff] }
0x45dc   :  { %v6122_v41 = vadd.f32 %v6121_v21, %v6120_v36  ;;  %v12514_v21 = vld [vmem:[%s13072_s15] sm:$0xff] }
0x45dd   :  { %v916_v60 = vpop.permute.xlu1 %915 }
0x45de   :  { %v6123_v24 = vmax.f32 %v6122_v41, 0.0  ;;  %919 = vst.msk [vmem:[#allocation3 + $0x30] sm:$0xff] %vm626_vm4, %v916_v60  ;;  %v12518_v41 = vld [vmem:[#allocation11] ss:$0 sm:$0xff] }
0x45e0   :  { %v12335_v15 = vmin.f32 %v6123_v24, 5.0 }
0x45e2   :  { %6126 = vrot.lane.b32.xlu0 %v12335_v15, %s9689_s9 }
0x45e5   :  { %v6376_v25 = vld [vmem:[#allocation3 + $0x30] sm:$0xff] }
0x45e6   :  { %2333 = vrot.lane.b32.xlu0 %v13264_v11, %s9689_s9  ;;  %6378 = vrot.lane.b32.xlu1 %v6376_v25, %s9687_s22 }
0x45ea   :  { %6384 = vrot.lane.b32.xlu1 %v12271_v54, %s9695_s14 }
0x4654   :  { %v6127_v9 = vpop.permute.xlu0 %6126 }
0x4655   :  { %8680 = vmatmul.mubr.msk.f32.vlgmr.msra.gmra.mxu0 %vm626_vm4, %v6127_v9 }
0x4656   :  { %8683 = vmatpush3.msra.mxu0 %v11997_v1  ;;  %8684 = vmatprep.mubr.msk.f32.mxu0 %vm9692_vm3, %v13182_v37  ;;  %v12362_v1 = vld [vmem:[%s13241_s10 + $0x60] sm:$0xff] }
0x4657   :  { %8710 = vmatprep.subr.mxu0 %v13182_v37 }
0x4658   :  { %v2334_v7 = vpop.permute.xlu0 %2333  ;;  %v6379_v53 = vpop.permute.xlu1 %6378 }
0x4659   :  { %2337 = vst.msk [vmem:[#allocation2 + $0x30] sm:$0xff] %vm626_vm4, %v2334_v7 }
0x465c   :  { %v6385_v27 = vpop.permute.xlu1 %6384 }
0x4660   :  { %v6375_v29 = vld [vmem:[#allocation2 + $0x30] sm:$0xff] }
0x4661   :  { %v6387_v31 = vsel %vm626_vm4, %v6375_v29, %v6379_v53 }
0x4715   :  { %v6196_v52 = vpop.f32.mrf.mxu0 }
0x4716   :  { %v12353_v2 = vadd.f32 %v12350_v62, %v6196_v52 }
0x4717   :  { %v8681_v49 = vpop.f32.mrf.mxu0 }
0x4718   :  { %6381 = vrot.lane.b32.xlu0 %v12353_v2, %s9688_s16  ;;  %8685 = vmatmul.mubr.msk.f32.vlgmr.msra.gmra.mxu0 %vm3269_vm11, %v12353_v2 }
0x4719   :  { %8711 = vmatpush3.msra.mxu0 %v12362_v1  ;;  %8736 = vmatprep.mubr.msk.f32.mxu0 %vm9692_vm3, %v13182_v37 }
0x471a   :  { %8712 = vmatprep.subr.mxu0 %v13182_v37 }
0x471b   :  { %8713 = vmatpush3.msra.mxu0 %v12371_v51 }
0x471c   :  { %8714 = vmatprep.subr.mxu0 %v13182_v37 }
0x471d   :  { %8715 = vmatpush3.msra.mxu0 %v12378_v58 }
0x471e   :  { %8716 = vmatprep.subr.mxu0 %v13182_v37 }
0x471f   :  { %8717 = vmatpush3.msra.mxu0 %v12385_v18 }
0x4720   :  { %8718 = vmatprep.subr.mxu0 %v13182_v37 }
0x4721   :  { %8719 = vmatpush3.msra.mxu0 %v12392_v19 }
0x4722   :  { %8720 = vmatprep.subr.mxu0 %v13182_v37 }
0x4723   :  { %8721 = vmatpush3.msra.mxu0 %v12399_v48 }
0x4724   :  { %8722 = vmatprep.subr.mxu0 %v13182_v37 }
0x4725   :  { %8723 = vmatpush3.msra.mxu0 %v12406_v6 }
0x4726   :  { %8724 = vmatprep.subr.mxu0 %v13182_v37 }
0x4727   :  { %8725 = vmatpush3.msra.mxu0 %v12413_v34 }
0x4728   :  { %8726 = vmatprep.subr.mxu0 %v13182_v37 }
0x4729   :  { %8727 = vmatpush3.msra.mxu0 %v12420_v8 }
0x472a   :  { %8728 = vmatprep.subr.mxu0 %v13182_v37 }
0x472b   :  { %8729 = vmatpush3.msra.mxu0 %v12427_v39 }
0x472c   :  { %8730 = vmatprep.subr.mxu0 %v13182_v37 }
0x472d   :  { %8731 = vmatpush3.msra.mxu0 %v12434_v13 }
0x472e   :  { %8732 = vmatprep.subr.mxu0 %v13182_v37 }
0x472f   :  { %8733 = vmatpush3.msra.mxu0 %v12441_v50 }
0x4730   :  { %8734 = vmatprep.subr.mxu0 %v13182_v37 }
0x4731   :  { %8735 = vmatpush3.msra.mxu0 %v12448_v45 }
0x4732   :  { %8763 = vmatprep.subr.mxu0 %v13182_v37 }
0x478a   :  { %v6382_v63 = vpop.permute.xlu0 %6381 }
0x478b   :  { %v6388_v20 = vsel %vm2647_vm5, %v6387_v31, %v6382_v63 }
0x478c   :  { %v6389_v0 = vsel %vm2862_vm6, %v6388_v20, %v6385_v27 }
0x478d   :  { %8737 = vmatmul.mubr.msk.f32.vlgmr.msra.gmra.mxu0 %vm2864_vm7, %v6389_v0 }
0x478e   :  { %8764 = vmatpush3.msra.mxu0 %v12459_v4  ;;  %8771 = vmatprep.mubr.msk.f32.mxu0 %vm9692_vm3, %v13182_v37 }
0x478f   :  { %8765 = vmatprep.subr.mxu0 %v13182_v37 }
0x4790   :  { %8766 = vmatpush3.msra.mxu0 %v12468_v17 }
0x4791   :  { %8767 = vmatprep.subr.mxu0 %v13182_v37 }
0x4792   :  { %8768 = vmatpush3.msra.mxu0 %v12475_v16 }
0x4793   :  { %8769 = vmatprep.subr.mxu0 %v13182_v37 }
0x4794   :  { %8770 = vmatpush3.msra.mxu0 %v12482_v42 }
0x4795   :  { %8774 = vmatprep.subr.mxu0 %v13182_v37 }
0x47d8   :  { %v6269_v46 = vpop.f32.mrf.mxu0 }
0x47d9   :  { %v6270_v57 = vadd.f32 %v12053_v30, %v6269_v46  ;;  %v12500_v30 = vld [vmem:[%s13072_s15 + $0x10] sm:$0xff] }
0x47da   :  { %v8686_v23 = vpop.f32.mrf.mxu0 }
0x47db   :  { %v6273_v59 = vmax.f32 %v6270_v57, 0.0 }
0x47dd   :  { %8708 = vmatmul.mubr.msk.f32.vlgmr.msra.gmra.mxu1 %vm367_vm2, %v6273_v59 }
0x47de   :  { %8740 = vmatpush3.msra.mxu1 %v12491_v3  ;;  %8747 = vmatprep.mubr.msk.f32.mxu1 %vm9692_vm3, %v13182_v37 }
0x47df   :  { %8741 = vmatprep.subr.mxu1 %v13182_v37 }
0x47e0   :  { %8742 = vmatpush3.msra.mxu1 %v12500_v30 }
0x47e1   :  { %8743 = vmatprep.subr.mxu1 %v13182_v37 }
0x47e2   :  { %8744 = vmatpush3.msra.mxu1 %v12507_v33 }
0x47e3   :  { %8745 = vmatprep.subr.mxu1 %v13182_v37 }
0x47e4   :  { %8746 = vmatpush3.msra.mxu1 %v12514_v21 }
0x47e5   :  { %8750 = vmatprep.subr.mxu1 %v13182_v37 }
0x484d   :  { %v6459_v36 = vpop.f32.mrf.mxu0 }
0x484e   :  { %v6460_v60 = vadd.f32 %v12518_v41, %v6459_v36 }
0x484f   :  { %v8738_v24 = vpop.f32.mrf.mxu0 }
0x4850   :  { %6470 = vrot.lane.b32.xlu0 %v6460_v60, %s9687_s22  ;;  %v7745_v25 = vmul.f32 -1.442695, %v6460_v60 }
0x4852   :  { %9225 = vpow2.f32 %v7745_v25  ;;  %v12554_v25 = vld [vmem:[%s13068_s11 + $0x10] sm:$0xff] }
0x485f   :  { %v9226_v52 = vpop.eup %9225 }
0x4860   :  { %v6466_v49 = vadd.f32 1.0, %v9226_v52  ;;  %v12568_v52 = vld [vmem:[%s13068_s11] sm:$0xff] }
0x4862   :  { %9227 = vrcp.f32 %v6466_v49 }
0x486f   :  { %v9228_v53 = vpop.eup %9227 }
0x4870   :  { %v6480_v0 = vsub.f32 1.0, %v9228_v53  ;;  %v6486_v57 = vmul.f32 %v9228_v53, %v12271_v54  ;;  %v12547_v54 = vld [vmem:[%s13068_s11 + $0x18] sm:$0xff] }
0x489d   :  { %v12522_v9 = vpop.f32.mrf.mxu1 }
0x489f   :  { %v8709_v7 = vpop.f32.mrf.mxu1 }
0x48a0   :  { %v12561_v7 = vld [vmem:[%s13068_s11 + $0x8] sm:$0xff] }
0x48c2   :  { %v6471_v29 = vpop.permute.xlu0 %6470 }
0x48c3   :  { %v6473_v31 = vmul.f32 %v9228_v53, %v6471_v29  ;;  %v12572_v53 = vld [vmem:[#allocation15] ss:$0 sm:$0xff] }
0x48c5   :  { %6475 = vrot.lane.b32.xlu1 %v6473_v31, %s9688_s16 }
0x4937   :  { %v6476_v63 = vpop.permute.xlu1 %6475 }
0x4938   :  { %v6478_v27 = vadd.f32 %v6476_v63, %v6460_v60  ;;  %v12537_v60 = vld [vmem:[%s13068_s11 + $0x20] sm:$0x3] }
0x493a   :  { %9229 = vtanh.f32 %v6478_v27 }
0x4947   :  { %v9230_v20 = vpop.eup %9229 }
0x4948   :  { %6482 = vrot.lane.b32.xlu0 %v9230_v20, %s9689_s9 }
0x49ba   :  { %v6483_v46 = vpop.permute.xlu0 %6482 }
0x49bb   :  { %v6485_v23 = vmul.f32 %v6483_v46, %v6480_v0  ;;  %v7747_v0 = vld [vmem:[%s13243_s26 + $0x30] sm:$0xff] }
0x49bd   :  { %v6487_v59 = vadd.f32 %v6486_v57, %v6485_v23 }
0x49bf   :  { %v12527_v36 = vmin.f32 %v6487_v59, 5.0 }
0x49c1   :  { %6490 = vrot.lane.b32.xlu1 %v12527_v36, %s9689_s9 }
0x49c5   :  { %6607 = vrot.lane.b32.xlu1 %v12335_v15, %s9696_s27 }
0x4a33   :  { %v6491_v24 = vpop.permute.xlu1 %6490 }
0x4a34   :  { %8748 = vmatmul.mubr.msk.f32.vlgmr.msra.gmra.mxu1 %vm626_vm4, %v6491_v24 }
0x4a35   :  { %8751 = vmatpush3.msk.msra.mxu1 %vm3090_vm8, %v12537_v60  ;;  %8760 = vmatprep.mubr.msk.f32.mxu1 %vm9692_vm3, %v13182_v37 }
0x4a36   :  { %8752 = vmatprep.subr.mxu1 %v13182_v37 }
0x4a37   :  { %8753 = vmatpush3.msra.mxu1 %v12547_v54  ;;  %v6608_v59 = vpop.permute.xlu1 %6607 }
0x4a38   :  { %8754 = vmatprep.subr.mxu1 %v13182_v37 }
0x4a39   :  { %8755 = vmatpush3.msra.mxu1 %v12554_v25 }
0x4a3a   :  { %8756 = vmatprep.subr.mxu1 %v13182_v37 }
0x4a3b   :  { %8757 = vmatpush3.msra.mxu1 %v12561_v7 }
0x4a3c   :  { %8758 = vmatprep.subr.mxu1 %v13182_v37 }
0x4a3d   :  { %8759 = vmatpush3.msra.mxu1 %v12568_v52 }
0x4a3e   :  { %8779 = vmatprep.subr.mxu1 %v13182_v37 }
0x4af4   :  { %v6560_v49 = vpop.f32.mrf.mxu1 }
0x4af5   :  { %v12575_v29 = vadd.f32 %v12572_v53, %v6560_v49 }
0x4af6   :  { %v8749_v31 = vpop.f32.mrf.mxu1 }
0x4af7   :  { %v6566_v63 = vmul.f32 0.5, %v12575_v29 }
0x4af9   :  { %v6567_v27 = vmul.f32 1.442695, %v6566_v63 }
0x4afb   :  { %9231 = vpow2.f32 %v6567_v27  ;;  %v13265_v27 = vld [vmem:[#allocation41_spill] sm:$0xff] }
0x4b08   :  { %v9232_v20 = vpop.eup %9231 }
0x4b09   :  { %6570 = vrot.lane.b32.xlu0 %v9232_v20, %s9694_s7  ;;  %v13266_v20 = vld [vmem:[#allocation49_spill] sm:$0xff] }
0x4b7b   :  { %v6571_v46 = vpop.permute.xlu0 %6570 }
0x4b7c   :  { %v6573_v57 = vmul.f32 %v7747_v0, %v6571_v46  ;;  %v2427_v0 = vadd.f32 %v13266_v20, %v13265_v27 }
0x4b7e   :  { %v12583_v23 = vadd.f32 %v6573_v57, %v12575_v29  ;;  %v7662_v46 = vmul.f32 -1.442695, %v2427_v0 }
0x4b80   :  { %v6610_v24 = vsel %vm3068_vm9, %v12583_v23, %v6608_v59 }
0x4b81   :  { %8761 = vmatmul.mubr.msk.f32.vlgmr.msra.gmra.mxu1 %vm3086_vm10, %v6610_v24 }
0x4b82   :  { %8780 = vmatpush3.msra.mxu1 %v12111_v28  ;;  %8799 = vmatprep.mubr.msk.f32.mxu1 %vm9692_vm3, %v13182_v37 }
0x4b83   :  { %8781 = vmatprep.subr.mxu1 %v13182_v37 }
0x4b84   :  { %8782 = vmatpush3.msra.mxu1 %v12120_v10  ;;  %v12610_v10 = vld [vmem:[#allocation12] ss:$0 sm:$0xff] }
0x4b85   :  { %8783 = vmatprep.subr.mxu1 %v13182_v37 }
0x4b86   :  { %8784 = vmatpush3.msra.mxu1 %v12127_v38 }
0x4b87   :  { %8785 = vmatprep.subr.mxu1 %v13182_v37 }
0x4b88   :  { %8786 = vmatpush3.msra.mxu1 %v12134_v44 }
0x4b89   :  { %8787 = vmatprep.subr.mxu1 %v13182_v37 }
0x4b8a   :  { %8788 = vmatpush3.msra.mxu1 %v12141_v55 }
0x4b8b   :  { %8789 = vmatprep.subr.mxu1 %v13182_v37 }
0x4b8c   :  { %8790 = vmatpush3.msra.mxu1 %v12148_v5 }
0x4b8d   :  { %8791 = vmatprep.subr.mxu1 %v13182_v37 }
0x4b8e   :  { %8792 = vmatpush3.msra.mxu1 %v12155_v47 }
0x4b8f   :  { %8793 = vmatprep.subr.mxu1 %v13182_v37 }
0x4b90   :  { %8794 = vmatpush3.msra.mxu1 %v12162_v12 }
0x4b91   :  { %8795 = vmatprep.subr.mxu1 %v13182_v37 }
0x4b92   :  { %8796 = vmatpush3.msra.mxu1 %v12169_v32 }
0x4b93   :  { %8797 = vmatprep.subr.mxu1 %v13182_v37 }
0x4b94   :  { %8798 = vmatpush3.msra.mxu1 %v12176_v14 }
0x4b95   :  { %8831 = vmatprep.subr.mxu1 %v13182_v37 }
0x4c41   :  { %v6680_v28 = vpop.f32.mrf.mxu1 }
0x4c42   :  { %v6681_v38 = vadd.f32 %v12610_v10, %v6680_v28 }
0x4c43   :  { %v8762_v44 = vpop.f32.mrf.mxu1 }
0x4c44   :  { %6691 = vrot.lane.b32.xlu0 %v6681_v38, %s9687_s22  ;;  %v7751_v55 = vmul.f32 -1.442695, %v6681_v38 }
0x4c46   :  { %9233 = vpow2.f32 %v7751_v55 }
0x4c53   :  { %v9234_v5 = vpop.eup %9233 }
0x4c54   :  { %v6687_v47 = vadd.f32 1.0, %v9234_v5 }
0x4c56   :  { %9235 = vrcp.f32 %v6687_v47 }
0x4c63   :  { %v9236_v12 = vpop.eup %9235 }
0x4c64   :  { %v6701_v24 = vsub.f32 1.0, %v9236_v12  ;;  %v6707_v44 = vmul.f32 %v9236_v12, %v12335_v15  ;;  %v12628_v15 = vld [vmem:[#allocation18] sm:$0xff] }
0x4cb6   :  { %v6692_v32 = vpop.permute.xlu0 %6691 }
0x4cb7   :  { %v6694_v49 = vmul.f32 %v9236_v12, %v6692_v32 }
0x4cb9   :  { %6696 = vrot.lane.b32.xlu1 %v6694_v49, %s9688_s16 }
0x4d2b   :  { %v6697_v14 = vpop.permute.xlu1 %6696 }
0x4d2c   :  { %v6699_v31 = vadd.f32 %v6697_v14, %v6681_v38 }
0x4d2e   :  { %9237 = vtanh.f32 %v6699_v31  ;;  %v13267_v31 = vld [vmem:[#allocation44_spill] sm:$0xff] }
0x4d2f   :  { %9239 = vpow2.f32 %v7662_v46 }
0x4d3b   :  { %v9238_v63 = vpop.eup %9237 }
0x4d3c   :  { %6703 = vrot.lane.b32.xlu0 %v9238_v63, %s9689_s9  ;;  %v9240_v57 = vpop.eup %9239 }
0x4d3d   :  { %v2541_v59 = vadd.f32 1.0, %v9240_v57 }
0x4d3f   :  { %9241 = vrcp.f32 %v2541_v59 }
0x4d40   :  { %2545 = vrot.lane.b32.xlu0 %v2427_v0, %s9687_s22 }
0x4d4c   :  { %v9242_v49 = vpop.eup %9241 }
0x4d4d   :  { %v2555_v59 = vsub.f32 1.0, %v9242_v49 }
0x4dae   :  { %v6704_v28 = vpop.permute.xlu0 %6703 }
0x4daf   :  { %v6706_v55 = vmul.f32 %v6704_v28, %v6701_v24  ;;  %v2561_v28 = vmul.f32 %v9242_v49, %v13264_v11 }
0x4db1   :  { %v6708_v38 = vadd.f32 %v6707_v44, %v6706_v55 }
0x4db2   :  { %v2546_v32 = vpop.permute.xlu0 %2545 }
0x4db3   :  { %v6709_v5 = vmax.f32 %v6708_v38, 0.0  ;;  %v2548_v14 = vmul.f32 %v9242_v49, %v2546_v32 }
0x4db5   :  { %v12620_v47 = vmin.f32 %v6709_v5, 5.0 }
0x4db7   :  { %6712 = vrot.lane.b32.xlu1 %v12620_v47, %s9689_s9 }
0x4dbb   :  { %2550 = vrot.lane.b32.xlu1 %v2548_v14, %s9688_s16 }
0x4dbf   :  { %629 = vrot.lane.b32.xlu1 %v13267_v31, %s9689_s9 }
0x4e29   :  { %v6713_v63 = vpop.permute.xlu1 %6712 }
0x4e2a   :  { %8772 = vmatmul.mubr.msk.f32.vlgmr.msra.gmra.mxu0 %vm626_vm4, %v6713_v63 }
0x4e2b   :  { %8775 = vmatpush3.msra.mxu0 %v12628_v15  ;;  %8776 = vmatprep.mubr.msk.f32.mxu0 %vm9692_vm3, %v13182_v37 }
0x4e2c   :  { %8802 = vmatprep.subr.mxu0 %v13182_v37 }
0x4e2d   :  { %v2551_v12 = vpop.permute.xlu1 %2550 }
0x4e2e   :  { %v2553_v27 = vadd.f32 %v2551_v12, %v2427_v0 }
0x4e30   :  { %9243 = vtanh.f32 %v2553_v27 }
0x4e31   :  { %v630_v20 = vpop.permute.xlu1 %629 }
0x4e32   :  { %633 = vst.msk [vmem:[#allocation3 + $0x38] sm:$0xff] %vm626_vm4, %v630_v20 }
0x4e39   :  { %v6962_v46 = vld [vmem:[#allocation3 + $0x38] sm:$0xff] }
0x4e3a   :  { %6964 = vrot.lane.b32.xlu1 %v6962_v46, %s9687_s22 }
0x4e3d   :  { %v9244_v57 = vpop.eup %9243 }
0x4e3e   :  { %2557 = vrot.lane.b32.xlu0 %v9244_v57, %s9689_s9  ;;  %6970 = vrot.lane.b32.xlu1 %v12527_v36, %s9695_s14 }
0x4eb0   :  { %v2558_v24 = vpop.permute.xlu0 %2557 }
0x4eb1   :  { %v2560_v44 = vmul.f32 %v2558_v24, %v2555_v59 }
0x4eb3   :  { %v2562_v55 = vadd.f32 %v2561_v28, %v2560_v44 }
0x4eb5   :  { %v2563_v0 = vmin.f32 %v2562_v55, 5.0 }
0x4eb7   :  { %2617 = vrot.lane.b32.xlu0 %v2563_v0, %s9689_s9 }
0x4eea   :  { %v6782_v38 = vpop.f32.mrf.mxu0 }
0x4eeb   :  { %v12642_v5 = vadd.f32 %v12350_v62, %v6782_v38 }
0x4eec   :  { %v8773_v32 = vpop.f32.mrf.mxu0 }
0x4eed   :  { %6967 = vrot.lane.b32.xlu0 %v12642_v5, %s9688_s16  ;;  %8777 = vmatmul.mubr.msk.f32.vlgmr.msra.gmra.mxu0 %vm3269_vm11, %v12642_v5  ;;  %v9395_v32 = vld [vmem:[%s13078_s21 + $0x48] sm:$0xff] }
0x4eee   :  { %8803 = vmatpush3.msra.mxu0 %v12362_v1  ;;  %8828 = vmatprep.mubr.msk.f32.mxu0 %vm9692_vm3, %v13182_v37  ;;  %v6965_v1 = vpop.permute.xlu1 %6964 }
0x4eef   :  { %8804 = vmatprep.subr.mxu0 %v13182_v37 }
0x4ef0   :  { %8805 = vmatpush3.msra.mxu0 %v12371_v51 }
0x4ef1   :  { %8806 = vmatprep.subr.mxu0 %v13182_v37 }
0x4ef2   :  { %8807 = vmatpush3.msra.mxu0 %v12378_v58 }
0x4ef3   :  { %8808 = vmatprep.subr.mxu0 %v13182_v37 }
0x4ef4   :  { %8809 = vmatpush3.msra.mxu0 %v12385_v18 }
0x4ef5   :  { %8810 = vmatprep.subr.mxu0 %v13182_v37 }
0x4ef6   :  { %8811 = vmatpush3.msra.mxu0 %v12392_v19  ;;  %v6971_v19 = vpop.permute.xlu1 %6970 }
0x4ef7   :  { %8812 = vmatprep.subr.mxu0 %v13182_v37 }
0x4ef8   :  { %8813 = vmatpush3.msra.mxu0 %v12399_v48 }
0x4ef9   :  { %8814 = vmatprep.subr.mxu0 %v13182_v37 }
0x4efa   :  { %8815 = vmatpush3.msra.mxu0 %v12406_v6 }
0x4efb   :  { %8816 = vmatprep.subr.mxu0 %v13182_v37 }
0x4efc   :  { %8817 = vmatpush3.msra.mxu0 %v12413_v34 }
0x4efd   :  { %8818 = vmatprep.subr.mxu0 %v13182_v37 }
0x4efe   :  { %8819 = vmatpush3.msra.mxu0 %v12420_v8  ;;  %v12691_v8 = vld [vmem:[#allocation20] ss:$0 sm:$0xff] }
0x4eff   :  { %8820 = vmatprep.subr.mxu0 %v13182_v37 }
0x4f00   :  { %8821 = vmatpush3.msra.mxu0 %v12427_v39 }
0x4f01   :  { %8822 = vmatprep.subr.mxu0 %v13182_v37 }
0x4f02   :  { %8823 = vmatpush3.msra.mxu0 %v12434_v13 }
0x4f03   :  { %8824 = vmatprep.subr.mxu0 %v13182_v37 }
0x4f04   :  { %8825 = vmatpush3.msra.mxu0 %v12441_v50 }
0x4f05   :  { %8826 = vmatprep.subr.mxu0 %v13182_v37 }
0x4f06   :  { %8827 = vmatpush3.msra.mxu0 %v12448_v45 }
0x4f07   :  { %8855 = vmatprep.subr.mxu0 %v13182_v37 }
0x4f29   :  { %v2618_v11 = vpop.permute.xlu0 %2617 }
0x4f2a   :  { %2621 = vst.msk [vmem:[#allocation2 + $0x38] sm:$0xff] %vm626_vm4, %v2618_v11  ;;  %v9396_v11 = vld [vmem:[%s13078_s21 + $0x40] sm:$0xff] }
0x4f31   :  { %v6961_v51 = vld [vmem:[#allocation2 + $0x38] sm:$0xff] }
0x4f32   :  { %v6973_v58 = vsel %vm626_vm4, %v6961_v51, %v6965_v1  ;;  %v9397_v1 = vld [vmem:[%s13078_s21 + $0x38] sm:$0xff]  ;;  %v9398_v51 = vld [vmem:[%s13078_s21 + $0x30] sm:$0xff] }
0x4f5f   :  { %v6968_v18 = vpop.permute.xlu0 %6967 }
0x4f60   :  { %v6974_v48 = vsel %vm2647_vm5, %v6973_v58, %v6968_v18  ;;  %v9399_v58 = vld [vmem:[%s13078_s21 + $0x28] sm:$0xff]  ;;  %v9400_v18 = vld [vmem:[%s13078_s21 + $0x20] sm:$0xff] }
0x4f61   :  { %v6975_v6 = vsel %vm2862_vm6, %v6974_v48, %v6971_v19  ;;  %v9401_v19 = vld [vmem:[%s13078_s21 + $0x18] sm:$0xff]  ;;  %v9402_v48 = vld [vmem:[%s13078_s21 + $0x10] sm:$0xff] }
0x4f62   :  { %8829 = vmatmul.mubr.msk.f32.vlgmr.msra.gmra.mxu0 %vm2864_vm7, %v6975_v6  ;;  %v9403_v6 = vld [vmem:[%s13078_s21 + $0x8] sm:$0xff] }
0x4f63   :  { %8856 = vmatpush3.msra.mxu0 %v12459_v4  ;;  %8863 = vmatprep.mubr.msk.f32.mxu0 %vm9692_vm3, %v13182_v37 }
0x4f64   :  { %8857 = vmatprep.subr.mxu0 %v13182_v37 }
0x4f65   :  { %8858 = vmatpush3.msra.mxu0 %v12468_v17 }
0x4f66   :  { %8859 = vmatprep.subr.mxu0 %v13182_v37 }
0x4f67   :  { %8860 = vmatpush3.msra.mxu0 %v12475_v16 }
0x4f68   :  { %8861 = vmatprep.subr.mxu0 %v13182_v37 }
0x4f69   :  { %8862 = vmatpush3.msra.mxu0 %v12482_v42 }
0x4f6a   :  { %8866 = vmatprep.subr.mxu0 %v13182_v37 }
0x4fad   :  { %v6855_v34 = vpop.f32.mrf.mxu0 }
0x4fae   :  { %v6856_v39 = vadd.f32 %v12691_v8, %v6855_v34  ;;  %v9404_v34 = vld [vmem:[%s13078_s21] sm:$0xff]  ;;  %s356_s21 = sld [smem:[#allocation4]] }
0x4faf   :  { %v8778_v13 = vpop.f32.mrf.mxu0 }
0x4fb0   :  { %v6859_v50 = vmax.f32 %v6856_v39, 0.0 }
0x4fb2   :  { %8800 = vmatmul.mubr.msk.f32.vlgmr.msra.gmra.mxu1 %vm367_vm2, %v6859_v50 }
0x4fb3   :  { %8832 = vmatpush3.msra.mxu1 %v12491_v3  ;;  %8839 = vmatprep.mubr.msk.f32.mxu1 %vm9692_vm3, %v13182_v37 }
0x4fb4   :  { %8833 = vmatprep.subr.mxu1 %v13182_v37 }
0x4fb5   :  { %8834 = vmatpush3.msra.mxu1 %v12500_v30 }
0x4fb6   :  { %8835 = vmatprep.subr.mxu1 %v13182_v37 }
0x4fb7   :  { %8836 = vmatpush3.msra.mxu1 %v12507_v33 }
0x4fb8   :  { %8837 = vmatprep.subr.mxu1 %v13182_v37 }
0x4fb9   :  { %8838 = vmatpush3.msra.mxu1 %v12514_v21 }
0x4fba   :  { %8842 = vmatprep.subr.mxu1 %v13182_v37 }
0x5022   :  { %v7045_v45 = vpop.f32.mrf.mxu0 }
0x5023   :  { %v7046_v4 = vadd.f32 %v12518_v41, %v7045_v45 }
0x5024   :  { %v8830_v17 = vpop.f32.mrf.mxu0 }
0x5025   :  { %7056 = vrot.lane.b32.xlu0 %v7046_v4, %s9687_s22  ;;  %v7758_v16 = vmul.f32 -1.442695, %v7046_v4 }
0x5027   :  { %9245 = vpow2.f32 %v7758_v16 }
0x5034   :  { %v9246_v30 = vpop.eup %9245 }
0x5035   :  { %v7052_v49 = vadd.f32 1.0, %v9246_v30 }
0x5037   :  { %9247 = vrcp.f32 %v7052_v49 }
0x5044   :  { %v9248_v33 = vpop.eup %9247 }
0x5045   :  { %v7066_v12 = vsub.f32 1.0, %v9248_v33  ;;  %v7072_v20 = vmul.f32 %v9248_v33, %v12527_v36 }
0x5072   :  { %v12707_v42 = vpop.f32.mrf.mxu1 }
0x5074   :  { %v8801_v3 = vpop.f32.mrf.mxu1 }
0x5097   :  { %v7057_v14 = vpop.permute.xlu0 %7056 }
0x5098   :  { %v7059_v31 = vmul.f32 %v9248_v33, %v7057_v14 }
0x509a   :  { %7061 = vrot.lane.b32.xlu1 %v7059_v31, %s9688_s16 }
0x510c   :  { %v7062_v21 = vpop.permute.xlu1 %7061 }
0x510d   :  { %v7064_v63 = vadd.f32 %v7062_v21, %v7046_v4  ;;  %v2734_v21 = vstv %s356_s21  ;;  %s9698_s21 = smov [#allocation24]  }
0x510f   :  { %9249 = vtanh.f32 %v7064_v63  ;;  %v13268_v63 = vld [vmem:[#allocation48_spill] sm:$0xff] }
0x511c   :  { %v9250_v41 = vpop.eup %9249 }
0x511d   :  { %7068 = vrot.lane.b32.xlu0 %v9250_v41, %s9689_s9  ;;  %v2741_v41 = vsub.f32 %v13268_v63, %v2734_v21 }
0x518f   :  { %v7069_v27 = vpop.permute.xlu0 %7068 }
0x5190   :  { %v7071_v46 = vmul.f32 %v7069_v27, %v7066_v12 }
0x5192   :  { %v7073_v57 = vadd.f32 %v7072_v20, %v7071_v46 }
0x5194   :  { %v7074_v59 = vmin.f32 %v7073_v57, 5.0  ;;  %v13269_v57 = vld [vmem:[#allocation47_spill] sm:$0xff] }
0x5196   :  { %7076 = vrot.lane.b32.xlu1 %v7074_v59, %s9689_s9 }
0x519a   :  { %7193 = vrot.lane.b32.xlu1 %v12620_v47, %s9696_s27  ;;  %s7600_s27 = sld [smem:[#allocation4 + $0x1]] }
0x51a0   :  { %v2732_v49 = vstv %s7600_s27 }
0x51a1   :  { %v2742_v33 = vmul.f32 -0.5, %v2732_v49  ;;  %v2737_v59 = vsub.f32 %v13269_v57, %v2732_v49 }
0x51a3   :  { %v2743_v14 = vmul.f32 1.442695, %v2742_v33 }
0x5208   :  { %v7077_v24 = vpop.permute.xlu1 %7076 }
0x5209   :  { %8840 = vmatmul.mubr.msk.f32.vlgmr.msra.gmra.mxu1 %vm626_vm4, %v7077_v24  ;;  %v2738_v24 = vmul.f32 1.442695, %v2737_v59 }
0x520a   :  { %8843 = vmatpush3.msk.msra.mxu1 %vm3090_vm8, %v12537_v60  ;;  %8852 = vmatprep.mubr.msk.f32.mxu1 %vm9692_vm3, %v13182_v37 }
0x520b   :  { %8844 = vmatprep.subr.mxu1 %v13182_v37 }
0x520c   :  { %8845 = vmatpush3.msra.mxu1 %v12547_v54  ;;  %v7194_v38 = vpop.permute.xlu1 %7193 }
0x520d   :  { %8846 = vmatprep.subr.mxu1 %v13182_v37 }
0x520e   :  { %8847 = vmatpush3.msra.mxu1 %v12554_v25 }
0x520f   :  { %8848 = vmatprep.subr.mxu1 %v13182_v37 }
0x5210   :  { %8849 = vmatpush3.msra.mxu1 %v12561_v7  ;;  %v7760_v7 = vld [vmem:[%s13243_s26 + $0x38] sm:$0xff]  ;;  %s13273_s26 = sld [smem:[#allocation60_spill]] }
0x5211   :  { %8850 = vmatprep.subr.mxu1 %v13182_v37 }
0x5212   :  { %8851 = vmatpush3.msra.mxu1 %v12568_v52 }
0x5213   :  { %8871 = vmatprep.subr.mxu1 %v13182_v37 }
0x52c9   :  { %v7146_v36 = vpop.f32.mrf.mxu1 }
0x52ca   :  { %v12730_v60 = vadd.f32 %v12572_v53, %v7146_v36 }
0x52cb   :  { %v8841_v28 = vpop.f32.mrf.mxu1 }
0x52cc   :  { %v7152_v54 = vmul.f32 0.5, %v12730_v60 }
0x52ce   :  { %v7153_v44 = vmul.f32 1.442695, %v7152_v54 }
0x52d0   :  { %9251 = vpow2.f32 %v7153_v44 }
0x52dd   :  { %v9252_v25 = vpop.eup %9251 }
0x52de   :  { %7156 = vrot.lane.b32.xlu0 %v9252_v25, %s9694_s7 }
0x5350   :  { %v7157_v55 = vpop.permute.xlu0 %7156 }
0x5351   :  { %v7159_v52 = vmul.f32 %v7760_v7, %v7157_v55 }
0x5353   :  { %v12738_v0 = vadd.f32 %v7159_v52, %v12730_v60 }
0x5355   :  { %v7196_v53 = vsel %vm3068_vm9, %v12738_v0, %v7194_v38  ;;  %v2736_v38 = vsub.f32 %v2732_v49, %v13269_v57  ;;  %v3417_v49 = vld [vmem:[%s13273_s26] sm:$0xff] }
0x5356   :  { %8853 = vmatmul.mubr.msk.f32.vlgmr.msra.gmra.mxu1 %vm3086_vm10, %v7196_v53 }
0x5357   :  { %8872 = vmatpush3.msra.mxu1 %v9395_v32  ;;  %8891 = vmatprep.mubr.msk.f32.mxu1 %vm9692_vm3, %v13182_v37 }
0x5358   :  { %8873 = vmatprep.subr.mxu1 %v13182_v37 }
0x5359   :  { %8874 = vmatpush3.msra.mxu1 %v9396_v11 }
0x535a   :  { %8875 = vmatprep.subr.mxu1 %v13182_v37 }
0x535b   :  { %8876 = vmatpush3.msra.mxu1 %v9397_v1  ;;  %v12796_v1 = vstv %s7601_s17  ;;  %s9699_s17 = smov [#allocation23]  }
0x535c   :  { %8877 = vmatprep.subr.mxu1 %v13182_v37 }
0x535d   :  { %8878 = vmatpush3.msra.mxu1 %v9398_v51 }
0x535e   :  { %8879 = vmatprep.subr.mxu1 %v13182_v37 }
0x535f   :  { %8880 = vmatpush3.msra.mxu1 %v9399_v58 }
0x5360   :  { %8881 = vmatprep.subr.mxu1 %v13182_v37 }
0x5361   :  { %8882 = vmatpush3.msra.mxu1 %v9400_v18  ;;  %v13270_v18 = vld [vmem:[#allocation38_spill] sm:$0xff] }
0x5362   :  { %8883 = vmatprep.subr.mxu1 %v13182_v37  ;;  %vm210_vm12 = vcmp.lt.s32.totalorder %v13270_v18, 2 }
0x5363   :  { %8884 = vmatpush3.msra.mxu1 %v9401_v19 }
0x5364   :  { %8885 = vmatprep.subr.mxu1 %v13182_v37 }
0x5365   :  { %8886 = vmatpush3.msra.mxu1 %v9402_v48 }
0x5366   :  { %8887 = vmatprep.subr.mxu1 %v13182_v37 }
0x5367   :  { %8888 = vmatpush3.msra.mxu1 %v9403_v6  ;;  %v13271_v6 = vld [vmem:[#allocation50_spill] sm:$0xff] }
0x5368   :  { %8889 = vmatprep.subr.mxu1 %v13182_v37 }
0x5369   :  { %8890 = vmatpush3.msra.mxu1 %v9404_v34  ;;  %v3054_v34 = vsub.f32 %v13271_v6, %v12796_v1 }
0x5416   :  { %v7266_v39 = vpop.f32.mrf.mxu1 }
0x5417   :  { %v7267_v13 = vadd.f32 %v12610_v10, %v7266_v39 }
0x5418   :  { %v8854_v50 = vpop.f32.mrf.mxu1 }
0x5419   :  { %7277 = vrot.lane.b32.xlu0 %v7267_v13, %s9687_s22  ;;  %v7764_v45 = vmul.f32 -1.442695, %v7267_v13 }
0x541b   :  { %9253 = vpow2.f32 %v7764_v45 }
0x5428   :  { %v9254_v4 = vpop.eup %9253 }
0x5429   :  { %v7273_v17 = vadd.f32 1.0, %v9254_v4 }
0x542b   :  { %9255 = vrcp.f32 %v7273_v17 }
0x542c   :  { %9257 = vpow2.f32 %v2743_v14 }
0x5438   :  { %v9256_v16 = vpop.eup %9255 }
0x5439   :  { %v9258_v12 = vpop.eup %9257  ;;  %v7287_v44 = vsub.f32 1.0, %v9256_v16  ;;  %v7293_v55 = vmul.f32 %v9256_v16, %v12620_v47  ;;  %v12805_v47 = vsel %vm210_vm12, 1.0, %v13182_v37 }
0x543a   :  { %v2745_v27 = vmul.f32 %v9258_v12, %v2741_v41 }
0x543c   :  { %v2746_v46 = vmul.f32 %v2745_v27, %v2745_v27 }
0x548b   :  { %v7278_v3 = vpop.permute.xlu0 %7277 }
0x548c   :  { %v7280_v30 = vmul.f32 %v9256_v16, %v7278_v3  ;;  %v12813_v16 = vld [vmem:[#allocation21] ss:$0 sm:$0xff]  ;;  %v13272_v3 = vld [vmem:[#allocation39_spill] sm:$0xff] }
0x548e   :  { %7282 = vrot.lane.b32.xlu1 %v7280_v30, %s9688_s16  ;;  %s7602_s16 = sld [smem:[#allocation4 + $0x3]]  ;;  %v12817_v30 = vadd.f32 %v12813_v16, %v13272_v3  ;;  %v4000_v3 = vadd.f32 %v12813_v16, %v11633_v56 }
0x5490   :  { %v3418_v33 = vsub.f32 %v3417_v49, %v12817_v30  ;;  %v7690_v49 = vld [vmem:[%s13273_s26 + $0x8] sm:$0xff] }
0x5494   :  { %v12791_v36 = vstv %s7602_s16  ;;  %s7572_s16 = sshll.u32 %s9698_s21, 4  ;;  %s7573_s16 = int_to_ptr.vmem [resolvable:$true] %s7572_s16 }
0x5495   :  { %v2847_v28 = vmul.f32 -0.5, %v12791_v36  ;;  %v3050_v4 = vsub.f32 %v13271_v6, %v12791_v36  ;;  %v3049_v41 = vsub.f32 %v12791_v36, %v13271_v6  ;;  %s9621_s19 = scalar_lea.vmem %s7573_s16, 32  ;;  %p9622_p0 = scmp.lt.s32.totalorder %s7573_s16, %s7573_s16 }
0x5497   :  { %v2848_v54 = vmul.f32 1.442695, %v2847_v28  ;;  %v3051_v17 = vmul.f32 1.442695, %v3050_v4  ;;  %v13274_v28 = vld [vmem:[#allocation51_spill] sm:$0xff] }
0x5500   :  { %v7283_v10 = vpop.permute.xlu1 %7282 }
0x5501   :  { %v7285_v31 = vadd.f32 %v7283_v10, %v7267_v13  ;;  %v3419_v10 = vmul.f32 %v3418_v33, %v3418_v33  ;;  %v4005_v33 = vsub.f32 %v7690_v49, %v4000_v3 }
0x5503   :  { %9259 = vtanh.f32 %v7285_v31  ;;  %v3420_v12 = vmul.f32 %v12805_v47, %v3419_v10 }
0x5504   :  { %9261 = vpow2.f32 %v2738_v24 }
0x5505   :  { %9263 = vpow2.f32 %v2848_v54  ;;  %v3421_v57 = vsel %vm363_vm0, %v3420_v12, 0.0 }
0x5506   :  { %9265 = vpow2.f32 %v3051_v17 }
0x5510   :  { %v9260_v20 = vpop.eup %9259 }
0x5511   :  { %7289 = vrot.lane.b32.xlu0 %v9260_v20, %s9689_s9  ;;  %v9262_v25 = vpop.eup %9261 }
0x5512   :  { %v2740_v32 = vadd.f32 %v9262_v25, %v2736_v38  ;;  %v12801_v39 = vpop.eup %9263  ;;  %v3646_v25 = vsub.f32 %v11512_v26, %v12791_v36 }
0x5513   :  { %v3055_v50 = vmul.f32 %v12801_v39, %v3054_v34  ;;  %v9266_v31 = vpop.eup %9265 }
0x5514   :  { %v3053_v27 = vadd.f32 %v9266_v31, %v3049_v41 }
0x5515   :  { %2748 = vrot.lane.b32.xlu0 %v2746_v46, %s9687_s22  ;;  %v3056_v45 = vmul.f32 %v3055_v50, %v3055_v50  ;;  %s7562_s22 = sshll.u32 %s9699_s17, 4  ;;  %s7563_s22 = int_to_ptr.vmem [resolvable:$true] %s7562_s22 }
0x5583   :  { %v7290_v7 = vpop.permute.xlu0 %7289 }
0x5584   :  { %v7292_v52 = vmul.f32 %v7290_v7, %v7287_v44 }
0x5586   :  { %v7294_v53 = vadd.f32 %v7293_v55, %v7292_v52  ;;  %v3647_v55 = vmul.f32 1.442695, %v3646_v25 }
0x5587   :  { %v2749_v11 = vpop.permute.xlu0 %2748 }
0x5588   :  { %v7295_v51 = vmax.f32 %v7294_v53, 0.0  ;;  %v2751_v58 = vadd.f32 %v2749_v11, %v2740_v32  ;;  %9267 = vpow2.f32 %v3647_v55 }
0x558a   :  { %v7296_v19 = vmin.f32 %v7295_v51, 5.0  ;;  %v7667_v48 = vadd.f32 -1.0, %v2751_v58  ;;  %v13275_v51 = vld [vmem:[#allocation52_spill] sm:$0xff] }
0x558c   :  { %7298 = vrot.lane.b32.xlu1 %v7296_v19, %s9689_s9  ;;  %v2753_v13 = vmul.f32 %v7667_v48, %v12805_v47  ;;  %v3645_v48 = vsub.f32 %v12791_v36, %v11512_v26 }
0x5590   :  { %2755 = vrot.lane.b32.xlu1 %v2753_v13, %s9689_s9  ;;  %s9697_s9 = smov 24  }
0x5594   :  { %3058 = vrot.lane.b32.xlu1 %v3056_v45, %s9693_s30 }
0x5595   :  { %v9268_v18 = vpop.eup %9267 }
0x5596   :  { %v3649_v34 = vadd.f32 %v9268_v18, %v3645_v48 }
0x55fe   :  { %v7299_v14 = vpop.permute.xlu1 %7298 }
0x55ff   :  { %8864 = vmatmul.mubr.msk.f32.vlgmr.msra.gmra.mxu0 %vm626_vm4, %v7299_v14 }
0x5600   :  { %8867 = vmatpush3.msra.mxu0 %v12628_v15  ;;  %8868 = vmatprep.mubr.msk.f32.mxu0 %vm9692_vm3, %v13182_v37  ;;  %v3650_v37 = vsub.f32 %v11512_v26, %v12796_v1  ;;  %v4006_v26 = vmul.f32 %v4005_v33, %v4005_v33 }
0x5602   :  { %v2756_v21 = vpop.permute.xlu1 %2755  ;;  %v3651_v24 = vmul.f32 %v12801_v39, %v3650_v37  ;;  %v4007_v14 = vmul.f32 %v12805_v47, %v4006_v26 }
0x5603   :  { %v2758_v63 = vsel %vm626_vm4, %v2756_v21, 0.0 }
0x5604   :  { %2759 = vadd.xlane.f32.xlu0 %v2758_v63  ;;  %v3652_v54 = vmul.f32 %v3651_v24, %v3651_v24  ;;  %v4008_v10 = vsel %vm363_vm0, %v4007_v14, 0.0 }
0x5606   :  { %v3059_v20 = vpop.permute.xlu1 %3058 }
0x5607   :  { %v3061_v46 = vadd.f32 %v3059_v20, %v3053_v27 }
0x5608   :  { %3422 = vadd.xlane.f32.xlu0 %v3421_v57 }
0x5609   :  { %v7672_v15 = vadd.f32 -1.0, %v3061_v46 }
0x560b   :  { %v3063_v59 = vmul.f32 %v7672_v15, %v12805_v47 }
0x560d   :  { %3065 = vrot.lane.b32.xlu1 %v3063_v59, %s9694_s7 }
0x561e   :  { %3433 = vrot.lane.b32.xlu0 %v13274_v28, %s9691_s0 }
0x5622   :  { %3654 = vrot.lane.b32.xlu0 %v3652_v54, %s9693_s30 }
0x567f   :  { %v3066_v44 = vpop.permute.xlu1 %3065 }
0x5680   :  { %v3069_v7 = vsel %vm3068_vm9, %v3066_v44, 0.0 }
0x5681   :  { %3070 = vadd.xlane.f32.xlu1 %v3069_v7 }
0x568d   :  { %v2760_v52 = vpop.xlane.xlu0 %2759 }
0x568e   :  { %v2761_v38 = vrot.slane %v2760_v52, 4 }
0x5690   :  { %v2762_v53 = vadd.f32 %v2761_v38, %v2760_v52  ;;  %v13277_v38 = vld [vmem:[#allocation40_spill] sm:$0xff] }
0x5691   :  { %v3423_v32 = vpop.xlane.xlu0 %3422 }
0x5692   :  { %v2763_v11 = vrot.slane %v2762_v53, 2  ;;  %3437 = vrot.lane.b32.xlu1 %v13275_v51, %s9697_s9  ;;  %v3424_v56 = vrot.slane %v3423_v32, 4 }
0x5694   :  { %v2764_v58 = vadd.f32 %v2763_v11, %v2762_v53  ;;  %v3425_v41 = vadd.f32 %v3424_v56, %v3423_v32 }
0x5695   :  { %v3434_v19 = vpop.permute.xlu0 %3433 }
0x5696   :  { %v2765_v6 = vrot.slane %v2764_v58, 1  ;;  %v3426_v12 = vrot.slane %v3425_v41, 2  ;;  %v3440_v57 = vsel %vm363_vm0, %v12817_v30, %v3434_v19  ;;  %v13276_v30 = vld [vmem:[#allocation42_spill] sm:$0xff] }
0x5697   :  { %v4236_v55 = vsub.f32 %v13276_v30, %v12796_v1  ;;  %v4232_v18 = vsub.f32 %v13276_v30, %v12791_v36 }
0x5698   :  { %v2766_v13 = vadd.f32 %v2765_v6, %v2764_v58  ;;  %v3427_v15 = vadd.f32 %v3426_v12, %v3425_v41 }
0x5699   :  { %v3655_v50 = vpop.permute.xlu0 %3654  ;;  %v4237_v52 = vmul.f32 %v12801_v39, %v4236_v55  ;;  %v4233_v19 = vmul.f32 1.442695, %v4232_v18 }
0x569a   :  { %v3657_v45 = vadd.f32 %v3655_v50, %v3649_v34  ;;  %8894 = vpush %v2766_v13  ;;  %v3428_v28 = vrot.slane %v3427_v15, 1 }
0x569b   :  { %v4238_v53 = vmul.f32 %v4237_v52, %v4237_v52  ;;  %9269 = vpow2.f32 %v4233_v19 }
0x569c   :  { %v7683_v4 = vadd.f32 -1.0, %v3657_v45  ;;  %v3429_v7 = vadd.f32 %v3428_v28, %v3427_v15  ;;  %v13278_v15 = vld [vmem:[#allocation36_spill] sm:$0xff] }
0x569e   :  { %v3659_v17 = vmul.f32 %v7683_v4, %v12805_v47 }
0x56a0   :  { %3661 = vrot.lane.b32.xlu0 %v3659_v17, %s9694_s7 }
0x56a8   :  { %v9270_v49 = vpop.eup %9269 }
0x56bf   :  { %v7368_v31 = vpop.f32.mrf.mxu0  ;;  %4009 = vadd.xlane.f32.xlu0 %v4008_v10 }
0x56c0   :  { %v12857_v21 = vadd.f32 %v12350_v62, %v7368_v31  ;;  %v4231_v31 = vsub.f32 %v12791_v36, %v13276_v30  ;;  %v13280_v30 = vld [vmem:[#allocation53_spill] sm:$0xff] }
0x56c1   :  { %v8865_v63 = vpop.f32.mrf.mxu0  ;;  %v4822_v55 = vsub.f32 %v13280_v30, %v12796_v1 }
0x56c2   :  { %8869 = vmatmul.mubr.msk.f32.vlgmr.msra.gmra.mxu0 %vm3269_vm11, %v12857_v21  ;;  %v4235_v63 = vadd.f32 %v9270_v49, %v4231_v31 }
0x56c3   :  { %v4823_v52 = vmul.f32 %v12801_v39, %v4822_v55  ;;  %v13285_v55 = vld [vmem:[#allocation55_spill] sm:$0xff] }
0x56d5   :  { %4020 = vrot.lane.b32.xlu0 %v11571_v35, %s9691_s0 }
0x570a   :  { %v3071_v27 = vpop.xlane.xlu1 %3070 }
0x570b   :  { %v3072_v20 = vrot.slane %v3071_v27, 4 }
0x570d   :  { %v3073_v46 = vadd.f32 %v3072_v20, %v3071_v27 }
0x570e   :  { %v3438_v62 = vpop.permute.xlu1 %3437 }
0x570f   :  { %v3074_v59 = vrot.slane %v3073_v46, 2  ;;  %v3442_v37 = vsel %vm3441_vm13, %v3440_v57, %v3438_v62 }
0x5710   :  { %3444 = vst.msk [vmem:[%s13080_s23] sm:$0xff] %vm3443_vm14, %v3442_v37  ;;  %v7703_v37 = vld [vmem:[%s13273_s26 + $0x10] sm:$0xff] }
0x5711   :  { %v3075_v35 = vadd.f32 %v3074_v59, %v3073_v46  ;;  %v4586_v59 = vadd.f32 %v12813_v16, %v13278_v15  ;;  %v7716_v15 = vld [vmem:[%s13273_s26 + $0x18] sm:$0xff] }
0x5712   :  { %v3662_v24 = vpop.permute.xlu0 %3661 }
0x5713   :  { %v3664_v54 = vsel %vm3068_vm9, %v3662_v24, 0.0  ;;  %v3076_v44 = vrot.slane %v3075_v35, 1 }
0x5714   :  { %3665 = vadd.xlane.f32.xlu1 %v3664_v54 }
0x5715   :  { %v3077_v25 = vadd.f32 %v3076_v44, %v3075_v35  ;;  %v4591_v35 = vsub.f32 %v7703_v37, %v4586_v59  ;;  %v13279_v44 = vld [vmem:[#allocation45_spill] sm:$0xff] }
0x5717   :  { %8896 = vpush %v3077_v25  ;;  %v4592_v24 = vmul.f32 %v4591_v35, %v4591_v35 }
0x5718   :  { %8898 = vpush %v3429_v7 }
0x5719   :  { %v4593_v28 = vmul.f32 %v12805_v47, %v4592_v24 }
0x571b   :  { %v4594_v54 = vsel %vm363_vm0, %v4593_v28, 0.0  ;;  %v13283_v28 = vld [vmem:[#allocation54_spill] sm:$0xff] }
0x5725   :  { %4024 = vrot.lane.b32.xlu1 %v13277_v38, %s9697_s9  ;;  %v13281_v38 = vld [vmem:[#allocation43_spill] sm:$0xff] }
0x5729   :  { %4240 = vrot.lane.b32.xlu1 %v4238_v53, %s9693_s30  ;;  %v4824_v53 = vmul.f32 %v4823_v52, %v4823_v52 }
0x5748   :  { %v4010_v48 = vpop.xlane.xlu0 %4009 }
0x5749   :  { %v4011_v6 = vrot.slane %v4010_v48, 4 }
0x574b   :  { %v4012_v34 = vadd.f32 %v4011_v6, %v4010_v48 }
0x574c   :  { %v4021_v45 = vpop.permute.xlu0 %4020 }
0x574d   :  { %v4013_v13 = vrot.slane %v4012_v34, 2 }
0x574f   :  { %v4014_v26 = vadd.f32 %v4013_v13, %v4012_v34 }
0x5751   :  { %v4015_v12 = vrot.slane %v4014_v26, 1 }
0x5753   :  { %v4016_v57 = vadd.f32 %v4015_v12, %v4014_v26 }
0x5782   :  { %v7441_v32 = vpop.f32.mrf.mxu0 }
0x5783   :  { %v7442_v11 = vadd.f32 %v12691_v8, %v7441_v32  ;;  %v4027_v8 = vsel %vm363_vm0, %v4000_v3, %v4021_v45 }
0x5784   :  { %v8870_v51 = vpop.f32.mrf.mxu0 }
0x5785   :  { %v7445_v58 = vmax.f32 %v7442_v11, 0.0  ;;  %v4818_v51 = vsub.f32 %v13280_v30, %v12791_v36 }
0x5787   :  { %8892 = vmatmul.mubr.msk.f32.vlgmr.msra.gmra.mxu1 %vm367_vm2, %v7445_v58  ;;  %v4819_v58 = vmul.f32 1.442695, %v4818_v51 }
0x5789   :  { %9271 = vpow2.f32 %v4819_v58 }
0x579d   :  { %v3666_v50 = vpop.xlane.xlu1 %3665 }
0x579e   :  { %v3667_v4 = vrot.slane %v3666_v50, 4 }
0x57a0   :  { %v3668_v17 = vadd.f32 %v3667_v4, %v3666_v50  ;;  %v9272_v4 = vpop.eup %9271 }
0x57a1   :  { %v4025_v33 = vpop.permute.xlu1 %4024 }
0x57a2   :  { %v3669_v14 = vrot.slane %v3668_v17, 2  ;;  %v4028_v10 = vsel %vm3441_vm13, %v4027_v8, %v4025_v33 }
0x57a3   :  { %7691 = vst.msk [vmem:[%s13080_s23 + $0x8] sm:$0xff] %vm3443_vm14, %v4028_v10 }
0x57a4   :  { %v3670_v56 = vadd.f32 %v3669_v14, %v3668_v17  ;;  %v4817_v14 = vsub.f32 %v12791_v36, %v13280_v30 }
0x57a5   :  { %v4241_v41 = vpop.permute.xlu1 %4240 }
0x57a6   :  { %v4243_v27 = vadd.f32 %v4241_v41, %v4235_v63  ;;  %v3671_v20 = vrot.slane %v3670_v56, 1  ;;  %v4821_v10 = vadd.f32 %v9272_v4, %v4817_v14 }
0x57a8   :  { %v7696_v3 = vadd.f32 -1.0, %v4243_v27  ;;  %v3672_v46 = vadd.f32 %v3671_v20, %v3670_v56 }
0x57aa   :  { %v4245_v62 = vmul.f32 %v7696_v3, %v12805_v47  ;;  %8900 = vpush %v3672_v46 }
0x57ab   :  { %8902 = vpush %v4016_v57  ;;  %v13282_v57 = vld [vmem:[#allocation56_spill] sm:$0xff] }
0x57ac   :  { %4247 = vrot.lane.b32.xlu0 %v4245_v62, %s9694_s7  ;;  %v5172_v62 = vadd.f32 %v12813_v16, %v13282_v57 }
0x57cb   :  { %4595 = vadd.xlane.f32.xlu0 %v4594_v54 }
0x57e1   :  { %4606 = vrot.lane.b32.xlu0 %v13279_v44, %s9691_s0 }
0x581e   :  { %v4248_v25 = vpop.permute.xlu0 %4247 }
0x581f   :  { %v4250_v7 = vsel %vm3068_vm9, %v4248_v25, 0.0  ;;  %v13284_v25 = vld [vmem:[#allocation57_spill] sm:$0xff] }
0x5820   :  { %4251 = vadd.xlane.f32.xlu1 %v4250_v7  ;;  %v5408_v7 = vsub.f32 %v13284_v25, %v12796_v1 }
0x5822   :  { %v5409_v30 = vmul.f32 %v12801_v39, %v5408_v7 }
0x5824   :  { %v5410_v52 = vmul.f32 %v5409_v30, %v5409_v30 }
0x5831   :  { %4610 = vrot.lane.b32.xlu1 %v13281_v38, %s9697_s9  ;;  %v5404_v38 = vsub.f32 %v13284_v25, %v12791_v36 }
0x5835   :  { %4826 = vrot.lane.b32.xlu1 %v4824_v53, %s9693_s30  ;;  %v5405_v53 = vmul.f32 1.442695, %v5404_v38 }
0x5837   :  { %9273 = vpow2.f32 %v5405_v53 }
0x5847   :  { %v12907_v32 = vpop.f32.mrf.mxu1 }
0x5849   :  { %v8893_v11 = vpop.f32.mrf.mxu1 }
0x5854   :  { %v4596_v18 = vpop.xlane.xlu0 %4595 }
0x5855   :  { %v4597_v19 = vrot.slane %v4596_v18, 4 }
0x5857   :  { %v4598_v48 = vadd.f32 %v4597_v19, %v4596_v18 }
0x5858   :  { %v4607_v13 = vpop.permute.xlu0 %4606 }
0x5859   :  { %v4599_v6 = vrot.slane %v4598_v48, 2  ;;  %v4613_v17 = vsel %vm363_vm0, %v4586_v59, %v4607_v13  ;;  %v5177_v59 = vsub.f32 %v7716_v15, %v5172_v62  ;;  %v9274_v13 = vpop.eup %9273 }
0x585b   :  { %v4600_v8 = vadd.f32 %v4599_v6, %v4598_v48  ;;  %v5178_v37 = vmul.f32 %v5177_v59, %v5177_v59 }
0x585d   :  { %v4601_v56 = vrot.slane %v4600_v8, 1  ;;  %v5179_v35 = vmul.f32 %v12805_v47, %v5178_v37 }
0x585f   :  { %v4602_v3 = vadd.f32 %v4601_v56, %v4600_v8  ;;  %v5180_v24 = vsel %vm363_vm0, %v5179_v35, 0.0  ;;  %v5403_v8 = vsub.f32 %v12791_v36, %v13284_v25 }
0x58a9   :  { %v4252_v34 = vpop.xlane.xlu1 %4251 }
0x58aa   :  { %v4253_v50 = vrot.slane %v4252_v34, 4 }
0x58ac   :  { %v4254_v45 = vadd.f32 %v4253_v50, %v4252_v34 }
0x58ad   :  { %v4611_v49 = vpop.permute.xlu1 %4610 }
0x58ae   :  { %v4255_v33 = vrot.slane %v4254_v45, 2  ;;  %v4614_v26 = vsel %vm3441_vm13, %v4613_v17, %v4611_v49 }
0x58af   :  { %7704 = vst.msk [vmem:[%s13080_s23 + $0x10] sm:$0xff] %vm3443_vm14, %v4614_v26 }
0x58b0   :  { %v4256_v31 = vadd.f32 %v4255_v33, %v4254_v45  ;;  %v5407_v33 = vadd.f32 %v9274_v13, %v5403_v8 }
0x58b1   :  { %v4827_v63 = vpop.permute.xlu1 %4826 }
0x58b2   :  { %v4829_v41 = vadd.f32 %v4827_v63, %v4821_v10  ;;  %v4257_v12 = vrot.slane %v4256_v31, 1 }
0x58b4   :  { %v7709_v27 = vadd.f32 -1.0, %v4829_v41  ;;  %v4258_v20 = vadd.f32 %v4257_v12, %v4256_v31 }
0x58b6   :  { %v4831_v46 = vmul.f32 %v7709_v27, %v12805_v47  ;;  %8904 = vpush %v4258_v20  ;;  %v5758_v20 = vadd.f32 %v12813_v16, %v12266_v40  ;;  %v5994_v40 = vsub.f32 %v12292_v43, %v12796_v1 }
0x58b7   :  { %8906 = vpush %v4602_v3  ;;  %v7729_v3 = vld [vmem:[%s13273_s26 + $0x20] sm:$0xff] }
0x58b8   :  { %4833 = vrot.lane.b32.xlu0 %v4831_v46, %s9694_s7  ;;  %v5763_v46 = vsub.f32 %v7729_v3, %v5758_v20  ;;  %v5995_v35 = vmul.f32 %v12801_v39, %v5994_v40 }
0x58ba   :  { %v5764_v57 = vmul.f32 %v5763_v46, %v5763_v46 }
0x58d7   :  { %5181 = vadd.xlane.f32.xlu0 %v5180_v24  ;;  %v13286_v24 = vld [vmem:[#allocation58_spill] sm:$0xff] }
0x58ed   :  { %5192 = vrot.lane.b32.xlu0 %v13283_v28, %s9691_s0  ;;  %v5996_v28 = vmul.f32 %v5995_v35, %v5995_v35 }
0x592a   :  { %v4834_v54 = vpop.permute.xlu0 %4833 }
0x592b   :  { %v4836_v44 = vsel %vm3068_vm9, %v4834_v54, 0.0  ;;  %v5990_v54 = vsub.f32 %v12292_v43, %v12791_v36 }
0x592c   :  { %4837 = vadd.xlane.f32.xlu1 %v4836_v44 }
0x592d   :  { %v5991_v44 = vmul.f32 1.442695, %v5990_v54 }
0x592f   :  { %9275 = vpow2.f32 %v5991_v44  ;;  %v6575_v44 = vsub.f32 %v12791_v36, %v12575_v29 }
0x593d   :  { %5196 = vrot.lane.b32.xlu1 %v13285_v55, %s9697_s9 }
0x5941   :  { %5412 = vrot.lane.b32.xlu1 %v5410_v52, %s9693_s30 }
0x5960   :  { %v5182_v11 = vpop.xlane.xlu0 %5181 }
0x5961   :  { %v5183_v51 = vrot.slane %v5182_v11, 4 }
0x5963   :  { %v5184_v58 = vadd.f32 %v5183_v51, %v5182_v11  ;;  %v9276_v11 = vpop.eup %9275 }
0x5964   :  { %v5193_v48 = vpop.permute.xlu0 %5192 }
0x5965   :  { %v5185_v18 = vrot.slane %v5184_v58, 2  ;;  %v5199_v50 = vsel %vm363_vm0, %v5172_v62, %v5193_v48  ;;  %v5765_v62 = vmul.f32 %v12805_v47, %v5764_v57 }
0x5967   :  { %v5186_v4 = vadd.f32 %v5185_v18, %v5184_v58  ;;  %v5766_v15 = vsel %vm363_vm0, %v5765_v62, 0.0 }
0x5969   :  { %v5187_v10 = vrot.slane %v5186_v4, 1 }
0x596b   :  { %v5188_v12 = vadd.f32 %v5187_v10, %v5186_v4 }
0x59b5   :  { %v4838_v19 = vpop.xlane.xlu1 %4837 }
0x59b6   :  { %v4839_v6 = vrot.slane %v4838_v19, 4 }
0x59b8   :  { %v4840_v34 = vadd.f32 %v4839_v6, %v4838_v19  ;;  %v5989_v6 = vsub.f32 %v12791_v36, %v12292_v43  ;;  %v6344_v43 = vadd.f32 %v12813_v16, %v12522_v9 }
0x59b9   :  { %v5197_v45 = vpop.permute.xlu1 %5196 }
0x59ba   :  { %v4841_v17 = vrot.slane %v4840_v34, 2  ;;  %v5200_v49 = vsel %vm3441_vm13, %v5199_v50, %v5197_v45 }
0x59bb   :  { %7717 = vst.msk [vmem:[%s13080_s23 + $0x18] sm:$0xff] %vm3443_vm14, %v5200_v49 }
0x59bc   :  { %v4842_v26 = vadd.f32 %v4841_v17, %v4840_v34  ;;  %v5993_v34 = vadd.f32 %v9276_v11, %v5989_v6 }
0x59bd   :  { %v5413_v14 = vpop.permute.xlu1 %5412 }
0x59be   :  { %v5415_v31 = vadd.f32 %v5413_v14, %v5407_v33  ;;  %v4843_v63 = vrot.slane %v4842_v26, 1  ;;  %v7742_v14 = vld [vmem:[%s13273_s26 + $0x28] sm:$0xff] }
0x59bf   :  { %v6349_v10 = vsub.f32 %v7742_v14, %v6344_v43 }
0x59c0   :  { %v7722_v56 = vadd.f32 -1.0, %v5415_v31  ;;  %v4844_v41 = vadd.f32 %v4843_v63, %v4842_v26 }
0x59c1   :  { %v6350_v31 = vmul.f32 %v6349_v10, %v6349_v10  ;;  %v7516_v10 = vadd.f32 %v12813_v16, %v12907_v32 }
0x59c2   :  { %v5417_v27 = vmul.f32 %v7722_v56, %v12805_v47  ;;  %8908 = vpush %v4844_v41 }
0x59c3   :  { %8910 = vpush %v5188_v12  ;;  %v6351_v63 = vmul.f32 %v12805_v47, %v6350_v31  ;;  %v6580_v12 = vsub.f32 %v12575_v29, %v12796_v1  ;;  %v7768_v31 = vld [vmem:[%s13273_s26 + $0x38] sm:$0xff] }
0x59c4   :  { %5419 = vrot.lane.b32.xlu0 %v5417_v27, %s9694_s7 }
0x59c5   :  { %v6352_v56 = vsel %vm363_vm0, %v6351_v63, 0.0  ;;  %v6581_v27 = vmul.f32 %v12801_v39, %v6580_v12  ;;  %v7521_v63 = vsub.f32 %v7768_v31, %v7516_v10 }
0x59c7   :  { %v6582_v3 = vmul.f32 %v6581_v27, %v6581_v27 }
0x59e3   :  { %5767 = vadd.xlane.f32.xlu0 %v5766_v15 }
0x59f9   :  { %5778 = vrot.lane.b32.xlu0 %v12204_v22, %s9691_s0 }
0x5a36   :  { %v5420_v59 = vpop.permute.xlu0 %5419 }
0x5a37   :  { %v5422_v37 = vsel %vm3068_vm9, %v5420_v59, 0.0 }
0x5a38   :  { %5423 = vadd.xlane.f32.xlu1 %v5422_v37 }
0x5a49   :  { %5782 = vrot.lane.b32.xlu1 %v13286_v24, %s9697_s9 }
0x5a4d   :  { %5998 = vrot.lane.b32.xlu1 %v5996_v28, %s9693_s30 }
0x5a6c   :  { %v5768_v22 = vpop.xlane.xlu0 %5767 }
0x5a6d   :  { %v5769_v25 = vrot.slane %v5768_v22, 4 }
0x5a6f   :  { %v5770_v7 = vadd.f32 %v5769_v25, %v5768_v22 }
0x5a70   :  { %v5779_v52 = vpop.permute.xlu0 %5778 }
0x5a71   :  { %v5771_v30 = vrot.slane %v5770_v7, 2  ;;  %v5785_v51 = vsel %vm363_vm0, %v5758_v20, %v5779_v52  ;;  %v7166_v20 = vsub.f32 %v12730_v60, %v12796_v1  ;;  %v6576_v1 = vsub.f32 %v12575_v29, %v12791_v36 }
0x5a72   :  { %v6930_v29 = vadd.f32 %v12813_v16, %v12707_v42 }
0x5a73   :  { %v5772_v18 = vadd.f32 %v5771_v30, %v5770_v7  ;;  %v7167_v46 = vmul.f32 %v12801_v39, %v7166_v20  ;;  %v6577_v39 = vmul.f32 1.442695, %v6576_v1 }
0x5a75   :  { %v5773_v45 = vrot.slane %v5772_v18, 1  ;;  %9277 = vpow2.f32 %v6577_v39 }
0x5a77   :  { %v5774_v33 = vadd.f32 %v5773_v45, %v5772_v18  ;;  %v7162_v45 = vsub.f32 %v12730_v60, %v12791_v36 }
0x5a82   :  { %v9278_v35 = vpop.eup %9277 }
0x5a83   :  { %v6579_v25 = vadd.f32 %v9278_v35, %v6575_v44 }
0x5ac1   :  { %v5424_v55 = vpop.xlane.xlu1 %5423 }
0x5ac2   :  { %v5425_v38 = vrot.slane %v5424_v55, 4 }
0x5ac4   :  { %v5426_v53 = vadd.f32 %v5425_v38, %v5424_v55 }
0x5ac5   :  { %v5783_v58 = vpop.permute.xlu1 %5782 }
0x5ac6   :  { %v5427_v19 = vrot.slane %v5426_v53, 2  ;;  %v5786_v48 = vsel %vm3441_vm13, %v5785_v51, %v5783_v58 }
0x5ac7   :  { %7730 = vst.msk [vmem:[%s13080_s23 + $0x20] sm:$0xff] %vm3443_vm14, %v5786_v48  ;;  %v7755_v48 = vld [vmem:[%s13273_s26 + $0x30] sm:$0xff] }
0x5ac8   :  { %v5428_v13 = vadd.f32 %v5427_v19, %v5426_v53  ;;  %v6935_v6 = vsub.f32 %v7755_v48, %v6930_v29 }
0x5ac9   :  { %v5999_v50 = vpop.permute.xlu1 %5998 }
0x5aca   :  { %v6001_v4 = vadd.f32 %v5999_v50, %v5993_v34  ;;  %v5429_v17 = vrot.slane %v5428_v13, 1  ;;  %v6936_v34 = vmul.f32 %v6935_v6, %v6935_v6 }
0x5acc   :  { %v7735_v49 = vadd.f32 -1.0, %v6001_v4  ;;  %v5430_v8 = vadd.f32 %v5429_v17, %v5428_v13  ;;  %v6937_v13 = vmul.f32 %v12805_v47, %v6936_v34  ;;  %v7163_v4 = vmul.f32 1.442695, %v7162_v45 }
0x5ace   :  { %v6003_v26 = vmul.f32 %v7735_v49, %v12805_v47  ;;  %8912 = vpush %v5430_v8  ;;  %v6938_v50 = vsel %vm363_vm0, %v6937_v13, 0.0  ;;  %9279 = vpow2.f32 %v7163_v4 }
0x5acf   :  { %8914 = vpush %v5774_v33  ;;  %v7161_v33 = vsub.f32 %v12791_v36, %v12730_v60 }
0x5ad0   :  { %6005 = vrot.lane.b32.xlu0 %v6003_v26, %s9694_s7 }
0x5adb   :  { %v9280_v8 = vpop.eup %9279 }
0x5adc   :  { %v7165_v26 = vadd.f32 %v9280_v8, %v7161_v33 }
0x5aef   :  { %6353 = vadd.xlane.f32.xlu0 %v6352_v56  ;;  %v7522_v56 = vmul.f32 %v7521_v63, %v7521_v63 }
0x5af1   :  { %v7523_v60 = vmul.f32 %v12805_v47, %v7522_v56 }
0x5af3   :  { %v7524_v36 = vsel %vm363_vm0, %v7523_v60, 0.0 }
0x5b05   :  { %6364 = vrot.lane.b32.xlu0 %v12353_v2, %s9691_s0  ;;  %v7168_v2 = vmul.f32 %v7167_v46, %v7167_v46 }
0x5b09   :  { %6368 = vrot.lane.b32.xlu0 %v12300_v61, %s9697_s9 }
0x5b42   :  { %v6006_v41 = vpop.permute.xlu0 %6005 }
0x5b43   :  { %v6008_v9 = vsel %vm3068_vm9, %v6006_v41, 0.0 }
0x5b44   :  { %6009 = vadd.xlane.f32.xlu1 %v6008_v9 }
0x5b55   :  { %6584 = vrot.lane.b32.xlu1 %v6582_v3, %s9693_s30 }
0x5b59   :  { %7170 = vrot.lane.b32.xlu1 %v7168_v2, %s9693_s30  ;;  %s9617_s30 = scalar_lea.vmem %s7573_s16, 16 }
0x5b5a   :  { %p9618_p13 = scmp.ne.s32.totalorder %s7573_s16, %s9617_s30  ;;  %p9623_p1 = scmp.lt.s32.totalorder %s9621_s19, %s9617_s30 }
0x5b5c   :  { %p9624_p2 = por %p9623_p1, %p9622_p0 }
0x5b5e   :  { %p9625_p3 = pnand %p9624_p2, %p9618_p13 }
0x5b78   :  { %v6354_v61 = vpop.xlane.xlu0 %6353 }
0x5b79   :  { %v6355_v37 = vrot.slane %v6354_v61, 4 }
0x5b7b   :  { %v6356_v40 = vadd.f32 %v6355_v37, %v6354_v61 }
0x5b7c   :  { %v6365_v57 = vpop.permute.xlu0 %6364 }
0x5b7d   :  { %v6371_v62 = vsel %vm363_vm0, %v6344_v43, %v6365_v57  ;;  %v6357_v24 = vrot.slane %v6356_v40, 2 }
0x5b7f   :  { %v6358_v30 = vadd.f32 %v6357_v24, %v6356_v40 }
0x5b80   :  { %v6369_v15 = vpop.permute.xlu0 %6368 }
0x5b81   :  { %v6372_v59 = vsel %vm3441_vm13, %v6371_v62, %v6369_v15  ;;  %v6359_v11 = vrot.slane %v6358_v30, 1 }
0x5b82   :  { %7743 = vst.msk [vmem:[%s13080_s23 + $0x28] sm:$0xff] %vm3443_vm14, %v6372_v59 }
0x5b83   :  { %v6360_v19 = vadd.f32 %v6359_v11, %v6358_v30 }
0x5bcd   :  { %v6010_v28 = vpop.xlane.xlu1 %6009 }
0x5bce   :  { %v6011_v54 = vrot.slane %v6010_v28, 4 }
0x5bd0   :  { %v6012_v22 = vadd.f32 %v6011_v54, %v6010_v28 }
0x5bd1   :  { %v6585_v7 = vpop.permute.xlu1 %6584 }
0x5bd2   :  { %v6013_v55 = vrot.slane %v6012_v22, 2  ;;  %v6587_v52 = vadd.f32 %v6585_v7, %v6579_v25 }
0x5bd4   :  { %v7748_v38 = vadd.f32 -1.0, %v6587_v52  ;;  %v6014_v53 = vadd.f32 %v6013_v55, %v6012_v22 }
0x5bd5   :  { %v7171_v17 = vpop.permute.xlu1 %7170 }
0x5bd6   :  { %v6589_v51 = vmul.f32 %v7748_v38, %v12805_v47  ;;  %v6015_v58 = vrot.slane %v6014_v53, 1  ;;  %v7173_v43 = vadd.f32 %v7171_v17, %v7165_v26 }
0x5bd8   :  { %6591 = vrot.lane.b32.xlu1 %v6589_v51, %s9694_s7  ;;  %v6016_v18 = vadd.f32 %v6015_v58, %v6014_v53  ;;  %v7761_v14 = vadd.f32 -1.0, %v7173_v43 }
0x5bda   :  { %8916 = vpush %v6016_v18 }
0x5bdb   :  { %8918 = vpush %v6360_v19 }
0x5bfc   :  { %6939 = vadd.xlane.f32.xlu1 %v6938_v50 }
0x5c0d   :  { %6954 = vrot.lane.b32.xlu1 %v12583_v23, %s9697_s9  ;;  %v7175_v23 = vmul.f32 %v7761_v14, %v12805_v47 }
0x5c4a   :  { %v6592_v42 = vpop.permute.xlu1 %6591 }
0x5c4b   :  { %v6594_v49 = vsel %vm3068_vm9, %v6592_v42, 0.0 }
0x5c4c   :  { %6595 = vadd.xlane.f32.xlu0 %v6594_v49 }
0x5c62   :  { %6950 = vrot.lane.b32.xlu0 %v12642_v5, %s9691_s0 }
0x5c66   :  { %7177 = vrot.lane.b32.xlu0 %v7175_v23, %s9694_s7 }
0x5c85   :  { %7525 = vadd.xlane.f32.xlu0 %v7524_v36  ;;  %v6940_v5 = vpop.xlane.xlu1 %6939 }
0x5c86   :  { %v6941_v41 = vrot.slane %v6940_v5, 4 }
0x5c88   :  { %v6942_v9 = vadd.f32 %v6941_v41, %v6940_v5 }
0x5c89   :  { %v6955_v46 = vpop.permute.xlu1 %6954 }
0x5c8a   :  { %v6943_v12 = vrot.slane %v6942_v9, 2 }
0x5c8c   :  { %v6944_v3 = vadd.f32 %v6943_v12, %v6942_v9 }
0x5c8e   :  { %v6945_v62 = vrot.slane %v6944_v3, 1 }
0x5c90   :  { %v6946_v39 = vadd.f32 %v6945_v62, %v6944_v3 }
0x5c9b   :  { %7536 = vrot.lane.b32.xlu0 %v12857_v21, %s9691_s0 }
0x5cd5   :  { %v6596_v27 = vpop.xlane.xlu0 %6595 }
0x5cd6   :  { %v6597_v16 = vrot.slane %v6596_v27, 4 }
0x5cd8   :  { %v6598_v32 = vadd.f32 %v6597_v16, %v6596_v27 }
0x5cd9   :  { %v6951_v20 = vpop.permute.xlu0 %6950 }
0x5cda   :  { %v6599_v2 = vrot.slane %v6598_v32, 2  ;;  %v6957_v61 = vsel %vm363_vm0, %v6930_v29, %v6951_v20 }
0x5cdb   :  { %v6958_v47 = vsel %vm3441_vm13, %v6957_v61, %v6955_v46 }
0x5cdc   :  { %7756 = vst.msk [vmem:[%s13080_s23 + $0x30] sm:$0xff] %vm3443_vm14, %v6958_v47  ;;  %v6600_v21 = vadd.f32 %v6599_v2, %v6598_v32 }
0x5cdd   :  { %v7178_v57 = vpop.permute.xlu0 %7177 }
0x5cde   :  { %v7180_v15 = vsel %vm3068_vm9, %v7178_v57, 0.0  ;;  %v6601_v59 = vrot.slane %v6600_v21, 1 }
0x5cdf   :  { %7181 = vadd.xlane.f32.xlu1 %v7180_v15 }
0x5ce0   :  { %v6602_v1 = vadd.f32 %v6601_v59, %v6600_v21 }
0x5ce2   :  { %8920 = vpush %v6602_v1 }
0x5ce3   :  { %8922 = vpush %v6946_v39 }
0x5cf0   :  { %7540 = vrot.lane.b32.xlu1 %v12738_v0, %s9697_s9  ;;  %s8895_s9 = spop %8894 }
0x5cf1   :  { %s8897_s18 = spop %8896  ;;  %v2768_v18 = vstv %s8895_s9 }
0x5cf2   :  { %s8899_s15 = spop %8898  ;;  %v3079_v58 = vstv %s8897_s18  ;;  %v2769_v6 = vmul.f32 0.5, %v2768_v18 }
0x5cf3   :  { %s8901_s5 = spop %8900  ;;  %v3080_v29 = vmul.f32 0.5, %v3079_v58  ;;  %v3431_v4 = vstv %s8899_s15 }
0x5cf4   :  { %s8903_s12 = spop %8902  ;;  %v3674_v19 = vstv %s8901_s5 }
0x5cf5   :  { %s8905_s10 = spop %8904  ;;  %v3675_v34 = vmul.f32 0.5, %v3674_v19  ;;  %v4018_v13 = vstv %s8903_s12  ;;  %v3081_v45 = vadd.f32 %v3080_v29, %v2769_v6 }
0x5cf6   :  { %s8907_s1 = spop %8906  ;;  %v4260_v48 = vstv %s8905_s10  ;;  %v4019_v49 = vadd.f32 %v4018_v13, %v3431_v4 }
0x5cf7   :  { %s8909_s8 = spop %8908  ;;  %v4261_v17 = vmul.f32 0.5, %v4260_v48  ;;  %v4604_v42 = vstv %s8907_s1  ;;  %v3676_v33 = vadd.f32 %v3675_v34, %v3081_v45 }
0x5cf8   :  { %s8911_s20 = spop %8910  ;;  %v4846_v50 = vstv %s8909_s8  ;;  %v4605_v14 = vadd.f32 %v4604_v42, %v4019_v49 }
0x5cf9   :  { %v4847_v26 = vmul.f32 0.5, %v4846_v50  ;;  %v5190_v43 = vstv %s8911_s20 }
0x5cfa   :  { %v5191_v56 = vadd.f32 %v5190_v43, %v4605_v14 }
0x5d0e   :  { %v7526_v37 = vpop.xlane.xlu0 %7525 }
0x5d0f   :  { %v7527_v40 = vrot.slane %v7526_v37, 4 }
0x5d11   :  { %v7528_v35 = vadd.f32 %v7527_v40, %v7526_v37 }
0x5d12   :  { %v7537_v54 = vpop.permute.xlu0 %7536 }
0x5d13   :  { %v7529_v24 = vrot.slane %v7528_v35, 2  ;;  %v7543_v25 = vsel %vm363_vm0, %v7516_v10, %v7537_v54  ;;  %v4262_v10 = vadd.f32 %v4261_v17, %v3676_v33 }
0x5d15   :  { %v7530_v30 = vadd.f32 %v7529_v24, %v7528_v35  ;;  %v4848_v36 = vadd.f32 %v4847_v26, %v4262_v10 }
0x5d17   :  { %v7531_v38 = vrot.slane %v7530_v30, 1 }
0x5d19   :  { %v7532_v51 = vadd.f32 %v7531_v38, %v7530_v30 }
0x5d68   :  { %v7182_v28 = vpop.xlane.xlu1 %7181 }
0x5d69   :  { %v7183_v44 = vrot.slane %v7182_v28, 4 }
0x5d6b   :  { %v7184_v22 = vadd.f32 %v7183_v44, %v7182_v28 }
0x5d6c   :  { %v7541_v7 = vpop.permute.xlu1 %7540 }
0x5d6d   :  { %v7185_v55 = vrot.slane %v7184_v22, 2  ;;  %v7544_v52 = vsel %vm3441_vm13, %v7543_v25, %v7541_v7 }
0x5d6e   :  { %7769 = vst.msk [vmem:[%s13080_s23 + $0x38] sm:$0xff] %vm3443_vm14, %v7544_v52  ;;  %s8913_s23 = spop %8912 }
0x5d6f   :  { %v7186_v0 = vadd.f32 %v7185_v55, %v7184_v22  ;;  %s8915_s4 = spop %8914  ;;  %v5432_v8 = vstv %s8913_s23 }
0x5d70   :  { %s8917_s6 = spop %8916  ;;  %v5433_v31 = vmul.f32 0.5, %v5432_v8  ;;  %v5776_v63 = vstv %s8915_s4 }
0x5d71   :  { %v7187_v53 = vrot.slane %v7186_v0, 1  ;;  %s8919_s28 = spop %8918  ;;  %v6018_v23 = vstv %s8917_s6  ;;  %v5777_v9 = vadd.f32 %v5776_v63, %v5191_v56 }
0x5d72   :  { %s8921_s11 = spop %8920  ;;  %v6019_v5 = vmul.f32 0.5, %v6018_v23  ;;  %v6362_v41 = vstv %s8919_s28  ;;  %v5434_v12 = vadd.f32 %v5433_v31, %v4848_v36 }
0x5d73   :  { %v7188_v11 = vadd.f32 %v7187_v53, %v7186_v0  ;;  %v6604_v60 = vstv %s8921_s11  ;;  %s8923_s29 = spop %8922  ;;  %v6363_v32 = vadd.f32 %v6362_v41, %v5777_v9 }
0x5d74   :  { %v6605_v27 = vmul.f32 0.5, %v6604_v60  ;;  %v6948_v16 = vstv %s8923_s29  ;;  %v6020_v20 = vadd.f32 %v6019_v5, %v5434_v12 }
0x5d75   :  { %8924 = vpush %v7188_v11  ;;  %v6949_v3 = vadd.f32 %v6948_v16, %v6363_v32 }
0x5d76   :  { %8926 = vpush %v7532_v51  ;;  %v6606_v2 = vadd.f32 %v6605_v27, %v6020_v20 }
0x5da6   :  { %s8925_s14 = spop %8924 }
0x5da7   :  { %v7190_v46 = vstv %s8925_s14  ;;  %s8927_s27 = spop %8926 }
0x5da8   :  { %v7191_v61 = vmul.f32 0.5, %v7190_v46  ;;  %v7534_v47 = vstv %s8927_s27 }
0x5da9   :  { %v7535_v21 = vadd.f32 %v7534_v47, %v6949_v3 }
0x5daa   :  { %v7192_v57 = vadd.f32 %v7191_v61, %v6606_v2 }
0x5dab   :  { %v7552_v62 = vmul.f32 0.00390625, %v7535_v21 }
0x5dac   :  { %v7548_v15 = vmul.f32 0.5, %v7192_v57 }
0x5dad   :  { %7553 = vst.msk [vmem:[#allocation24] sm:$0x1] %vm7549_vm15, %v7552_v62 }
0x5dae   :  { %7550 = vst.msk [vmem:[#allocation23] sm:$0x1] %vm7549_vm15, %v7548_v15 }
0x5daf   :  { %9628 = shalt.err (!%p9625_p3)
}
0x5db0   :  { %7575 = dma.vmem_to_hbm [thread:$0]  %s7573_s16, 16, %s13082_s25, [#allocation25]  }
0x5db1   :  { %s9637_s7 = scalar_lea.vmem %s7563_s22, 16  ;;  %s9641_s26 = scalar_lea.vmem %s7563_s22, 32 }
0x5db2   :  { %p9638_p4 = scmp.ne.s32.totalorder %s7563_s22, %s9637_s7  ;;  %p9642_p5 = scmp.lt.s32.totalorder %s7563_s22, %s7563_s22 }
0x5db3   :  { %p9643_p6 = scmp.lt.s32.totalorder %s9641_s26, %s9637_s7 }
0x5db5   :  { %p9644_p7 = por %p9643_p6, %p9642_p5 }
0x5db7   :  { %p9645_p8 = pnand %p9644_p7, %p9638_p4 }
0x5db9   :  { %9648 = shalt.err (!%p9645_p8)
}
0x5dba   :  { %7565 = dma.vmem_to_hbm [thread:$0]  %s7563_s22, 16, %s13081_s24, [#allocation6]  }
0x5dbb   :  { %9671 = dma.done.wait [#allocation6], 16  }
0x5dbc   :  { %9672 = vsyncadd [#allocation6], 4294967280 }
0x5dbd   :  { %9673 = dma.done.wait [#allocation25], 16  }
0x5dbe   :  { %9674 = vsyncadd [#allocation25], 4294967280 }
0x5dbf   :  { %7584 = vsyncpa [#allocation5], 1 }
0x5dc0   :  { %7585 = vsyncpa [#allocation10], 1 }
0x5dc1   :  { %7586 = vsyncpa [#allocation13], 1 }
0x5dc2   :  { %7587 = vsyncpa [#allocation16], 1 }
0x5dc3   :  { %7588 = vsyncpa [#allocation19], 1 }
0x5dc4   :  { %7589 = vsyncpa [#allocation22], 1 }
0x5dc5   :  { %7590 = vsyncpa [#allocation6], 1 }
0x5dc6   :  { %7591 = vsyncpa [#allocation25], 1 }
0x5dc7   :  { %7592 = vsyncpa [#allocation7], 1 }

</bundles_post_ra>
